<compile_context>
chip_gen: v5e
topology: v5e:2x2
jax: 0.10.0
libtpu: 0.0.40
codegen_flags: <defaults>
</compile_context>

<pallas_src>
import functools

import jax
import jax.numpy as jnp
from jax.experimental import pallas as pl
from jax.experimental.pallas import tpu as pltpu

C1, C2, C3, C_MSA, T_MSA = 64, 128, 64, 32, 8
LANE = 128


# --------------------------------------------------------------------------
# shared in-kernel helpers
# --------------------------------------------------------------------------
def _maxpool_rows(x, pool):
    # x: (T, C) channel-last -> (T//pool, C).  Each group is a sublane-axis
    # reduce over `pool` consecutive rows (lane-dense, no unaligned reshape).
    n_out = x.shape[0] // pool
    rows = [jnp.max(x[pool * r:pool * r + pool, :], axis=0, keepdims=True)
            for r in range(n_out)]
    return jnp.concatenate(rows, axis=0)


# --------------------------------------------------------------------------
# Pallas call #1: conv1 + folded-BN + ReLU + MaxPool1d(8,8)
# --------------------------------------------------------------------------
def _conv1_pool_kernel(x_ref, w_ref, b_ref, o_ref, *, t_valid, pool):
    # x: (TP, K) bf16   w: (K, 128) bf16 (BN scale folded)   b: (1, 128) f32
    # o: (t_valid // pool, 128) f32
    y = jnp.dot(x_ref[...], w_ref[...], preferred_element_type=jnp.float32)
    y = jnp.maximum(y + b_ref[...], 0.0)
    o_ref[...] = _maxpool_rows(y[:t_valid, :], pool)


def conv1_bn_relu_pool(patches, w, b, *, t_valid, pool):
    B, tp, k = patches.shape
    n_cols = w.shape[1]
    n_out = t_valid // pool
    kernel = functools.partial(_conv1_pool_kernel, t_valid=t_valid, pool=pool)
    return pl.pallas_call(
        kernel,
        out_shape=jax.ShapeDtypeStruct((B, n_out, n_cols), jnp.float32),
        grid=(B,),
        in_specs=[
            pl.BlockSpec((None, tp, k), lambda i: (i, 0, 0)),
            pl.BlockSpec((k, n_cols), lambda i: (0, 0)),
            pl.BlockSpec((1, n_cols), lambda i: (0, 0)),
        ],
        out_specs=pl.BlockSpec((None, n_out, n_cols), lambda i: (i, 0, 0)),
        compiler_params=pltpu.CompilerParams(
            dimension_semantics=("parallel",)),
    )(patches, w, b)


# --------------------------------------------------------------------------
# Pallas call #2: fused tail (conv2 / conv3 / pool / MSA / SE / fc head)
# --------------------------------------------------------------------------
def _tail_kernel(a1_ref, w2_ref, b2_ref, w3_ref, b3_ref,
                 wm1_ref, bm1_ref, wm2_ref, bm2_ref, wm3_ref, bm3_ref,
                 wse1_ref, wse2_ref,
                 wf1_ref, bf1_ref, wf2_ref, bf2_ref, wo_ref, bo_ref,
                 feat_ref, logit_ref, *, c1):
    B = a1_ref.shape[0]

    def conv_block(x, w_ref, b_ref, k, dil):
        # x: (B, T, Cin) channel-last. y = relu(conv(x) folded with BN).
        # im2col built in VMEM from k shifted slices (rows (tap, cin) match the
        # weight matrix prep); one rank-2 MXU dot per batch element.
        _, t_in, _ = x.shape
        t_out = t_in - dil * (k - 1)
        w = w_ref[...]
        b = b_ref[...]
        outs = []
        for bi in range(x.shape[0]):
            xb = x[bi]
            patches = jnp.concatenate(
                [xb[j * dil:j * dil + t_out, :] for j in range(k)], axis=-1)
            y = jnp.dot(patches, w, preferred_element_type=jnp.float32) + b
            outs.append(jnp.maximum(y, 0.0))
        return jnp.stack(outs, axis=0)

    # conv1 output: (B, 57, 128) with only the first c1 (=64) lanes valid.
    x = a1_ref[...][:, :, :c1]                           # (B, 57, 64)
    x = conv_block(x, w2_ref, b2_ref, k=7, dil=1)        # (B, 51, 128)
    x = conv_block(x, w3_ref, b3_ref, k=7, dil=1)        # (B, 45, 64)

    # MaxPool1d(4, 4): 45 -> 11
    x = jnp.stack([_maxpool_rows(x[bi], 4) for bi in range(B)], axis=0)

    # MSA: three dilated conv branches, concatenated along time.
    x1 = conv_block(x, wm1_ref, bm1_ref, k=5, dil=2)     # (B, 3, 32)
    x2 = conv_block(x, wm2_ref, bm2_ref, k=4, dil=3)     # (B, 2, 32)
    x3 = conv_block(x, wm3_ref, bm3_ref, k=3, dil=4)     # (B, 3, 32)
    cat = jnp.concatenate([x1, x2, x3], axis=1)          # (B, 8, 32)

    # SE gate entirely on VPU/EUP (bottleneck width is 2; an MXU pass would be
    # pure fill/drain latency).
    y = jnp.mean(cat, axis=1)                            # (B, 32)
    wse1 = wse1_ref[...]                                 # (2, 32)
    wse2 = wse2_ref[...]                                 # (2, 32)
    h0a = jnp.maximum(jnp.sum(y * wse1[0:1, :], axis=1, keepdims=True), 0.0)
    h0b = jnp.maximum(jnp.sum(y * wse1[1:2, :], axis=1, keepdims=True), 0.0)
    gate = jax.nn.sigmoid(h0a * wse2[0:1, :] + h0b * wse2[1:2, :])   # (B, 32)
    cat = cat * gate[:, None, :]                         # (B, 8, 32)

    # Flatten via lane-concat; fc1 columns were pre-permuted in the glue so the
    # (t, c) order here matches PyTorch's (c, t) Flatten.
    flat = jnp.concatenate([cat[:, t, :] for t in range(cat.shape[1])],
                           axis=-1)                      # (B, 256)

    # Fused MLP head: fc1+ReLU, fc2+ReLU, out (out padded to 128 lanes for an
    # unmasked store; sliced back to num_classes in the glue).
    h1 = jnp.maximum(
        jnp.dot(flat, wf1_ref[...], preferred_element_type=jnp.float32)
        + bf1_ref[...], 0.0)                             # (B, 512)
    feats = jnp.maximum(
        jnp.dot(h1, wf2_ref[...], preferred_element_type=jnp.float32)
        + bf2_ref[...], 0.0)                             # (B, 128)
    feat_ref[...] = feats
    logit_ref[...] = (
        jnp.dot(feats, wo_ref[...], preferred_element_type=jnp.float32)
        + bo_ref[...])


# --------------------------------------------------------------------------
# JAX glue: weight preparation (BN fold, im2col-compatible weight matrices)
# --------------------------------------------------------------------------
def fold_bn(conv_bias, gamma, beta, mean, var, eps=1e-5):
    scale = gamma / jnp.sqrt(var + eps)
    bias = (conv_bias - mean) * scale + beta
    return scale, bias


def conv_weight_matrix(w, scale, pad_cols_to=None):
    # (Cout, Cin, k) PyTorch conv weight -> (k*Cin, Cout) matmul weight with
    # the BN scale folded in; rows ordered (tap, cin) to match the in-kernel
    # im2col (concat of shifted channel slices).
    cout, cin, k = w.shape
    wm = w.transpose(2, 1, 0).reshape(k * cin, cout) * scale[None, :]
    if pad_cols_to is not None and pad_cols_to > cout:
        wm = jnp.pad(wm, ((0, 0), (0, pad_cols_to - cout)))
    return wm


def row_bias(b, pad_to=None):
    if pad_to is not None and pad_to > b.shape[0]:
        b = jnp.pad(b, (0, pad_to - b.shape[0]))
    return b.reshape(1, -1)


def conv1_im2col(x, k, stride, t_pad_to):
    # Slice-based sliding window (k is a multiple of stride): no XLA gather,
    # no extra index tensor.
    B, _, L = x.shape
    l_out = (L - k) // stride + 1
    nblk = k // stride
    usable = stride * (l_out - 1) + k
    xb = x[:, 0, :usable].reshape(B, usable // stride, stride)
    patches = jnp.concatenate([xb[:, j:j + l_out, :] for j in range(nblk)],
                              axis=-1)                   # (B, l_out, k)
    patches = jnp.pad(patches, ((0, 0), (0, t_pad_to - l_out), (0, 0)))
    return patches, l_out


def maf_cnn_forward(params, x):
    p = params
    num_classes = p["out_w"].shape[0]
    B = x.shape[0]

    # ---------------- Pallas call #1: conv1 + BN + ReLU + MaxPool(8) --------
    k1, stride1 = p["c1_w"].shape[2], 32
    l_out1 = (x.shape[2] - k1) // stride1 + 1            # 461
    t_pad = pl.cdiv(l_out1, LANE) * LANE                 # 512
    patches, _ = conv1_im2col(x.astype(jnp.bfloat16), k1, stride1, t_pad)

    sc1, bs1 = fold_bn(p["c1_b"], *p["bn1"])
    w1m = conv_weight_matrix(p["c1_w"], sc1, pad_cols_to=LANE).astype(jnp.bfloat16)
    b1v = row_bias(bs1, pad_to=LANE)
    t_valid = (l_out1 // 8) * 8                          # 456
    a1 = conv1_bn_relu_pool(patches, w1m, b1v, t_valid=t_valid, pool=8)
    # a1: (B, 57, 128) channel-last, lanes >= 64 are zero.
    # TODO(synk): nn.Dropout is identity in eval mode; training-mode dropout
    # masks are not implemented.

    # ---------------- Pallas call #2: fused tail -----------------------------
    sc2, bs2 = fold_bn(p["c2_b"], *p["bn2"])
    sc3, bs3 = fold_bn(p["c3_b"], *p["bn3"])
    scm1, bsm1 = fold_bn(p["m1_b"], *p["mbn1"])
    scm2, bsm2 = fold_bn(p["m2_b"], *p["mbn2"])
    scm3, bsm3 = fold_bn(p["m3_b"], *p["mbn3"])

    w2m, b2v = conv_weight_matrix(p["c2_w"], sc2), row_bias(bs2)
    w3m, b3v = conv_weight_matrix(p["c3_w"], sc3), row_bias(bs3)
    wm1, bm1 = conv_weight_matrix(p["m1_w"], scm1), row_bias(bsm1)
    wm2, bm2 = conv_weight_matrix(p["m2_w"], scm2), row_bias(bsm2)
    wm3, bm3 = conv_weight_matrix(p["m3_w"], scm3), row_bias(bsm3)

    wse1 = p["se_w1"]                                    # (2, 32)  out x in
    wse2 = p["se_w2"].T                                  # (2, 32)

    h1_dim = p["fc1_w"].shape[0]
    # PyTorch flattens (B, 32, 8) as c*8 + t; the kernel flattens (t, c):
    # permute fc1 input columns once here.
    wf1 = (p["fc1_w"].T.reshape(C_MSA, T_MSA, h1_dim)
           .transpose(1, 0, 2).reshape(C_MSA * T_MSA, h1_dim))
    bf1 = row_bias(p["fc1_b"])
    wf2 = p["fc2_w"].T                                   # (512, 128)
    bf2 = row_bias(p["fc2_b"])
    ncp = pl.cdiv(num_classes, LANE) * LANE              # lane-dense logits
    wo = jnp.pad(p["out_w"].T, ((0, 0), (0, ncp - num_classes)))
    bo = row_bias(p["out_b"], pad_to=ncp)

    n_feat = wf2.shape[1]
    kernel = functools.partial(_tail_kernel, c1=C1)
    feats, logits_pad = pl.pallas_call(
        kernel,
        out_shape=(jax.ShapeDtypeStruct((B, n_feat), jnp.float32),
                   jax.ShapeDtypeStruct((B, ncp), jnp.float32)),
    )(a1, w2m, b2v, w3m, b3v, wm1, bm1, wm2, bm2, wm3, bm3,
      wse1, wse2, wf1, bf1, wf2, bf2, wo, bo)

    return feats, logits_pad[:, :num_classes]


# ------------------------- deterministic parameters -------------------------
def init_params(key, num_classes):
    ks = iter(jax.random.split(key, 64))

    def w(shape, scale=0.05):
        return scale * jax.random.normal(next(ks), shape, jnp.float32)

    def bn(c):
        gamma = 1.0 + 0.1 * jax.random.normal(next(ks), (c,), jnp.float32)
        beta = 0.1 * jax.random.normal(next(ks), (c,), jnp.float32)
        mean = 0.1 * jax.random.normal(next(ks), (c,), jnp.float32)
        var = 1.0 + 0.1 * jnp.abs(jax.random.normal(next(ks), (c,), jnp.float32))
        return (gamma, beta, mean, var)

    p = {}
    p["c1_w"] = w((64, 1, 256)); p["c1_b"] = w((64,)); p["bn1"] = bn(64)
    p["c2_w"] = w((128, 64, 7)); p["c2_b"] = w((128,)); p["bn2"] = bn(128)
    p["c3_w"] = w((64, 128, 7)); p["c3_b"] = w((64,)); p["bn3"] = bn(64)
    p["m1_w"] = w((32, 64, 5)); p["m1_b"] = w((32,)); p["mbn1"] = bn(32)
    p["m2_w"] = w((32, 64, 4)); p["m2_b"] = w((32,)); p["mbn2"] = bn(32)
    p["m3_w"] = w((32, 64, 3)); p["m3_b"] = w((32,)); p["mbn3"] = bn(32)
    p["se_w1"] = w((2, 32))          # Linear(32 -> 2, bias=False), (out, in)
    p["se_w2"] = w((32, 2))          # Linear(2 -> 32, bias=False)
    p["fc1_w"] = w((512, 256)); p["fc1_b"] = w((512,))
    p["fc2_w"] = w((128, 512)); p["fc2_b"] = w((128,))
    p["out_w"] = w((num_classes, 128)); p["out_b"] = w((num_classes,))
    return p


if __name__ == "__main__":
    key = jax.random.PRNGKey(0)
    pkey, xkey = jax.random.split(key)
    num_classes = 5
    params = init_params(pkey, num_classes)

    # The architecture (Linear(256, 512) after Flatten of 32 channels x 8 time
    # steps) implies an input length of 15000: conv(k256,s32) -> 461, /8 -> 57,
    # -6 -> 51, -6 -> 45, /4 -> 11, MSA branches 3+2+3 = 8 time steps.
    x = jax.random.normal(xkey, (2, 1, 15000), jnp.float32)

    feats, logits = jax.jit(maf_cnn_forward)(params, x)
    jax.block_until_ready((feats, logits))
    assert feats.shape == (2, 128) and logits.shape == (2, num_classes)
    print("KERNEL_OK")
</pallas_src>

<mosaic_0001>
module attributes {stable_mosaic.version = 11 : i64} {
  func.func @_conv1_pool_kernel(%arg0: i32, %arg1: memref<1x512x256xbf16, #tpu.memory_space<vmem>>, %arg2: memref<256x128xbf16, #tpu.memory_space<vmem>>, %arg3: memref<1x128xf32, #tpu.memory_space<vmem>>, %arg4: memref<1x57x128xf32, #tpu.memory_space<vmem>>) attributes {dimension_semantics = [#tpu.dimension_semantics<parallel>], iteration_bounds = array<i64: 2>, scalar_prefetch = 0 : i64, scratch_operands = 0 : i64, tpu.core_type = #tpu.core_type<tc>, window_params = [{transform_indices = @transform_0, window_bounds = array<i64: 1, 512, 256>}, {pipeline_mode = #tpu.pipeline_mode<synchronous>, transform_indices = @transform_1, window_bounds = array<i64: 256, 128>}, {pipeline_mode = #tpu.pipeline_mode<synchronous>, transform_indices = @transform_2, window_bounds = array<i64: 1, 128>}, {transform_indices = @transform_3, window_bounds = array<i64: 1, 57, 128>}]} {
    %c0 = arith.constant 0 : index
    %c0_0 = arith.constant 0 : index
    %c0_1 = arith.constant 0 : index
    %0 = vector.load %arg1[%c0, %c0_0, %c0_1] : memref<1x512x256xbf16, #tpu.memory_space<vmem>>, vector<1x512x256xbf16>
    %1 = vector.shape_cast %0 : vector<1x512x256xbf16> to vector<512x256xbf16>
    %c0_2 = arith.constant 0 : index
    %c0_3 = arith.constant 0 : index
    %2 = vector.load %arg2[%c0_2, %c0_3] : memref<256x128xbf16, #tpu.memory_space<vmem>>, vector<256x128xbf16>
    %cst = arith.constant dense<0.000000e+00> : vector<512x128xf32>
    %3 = tpu.matmul %1, %2, %cst {dimension_numbers = #tpu.dot_dimension_numbers<[1], [0], [0], [1], [0, 0, 1, 1], [], []>} : vector<512x256xbf16>, vector<256x128xbf16>, vector<512x128xf32> -> vector<512x128xf32>
    %c0_4 = arith.constant 0 : index
    %c0_5 = arith.constant 0 : index
    %4 = vector.load %arg3[%c0_4, %c0_5] : memref<1x128xf32, #tpu.memory_space<vmem>>, vector<1x128xf32>
    %5 = vector.broadcast %4 : vector<1x128xf32> to vector<512x128xf32>
    %6 = arith.addf %3, %5 : vector<512x128xf32>
    %cst_6 = arith.constant 0.000000e+00 : f32
    %7 = vector.broadcast %cst_6 : f32 to vector<512x128xf32>
    %8 = arith.maximumf %6, %7 : vector<512x128xf32>
    %9 = vector.extract_strided_slice %8 {offsets = [0, 0], sizes = [456, 128], strides = [1, 1]} : vector<512x128xf32> to vector<456x128xf32>
    %10 = vector.extract_strided_slice %9 {offsets = [0, 0], sizes = [8, 128], strides = [1, 1]} : vector<456x128xf32> to vector<8x128xf32>
    %cst_7 = arith.constant dense<0xFF800000> : vector<128xf32>
    %11 = vector.multi_reduction <maximumf>, %10, %cst_7 [0] : vector<8x128xf32> to vector<128xf32>
    %12 = vector.shape_cast %11 : vector<128xf32> to vector<1x128xf32>
    %13 = vector.extract_strided_slice %9 {offsets = [8, 0], sizes = [8, 128], strides = [1, 1]} : vector<456x128xf32> to vector<8x128xf32>
    %cst_8 = arith.constant dense<0xFF800000> : vector<128xf32>
    %14 = vector.multi_reduction <maximumf>, %13, %cst_8 [0] : vector<8x128xf32> to vector<128xf32>
    %15 = vector.shape_cast %14 : vector<128xf32> to vector<1x128xf32>
    %16 = vector.extract_strided_slice %9 {offsets = [16, 0], sizes = [8, 128], strides = [1, 1]} : vector<456x128xf32> to vector<8x128xf32>
    %cst_9 = arith.constant dense<0xFF800000> : vector<128xf32>
    %17 = vector.multi_reduction <maximumf>, %16, %cst_9 [0] : vector<8x128xf32> to vector<128xf32>
    %18 = vector.shape_cast %17 : vector<128xf32> to vector<1x128xf32>
    %19 = vector.extract_strided_slice %9 {offsets = [24, 0], sizes = [8, 128], strides = [1, 1]} : vector<456x128xf32> to vector<8x128xf32>
    %cst_10 = arith.constant dense<0xFF800000> : vector<128xf32>
    %20 = vector.multi_reduction <maximumf>, %19, %cst_10 [0] : vector<8x128xf32> to vector<128xf32>
    %21 = vector.shape_cast %20 : vector<128xf32> to vector<1x128xf32>
    %22 = vector.extract_strided_slice %9 {offsets = [32, 0], sizes = [8, 128], strides = [1, 1]} : vector<456x128xf32> to vector<8x128xf32>
    %cst_11 = arith.constant dense<0xFF800000> : vector<128xf32>
    %23 = vector.multi_reduction <maximumf>, %22, %cst_11 [0] : vector<8x128xf32> to vector<128xf32>
    %24 = vector.shape_cast %23 : vector<128xf32> to vector<1x128xf32>
    %25 = vector.extract_strided_slice %9 {offsets = [40, 0], sizes = [8, 128], strides = [1, 1]} : vector<456x128xf32> to vector<8x128xf32>
    %cst_12 = arith.constant dense<0xFF800000> : vector<128xf32>
    %26 = vector.multi_reduction <maximumf>, %25, %cst_12 [0] : vector<8x128xf32> to vector<128xf32>
    %27 = vector.shape_cast %26 : vector<128xf32> to vector<1x128xf32>
    %28 = vector.extract_strided_slice %9 {offsets = [48, 0], sizes = [8, 128], strides = [1, 1]} : vector<456x128xf32> to vector<8x128xf32>
    %cst_13 = arith.constant dense<0xFF800000> : vector<128xf32>
    %29 = vector.multi_reduction <maximumf>, %28, %cst_13 [0] : vector<8x128xf32> to vector<128xf32>
    %30 = vector.shape_cast %29 : vector<128xf32> to vector<1x128xf32>
    %31 = vector.extract_strided_slice %9 {offsets = [56, 0], sizes = [8, 128], strides = [1, 1]} : vector<456x128xf32> to vector<8x128xf32>
    %cst_14 = arith.constant dense<0xFF800000> : vector<128xf32>
    %32 = vector.multi_reduction <maximumf>, %31, %cst_14 [0] : vector<8x128xf32> to vector<128xf32>
    %33 = vector.shape_cast %32 : vector<128xf32> to vector<1x128xf32>
    %34 = vector.extract_strided_slice %9 {offsets = [64, 0], sizes = [8, 128], strides = [1, 1]} : vector<456x128xf32> to vector<8x128xf32>
    %cst_15 = arith.constant dense<0xFF800000> : vector<128xf32>
    %35 = vector.multi_reduction <maximumf>, %34, %cst_15 [0] : vector<8x128xf32> to vector<128xf32>
    %36 = vector.shape_cast %35 : vector<128xf32> to vector<1x128xf32>
    %37 = vector.extract_strided_slice %9 {offsets = [72, 0], sizes = [8, 128], strides = [1, 1]} : vector<456x128xf32> to vector<8x128xf32>
    %cst_16 = arith.constant dense<0xFF800000> : vector<128xf32>
    %38 = vector.multi_reduction <maximumf>, %37, %cst_16 [0] : vector<8x128xf32> to vector<128xf32>
    %39 = vector.shape_cast %38 : vector<128xf32> to vector<1x128xf32>
    %40 = vector.extract_strided_slice %9 {offsets = [80, 0], sizes = [8, 128], strides = [1, 1]} : vector<456x128xf32> to vector<8x128xf32>
    %cst_17 = arith.constant dense<0xFF800000> : vector<128xf32>
    %41 = vector.multi_reduction <maximumf>, %40, %cst_17 [0] : vector<8x128xf32> to vector<128xf32>
    %42 = vector.shape_cast %41 : vector<128xf32> to vector<1x128xf32>
    %43 = vector.extract_strided_slice %9 {offsets = [88, 0], sizes = [8, 128], strides = [1, 1]} : vector<456x128xf32> to vector<8x128xf32>
    %cst_18 = arith.constant dense<0xFF800000> : vector<128xf32>
    %44 = vector.multi_reduction <maximumf>, %43, %cst_18 [0] : vector<8x128xf32> to vector<128xf32>
    %45 = vector.shape_cast %44 : vector<128xf32> to vector<1x128xf32>
    %46 = vector.extract_strided_slice %9 {offsets = [96, 0], sizes = [8, 128], strides = [1, 1]} : vector<456x128xf32> to vector<8x128xf32>
    %cst_19 = arith.constant dense<0xFF800000> : vector<128xf32>
    %47 = vector.multi_reduction <maximumf>, %46, %cst_19 [0] : vector<8x128xf32> to vector<128xf32>
    %48 = vector.shape_cast %47 : vector<128xf32> to vector<1x128xf32>
    %49 = vector.extract_strided_slice %9 {offsets = [104, 0], sizes = [8, 128], strides = [1, 1]} : vector<456x128xf32> to vector<8x128xf32>
    %cst_20 = arith.constant dense<0xFF800000> : vector<128xf32>
    %50 = vector.multi_reduction <maximumf>, %49, %cst_20 [0] : vector<8x128xf32> to vector<128xf32>
    %51 = vector.shape_cast %50 : vector<128xf32> to vector<1x128xf32>
    %52 = vector.extract_strided_slice %9 {offsets = [112, 0], sizes = [8, 128], strides = [1, 1]} : vector<456x128xf32> to vector<8x128xf32>
    %cst_21 = arith.constant dense<0xFF800000> : vector<128xf32>
    %53 = vector.multi_reduction <maximumf>, %52, %cst_21 [0] : vector<8x128xf32> to vector<128xf32>
    %54 = vector.shape_cast %53 : vector<128xf32> to vector<1x128xf32>
    %55 = vector.extract_strided_slice %9 {offsets = [120, 0], sizes = [8, 128], strides = [1, 1]} : vector<456x128xf32> to vector<8x128xf32>
    %cst_22 = arith.constant dense<0xFF800000> : vector<128xf32>
    %56 = vector.multi_reduction <maximumf>, %55, %cst_22 [0] : vector<8x128xf32> to vector<128xf32>
    %57 = vector.shape_cast %56 : vector<128xf32> to vector<1x128xf32>
    %58 = vector.extract_strided_slice %9 {offsets = [128, 0], sizes = [8, 128], strides = [1, 1]} : vector<456x128xf32> to vector<8x128xf32>
    %cst_23 = arith.constant dense<0xFF800000> : vector<128xf32>
    %59 = vector.multi_reduction <maximumf>, %58, %cst_23 [0] : vector<8x128xf32> to vector<128xf32>
    %60 = vector.shape_cast %59 : vector<128xf32> to vector<1x128xf32>
    %61 = vector.extract_strided_slice %9 {offsets = [136, 0], sizes = [8, 128], strides = [1, 1]} : vector<456x128xf32> to vector<8x128xf32>
    %cst_24 = arith.constant dense<0xFF800000> : vector<128xf32>
    %62 = vector.multi_reduction <maximumf>, %61, %cst_24 [0] : vector<8x128xf32> to vector<128xf32>
    %63 = vector.shape_cast %62 : vector<128xf32> to vector<1x128xf32>
    %64 = vector.extract_strided_slice %9 {offsets = [144, 0], sizes = [8, 128], strides = [1, 1]} : vector<456x128xf32> to vector<8x128xf32>
    %cst_25 = arith.constant dense<0xFF800000> : vector<128xf32>
    %65 = vector.multi_reduction <maximumf>, %64, %cst_25 [0] : vector<8x128xf32> to vector<128xf32>
    %66 = vector.shape_cast %65 : vector<128xf32> to vector<1x128xf32>
    %67 = vector.extract_strided_slice %9 {offsets = [152, 0], sizes = [8, 128], strides = [1, 1]} : vector<456x128xf32> to vector<8x128xf32>
    %cst_26 = arith.constant dense<0xFF800000> : vector<128xf32>
    %68 = vector.multi_reduction <maximumf>, %67, %cst_26 [0] : vector<8x128xf32> to vector<128xf32>
    %69 = vector.shape_cast %68 : vector<128xf32> to vector<1x128xf32>
    %70 = vector.extract_strided_slice %9 {offsets = [160, 0], sizes = [8, 128], strides = [1, 1]} : vector<456x128xf32> to vector<8x128xf32>
    %cst_27 = arith.constant dense<0xFF800000> : vector<128xf32>
    %71 = vector.multi_reduction <maximumf>, %70, %cst_27 [0] : vector<8x128xf32> to vector<128xf32>
    %72 = vector.shape_cast %71 : vector<128xf32> to vector<1x128xf32>
    %73 = vector.extract_strided_slice %9 {offsets = [168, 0], sizes = [8, 128], strides = [1, 1]} : vector<456x128xf32> to vector<8x128xf32>
    %cst_28 = arith.constant dense<0xFF800000> : vector<128xf32>
    %74 = vector.multi_reduction <maximumf>, %73, %cst_28 [0] : vector<8x128xf32> to vector<128xf32>
    %75 = vector.shape_cast %74 : vector<128xf32> to vector<1x128xf32>
    %76 = vector.extract_strided_slice %9 {offsets = [176, 0], sizes = [8, 128], strides = [1, 1]} : vector<456x128xf32> to vector<8x128xf32>
    %cst_29 = arith.constant dense<0xFF800000> : vector<128xf32>
    %77 = vector.multi_reduction <maximumf>, %76, %cst_29 [0] : vector<8x128xf32> to vector<128xf32>
    %78 = vector.shape_cast %77 : vector<128xf32> to vector<1x128xf32>
    %79 = vector.extract_strided_slice %9 {offsets = [184, 0], sizes = [8, 128], strides = [1, 1]} : vector<456x128xf32> to vector<8x128xf32>
    %cst_30 = arith.constant dense<0xFF800000> : vector<128xf32>
    %80 = vector.multi_reduction <maximumf>, %79, %cst_30 [0] : vector<8x128xf32> to vector<128xf32>
    %81 = vector.shape_cast %80 : vector<128xf32> to vector<1x128xf32>
    %82 = vector.extract_strided_slice %9 {offsets = [192, 0], sizes = [8, 128], strides = [1, 1]} : vector<456x128xf32> to vector<8x128xf32>
    %cst_31 = arith.constant dense<0xFF800000> : vector<128xf32>
    %83 = vector.multi_reduction <maximumf>, %82, %cst_31 [0] : vector<8x128xf32> to vector<128xf32>
    %84 = vector.shape_cast %83 : vector<128xf32> to vector<1x128xf32>
    %85 = vector.extract_strided_slice %9 {offsets = [200, 0], sizes = [8, 128], strides = [1, 1]} : vector<456x128xf32> to vector<8x128xf32>
    %cst_32 = arith.constant dense<0xFF800000> : vector<128xf32>
    %86 = vector.multi_reduction <maximumf>, %85, %cst_32 [0] : vector<8x128xf32> to vector<128xf32>
    %87 = vector.shape_cast %86 : vector<128xf32> to vector<1x128xf32>
    %88 = vector.extract_strided_slice %9 {offsets = [208, 0], sizes = [8, 128], strides = [1, 1]} : vector<456x128xf32> to vector<8x128xf32>
    %cst_33 = arith.constant dense<0xFF800000> : vector<128xf32>
    %89 = vector.multi_reduction <maximumf>, %88, %cst_33 [0] : vector<8x128xf32> to vector<128xf32>
    %90 = vector.shape_cast %89 : vector<128xf32> to vector<1x128xf32>
    %91 = vector.extract_strided_slice %9 {offsets = [216, 0], sizes = [8, 128], strides = [1, 1]} : vector<456x128xf32> to vector<8x128xf32>
    %cst_34 = arith.constant dense<0xFF800000> : vector<128xf32>
    %92 = vector.multi_reduction <maximumf>, %91, %cst_34 [0] : vector<8x128xf32> to vector<128xf32>
    %93 = vector.shape_cast %92 : vector<128xf32> to vector<1x128xf32>
    %94 = vector.extract_strided_slice %9 {offsets = [224, 0], sizes = [8, 128], strides = [1, 1]} : vector<456x128xf32> to vector<8x128xf32>
    %cst_35 = arith.constant dense<0xFF800000> : vector<128xf32>
    %95 = vector.multi_reduction <maximumf>, %94, %cst_35 [0] : vector<8x128xf32> to vector<128xf32>
    %96 = vector.shape_cast %95 : vector<128xf32> to vector<1x128xf32>
    %97 = vector.extract_strided_slice %9 {offsets = [232, 0], sizes = [8, 128], strides = [1, 1]} : vector<456x128xf32> to vector<8x128xf32>
    %cst_36 = arith.constant dense<0xFF800000> : vector<128xf32>
    %98 = vector.multi_reduction <maximumf>, %97, %cst_36 [0] : vector<8x128xf32> to vector<128xf32>
    %99 = vector.shape_cast %98 : vector<128xf32> to vector<1x128xf32>
    %100 = vector.extract_strided_slice %9 {offsets = [240, 0], sizes = [8, 128], strides = [1, 1]} : vector<456x128xf32> to vector<8x128xf32>
    %cst_37 = arith.constant dense<0xFF800000> : vector<128xf32>
    %101 = vector.multi_reduction <maximumf>, %100, %cst_37 [0] : vector<8x128xf32> to vector<128xf32>
    %102 = vector.shape_cast %101 : vector<128xf32> to vector<1x128xf32>
    %103 = vector.extract_strided_slice %9 {offsets = [248, 0], sizes = [8, 128], strides = [1, 1]} : vector<456x128xf32> to vector<8x128xf32>
    %cst_38 = arith.constant dense<0xFF800000> : vector<128xf32>
    %104 = vector.multi_reduction <maximumf>, %103, %cst_38 [0] : vector<8x128xf32> to vector<128xf32>
    %105 = vector.shape_cast %104 : vector<128xf32> to vector<1x128xf32>
    %106 = vector.extract_strided_slice %9 {offsets = [256, 0], sizes = [8, 128], strides = [1, 1]} : vector<456x128xf32> to vector<8x128xf32>
    %cst_39 = arith.constant dense<0xFF800000> : vector<128xf32>
    %107 = vector.multi_reduction <maximumf>, %106, %cst_39 [0] : vector<8x128xf32> to vector<128xf32>
    %108 = vector.shape_cast %107 : vector<128xf32> to vector<1x128xf32>
    %109 = vector.extract_strided_slice %9 {offsets = [264, 0], sizes = [8, 128], strides = [1, 1]} : vector<456x128xf32> to vector<8x128xf32>
    %cst_40 = arith.constant dense<0xFF800000> : vector<128xf32>
    %110 = vector.multi_reduction <maximumf>, %109, %cst_40 [0] : vector<8x128xf32> to vector<128xf32>
    %111 = vector.shape_cast %110 : vector<128xf32> to vector<1x128xf32>
    %112 = vector.extract_strided_slice %9 {offsets = [272, 0], sizes = [8, 128], strides = [1, 1]} : vector<456x128xf32> to vector<8x128xf32>
    %cst_41 = arith.constant dense<0xFF800000> : vector<128xf32>
    %113 = vector.multi_reduction <maximumf>, %112, %cst_41 [0] : vector<8x128xf32> to vector<128xf32>
    %114 = vector.shape_cast %113 : vector<128xf32> to vector<1x128xf32>
    %115 = vector.extract_strided_slice %9 {offsets = [280, 0], sizes = [8, 128], strides = [1, 1]} : vector<456x128xf32> to vector<8x128xf32>
    %cst_42 = arith.constant dense<0xFF800000> : vector<128xf32>
    %116 = vector.multi_reduction <maximumf>, %115, %cst_42 [0] : vector<8x128xf32> to vector<128xf32>
    %117 = vector.shape_cast %116 : vector<128xf32> to vector<1x128xf32>
    %118 = vector.extract_strided_slice %9 {offsets = [288, 0], sizes = [8, 128], strides = [1, 1]} : vector<456x128xf32> to vector<8x128xf32>
    %cst_43 = arith.constant dense<0xFF800000> : vector<128xf32>
    %119 = vector.multi_reduction <maximumf>, %118, %cst_43 [0] : vector<8x128xf32> to vector<128xf32>
    %120 = vector.shape_cast %119 : vector<128xf32> to vector<1x128xf32>
    %121 = vector.extract_strided_slice %9 {offsets = [296, 0], sizes = [8, 128], strides = [1, 1]} : vector<456x128xf32> to vector<8x128xf32>
    %cst_44 = arith.constant dense<0xFF800000> : vector<128xf32>
    %122 = vector.multi_reduction <maximumf>, %121, %cst_44 [0] : vector<8x128xf32> to vector<128xf32>
    %123 = vector.shape_cast %122 : vector<128xf32> to vector<1x128xf32>
    %124 = vector.extract_strided_slice %9 {offsets = [304, 0], sizes = [8, 128], strides = [1, 1]} : vector<456x128xf32> to vector<8x128xf32>
    %cst_45 = arith.constant dense<0xFF800000> : vector<128xf32>
    %125 = vector.multi_reduction <maximumf>, %124, %cst_45 [0] : vector<8x128xf32> to vector<128xf32>
    %126 = vector.shape_cast %125 : vector<128xf32> to vector<1x128xf32>
    %127 = vector.extract_strided_slice %9 {offsets = [312, 0], sizes = [8, 128], strides = [1, 1]} : vector<456x128xf32> to vector<8x128xf32>
    %cst_46 = arith.constant dense<0xFF800000> : vector<128xf32>
    %128 = vector.multi_reduction <maximumf>, %127, %cst_46 [0] : vector<8x128xf32> to vector<128xf32>
    %129 = vector.shape_cast %128 : vector<128xf32> to vector<1x128xf32>
    %130 = vector.extract_strided_slice %9 {offsets = [320, 0], sizes = [8, 128], strides = [1, 1]} : vector<456x128xf32> to vector<8x128xf32>
    %cst_47 = arith.constant dense<0xFF800000> : vector<128xf32>
    %131 = vector.multi_reduction <maximumf>, %130, %cst_47 [0] : vector<8x128xf32> to vector<128xf32>
    %132 = vector.shape_cast %131 : vector<128xf32> to vector<1x128xf32>
    %133 = vector.extract_strided_slice %9 {offsets = [328, 0], sizes = [8, 128], strides = [1, 1]} : vector<456x128xf32> to vector<8x128xf32>
    %cst_48 = arith.constant dense<0xFF800000> : vector<128xf32>
    %134 = vector.multi_reduction <maximumf>, %133, %cst_48 [0] : vector<8x128xf32> to vector<128xf32>
    %135 = vector.shape_cast %134 : vector<128xf32> to vector<1x128xf32>
    %136 = vector.extract_strided_slice %9 {offsets = [336, 0], sizes = [8, 128], strides = [1, 1]} : vector<456x128xf32> to vector<8x128xf32>
    %cst_49 = arith.constant dense<0xFF800000> : vector<128xf32>
    %137 = vector.multi_reduction <maximumf>, %136, %cst_49 [0] : vector<8x128xf32> to vector<128xf32>
    %138 = vector.shape_cast %137 : vector<128xf32> to vector<1x128xf32>
    %139 = vector.extract_strided_slice %9 {offsets = [344, 0], sizes = [8, 128], strides = [1, 1]} : vector<456x128xf32> to vector<8x128xf32>
    %cst_50 = arith.constant dense<0xFF800000> : vector<128xf32>
    %140 = vector.multi_reduction <maximumf>, %139, %cst_50 [0] : vector<8x128xf32> to vector<128xf32>
    %141 = vector.shape_cast %140 : vector<128xf32> to vector<1x128xf32>
    %142 = vector.extract_strided_slice %9 {offsets = [352, 0], sizes = [8, 128], strides = [1, 1]} : vector<456x128xf32> to vector<8x128xf32>
    %cst_51 = arith.constant dense<0xFF800000> : vector<128xf32>
    %143 = vector.multi_reduction <maximumf>, %142, %cst_51 [0] : vector<8x128xf32> to vector<128xf32>
    %144 = vector.shape_cast %143 : vector<128xf32> to vector<1x128xf32>
    %145 = vector.extract_strided_slice %9 {offsets = [360, 0], sizes = [8, 128], strides = [1, 1]} : vector<456x128xf32> to vector<8x128xf32>
    %cst_52 = arith.constant dense<0xFF800000> : vector<128xf32>
    %146 = vector.multi_reduction <maximumf>, %145, %cst_52 [0] : vector<8x128xf32> to vector<128xf32>
    %147 = vector.shape_cast %146 : vector<128xf32> to vector<1x128xf32>
    %148 = vector.extract_strided_slice %9 {offsets = [368, 0], sizes = [8, 128], strides = [1, 1]} : vector<456x128xf32> to vector<8x128xf32>
    %cst_53 = arith.constant dense<0xFF800000> : vector<128xf32>
    %149 = vector.multi_reduction <maximumf>, %148, %cst_53 [0] : vector<8x128xf32> to vector<128xf32>
    %150 = vector.shape_cast %149 : vector<128xf32> to vector<1x128xf32>
    %151 = vector.extract_strided_slice %9 {offsets = [376, 0], sizes = [8, 128], strides = [1, 1]} : vector<456x128xf32> to vector<8x128xf32>
    %cst_54 = arith.constant dense<0xFF800000> : vector<128xf32>
    %152 = vector.multi_reduction <maximumf>, %151, %cst_54 [0] : vector<8x128xf32> to vector<128xf32>
    %153 = vector.shape_cast %152 : vector<128xf32> to vector<1x128xf32>
    %154 = vector.extract_strided_slice %9 {offsets = [384, 0], sizes = [8, 128], strides = [1, 1]} : vector<456x128xf32> to vector<8x128xf32>
    %cst_55 = arith.constant dense<0xFF800000> : vector<128xf32>
    %155 = vector.multi_reduction <maximumf>, %154, %cst_55 [0] : vector<8x128xf32> to vector<128xf32>
    %156 = vector.shape_cast %155 : vector<128xf32> to vector<1x128xf32>
    %157 = vector.extract_strided_slice %9 {offsets = [392, 0], sizes = [8, 128], strides = [1, 1]} : vector<456x128xf32> to vector<8x128xf32>
    %cst_56 = arith.constant dense<0xFF800000> : vector<128xf32>
    %158 = vector.multi_reduction <maximumf>, %157, %cst_56 [0] : vector<8x128xf32> to vector<128xf32>
    %159 = vector.shape_cast %158 : vector<128xf32> to vector<1x128xf32>
    %160 = vector.extract_strided_slice %9 {offsets = [400, 0], sizes = [8, 128], strides = [1, 1]} : vector<456x128xf32> to vector<8x128xf32>
    %cst_57 = arith.constant dense<0xFF800000> : vector<128xf32>
    %161 = vector.multi_reduction <maximumf>, %160, %cst_57 [0] : vector<8x128xf32> to vector<128xf32>
    %162 = vector.shape_cast %161 : vector<128xf32> to vector<1x128xf32>
    %163 = vector.extract_strided_slice %9 {offsets = [408, 0], sizes = [8, 128], strides = [1, 1]} : vector<456x128xf32> to vector<8x128xf32>
    %cst_58 = arith.constant dense<0xFF800000> : vector<128xf32>
    %164 = vector.multi_reduction <maximumf>, %163, %cst_58 [0] : vector<8x128xf32> to vector<128xf32>
    %165 = vector.shape_cast %164 : vector<128xf32> to vector<1x128xf32>
    %166 = vector.extract_strided_slice %9 {offsets = [416, 0], sizes = [8, 128], strides = [1, 1]} : vector<456x128xf32> to vector<8x128xf32>
    %cst_59 = arith.constant dense<0xFF800000> : vector<128xf32>
    %167 = vector.multi_reduction <maximumf>, %166, %cst_59 [0] : vector<8x128xf32> to vector<128xf32>
    %168 = vector.shape_cast %167 : vector<128xf32> to vector<1x128xf32>
    %169 = vector.extract_strided_slice %9 {offsets = [424, 0], sizes = [8, 128], strides = [1, 1]} : vector<456x128xf32> to vector<8x128xf32>
    %cst_60 = arith.constant dense<0xFF800000> : vector<128xf32>
    %170 = vector.multi_reduction <maximumf>, %169, %cst_60 [0] : vector<8x128xf32> to vector<128xf32>
    %171 = vector.shape_cast %170 : vector<128xf32> to vector<1x128xf32>
    %172 = vector.extract_strided_slice %9 {offsets = [432, 0], sizes = [8, 128], strides = [1, 1]} : vector<456x128xf32> to vector<8x128xf32>
    %cst_61 = arith.constant dense<0xFF800000> : vector<128xf32>
    %173 = vector.multi_reduction <maximumf>, %172, %cst_61 [0] : vector<8x128xf32> to vector<128xf32>
    %174 = vector.shape_cast %173 : vector<128xf32> to vector<1x128xf32>
    %175 = vector.extract_strided_slice %9 {offsets = [440, 0], sizes = [8, 128], strides = [1, 1]} : vector<456x128xf32> to vector<8x128xf32>
    %cst_62 = arith.constant dense<0xFF800000> : vector<128xf32>
    %176 = vector.multi_reduction <maximumf>, %175, %cst_62 [0] : vector<8x128xf32> to vector<128xf32>
    %177 = vector.shape_cast %176 : vector<128xf32> to vector<1x128xf32>
    %178 = vector.extract_strided_slice %9 {offsets = [448, 0], sizes = [8, 128], strides = [1, 1]} : vector<456x128xf32> to vector<8x128xf32>
    %cst_63 = arith.constant dense<0xFF800000> : vector<128xf32>
    %179 = vector.multi_reduction <maximumf>, %178, %cst_63 [0] : vector<8x128xf32> to vector<128xf32>
    %180 = vector.shape_cast %179 : vector<128xf32> to vector<1x128xf32>
    %181 = tpu.concatenate %12, %15, %18, %21, %24, %27, %30, %33, %36, %39, %42, %45, %48, %51, %54, %57 in 0 : vector<1x128xf32>, vector<1x128xf32>, vector<1x128xf32>, vector<1x128xf32>, vector<1x128xf32>, vector<1x128xf32>, vector<1x128xf32>, vector<1x128xf32>, vector<1x128xf32>, vector<1x128xf32>, vector<1x128xf32>, vector<1x128xf32>, vector<1x128xf32>, vector<1x128xf32>, vector<1x128xf32>, vector<1x128xf32> -> vector<16x128xf32>
    %182 = tpu.concatenate %60, %63, %66, %69, %72, %75, %78, %81, %84, %87, %90, %93, %96, %99, %102, %105 in 0 : vector<1x128xf32>, vector<1x128xf32>, vector<1x128xf32>, vector<1x128xf32>, vector<1x128xf32>, vector<1x128xf32>, vector<1x128xf32>, vector<1x128xf32>, vector<1x128xf32>, vector<1x128xf32>, vector<1x128xf32>, vector<1x128xf32>, vector<1x128xf32>, vector<1x128xf32>, vector<1x128xf32>, vector<1x128xf32> -> vector<16x128xf32>
    %183 = tpu.concatenate %108, %111, %114, %117, %120, %123, %126, %129, %132, %135, %138, %141, %144, %147, %150, %153 in 0 : vector<1x128xf32>, vector<1x128xf32>, vector<1x128xf32>, vector<1x128xf32>, vector<1x128xf32>, vector<1x128xf32>, vector<1x128xf32>, vector<1x128xf32>, vector<1x128xf32>, vector<1x128xf32>, vector<1x128xf32>, vector<1x128xf32>, vector<1x128xf32>, vector<1x128xf32>, vector<1x128xf32>, vector<1x128xf32> -> vector<16x128xf32>
    %184 = tpu.concatenate %156, %159, %162, %165, %168, %171, %174, %177, %180 in 0 : vector<1x128xf32>, vector<1x128xf32>, vector<1x128xf32>, vector<1x128xf32>, vector<1x128xf32>, vector<1x128xf32>, vector<1x128xf32>, vector<1x128xf32>, vector<1x128xf32> -> vector<9x128xf32>
    %185 = tpu.concatenate %181, %182, %183, %184 in 0 : vector<16x128xf32>, vector<16x128xf32>, vector<16x128xf32>, vector<9x128xf32> -> vector<57x128xf32>
    %c0_64 = arith.constant 0 : index
    %c0_65 = arith.constant 0 : index
    %c0_66 = arith.constant 0 : index
    %186 = vector.load %arg4[%c0_64, %c0_65, %c0_66] : memref<1x57x128xf32, #tpu.memory_space<vmem>>, vector<1x57x128xf32>
    %187 = vector.shape_cast %186 : vector<1x57x128xf32> to vector<57x128xf32>
    %188 = vector.shape_cast %185 : vector<57x128xf32> to vector<1x57x128xf32>
    tpu.vector_store %arg4[%c0_64, %c0_65, %c0_66], %188 {strides = array<i32>} : memref<1x57x128xf32, #tpu.memory_space<vmem>>, vector<1x57x128xf32>,
    return
  }
  func.func @transform_0(%arg0: i32) -> (i32, i32, i32) {
    %c0_i32 = arith.constant 0 : i32
    %c0_i32_0 = arith.constant 0 : i32
    %c0_i32_1 = arith.constant 0 : i32
    return %arg0, %c0_i32, %c0_i32_0 : i32, i32, i32
  }
  func.func @transform_1(%arg0: i32) -> (i32, i32) {
    %c0_i32 = arith.constant 0 : i32
    %c0_i32_0 = arith.constant 0 : i32
    %c0_i32_1 = arith.constant 0 : i32
    return %c0_i32, %c0_i32_0 : i32, i32
  }
  func.func @transform_2(%arg0: i32) -> (i32, i32) {
    %c0_i32 = arith.constant 0 : i32
    %c0_i32_0 = arith.constant 0 : i32
    %c0_i32_1 = arith.constant 0 : i32
    return %c0_i32, %c0_i32_0 : i32, i32
  }
  func.func @transform_3(%arg0: i32) -> (i32, i32, i32) {
    %c0_i32 = arith.constant 0 : i32
    %c0_i32_0 = arith.constant 0 : i32
    %c0_i32_1 = arith.constant 0 : i32
    return %arg0, %c0_i32, %c0_i32_0 : i32, i32, i32
  }
}

module attributes {stable_mosaic.version = 11 : i64} {
  func.func @_tail_kernel(%arg0: memref<2x57x128xf32, #tpu.memory_space<vmem>>, %arg1: memref<448x128xf32, #tpu.memory_space<vmem>>, %arg2: memref<1x128xf32, #tpu.memory_space<vmem>>, %arg3: memref<896x64xf32, #tpu.memory_space<vmem>>, %arg4: memref<1x64xf32, #tpu.memory_space<vmem>>, %arg5: memref<320x32xf32, #tpu.memory_space<vmem>>, %arg6: memref<1x32xf32, #tpu.memory_space<vmem>>, %arg7: memref<256x32xf32, #tpu.memory_space<vmem>>, %arg8: memref<1x32xf32, #tpu.memory_space<vmem>>, %arg9: memref<192x32xf32, #tpu.memory_space<vmem>>, %arg10: memref<1x32xf32, #tpu.memory_space<vmem>>, %arg11: memref<2x32xf32, #tpu.memory_space<vmem>>, %arg12: memref<2x32xf32, #tpu.memory_space<vmem>>, %arg13: memref<256x512xf32, #tpu.memory_space<vmem>>, %arg14: memref<1x512xf32, #tpu.memory_space<vmem>>, %arg15: memref<512x128xf32, #tpu.memory_space<vmem>>, %arg16: memref<1x128xf32, #tpu.memory_space<vmem>>, %arg17: memref<128x128xf32, #tpu.memory_space<vmem>>, %arg18: memref<1x128xf32, #tpu.memory_space<vmem>>, %arg19: memref<2x128xf32, #tpu.memory_space<vmem>>, %arg20: memref<2x128xf32, #tpu.memory_space<vmem>>) attributes {dimension_semantics = [], scalar_prefetch = 0 : i64, scratch_operands = 0 : i64, tpu.core_type = #tpu.core_type<tc>} {
    %c0 = arith.constant 0 : index
    %c0_0 = arith.constant 0 : index
    %c0_1 = arith.constant 0 : index
    %0 = vector.load %arg0[%c0, %c0_0, %c0_1] : memref<2x57x128xf32, #tpu.memory_space<vmem>>, vector<2x57x128xf32>
    %1 = vector.extract_strided_slice %0 {offsets = [0, 0, 0], sizes = [2, 57, 64], strides = [1, 1, 1]} : vector<2x57x128xf32> to vector<2x57x64xf32>
    %c0_2 = arith.constant 0 : index
    %c0_3 = arith.constant 0 : index
    %2 = vector.load %arg1[%c0_2, %c0_3] : memref<448x128xf32, #tpu.memory_space<vmem>>, vector<448x128xf32>
    %c0_4 = arith.constant 0 : index
    %c0_5 = arith.constant 0 : index
    %3 = vector.load %arg2[%c0_4, %c0_5] : memref<1x128xf32, #tpu.memory_space<vmem>>, vector<1x128xf32>
    %4 = vector.extract_strided_slice %1 {offsets = [0, 0, 0], sizes = [1, 57, 64], strides = [1, 1, 1]} : vector<2x57x64xf32> to vector<1x57x64xf32>
    %5 = vector.shape_cast %4 : vector<1x57x64xf32> to vector<57x64xf32>
    %6 = vector.extract_strided_slice %5 {offsets = [0, 0], sizes = [51, 64], strides = [1, 1]} : vector<57x64xf32> to vector<51x64xf32>
    %7 = vector.extract_strided_slice %5 {offsets = [1, 0], sizes = [51, 64], strides = [1, 1]} : vector<57x64xf32> to vector<51x64xf32>
    %8 = vector.extract_strided_slice %5 {offsets = [2, 0], sizes = [51, 64], strides = [1, 1]} : vector<57x64xf32> to vector<51x64xf32>
    %9 = vector.extract_strided_slice %5 {offsets = [3, 0], sizes = [51, 64], strides = [1, 1]} : vector<57x64xf32> to vector<51x64xf32>
    %10 = vector.extract_strided_slice %5 {offsets = [4, 0], sizes = [51, 64], strides = [1, 1]} : vector<57x64xf32> to vector<51x64xf32>
    %11 = vector.extract_strided_slice %5 {offsets = [5, 0], sizes = [51, 64], strides = [1, 1]} : vector<57x64xf32> to vector<51x64xf32>
    %12 = vector.extract_strided_slice %5 {offsets = [6, 0], sizes = [51, 64], strides = [1, 1]} : vector<57x64xf32> to vector<51x64xf32>
    %13 = tpu.concatenate %6, %7, %8, %9, %10, %11, %12 in 1 : vector<51x64xf32>, vector<51x64xf32>, vector<51x64xf32>, vector<51x64xf32>, vector<51x64xf32>, vector<51x64xf32>, vector<51x64xf32> -> vector<51x448xf32>
    %cst = arith.constant dense<0.000000e+00> : vector<51x128xf32>
    %14 = tpu.matmul %13, %2, %cst {dimension_numbers = #tpu.dot_dimension_numbers<[1], [0], [0], [1], [0, 0, 1, 1], [], []>} : vector<51x448xf32>, vector<448x128xf32>, vector<51x128xf32> -> vector<51x128xf32>
    %15 = vector.broadcast %3 : vector<1x128xf32> to vector<51x128xf32>
    %16 = arith.addf %14, %15 : vector<51x128xf32>
    %cst_6 = arith.constant 0.000000e+00 : f32
    %17 = vector.broadcast %cst_6 : f32 to vector<51x128xf32>
    %18 = arith.maximumf %16, %17 : vector<51x128xf32>
    %19 = vector.extract_strided_slice %1 {offsets = [1, 0, 0], sizes = [1, 57, 64], strides = [1, 1, 1]} : vector<2x57x64xf32> to vector<1x57x64xf32>
    %20 = vector.shape_cast %19 : vector<1x57x64xf32> to vector<57x64xf32>
    %21 = vector.extract_strided_slice %20 {offsets = [0, 0], sizes = [51, 64], strides = [1, 1]} : vector<57x64xf32> to vector<51x64xf32>
    %22 = vector.extract_strided_slice %20 {offsets = [1, 0], sizes = [51, 64], strides = [1, 1]} : vector<57x64xf32> to vector<51x64xf32>
    %23 = vector.extract_strided_slice %20 {offsets = [2, 0], sizes = [51, 64], strides = [1, 1]} : vector<57x64xf32> to vector<51x64xf32>
    %24 = vector.extract_strided_slice %20 {offsets = [3, 0], sizes = [51, 64], strides = [1, 1]} : vector<57x64xf32> to vector<51x64xf32>
    %25 = vector.extract_strided_slice %20 {offsets = [4, 0], sizes = [51, 64], strides = [1, 1]} : vector<57x64xf32> to vector<51x64xf32>
    %26 = vector.extract_strided_slice %20 {offsets = [5, 0], sizes = [51, 64], strides = [1, 1]} : vector<57x64xf32> to vector<51x64xf32>
    %27 = vector.extract_strided_slice %20 {offsets = [6, 0], sizes = [51, 64], strides = [1, 1]} : vector<57x64xf32> to vector<51x64xf32>
    %28 = tpu.concatenate %21, %22, %23, %24, %25, %26, %27 in 1 : vector<51x64xf32>, vector<51x64xf32>, vector<51x64xf32>, vector<51x64xf32>, vector<51x64xf32>, vector<51x64xf32>, vector<51x64xf32> -> vector<51x448xf32>
    %cst_7 = arith.constant dense<0.000000e+00> : vector<51x128xf32>
    %29 = tpu.matmul %28, %2, %cst_7 {dimension_numbers = #tpu.dot_dimension_numbers<[1], [0], [0], [1], [0, 0, 1, 1], [], []>} : vector<51x448xf32>, vector<448x128xf32>, vector<51x128xf32> -> vector<51x128xf32>
    %30 = vector.broadcast %3 : vector<1x128xf32> to vector<51x128xf32>
    %31 = arith.addf %29, %30 : vector<51x128xf32>
    %cst_8 = arith.constant 0.000000e+00 : f32
    %32 = vector.broadcast %cst_8 : f32 to vector<51x128xf32>
    %33 = arith.maximumf %31, %32 : vector<51x128xf32>
    %34 = vector.shape_cast %18 : vector<51x128xf32> to vector<1x51x128xf32>
    %35 = vector.shape_cast %33 : vector<51x128xf32> to vector<1x51x128xf32>
    %36 = tpu.concatenate %34, %35 in 0 : vector<1x51x128xf32>, vector<1x51x128xf32> -> vector<2x51x128xf32>
    %c0_9 = arith.constant 0 : index
    %c0_10 = arith.constant 0 : index
    %37 = vector.load %arg3[%c0_9, %c0_10] : memref<896x64xf32, #tpu.memory_space<vmem>>, vector<896x64xf32>
    %c0_11 = arith.constant 0 : index
    %c0_12 = arith.constant 0 : index
    %38 = vector.load %arg4[%c0_11, %c0_12] : memref<1x64xf32, #tpu.memory_space<vmem>>, vector<1x64xf32>
    %39 = vector.extract_strided_slice %36 {offsets = [0, 0, 0], sizes = [1, 51, 128], strides = [1, 1, 1]} : vector<2x51x128xf32> to vector<1x51x128xf32>
    %40 = vector.shape_cast %39 : vector<1x51x128xf32> to vector<51x128xf32>
    %41 = vector.extract_strided_slice %40 {offsets = [0, 0], sizes = [45, 128], strides = [1, 1]} : vector<51x128xf32> to vector<45x128xf32>
    %42 = vector.extract_strided_slice %40 {offsets = [1, 0], sizes = [45, 128], strides = [1, 1]} : vector<51x128xf32> to vector<45x128xf32>
    %43 = vector.extract_strided_slice %40 {offsets = [2, 0], sizes = [45, 128], strides = [1, 1]} : vector<51x128xf32> to vector<45x128xf32>
    %44 = vector.extract_strided_slice %40 {offsets = [3, 0], sizes = [45, 128], strides = [1, 1]} : vector<51x128xf32> to vector<45x128xf32>
    %45 = vector.extract_strided_slice %40 {offsets = [4, 0], sizes = [45, 128], strides = [1, 1]} : vector<51x128xf32> to vector<45x128xf32>
    %46 = vector.extract_strided_slice %40 {offsets = [5, 0], sizes = [45, 128], strides = [1, 1]} : vector<51x128xf32> to vector<45x128xf32>
    %47 = vector.extract_strided_slice %40 {offsets = [6, 0], sizes = [45, 128], strides = [1, 1]} : vector<51x128xf32> to vector<45x128xf32>
    %48 = tpu.concatenate %41, %42, %43, %44, %45, %46, %47 in 1 : vector<45x128xf32>, vector<45x128xf32>, vector<45x128xf32>, vector<45x128xf32>, vector<45x128xf32>, vector<45x128xf32>, vector<45x128xf32> -> vector<45x896xf32>
    %cst_13 = arith.constant dense<0.000000e+00> : vector<45x64xf32>
    %49 = tpu.matmul %48, %37, %cst_13 {dimension_numbers = #tpu.dot_dimension_numbers<[1], [0], [0], [1], [0, 0, 1, 1], [], []>} : vector<45x896xf32>, vector<896x64xf32>, vector<45x64xf32> -> vector<45x64xf32>
    %50 = vector.broadcast %38 : vector<1x64xf32> to vector<45x64xf32>
    %51 = arith.addf %49, %50 : vector<45x64xf32>
    %cst_14 = arith.constant 0.000000e+00 : f32
    %52 = vector.broadcast %cst_14 : f32 to vector<45x64xf32>
    %53 = arith.maximumf %51, %52 : vector<45x64xf32>
    %54 = vector.extract_strided_slice %36 {offsets = [1, 0, 0], sizes = [1, 51, 128], strides = [1, 1, 1]} : vector<2x51x128xf32> to vector<1x51x128xf32>
    %55 = vector.shape_cast %54 : vector<1x51x128xf32> to vector<51x128xf32>
    %56 = vector.extract_strided_slice %55 {offsets = [0, 0], sizes = [45, 128], strides = [1, 1]} : vector<51x128xf32> to vector<45x128xf32>
    %57 = vector.extract_strided_slice %55 {offsets = [1, 0], sizes = [45, 128], strides = [1, 1]} : vector<51x128xf32> to vector<45x128xf32>
    %58 = vector.extract_strided_slice %55 {offsets = [2, 0], sizes = [45, 128], strides = [1, 1]} : vector<51x128xf32> to vector<45x128xf32>
    %59 = vector.extract_strided_slice %55 {offsets = [3, 0], sizes = [45, 128], strides = [1, 1]} : vector<51x128xf32> to vector<45x128xf32>
    %60 = vector.extract_strided_slice %55 {offsets = [4, 0], sizes = [45, 128], strides = [1, 1]} : vector<51x128xf32> to vector<45x128xf32>
    %61 = vector.extract_strided_slice %55 {offsets = [5, 0], sizes = [45, 128], strides = [1, 1]} : vector<51x128xf32> to vector<45x128xf32>
    %62 = vector.extract_strided_slice %55 {offsets = [6, 0], sizes = [45, 128], strides = [1, 1]} : vector<51x128xf32> to vector<45x128xf32>
    %63 = tpu.concatenate %56, %57, %58, %59, %60, %61, %62 in 1 : vector<45x128xf32>, vector<45x128xf32>, vector<45x128xf32>, vector<45x128xf32>, vector<45x128xf32>, vector<45x128xf32>, vector<45x128xf32> -> vector<45x896xf32>
    %cst_15 = arith.constant dense<0.000000e+00> : vector<45x64xf32>
    %64 = tpu.matmul %63, %37, %cst_15 {dimension_numbers = #tpu.dot_dimension_numbers<[1], [0], [0], [1], [0, 0, 1, 1], [], []>} : vector<45x896xf32>, vector<896x64xf32>, vector<45x64xf32> -> vector<45x64xf32>
    %65 = vector.broadcast %38 : vector<1x64xf32> to vector<45x64xf32>
    %66 = arith.addf %64, %65 : vector<45x64xf32>
    %cst_16 = arith.constant 0.000000e+00 : f32
    %67 = vector.broadcast %cst_16 : f32 to vector<45x64xf32>
    %68 = arith.maximumf %66, %67 : vector<45x64xf32>
    %69 = vector.shape_cast %53 : vector<45x64xf32> to vector<1x45x64xf32>
    %70 = vector.shape_cast %68 : vector<45x64xf32> to vector<1x45x64xf32>
    %71 = tpu.concatenate %69, %70 in 0 : vector<1x45x64xf32>, vector<1x45x64xf32> -> vector<2x45x64xf32>
    %72 = vector.extract_strided_slice %71 {offsets = [0, 0, 0], sizes = [1, 45, 64], strides = [1, 1, 1]} : vector<2x45x64xf32> to vector<1x45x64xf32>
    %73 = vector.shape_cast %72 : vector<1x45x64xf32> to vector<45x64xf32>
    %74 = vector.extract_strided_slice %73 {offsets = [0, 0], sizes = [4, 64], strides = [1, 1]} : vector<45x64xf32> to vector<4x64xf32>
    %cst_17 = arith.constant dense<0xFF800000> : vector<64xf32>
    %75 = vector.multi_reduction <maximumf>, %74, %cst_17 [0] : vector<4x64xf32> to vector<64xf32>
    %76 = vector.shape_cast %75 : vector<64xf32> to vector<1x64xf32>
    %77 = vector.extract_strided_slice %73 {offsets = [4, 0], sizes = [4, 64], strides = [1, 1]} : vector<45x64xf32> to vector<4x64xf32>
    %cst_18 = arith.constant dense<0xFF800000> : vector<64xf32>
    %78 = vector.multi_reduction <maximumf>, %77, %cst_18 [0] : vector<4x64xf32> to vector<64xf32>
    %79 = vector.shape_cast %78 : vector<64xf32> to vector<1x64xf32>
    %80 = vector.extract_strided_slice %73 {offsets = [8, 0], sizes = [4, 64], strides = [1, 1]} : vector<45x64xf32> to vector<4x64xf32>
    %cst_19 = arith.constant dense<0xFF800000> : vector<64xf32>
    %81 = vector.multi_reduction <maximumf>, %80, %cst_19 [0] : vector<4x64xf32> to vector<64xf32>
    %82 = vector.shape_cast %81 : vector<64xf32> to vector<1x64xf32>
    %83 = vector.extract_strided_slice %73 {offsets = [12, 0], sizes = [4, 64], strides = [1, 1]} : vector<45x64xf32> to vector<4x64xf32>
    %cst_20 = arith.constant dense<0xFF800000> : vector<64xf32>
    %84 = vector.multi_reduction <maximumf>, %83, %cst_20 [0] : vector<4x64xf32> to vector<64xf32>
    %85 = vector.shape_cast %84 : vector<64xf32> to vector<1x64xf32>
    %86 = vector.extract_strided_slice %73 {offsets = [16, 0], sizes = [4, 64], strides = [1, 1]} : vector<45x64xf32> to vector<4x64xf32>
    %cst_21 = arith.constant dense<0xFF800000> : vector<64xf32>
    %87 = vector.multi_reduction <maximumf>, %86, %cst_21 [0] : vector<4x64xf32> to vector<64xf32>
    %88 = vector.shape_cast %87 : vector<64xf32> to vector<1x64xf32>
    %89 = vector.extract_strided_slice %73 {offsets = [20, 0], sizes = [4, 64], strides = [1, 1]} : vector<45x64xf32> to vector<4x64xf32>
    %cst_22 = arith.constant dense<0xFF800000> : vector<64xf32>
    %90 = vector.multi_reduction <maximumf>, %89, %cst_22 [0] : vector<4x64xf32> to vector<64xf32>
    %91 = vector.shape_cast %90 : vector<64xf32> to vector<1x64xf32>
    %92 = vector.extract_strided_slice %73 {offsets = [24, 0], sizes = [4, 64], strides = [1, 1]} : vector<45x64xf32> to vector<4x64xf32>
    %cst_23 = arith.constant dense<0xFF800000> : vector<64xf32>
    %93 = vector.multi_reduction <maximumf>, %92, %cst_23 [0] : vector<4x64xf32> to vector<64xf32>
    %94 = vector.shape_cast %93 : vector<64xf32> to vector<1x64xf32>
    %95 = vector.extract_strided_slice %73 {offsets = [28, 0], sizes = [4, 64], strides = [1, 1]} : vector<45x64xf32> to vector<4x64xf32>
    %cst_24 = arith.constant dense<0xFF800000> : vector<64xf32>
    %96 = vector.multi_reduction <maximumf>, %95, %cst_24 [0] : vector<4x64xf32> to vector<64xf32>
    %97 = vector.shape_cast %96 : vector<64xf32> to vector<1x64xf32>
    %98 = vector.extract_strided_slice %73 {offsets = [32, 0], sizes = [4, 64], strides = [1, 1]} : vector<45x64xf32> to vector<4x64xf32>
    %cst_25 = arith.constant dense<0xFF800000> : vector<64xf32>
    %99 = vector.multi_reduction <maximumf>, %98, %cst_25 [0] : vector<4x64xf32> to vector<64xf32>
    %100 = vector.shape_cast %99 : vector<64xf32> to vector<1x64xf32>
    %101 = vector.extract_strided_slice %73 {offsets = [36, 0], sizes = [4, 64], strides = [1, 1]} : vector<45x64xf32> to vector<4x64xf32>
    %cst_26 = arith.constant dense<0xFF800000> : vector<64xf32>
    %102 = vector.multi_reduction <maximumf>, %101, %cst_26 [0] : vector<4x64xf32> to vector<64xf32>
    %103 = vector.shape_cast %102 : vector<64xf32> to vector<1x64xf32>
    %104 = vector.extract_strided_slice %73 {offsets = [40, 0], sizes = [4, 64], strides = [1, 1]} : vector<45x64xf32> to vector<4x64xf32>
    %cst_27 = arith.constant dense<0xFF800000> : vector<64xf32>
    %105 = vector.multi_reduction <maximumf>, %104, %cst_27 [0] : vector<4x64xf32> to vector<64xf32>
    %106 = vector.shape_cast %105 : vector<64xf32> to vector<1x64xf32>
    %107 = tpu.concatenate %76, %79, %82, %85, %88, %91, %94, %97, %100, %103, %106 in 0 : vector<1x64xf32>, vector<1x64xf32>, vector<1x64xf32>, vector<1x64xf32>, vector<1x64xf32>, vector<1x64xf32>, vector<1x64xf32>, vector<1x64xf32>, vector<1x64xf32>, vector<1x64xf32>, vector<1x64xf32> -> vector<11x64xf32>
    %108 = vector.extract_strided_slice %71 {offsets = [1, 0, 0], sizes = [1, 45, 64], strides = [1, 1, 1]} : vector<2x45x64xf32> to vector<1x45x64xf32>
    %109 = vector.shape_cast %108 : vector<1x45x64xf32> to vector<45x64xf32>
    %110 = vector.extract_strided_slice %109 {offsets = [0, 0], sizes = [4, 64], strides = [1, 1]} : vector<45x64xf32> to vector<4x64xf32>
    %cst_28 = arith.constant dense<0xFF800000> : vector<64xf32>
    %111 = vector.multi_reduction <maximumf>, %110, %cst_28 [0] : vector<4x64xf32> to vector<64xf32>
    %112 = vector.shape_cast %111 : vector<64xf32> to vector<1x64xf32>
    %113 = vector.extract_strided_slice %109 {offsets = [4, 0], sizes = [4, 64], strides = [1, 1]} : vector<45x64xf32> to vector<4x64xf32>
    %cst_29 = arith.constant dense<0xFF800000> : vector<64xf32>
    %114 = vector.multi_reduction <maximumf>, %113, %cst_29 [0] : vector<4x64xf32> to vector<64xf32>
    %115 = vector.shape_cast %114 : vector<64xf32> to vector<1x64xf32>
    %116 = vector.extract_strided_slice %109 {offsets = [8, 0], sizes = [4, 64], strides = [1, 1]} : vector<45x64xf32> to vector<4x64xf32>
    %cst_30 = arith.constant dense<0xFF800000> : vector<64xf32>
    %117 = vector.multi_reduction <maximumf>, %116, %cst_30 [0] : vector<4x64xf32> to vector<64xf32>
    %118 = vector.shape_cast %117 : vector<64xf32> to vector<1x64xf32>
    %119 = vector.extract_strided_slice %109 {offsets = [12, 0], sizes = [4, 64], strides = [1, 1]} : vector<45x64xf32> to vector<4x64xf32>
    %cst_31 = arith.constant dense<0xFF800000> : vector<64xf32>
    %120 = vector.multi_reduction <maximumf>, %119, %cst_31 [0] : vector<4x64xf32> to vector<64xf32>
    %121 = vector.shape_cast %120 : vector<64xf32> to vector<1x64xf32>
    %122 = vector.extract_strided_slice %109 {offsets = [16, 0], sizes = [4, 64], strides = [1, 1]} : vector<45x64xf32> to vector<4x64xf32>
    %cst_32 = arith.constant dense<0xFF800000> : vector<64xf32>
    %123 = vector.multi_reduction <maximumf>, %122, %cst_32 [0] : vector<4x64xf32> to vector<64xf32>
    %124 = vector.shape_cast %123 : vector<64xf32> to vector<1x64xf32>
    %125 = vector.extract_strided_slice %109 {offsets = [20, 0], sizes = [4, 64], strides = [1, 1]} : vector<45x64xf32> to vector<4x64xf32>
    %cst_33 = arith.constant dense<0xFF800000> : vector<64xf32>
    %126 = vector.multi_reduction <maximumf>, %125, %cst_33 [0] : vector<4x64xf32> to vector<64xf32>
    %127 = vector.shape_cast %126 : vector<64xf32> to vector<1x64xf32>
    %128 = vector.extract_strided_slice %109 {offsets = [24, 0], sizes = [4, 64], strides = [1, 1]} : vector<45x64xf32> to vector<4x64xf32>
    %cst_34 = arith.constant dense<0xFF800000> : vector<64xf32>
    %129 = vector.multi_reduction <maximumf>, %128, %cst_34 [0] : vector<4x64xf32> to vector<64xf32>
    %130 = vector.shape_cast %129 : vector<64xf32> to vector<1x64xf32>
    %131 = vector.extract_strided_slice %109 {offsets = [28, 0], sizes = [4, 64], strides = [1, 1]} : vector<45x64xf32> to vector<4x64xf32>
    %cst_35 = arith.constant dense<0xFF800000> : vector<64xf32>
    %132 = vector.multi_reduction <maximumf>, %131, %cst_35 [0] : vector<4x64xf32> to vector<64xf32>
    %133 = vector.shape_cast %132 : vector<64xf32> to vector<1x64xf32>
    %134 = vector.extract_strided_slice %109 {offsets = [32, 0], sizes = [4, 64], strides = [1, 1]} : vector<45x64xf32> to vector<4x64xf32>
    %cst_36 = arith.constant dense<0xFF800000> : vector<64xf32>
    %135 = vector.multi_reduction <maximumf>, %134, %cst_36 [0] : vector<4x64xf32> to vector<64xf32>
    %136 = vector.shape_cast %135 : vector<64xf32> to vector<1x64xf32>
    %137 = vector.extract_strided_slice %109 {offsets = [36, 0], sizes = [4, 64], strides = [1, 1]} : vector<45x64xf32> to vector<4x64xf32>
    %cst_37 = arith.constant dense<0xFF800000> : vector<64xf32>
    %138 = vector.multi_reduction <maximumf>, %137, %cst_37 [0] : vector<4x64xf32> to vector<64xf32>
    %139 = vector.shape_cast %138 : vector<64xf32> to vector<1x64xf32>
    %140 = vector.extract_strided_slice %109 {offsets = [40, 0], sizes = [4, 64], strides = [1, 1]} : vector<45x64xf32> to vector<4x64xf32>
    %cst_38 = arith.constant dense<0xFF800000> : vector<64xf32>
    %141 = vector.multi_reduction <maximumf>, %140, %cst_38 [0] : vector<4x64xf32> to vector<64xf32>
    %142 = vector.shape_cast %141 : vector<64xf32> to vector<1x64xf32>
    %143 = tpu.concatenate %112, %115, %118, %121, %124, %127, %130, %133, %136, %139, %142 in 0 : vector<1x64xf32>, vector<1x64xf32>, vector<1x64xf32>, vector<1x64xf32>, vector<1x64xf32>, vector<1x64xf32>, vector<1x64xf32>, vector<1x64xf32>, vector<1x64xf32>, vector<1x64xf32>, vector<1x64xf32> -> vector<11x64xf32>
    %144 = vector.shape_cast %107 : vector<11x64xf32> to vector<1x11x64xf32>
    %145 = vector.shape_cast %143 : vector<11x64xf32> to vector<1x11x64xf32>
    %146 = tpu.concatenate %144, %145 in 0 : vector<1x11x64xf32>, vector<1x11x64xf32> -> vector<2x11x64xf32>
    %c0_39 = arith.constant 0 : index
    %c0_40 = arith.constant 0 : index
    %147 = vector.load %arg5[%c0_39, %c0_40] : memref<320x32xf32, #tpu.memory_space<vmem>>, vector<320x32xf32>
    %c0_41 = arith.constant 0 : index
    %c0_42 = arith.constant 0 : index
    %148 = vector.load %arg6[%c0_41, %c0_42] : memref<1x32xf32, #tpu.memory_space<vmem>>, vector<1x32xf32>
    %149 = vector.extract_strided_slice %146 {offsets = [0, 0, 0], sizes = [1, 11, 64], strides = [1, 1, 1]} : vector<2x11x64xf32> to vector<1x11x64xf32>
    %150 = vector.shape_cast %149 : vector<1x11x64xf32> to vector<11x64xf32>
    %151 = vector.extract_strided_slice %150 {offsets = [0, 0], sizes = [3, 64], strides = [1, 1]} : vector<11x64xf32> to vector<3x64xf32>
    %152 = vector.extract_strided_slice %150 {offsets = [2, 0], sizes = [3, 64], strides = [1, 1]} : vector<11x64xf32> to vector<3x64xf32>
    %153 = vector.extract_strided_slice %150 {offsets = [4, 0], sizes = [3, 64], strides = [1, 1]} : vector<11x64xf32> to vector<3x64xf32>
    %154 = vector.extract_strided_slice %150 {offsets = [6, 0], sizes = [3, 64], strides = [1, 1]} : vector<11x64xf32> to vector<3x64xf32>
    %155 = vector.extract_strided_slice %150 {offsets = [8, 0], sizes = [3, 64], strides = [1, 1]} : vector<11x64xf32> to vector<3x64xf32>
    %156 = tpu.concatenate %151, %152, %153, %154, %155 in 1 : vector<3x64xf32>, vector<3x64xf32>, vector<3x64xf32>, vector<3x64xf32>, vector<3x64xf32> -> vector<3x320xf32>
    %cst_43 = arith.constant dense<0.000000e+00> : vector<3x32xf32>
    %157 = tpu.matmul %156, %147, %cst_43 {dimension_numbers = #tpu.dot_dimension_numbers<[1], [0], [0], [1], [0, 0, 1, 1], [], []>} : vector<3x320xf32>, vector<320x32xf32>, vector<3x32xf32> -> vector<3x32xf32>
    %158 = vector.broadcast %148 : vector<1x32xf32> to vector<3x32xf32>
    %159 = arith.addf %157, %158 : vector<3x32xf32>
    %cst_44 = arith.constant 0.000000e+00 : f32
    %160 = vector.broadcast %cst_44 : f32 to vector<3x32xf32>
    %161 = arith.maximumf %159, %160 : vector<3x32xf32>
    %162 = vector.extract_strided_slice %146 {offsets = [1, 0, 0], sizes = [1, 11, 64], strides = [1, 1, 1]} : vector<2x11x64xf32> to vector<1x11x64xf32>
    %163 = vector.shape_cast %162 : vector<1x11x64xf32> to vector<11x64xf32>
    %164 = vector.extract_strided_slice %163 {offsets = [0, 0], sizes = [3, 64], strides = [1, 1]} : vector<11x64xf32> to vector<3x64xf32>
    %165 = vector.extract_strided_slice %163 {offsets = [2, 0], sizes = [3, 64], strides = [1, 1]} : vector<11x64xf32> to vector<3x64xf32>
    %166 = vector.extract_strided_slice %163 {offsets = [4, 0], sizes = [3, 64], strides = [1, 1]} : vector<11x64xf32> to vector<3x64xf32>
    %167 = vector.extract_strided_slice %163 {offsets = [6, 0], sizes = [3, 64], strides = [1, 1]} : vector<11x64xf32> to vector<3x64xf32>
    %168 = vector.extract_strided_slice %163 {offsets = [8, 0], sizes = [3, 64], strides = [1, 1]} : vector<11x64xf32> to vector<3x64xf32>
    %169 = tpu.concatenate %164, %165, %166, %167, %168 in 1 : vector<3x64xf32>, vector<3x64xf32>, vector<3x64xf32>, vector<3x64xf32>, vector<3x64xf32> -> vector<3x320xf32>
    %cst_45 = arith.constant dense<0.000000e+00> : vector<3x32xf32>
    %170 = tpu.matmul %169, %147, %cst_45 {dimension_numbers = #tpu.dot_dimension_numbers<[1], [0], [0], [1], [0, 0, 1, 1], [], []>} : vector<3x320xf32>, vector<320x32xf32>, vector<3x32xf32> -> vector<3x32xf32>
    %171 = vector.broadcast %148 : vector<1x32xf32> to vector<3x32xf32>
    %172 = arith.addf %170, %171 : vector<3x32xf32>
    %cst_46 = arith.constant 0.000000e+00 : f32
    %173 = vector.broadcast %cst_46 : f32 to vector<3x32xf32>
    %174 = arith.maximumf %172, %173 : vector<3x32xf32>
    %175 = vector.shape_cast %161 : vector<3x32xf32> to vector<1x3x32xf32>
    %176 = vector.shape_cast %174 : vector<3x32xf32> to vector<1x3x32xf32>
    %177 = tpu.concatenate %175, %176 in 0 : vector<1x3x32xf32>, vector<1x3x32xf32> -> vector<2x3x32xf32>
    %c0_47 = arith.constant 0 : index
    %c0_48 = arith.constant 0 : index
    %178 = vector.load %arg7[%c0_47, %c0_48] : memref<256x32xf32, #tpu.memory_space<vmem>>, vector<256x32xf32>
    %c0_49 = arith.constant 0 : index
    %c0_50 = arith.constant 0 : index
    %179 = vector.load %arg8[%c0_49, %c0_50] : memref<1x32xf32, #tpu.memory_space<vmem>>, vector<1x32xf32>
    %180 = vector.extract_strided_slice %146 {offsets = [0, 0, 0], sizes = [1, 11, 64], strides = [1, 1, 1]} : vector<2x11x64xf32> to vector<1x11x64xf32>
    %181 = vector.shape_cast %180 : vector<1x11x64xf32> to vector<11x64xf32>
    %182 = vector.extract_strided_slice %181 {offsets = [0, 0], sizes = [2, 64], strides = [1, 1]} : vector<11x64xf32> to vector<2x64xf32>
    %183 = vector.extract_strided_slice %181 {offsets = [3, 0], sizes = [2, 64], strides = [1, 1]} : vector<11x64xf32> to vector<2x64xf32>
    %184 = vector.extract_strided_slice %181 {offsets = [6, 0], sizes = [2, 64], strides = [1, 1]} : vector<11x64xf32> to vector<2x64xf32>
    %185 = vector.extract_strided_slice %181 {offsets = [9, 0], sizes = [2, 64], strides = [1, 1]} : vector<11x64xf32> to vector<2x64xf32>
    %186 = tpu.concatenate %182, %183, %184, %185 in 1 : vector<2x64xf32>, vector<2x64xf32>, vector<2x64xf32>, vector<2x64xf32> -> vector<2x256xf32>
    %cst_51 = arith.constant dense<0.000000e+00> : vector<2x32xf32>
    %187 = tpu.matmul %186, %178, %cst_51 {dimension_numbers = #tpu.dot_dimension_numbers<[1], [0], [0], [1], [0, 0, 1, 1], [], []>} : vector<2x256xf32>, vector<256x32xf32>, vector<2x32xf32> -> vector<2x32xf32>
    %188 = vector.broadcast %179 : vector<1x32xf32> to vector<2x32xf32>
    %189 = arith.addf %187, %188 : vector<2x32xf32>
    %cst_52 = arith.constant 0.000000e+00 : f32
    %190 = vector.broadcast %cst_52 : f32 to vector<2x32xf32>
    %191 = arith.maximumf %189, %190 : vector<2x32xf32>
    %192 = vector.extract_strided_slice %146 {offsets = [1, 0, 0], sizes = [1, 11, 64], strides = [1, 1, 1]} : vector<2x11x64xf32> to vector<1x11x64xf32>
    %193 = vector.shape_cast %192 : vector<1x11x64xf32> to vector<11x64xf32>
    %194 = vector.extract_strided_slice %193 {offsets = [0, 0], sizes = [2, 64], strides = [1, 1]} : vector<11x64xf32> to vector<2x64xf32>
    %195 = vector.extract_strided_slice %193 {offsets = [3, 0], sizes = [2, 64], strides = [1, 1]} : vector<11x64xf32> to vector<2x64xf32>
    %196 = vector.extract_strided_slice %193 {offsets = [6, 0], sizes = [2, 64], strides = [1, 1]} : vector<11x64xf32> to vector<2x64xf32>
    %197 = vector.extract_strided_slice %193 {offsets = [9, 0], sizes = [2, 64], strides = [1, 1]} : vector<11x64xf32> to vector<2x64xf32>
    %198 = tpu.concatenate %194, %195, %196, %197 in 1 : vector<2x64xf32>, vector<2x64xf32>, vector<2x64xf32>, vector<2x64xf32> -> vector<2x256xf32>
    %cst_53 = arith.constant dense<0.000000e+00> : vector<2x32xf32>
    %199 = tpu.matmul %198, %178, %cst_53 {dimension_numbers = #tpu.dot_dimension_numbers<[1], [0], [0], [1], [0, 0, 1, 1], [], []>} : vector<2x256xf32>, vector<256x32xf32>, vector<2x32xf32> -> vector<2x32xf32>
    %200 = vector.broadcast %179 : vector<1x32xf32> to vector<2x32xf32>
    %201 = arith.addf %199, %200 : vector<2x32xf32>
    %cst_54 = arith.constant 0.000000e+00 : f32
    %202 = vector.broadcast %cst_54 : f32 to vector<2x32xf32>
    %203 = arith.maximumf %201, %202 : vector<2x32xf32>
    %204 = vector.shape_cast %191 : vector<2x32xf32> to vector<1x2x32xf32>
    %205 = vector.shape_cast %203 : vector<2x32xf32> to vector<1x2x32xf32>
    %206 = tpu.concatenate %204, %205 in 0 : vector<1x2x32xf32>, vector<1x2x32xf32> -> vector<2x2x32xf32>
    %c0_55 = arith.constant 0 : index
    %c0_56 = arith.constant 0 : index
    %207 = vector.load %arg9[%c0_55, %c0_56] : memref<192x32xf32, #tpu.memory_space<vmem>>, vector<192x32xf32>
    %c0_57 = arith.constant 0 : index
    %c0_58 = arith.constant 0 : index
    %208 = vector.load %arg10[%c0_57, %c0_58] : memref<1x32xf32, #tpu.memory_space<vmem>>, vector<1x32xf32>
    %209 = vector.extract_strided_slice %146 {offsets = [0, 0, 0], sizes = [1, 11, 64], strides = [1, 1, 1]} : vector<2x11x64xf32> to vector<1x11x64xf32>
    %210 = vector.shape_cast %209 : vector<1x11x64xf32> to vector<11x64xf32>
    %211 = vector.extract_strided_slice %210 {offsets = [0, 0], sizes = [3, 64], strides = [1, 1]} : vector<11x64xf32> to vector<3x64xf32>
    %212 = vector.extract_strided_slice %210 {offsets = [4, 0], sizes = [3, 64], strides = [1, 1]} : vector<11x64xf32> to vector<3x64xf32>
    %213 = vector.extract_strided_slice %210 {offsets = [8, 0], sizes = [3, 64], strides = [1, 1]} : vector<11x64xf32> to vector<3x64xf32>
    %214 = tpu.concatenate %211, %212, %213 in 1 : vector<3x64xf32>, vector<3x64xf32>, vector<3x64xf32> -> vector<3x192xf32>
    %cst_59 = arith.constant dense<0.000000e+00> : vector<3x32xf32>
    %215 = tpu.matmul %214, %207, %cst_59 {dimension_numbers = #tpu.dot_dimension_numbers<[1], [0], [0], [1], [0, 0, 1, 1], [], []>} : vector<3x192xf32>, vector<192x32xf32>, vector<3x32xf32> -> vector<3x32xf32>
    %216 = vector.broadcast %208 : vector<1x32xf32> to vector<3x32xf32>
    %217 = arith.addf %215, %216 : vector<3x32xf32>
    %cst_60 = arith.constant 0.000000e+00 : f32
    %218 = vector.broadcast %cst_60 : f32 to vector<3x32xf32>
    %219 = arith.maximumf %217, %218 : vector<3x32xf32>
    %220 = vector.extract_strided_slice %146 {offsets = [1, 0, 0], sizes = [1, 11, 64], strides = [1, 1, 1]} : vector<2x11x64xf32> to vector<1x11x64xf32>
    %221 = vector.shape_cast %220 : vector<1x11x64xf32> to vector<11x64xf32>
    %222 = vector.extract_strided_slice %221 {offsets = [0, 0], sizes = [3, 64], strides = [1, 1]} : vector<11x64xf32> to vector<3x64xf32>
    %223 = vector.extract_strided_slice %221 {offsets = [4, 0], sizes = [3, 64], strides = [1, 1]} : vector<11x64xf32> to vector<3x64xf32>
    %224 = vector.extract_strided_slice %221 {offsets = [8, 0], sizes = [3, 64], strides = [1, 1]} : vector<11x64xf32> to vector<3x64xf32>
    %225 = tpu.concatenate %222, %223, %224 in 1 : vector<3x64xf32>, vector<3x64xf32>, vector<3x64xf32> -> vector<3x192xf32>
    %cst_61 = arith.constant dense<0.000000e+00> : vector<3x32xf32>
    %226 = tpu.matmul %225, %207, %cst_61 {dimension_numbers = #tpu.dot_dimension_numbers<[1], [0], [0], [1], [0, 0, 1, 1], [], []>} : vector<3x192xf32>, vector<192x32xf32>, vector<3x32xf32> -> vector<3x32xf32>
    %227 = vector.broadcast %208 : vector<1x32xf32> to vector<3x32xf32>
    %228 = arith.addf %226, %227 : vector<3x32xf32>
    %cst_62 = arith.constant 0.000000e+00 : f32
    %229 = vector.broadcast %cst_62 : f32 to vector<3x32xf32>
    %230 = arith.maximumf %228, %229 : vector<3x32xf32>
    %231 = vector.shape_cast %219 : vector<3x32xf32> to vector<1x3x32xf32>
    %232 = vector.shape_cast %230 : vector<3x32xf32> to vector<1x3x32xf32>
    %233 = tpu.concatenate %231, %232 in 0 : vector<1x3x32xf32>, vector<1x3x32xf32> -> vector<2x3x32xf32>
    %234 = tpu.concatenate %177, %206, %233 in 1 : vector<2x3x32xf32>, vector<2x2x32xf32>, vector<2x3x32xf32> -> vector<2x8x32xf32>
    %cst_63 = arith.constant dense<0.000000e+00> : vector<2x32xf32>
    %235 = vector.multi_reduction <add>, %234, %cst_63 [1] : vector<2x8x32xf32> to vector<2x32xf32>
    %cst_64 = arith.constant 8.000000e+00 : f32
    %236 = vector.broadcast %cst_64 : f32 to vector<2x32xf32>
    %237 = arith.divf %235, %236 : vector<2x32xf32>
    %c0_65 = arith.constant 0 : index
    %c0_66 = arith.constant 0 : index
    %238 = vector.load %arg11[%c0_65, %c0_66] : memref<2x32xf32, #tpu.memory_space<vmem>>, vector<2x32xf32>
    %c0_67 = arith.constant 0 : index
    %c0_68 = arith.constant 0 : index
    %239 = vector.load %arg12[%c0_67, %c0_68] : memref<2x32xf32, #tpu.memory_space<vmem>>, vector<2x32xf32>
    %240 = vector.extract_strided_slice %238 {offsets = [0, 0], sizes = [1, 32], strides = [1, 1]} : vector<2x32xf32> to vector<1x32xf32>
    %241 = vector.broadcast %240 : vector<1x32xf32> to vector<2x32xf32>
    %242 = arith.mulf %237, %241 : vector<2x32xf32>
    %cst_69 = arith.constant dense<0.000000e+00> : vector<2xf32>
    %243 = vector.multi_reduction <add>, %242, %cst_69 [1] : vector<2x32xf32> to vector<2xf32>
    %244 = vector.shape_cast %243 : vector<2xf32> to vector<2x1xf32>
    %cst_70 = arith.constant 0.000000e+00 : f32
    %245 = vector.broadcast %cst_70 : f32 to vector<2x1xf32>
    %246 = arith.maximumf %244, %245 : vector<2x1xf32>
    %247 = vector.extract_strided_slice %238 {offsets = [1, 0], sizes = [1, 32], strides = [1, 1]} : vector<2x32xf32> to vector<1x32xf32>
    %248 = vector.broadcast %247 : vector<1x32xf32> to vector<2x32xf32>
    %249 = arith.mulf %237, %248 : vector<2x32xf32>
    %cst_71 = arith.constant dense<0.000000e+00> : vector<2xf32>
    %250 = vector.multi_reduction <add>, %249, %cst_71 [1] : vector<2x32xf32> to vector<2xf32>
    %251 = vector.shape_cast %250 : vector<2xf32> to vector<2x1xf32>
    %cst_72 = arith.constant 0.000000e+00 : f32
    %252 = vector.broadcast %cst_72 : f32 to vector<2x1xf32>
    %253 = arith.maximumf %251, %252 : vector<2x1xf32>
    %254 = vector.extract_strided_slice %239 {offsets = [0, 0], sizes = [1, 32], strides = [1, 1]} : vector<2x32xf32> to vector<1x32xf32>
    %255 = vector.broadcast %246 : vector<2x1xf32> to vector<2x32xf32>
    %256 = vector.broadcast %254 : vector<1x32xf32> to vector<2x32xf32>
    %257 = arith.mulf %255, %256 : vector<2x32xf32>
    %258 = vector.extract_strided_slice %239 {offsets = [1, 0], sizes = [1, 32], strides = [1, 1]} : vector<2x32xf32> to vector<1x32xf32>
    %259 = vector.broadcast %253 : vector<2x1xf32> to vector<2x32xf32>
    %260 = vector.broadcast %258 : vector<1x32xf32> to vector<2x32xf32>
    %261 = arith.mulf %259, %260 : vector<2x32xf32>
    %262 = arith.addf %257, %261 : vector<2x32xf32>
    %263 = arith.negf %262 : vector<2x32xf32>
    %264 = math.exp %263 : vector<2x32xf32>
    %cst_73 = arith.constant 1.000000e+00 : f32
    %265 = vector.broadcast %cst_73 : f32 to vector<2x32xf32>
    %266 = arith.addf %265, %264 : vector<2x32xf32>
    %267 = arith.divf %265, %266 : vector<2x32xf32>
    %268 = vector.shape_cast %267 : vector<2x32xf32> to vector<2x1x32xf32>
    %269 = vector.broadcast %268 : vector<2x1x32xf32> to vector<2x8x32xf32>
    %270 = arith.mulf %234, %269 : vector<2x8x32xf32>
    %271 = vector.extract_strided_slice %270 {offsets = [0, 0, 0], sizes = [2, 1, 32], strides = [1, 1, 1]} : vector<2x8x32xf32> to vector<2x1x32xf32>
    %272 = vector.shape_cast %271 : vector<2x1x32xf32> to vector<2x32xf32>
    %273 = vector.extract_strided_slice %270 {offsets = [0, 1, 0], sizes = [2, 1, 32], strides = [1, 1, 1]} : vector<2x8x32xf32> to vector<2x1x32xf32>
    %274 = vector.shape_cast %273 : vector<2x1x32xf32> to vector<2x32xf32>
    %275 = vector.extract_strided_slice %270 {offsets = [0, 2, 0], sizes = [2, 1, 32], strides = [1, 1, 1]} : vector<2x8x32xf32> to vector<2x1x32xf32>
    %276 = vector.shape_cast %275 : vector<2x1x32xf32> to vector<2x32xf32>
    %277 = vector.extract_strided_slice %270 {offsets = [0, 3, 0], sizes = [2, 1, 32], strides = [1, 1, 1]} : vector<2x8x32xf32> to vector<2x1x32xf32>
    %278 = vector.shape_cast %277 : vector<2x1x32xf32> to vector<2x32xf32>
    %279 = vector.extract_strided_slice %270 {offsets = [0, 4, 0], sizes = [2, 1, 32], strides = [1, 1, 1]} : vector<2x8x32xf32> to vector<2x1x32xf32>
    %280 = vector.shape_cast %279 : vector<2x1x32xf32> to vector<2x32xf32>
    %281 = vector.extract_strided_slice %270 {offsets = [0, 5, 0], sizes = [2, 1, 32], strides = [1, 1, 1]} : vector<2x8x32xf32> to vector<2x1x32xf32>
    %282 = vector.shape_cast %281 : vector<2x1x32xf32> to vector<2x32xf32>
    %283 = vector.extract_strided_slice %270 {offsets = [0, 6, 0], sizes = [2, 1, 32], strides = [1, 1, 1]} : vector<2x8x32xf32> to vector<2x1x32xf32>
    %284 = vector.shape_cast %283 : vector<2x1x32xf32> to vector<2x32xf32>
    %285 = vector.extract_strided_slice %270 {offsets = [0, 7, 0], sizes = [2, 1, 32], strides = [1, 1, 1]} : vector<2x8x32xf32> to vector<2x1x32xf32>
    %286 = vector.shape_cast %285 : vector<2x1x32xf32> to vector<2x32xf32>
    %287 = tpu.concatenate %272, %274, %276, %278, %280, %282, %284, %286 in 1 : vector<2x32xf32>, vector<2x32xf32>, vector<2x32xf32>, vector<2x32xf32>, vector<2x32xf32>, vector<2x32xf32>, vector<2x32xf32>, vector<2x32xf32> -> vector<2x256xf32>
    %c0_74 = arith.constant 0 : index
    %c0_75 = arith.constant 0 : index
    %288 = vector.load %arg13[%c0_74, %c0_75] : memref<256x512xf32, #tpu.memory_space<vmem>>, vector<256x512xf32>
    %cst_76 = arith.constant dense<0.000000e+00> : vector<2x512xf32>
    %289 = tpu.matmul %287, %288, %cst_76 {dimension_numbers = #tpu.dot_dimension_numbers<[1], [0], [0], [1], [0, 0, 1, 1], [], []>} : vector<2x256xf32>, vector<256x512xf32>, vector<2x512xf32> -> vector<2x512xf32>
    %c0_77 = arith.constant 0 : index
    %c0_78 = arith.constant 0 : index
    %290 = vector.load %arg14[%c0_77, %c0_78] : memref<1x512xf32, #tpu.memory_space<vmem>>, vector<1x512xf32>
    %291 = vector.broadcast %290 : vector<1x512xf32> to vector<2x512xf32>
    %292 = arith.addf %289, %291 : vector<2x512xf32>
    %cst_79 = arith.constant 0.000000e+00 : f32
    %293 = vector.broadcast %cst_79 : f32 to vector<2x512xf32>
    %294 = arith.maximumf %292, %293 : vector<2x512xf32>
    %c0_80 = arith.constant 0 : index
    %c0_81 = arith.constant 0 : index
    %295 = vector.load %arg15[%c0_80, %c0_81] : memref<512x128xf32, #tpu.memory_space<vmem>>, vector<512x128xf32>
    %cst_82 = arith.constant dense<0.000000e+00> : vector<2x128xf32>
    %296 = tpu.matmul %294, %295, %cst_82 {dimension_numbers = #tpu.dot_dimension_numbers<[1], [0], [0], [1], [0, 0, 1, 1], [], []>} : vector<2x512xf32>, vector<512x128xf32>, vector<2x128xf32> -> vector<2x128xf32>
    %c0_83 = arith.constant 0 : index
    %c0_84 = arith.constant 0 : index
    %297 = vector.load %arg16[%c0_83, %c0_84] : memref<1x128xf32, #tpu.memory_space<vmem>>, vector<1x128xf32>
    %298 = vector.broadcast %297 : vector<1x128xf32> to vector<2x128xf32>
    %299 = arith.addf %296, %298 : vector<2x128xf32>
    %cst_85 = arith.constant 0.000000e+00 : f32
    %300 = vector.broadcast %cst_85 : f32 to vector<2x128xf32>
    %301 = arith.maximumf %299, %300 : vector<2x128xf32>
    %c0_86 = arith.constant 0 : index
    %c0_87 = arith.constant 0 : index
    %302 = vector.load %arg19[%c0_86, %c0_87] : memref<2x128xf32, #tpu.memory_space<vmem>>, vector<2x128xf32>
    tpu.vector_store %arg19[%c0_86, %c0_87], %301 {strides = array<i32>} : memref<2x128xf32, #tpu.memory_space<vmem>>, vector<2x128xf32>,
    %c0_88 = arith.constant 0 : index
    %c0_89 = arith.constant 0 : index
    %303 = vector.load %arg17[%c0_88, %c0_89] : memref<128x128xf32, #tpu.memory_space<vmem>>, vector<128x128xf32>
    %cst_90 = arith.constant dense<0.000000e+00> : vector<2x128xf32>
    %304 = tpu.matmul %301, %303, %cst_90 {dimension_numbers = #tpu.dot_dimension_numbers<[1], [0], [0], [1], [0, 0, 1, 1], [], []>} : vector<2x128xf32>, vector<128x128xf32>, vector<2x128xf32> -> vector<2x128xf32>
    %c0_91 = arith.constant 0 : index
    %c0_92 = arith.constant 0 : index
    %305 = vector.load %arg18[%c0_91, %c0_92] : memref<1x128xf32, #tpu.memory_space<vmem>>, vector<1x128xf32>
    %306 = vector.broadcast %305 : vector<1x128xf32> to vector<2x128xf32>
    %307 = arith.addf %304, %306 : vector<2x128xf32>
    %c0_93 = arith.constant 0 : index
    %c0_94 = arith.constant 0 : index
    %308 = vector.load %arg20[%c0_93, %c0_94] : memref<2x128xf32, #tpu.memory_space<vmem>>, vector<2x128xf32>
    tpu.vector_store %arg20[%c0_93, %c0_94], %307 {strides = array<i32>} : memref<2x128xf32, #tpu.memory_space<vmem>>, vector<2x128xf32>,
    return
  }
}

</mosaic_0001>

<bundles_post_ra>
// kernel: squeeze.1
= control target key start
LH: loop header
LB: loop body
LE: loop exit
PB: predicated region body
PF: predicated region fallthrough
CT: control target
= control target key end

     0   :  { %s2341_s11 = smov 48  ;;  %vm2343_vm0 = vcmask 1045508   ;;  %s2346_s14 = smov 192  ;;  %vm2348_vm1 = vcmask 1047558   ;;  %vm2361_vm2 = vcmask 1047556   ;;  %vm1758_vm3 = vcmask 261120   ;;  %s6625_s0 = inlined_call_operand.vmem [shape: bf16[2,14976], index: 0, kind: input, shape index: {}]   ;;  %s6626_s1 = inlined_call_operand.vmem [shape: bf16[2,468,32], index: 1, kind: output, shape index: {}]  }
   0x1   :  { %v4694_v0 = vld [vmem:[%s6625_s0 + $0x7] sm:$0x1]  ;;  %v4695_v1 = vld [vmem:[%s6625_s0 + $0x6] sm:$0x1]  ;;  %v4696_v2 = vld [vmem:[%s6625_s0 + $0x5] sm:$0x1] }
   0x2   :  { %v1650_v3 = vunpack.c.l.bf16 %v4694_v0  ;;  %v1665_v4 = vunpack.c.l.bf16 %v4695_v1  ;;  %v1680_v5 = vunpack.c.l.bf16 %v4696_v2  ;;  %v4697_v6 = vld [vmem:[%s6625_s0 + $0x4] sm:$0x1]  ;;  %v4698_v7 = vld [vmem:[%s6625_s0 + $0x3] sm:$0x1]  ;;  %v4699_v8 = vld [vmem:[%s6625_s0 + $0x2] sm:$0x1] }
   0x3   :  { %v1695_v9 = vunpack.c.l.bf16 %v4697_v6  ;;  %v4700_v10 = vld [vmem:[%s6625_s0 + $0x1] sm:$0x1]  ;;  %v1710_v11 = vunpack.c.l.bf16 %v4698_v7  ;;  %v1753_v12 = vld [vmem:[%s6625_s0] sm:$0x1]  ;;  %v1725_v13 = vunpack.c.l.bf16 %v4699_v8  ;;  %v4678_v14 = vld [vmem:[%s6625_s0 + $0x17] sm:$0x1] }
   0x4   :  { %1653 = vst [vmem:[#allocation1 + $0x38] sm:$0x3] %v1650_v3  ;;  %v1740_v15 = vunpack.c.l.bf16 %v4700_v10  ;;  %v4679_v16 = vld [vmem:[%s6625_s0 + $0x16] sm:$0x1]  ;;  %v1754_v17 = vunpack.c.l.bf16 %v1753_v12  ;;  %v4680_v18 = vld [vmem:[%s6625_s0 + $0x15] sm:$0x1]  ;;  %v1410_v19 = vunpack.c.l.bf16 %v4678_v14 }
   0x5   :  { %1668 = vst [vmem:[#allocation1 + $0x30] sm:$0x3] %v1665_v4  ;;  %v4681_v20 = vld [vmem:[%s6625_s0 + $0x14] sm:$0x1]  ;;  %v1425_v21 = vunpack.c.l.bf16 %v4679_v16  ;;  %v4682_v22 = vld [vmem:[%s6625_s0 + $0x13] sm:$0x1]  ;;  %v1440_v23 = vunpack.c.l.bf16 %v4680_v18 }
   0x6   :  { %1683 = vst [vmem:[#allocation1 + $0x28] sm:$0x3] %v1680_v5  ;;  %v4683_v24 = vld [vmem:[%s6625_s0 + $0x12] sm:$0x1]  ;;  %v1455_v25 = vunpack.c.l.bf16 %v4681_v20  ;;  %v1470_v26 = vunpack.c.l.bf16 %v4682_v22  ;;  %v4684_v27 = vld [vmem:[%s6625_s0 + $0x11] sm:$0x1] }
   0x7   :  { %1698 = vst [vmem:[#allocation1 + $0x20] sm:$0x3] %v1695_v9  ;;  %v1485_v28 = vunpack.c.l.bf16 %v4683_v24  ;;  %v4685_v29 = vld [vmem:[%s6625_s0 + $0x10] sm:$0x1]  ;;  %v4686_v30 = vld [vmem:[%s6625_s0 + $0xf] sm:$0x1]  ;;  %v1500_v31 = vunpack.c.l.bf16 %v4684_v27 }
   0x8   :  { %1713 = vst [vmem:[#allocation1 + $0x18] sm:$0x3] %v1710_v11  ;;  %v4687_v32 = vld [vmem:[%s6625_s0 + $0xe] sm:$0x1]  ;;  %v1515_v33 = vunpack.c.l.bf16 %v4685_v29  ;;  %v4688_v34 = vld [vmem:[%s6625_s0 + $0xd] sm:$0x1]  ;;  %v1530_v35 = vunpack.c.l.bf16 %v4686_v30 }
   0x9   :  { %1728 = vst [vmem:[#allocation1 + $0x10] sm:$0x3] %v1725_v13  ;;  %v4689_v36 = vld [vmem:[%s6625_s0 + $0xc] sm:$0x1]  ;;  %v4690_v37 = vld [vmem:[%s6625_s0 + $0xb] sm:$0x1]  ;;  %v1545_v40 = vunpack.c.l.bf16 %v4687_v32  ;;  %v1560_v43 = vunpack.c.l.bf16 %v4688_v34 }
   0xa   :  { %1743 = vst [vmem:[#allocation1 + $0x8] sm:$0x3] %v1740_v15  ;;  %v4691_v44 = vld [vmem:[%s6625_s0 + $0xa] sm:$0x1]  ;;  %v1575_v46 = vunpack.c.l.bf16 %v4689_v36  ;;  %s5369_s23 = smov 96   ;;  %v1590_v47 = vunpack.c.l.bf16 %v4690_v37  ;;  %s2405_s3 = smov 48 }
   0xb   :  { %1756 = vst [vmem:[#allocation1] sm:$0x3] %v1754_v17  ;;  %v4662_v48 = vld [vmem:[%s6625_s0 + $0x27] sm:$0x1]  ;;  %v1605_v49 = vunpack.c.l.bf16 %v4691_v44  ;;  %v4663_v50 = vld [vmem:[%s6625_s0 + $0x26] sm:$0x1] }
   0xc   :  { %1413 = vst [vmem:[#allocation1 + $0xb8] sm:$0x3] %v1410_v19  ;;  %v4664_v51 = vld [vmem:[%s6625_s0 + $0x25] sm:$0x1]  ;;  %v1170_v52 = vunpack.c.l.bf16 %v4662_v48  ;;  %v4665_v53 = vld [vmem:[%s6625_s0 + $0x24] sm:$0x1]  ;;  %v1185_v54 = vunpack.c.l.bf16 %v4663_v50 }
   0xd   :  { %1428 = vst [vmem:[#allocation1 + $0xb0] sm:$0x3] %v1425_v21  ;;  %v4666_v55 = vld [vmem:[%s6625_s0 + $0x23] sm:$0x1]  ;;  %v1200_v56 = vunpack.c.l.bf16 %v4664_v51  ;;  %v1215_v58 = vunpack.c.l.bf16 %v4665_v53  ;;  %v4667_v59 = vld [vmem:[%s6625_s0 + $0x22] sm:$0x1] }
   0xe   :  { %1443 = vst [vmem:[#allocation1 + $0xa8] sm:$0x3] %v1440_v23  ;;  %v1230_v61 = vunpack.c.l.bf16 %v4666_v55  ;;  %v4668_v62 = vld [vmem:[%s6625_s0 + $0x21] sm:$0x1]  ;;  %s2410_s10 = smov 192  ;;  %v1245_v0 = vunpack.c.l.bf16 %v4667_v59  ;;  %s2469_s5 = smov 48 }
   0xf   :  { %1458 = vst [vmem:[#allocation1 + $0xa0] sm:$0x3] %v1455_v25  ;;  %v4669_v63 = vld [vmem:[%s6625_s0 + $0x20] sm:$0x1]  ;;  %v4670_v1 = vld [vmem:[%s6625_s0 + $0x1f] sm:$0x1]  ;;  %v1260_v5 = vunpack.c.l.bf16 %v4668_v62 }
  0x10   :  { %1473 = vst [vmem:[#allocation1 + $0x98] sm:$0x3] %v1470_v26  ;;  %v4671_v2 = vld [vmem:[%s6625_s0 + $0x1e] sm:$0x1]  ;;  %v1275_v6 = vunpack.c.l.bf16 %v4669_v63  ;;  %v4672_v7 = vld [vmem:[%s6625_s0 + $0x1d] sm:$0x1]  ;;  %v1290_v11 = vunpack.c.l.bf16 %v4670_v1 }
  0x11   :  { %1488 = vst [vmem:[#allocation1 + $0x90] sm:$0x3] %v1485_v28  ;;  %v4673_v8 = vld [vmem:[%s6625_s0 + $0x1c] sm:$0x1]  ;;  %v1305_v14 = vunpack.c.l.bf16 %v4671_v2  ;;  %v4674_v15 = vld [vmem:[%s6625_s0 + $0x1b] sm:$0x1]  ;;  %v1320_v17 = vunpack.c.l.bf16 %v4672_v7 }
  0x12   :  { %v2340_v38 = vld [vmem:[#allocation1] ss:$8 sm:$0xf]   ;;  %v2347_v42 = vld [vmem:[#allocation1 - $0x2f] ss:$8 sm:%s2346_s14]   ;;  %v1335_v19 = vunpack.c.l.bf16 %v4673_v8  ;;  %v1350_v20 = vunpack.c.l.bf16 %v4674_v15  ;;  %s2474_s12 = smov 192 }
  0x13   :  { %v2342_v39 = vld [vmem:[#allocation1] ss:$8 sm:%s2341_s11]   ;;  %1503 = vst [vmem:[#allocation1 + $0x88] sm:$0x3] %v1500_v31  ;;  %v4675_v18 = vld [vmem:[%s6625_s0 + $0x1a] sm:$0x1] }
  0x14   :  { %v2344_v41 = vsel %vm2343_vm0, %v2342_v39, %v2340_v38  ;;  %1518 = vst [vmem:[#allocation1 + $0x80] sm:$0x3] %v1515_v33  ;;  %v4692_v21 = vld [vmem:[%s6625_s0 + $0x9] sm:$0x1]  ;;  %v1365_v22 = vunpack.c.l.bf16 %v4675_v18  ;;  %v4693_v23 = vld [vmem:[%s6625_s0 + $0x8] sm:$0x1] }
  0x15   :  { %v2349_v45 = vsel %vm2348_vm1, %v2347_v42, %v2344_v41  ;;  %1533 = vst [vmem:[#allocation1 + $0x78] sm:$0x3] %v1530_v35  ;;  %v4676_v24 = vld [vmem:[%s6625_s0 + $0x19] sm:$0x1]  ;;  %v1620_v25 = vunpack.c.l.bf16 %v4692_v21  ;;  %v4677_v26 = vld [vmem:[%s6625_s0 + $0x18] sm:$0x1]  ;;  %v1635_v27 = vunpack.c.l.bf16 %v4693_v23 }
  0x16   :  { %2350 = vrot.lane.b32.xlu0 %v2349_v45, %s5369_s23  ;;  %1548 = vst [vmem:[#allocation1 + $0x70] sm:$0x3] %v1545_v40  ;;  %v4654_v28 = vld [vmem:[%s6625_s0 + $0x2f] sm:$0x1]  ;;  %v1380_v29 = vunpack.c.l.bf16 %v4676_v24  ;;  %v1395_v31 = vunpack.c.l.bf16 %v4677_v26  ;;  %v4655_v32 = vld [vmem:[%s6625_s0 + $0x2e] sm:$0x1] }
  0x17   :  { %1563 = vst [vmem:[#allocation1 + $0x68] sm:$0x3] %v1560_v43  ;;  %v1050_v34 = vunpack.c.l.bf16 %v4654_v28  ;;  %v4656_v35 = vld [vmem:[%s6625_s0 + $0x2d] sm:$0x1]  ;;  %s5521_s13 = smov 48  ;;  %v1065_v36 = vunpack.c.l.bf16 %v4655_v32  ;;  %s2378_s16 = smov 192 }
  0x18   :  { %1578 = vst [vmem:[#allocation1 + $0x60] sm:$0x3] %v1575_v46  ;;  %v4657_v37 = vld [vmem:[%s6625_s0 + $0x2c] sm:$0x1]  ;;  %v1080_v42 = vunpack.c.l.bf16 %v4656_v35  ;;  %v4658_v43 = vld [vmem:[%s6625_s0 + $0x2b] sm:$0x1] }
  0x19   :  { %1593 = vst [vmem:[#allocation1 + $0x58] sm:$0x3] %v1590_v47  ;;  %v2358_v40 = vld [vmem:[#allocation1 + $0x11] ss:$8 sm:$0xf]   ;;  %s2437_s21 = smov 48  ;;  %v1110_v55 = vunpack.c.l.bf16 %v4658_v43 }
  0x1a   :  { %1608 = vst [vmem:[#allocation1 + $0x50] sm:$0x3] %v1605_v49  ;;  %v5529_v41 = vld.sshfl [vmem:[#allocation1 + $0x30] sm:$0xff pattern:$0x80911111]   ;;  %v1095_v49 = vunpack.c.l.bf16 %v4657_v37  ;;  %s2442_s2 = smov 192 }
  0x1b   :  { %v2403_v57 = vld [vmem:[#allocation1 + $0x80] ss:$8 sm:$0xf]   ;;  %1173 = vst [vmem:[#allocation1 + $0x138] sm:$0x3] %v1170_v52  ;;  %s2501_s19 = smov 48 }
  0x1c   :  { %v2406_v60 = vld [vmem:[#allocation1 + $0x80] ss:$8 sm:%s2405_s3]   ;;  %1188 = vst [vmem:[#allocation1 + $0x130] sm:$0x3] %v1185_v54  ;;  %v4659_v44 = vld [vmem:[%s6625_s0 + $0x2a] sm:$0x1] }
  0x1d   :  { %1203 = vst [vmem:[#allocation1 + $0x128] sm:$0x3] %v1200_v56  ;;  %v5481_v3 = vld.sshfl [vmem:[#allocation1 + $0x70] sm:$0xff pattern:$0x80911111]   ;;  %v2408_v4 = vsel %vm2343_vm0, %v2406_v60, %v2403_v57  ;;  %s2506_s20 = smov 192 }
  0x1e   :  { %1218 = vst [vmem:[#allocation1 + $0x120] sm:$0x3] %v1215_v58  ;;  %v2422_v47 = vld [vmem:[#allocation1 + $0x91] ss:$8 sm:$0xf]   ;;  %v2362_v58 = vsel %vm2361_vm2, %v5529_v41, %v2358_v40  ;;  %s2533_s9 = smov 48 }
  0x1f   :  { %1233 = vst [vmem:[#allocation1 + $0x118] sm:$0x3] %v1230_v61  ;;  %v5537_v48 = vld.sshfl [vmem:[#allocation1 + $0xb0] sm:$0xff pattern:$0x80911111]   ;;  %v1125_v61 = vunpack.c.l.bf16 %v4659_v44  ;;  %s2565_s28 = smov 48 }
  0x20   :  { %1248 = vst [vmem:[#allocation1 + $0x110] sm:$0x3] %v1245_v0  ;;  %v4660_v52 = vld [vmem:[%s6625_s0 + $0x29] sm:$0x1]  ;;  %v4661_v53 = vld [vmem:[%s6625_s0 + $0x28] sm:$0x1] }
  0x21   :  { %v2390_v9 = vld [vmem:[#allocation1 + $0x51] ss:$8 sm:$0xf]   ;;  %1263 = vst [vmem:[#allocation1 + $0x108] sm:$0x3] %v1260_v5  ;;  %v1140_v0 = vunpack.c.l.bf16 %v4660_v52  ;;  %v1155_v7 = vunpack.c.l.bf16 %v4661_v53  ;;  %s2570_s29 = smov 192 }
  0x22   :  { %v2411_v10 = vld [vmem:[#allocation1 + $0x51] ss:$8 sm:%s2410_s10]   ;;  %v2394_v12 = vsel %vm2361_vm2, %v5481_v3, %v2390_v9  ;;  %1278 = vst [vmem:[#allocation1 + $0x100] sm:$0x3] %v1275_v6  ;;  %v4646_v56 = vld [vmem:[%s6625_s0 + $0x37] sm:$0x1] }
  0x23   :  { %v2413_v13 = vsel %vm2348_vm1, %v2411_v10, %v2408_v4  ;;  %1293 = vst [vmem:[#allocation1 + $0xf8] sm:$0x3] %v1290_v11  ;;  %v4647_v57 = vld [vmem:[%s6625_s0 + $0x36] sm:$0x1]  ;;  %v4648_v1 = vld [vmem:[%s6625_s0 + $0x35] sm:$0x1]  ;;  %v2426_v4 = vsel %vm2361_vm2, %v5537_v48, %v2422_v47  ;;  %v930_v11 = vunpack.c.l.bf16 %v4646_v56 }
  0x24   :  { %v5179_v16 = vpack.i.bf16 %v2413_v13, %v2394_v12  ;;  %1308 = vst [vmem:[#allocation1 + $0xf0] sm:$0x3] %v1305_v14  ;;  %v4649_v12 = vld [vmem:[%s6625_s0 + $0x34] sm:$0x1]  ;;  %v945_v14 = vunpack.c.l.bf16 %v4647_v57  ;;  %v4650_v15 = vld [vmem:[%s6625_s0 + $0x33] sm:$0x1] }
  0x25   :  { %1323 = vst [vmem:[#allocation1 + $0xe8] sm:$0x3] %v1320_v17  ;;  %v960_v17 = vunpack.c.l.bf16 %v4648_v1  ;;  %v4651_v18 = vld [vmem:[%s6625_s0 + $0x32] sm:$0x1]  ;;  %v4652_v21 = vld [vmem:[%s6625_s0 + $0x31] sm:$0x1] }
  0x26   :  { %5180 = vrot.lane.b32.xlu1 %v5179_v16, %s5369_s23  ;;  %1338 = vst [vmem:[#allocation1 + $0xe0] sm:$0x3] %v1335_v19  ;;  %v975_v19 = vunpack.c.l.bf16 %v4649_v12  ;;  %v1005_v23 = vunpack.c.l.bf16 %v4651_v18  ;;  %v4653_v24 = vld [vmem:[%s6625_s0 + $0x30] sm:$0x1]  ;;  %v4639_v26 = vld [vmem:[%s6625_s0 + $0x3e] sm:$0x1]  ;;  %v1020_v28 = vunpack.c.l.bf16 %v4652_v21 }
  0x27   :  { %1353 = vst [vmem:[#allocation1 + $0xd8] sm:$0x3] %v1350_v20  ;;  %v990_v20 = vunpack.c.l.bf16 %v4650_v15  ;;  %v4641_v32 = vld [vmem:[%s6625_s0 + $0x3c] sm:$0x1]  ;;  %v825_v37 = vunpack.c.l.bf16 %v4639_v26  ;;  %v4643_v43 = vld [vmem:[%s6625_s0 + $0x3a] sm:$0x1] }
  0x28   :  { %1368 = vst [vmem:[#allocation1 + $0xd0] sm:$0x3] %v1365_v22  ;;  %v5581_v22 = vld.sshfl [vmem:[#allocation1 + $0x130] sm:$0xff pattern:$0x80911111]   ;;  %s2538_s10 = smov 192 }
  0x29   :  { %v2467_v30 = vld [vmem:[#allocation1 + $0x100] ss:$8 sm:$0xf]   ;;  %1623 = vst [vmem:[#allocation1 + $0x48] sm:$0x3] %v1620_v25  ;;  %s2597_s17 = smov 48 }
  0x2a   :  { %v2470_v33 = vld [vmem:[#allocation1 + $0x100] ss:$8 sm:%s2469_s5]   ;;  %1638 = vst [vmem:[#allocation1 + $0x40] sm:$0x3] %v1635_v27  ;;  %v4638_v25 = vld [vmem:[%s6625_s0 + $0x3f] sm:$0x1] }
  0x2b   :  { %1383 = vst [vmem:[#allocation1 + $0xc8] sm:$0x3] %v1380_v29  ;;  %v5526_v38 = vld.sshfl [vmem:[#allocation1 + $0xf0] sm:$0xff pattern:$0x80911111]   ;;  %v2472_v39 = vsel %vm2343_vm0, %v2470_v33, %v2467_v30  ;;  %v1035_v29 = vunpack.c.l.bf16 %v4653_v24  ;;  %s2602_s18 = smov 192 }
  0x2c   :  { %1398 = vst [vmem:[#allocation1 + $0xc0] sm:$0x3] %v1395_v31  ;;  %v2486_v27 = vld [vmem:[#allocation1 + $0x111] ss:$8 sm:$0xf]   ;;  %v810_v31 = vunpack.c.l.bf16 %v4638_v25  ;;  %s2629_s7 = smov 48 }
  0x2d   :  { %1053 = vst [vmem:[#allocation1 + $0x178] sm:$0x3] %v1050_v34  ;;  %v4640_v30 = vld [vmem:[%s6625_s0 + $0x3d] sm:$0x1]  ;;  %v4642_v33 = vld [vmem:[%s6625_s0 + $0x3b] sm:$0x1]  ;;  %v2490_v34 = vsel %vm2361_vm2, %v5581_v22, %v2486_v27 }
  0x2e   :  { %1068 = vst [vmem:[#allocation1 + $0x170] sm:$0x3] %v1065_v36  ;;  %v870_v47 = vunpack.c.l.bf16 %v4642_v33  ;;  %v4630_v52 = vld [vmem:[%s6625_s0 + $0x47] sm:$0x1]  ;;  %v4631_v53 = vld [vmem:[%s6625_s0 + $0x46] sm:$0x1] }
  0x2f   :  { %v2454_v45 = vld [vmem:[#allocation1 + $0xd1] ss:$8 sm:$0xf]   ;;  %1083 = vst [vmem:[#allocation1 + $0x168] sm:$0x3] %v1080_v42  ;;  %v840_v42 = vunpack.c.l.bf16 %v4640_v30  ;;  %v705_v1 = vunpack.c.l.bf16 %v4631_v53  ;;  %s2634_s8 = smov 192 }
  0x30   :  { %v2475_v46 = vld [vmem:[#allocation1 + $0xd1] ss:$8 sm:%s2474_s12]   ;;  %v2458_v50 = vsel %vm2361_vm2, %v5526_v38, %v2454_v45  ;;  %1098 = vst [vmem:[#allocation1 + $0x160] sm:$0x3] %v1095_v49  ;;  %v855_v45 = vunpack.c.l.bf16 %v4641_v32  ;;  %v4637_v12 = vld [vmem:[%s6625_s0 + $0x40] sm:$0x1] }
  0x31   :  { %v2477_v51 = vsel %vm2348_vm1, %v2475_v46, %v2472_v39  ;;  %v2371_v59 = vld [vmem:[#allocation1 + $0x40] ss:$8 sm:$0xf]   ;;  %v2379_v63 = vld [vmem:[#allocation1 + $0x11] ss:$8 sm:%s2378_s16]   ;;  %s2661_s26 = smov 48 }
  0x32   :  { %v5189_v54 = vpack.i.bf16 %v2477_v51, %v2458_v50  ;;  %v2374_v60 = vld [vmem:[#allocation1 + $0x40] ss:$8 sm:%s5521_s13]   ;;  %1113 = vst [vmem:[#allocation1 + $0x158] sm:$0x3] %v1110_v55  ;;  %v4644_v49 = vld [vmem:[%s6625_s0 + $0x39] sm:$0x1]  ;;  %v885_v51 = vunpack.c.l.bf16 %v4643_v43 }
  0x33   :  { %v2376_v62 = vsel %vm2343_vm0, %v2374_v60, %v2371_v59  ;;  %v2435_v5 = vld [vmem:[#allocation1 + $0xc0] ss:$8 sm:$0xf]   ;;  %v2443_v10 = vld [vmem:[#allocation1 + $0x91] ss:$8 sm:%s2442_s2]   ;;  %v900_v56 = vunpack.c.l.bf16 %v4644_v49  ;;  %v690_v59 = vunpack.c.l.bf16 %v4630_v52  ;;  %s2666_s27 = smov 192 }
  0x34   :  { %5190 = vrot.lane.b32.xlu2 %v5189_v54, %s5369_s23  ;;  %v2381_v2 = vsel %vm2348_vm1, %v2379_v63, %v2376_v62  ;;  %v2438_v6 = vld [vmem:[#allocation1 + $0xc0] ss:$8 sm:%s2437_s21]   ;;  %1128 = vst [vmem:[#allocation1 + $0x150] sm:$0x3] %v1125_v61  ;;  %v4633_v60 = vld [vmem:[%s6625_s0 + $0x44] sm:$0x1] }
  0x35   :  { %v5174_v8 = vpack.i.bf16 %v2381_v2, %v2362_v58  ;;  %v2440_v9 = vsel %vm2343_vm0, %v2438_v6, %v2435_v5  ;;  %1143 = vst [vmem:[#allocation1 + $0x148] sm:$0x3] %v1140_v0  ;;  %v4645_v50 = vld [vmem:[%s6625_s0 + $0x38] sm:$0x1]  ;;  %v4632_v58 = vld [vmem:[%s6625_s0 + $0x45] sm:$0x1] }
  0x36   :  { %v2445_v13 = vsel %vm2348_vm1, %v2443_v10, %v2440_v9  ;;  %1158 = vst [vmem:[#allocation1 + $0x140] sm:$0x3] %v1155_v7  ;;  %v5621_v54 = vld.sshfl [vmem:[#allocation1 + $0x170] sm:$0xff pattern:$0x80911111]   ;;  %v915_v57 = vunpack.c.l.bf16 %v4645_v50  ;;  %v720_v5 = vunpack.c.l.bf16 %v4632_v58  ;;  %s2693_s15 = smov 48 }
  0x37   :  { %5175 = vrot.lane.b32.xlu0 %v5174_v8, %s5369_s23  ;;  %v5184_v16 = vpack.i.bf16 %v2445_v13, %v2426_v4  ;;  %933 = vst [vmem:[#allocation1 + $0x1b8] sm:$0x3] %v930_v11  ;;  %v4634_v61 = vld [vmem:[%s6625_s0 + $0x43] sm:$0x1]  ;;  %v4635_v6 = vld [vmem:[%s6625_s0 + $0x42] sm:$0x1]  ;;  %v735_v8 = vunpack.c.l.bf16 %v4633_v60 }
  0x38   :  { %948 = vst [vmem:[#allocation1 + $0x1b0] sm:$0x3] %v945_v14  ;;  %v750_v10 = vunpack.c.l.bf16 %v4634_v61  ;;  %v4636_v11 = vld [vmem:[%s6625_s0 + $0x41] sm:$0x1]  ;;  %v765_v13 = vunpack.c.l.bf16 %v4635_v6  ;;  %v4622_v14 = vld [vmem:[%s6625_s0 + $0x4f] sm:$0x1] }
  0x39   :  { %5185 = vrot.lane.b32.xlu1 %v5184_v16, %s5369_s23  ;;  %963 = vst [vmem:[#allocation1 + $0x1a8] sm:$0x3] %v960_v17  ;;  %v4623_v15 = vld [vmem:[%s6625_s0 + $0x4e] sm:$0x1]  ;;  %v780_v18 = vunpack.c.l.bf16 %v4636_v11  ;;  %v570_v21 = vunpack.c.l.bf16 %v4622_v14  ;;  %v4626_v24 = vld [vmem:[%s6625_s0 + $0x4b] sm:$0x1] }
  0x3a   :  { %978 = vst [vmem:[#allocation1 + $0x1a0] sm:$0x3] %v975_v19  ;;  %v795_v19 = vunpack.c.l.bf16 %v4637_v12  ;;  %v4627_v32 = vld [vmem:[%s6625_s0 + $0x4a] sm:$0x1]  ;;  %v4615_v43 = vld [vmem:[%s6625_s0 + $0x56] sm:$0x1] }
  0x3b   :  { %993 = vst [vmem:[#allocation1 + $0x198] sm:$0x3] %v990_v20  ;;  %v2518_v55 = vld [vmem:[#allocation1 + $0x151] ss:$8 sm:$0xf]   ;;  %s2698_s16 = smov 192 }
  0x3c   :  { %1008 = vst [vmem:[#allocation1 + $0x190] sm:$0x3] %v1005_v23  ;;  %v2522_v62 = vsel %vm2361_vm2, %v5621_v54, %v2518_v55  ;;  %v4624_v20 = vld [vmem:[%s6625_s0 + $0x4d] sm:$0x1]  ;;  %v4625_v23 = vld [vmem:[%s6625_s0 + $0x4c] sm:$0x1] }
  0x3d   :  { %v2499_v35 = vld [vmem:[#allocation1 + $0x140] ss:$8 sm:$0xf]   ;;  %v2507_v40 = vld [vmem:[#allocation1 + $0x111] ss:$8 sm:%s2506_s20]   ;;  %s2725_s5 = smov 48 }
  0x3e   :  { %v2502_v36 = vld [vmem:[#allocation1 + $0x140] ss:$8 sm:%s2501_s19]   ;;  %1023 = vst [vmem:[#allocation1 + $0x188] sm:$0x3] %v1020_v28  ;;  %v585_v28 = vunpack.c.l.bf16 %v4623_v15  ;;  %v4616_v49 = vld [vmem:[%s6625_s0 + $0x55] sm:$0x1] }
  0x3f   :  { %v2504_v39 = vsel %vm2343_vm0, %v2502_v36, %v2499_v35  ;;  %1038 = vst [vmem:[#allocation1 + $0x180] sm:$0x3] %v1035_v29  ;;  %v5652_v16 = vld.sshfl [vmem:[#allocation1 + $0x1b0] sm:$0xff pattern:$0x80911111]   ;;  %v630_v36 = vunpack.c.l.bf16 %v4626_v24  ;;  %v480_v60 = vunpack.c.l.bf16 %v4616_v49  ;;  %s2730_s6 = smov 192 }
  0x40   :  { %v2509_v44 = vsel %vm2348_vm1, %v2507_v40, %v2504_v39  ;;  %813 = vst [vmem:[#allocation1 + $0x1f8] sm:$0x3] %v810_v31  ;;  %v600_v31 = vunpack.c.l.bf16 %v4624_v20  ;;  %v4629_v39 = vld [vmem:[%s6625_s0 + $0x48] sm:$0x1]  ;;  %v645_v40 = vunpack.c.l.bf16 %v4627_v32  ;;  %v4618_v52 = vld [vmem:[%s6625_s0 + $0x53] sm:$0x1] }
  0x41   :  { %v5194_v46 = vpack.i.bf16 %v2509_v44, %v2490_v34  ;;  %828 = vst [vmem:[#allocation1 + $0x1f0] sm:$0x3] %v825_v37  ;;  %v615_v34 = vunpack.c.l.bf16 %v4625_v23  ;;  %v4628_v37 = vld [vmem:[%s6625_s0 + $0x49] sm:$0x1]  ;;  %v4619_v61 = vld [vmem:[%s6625_s0 + $0x52] sm:$0x1] }
  0x42   :  { %843 = vst [vmem:[#allocation1 + $0x1e8] sm:$0x3] %v840_v42  ;;  %v4614_v42 = vld [vmem:[%s6625_s0 + $0x57] sm:$0x1]  ;;  %v4606_v6 = vld [vmem:[%s6625_s0 + $0x5f] sm:$0x1] }
  0x43   :  { %5195 = vrot.lane.b32.xlu2 %v5194_v46, %s5369_s23  ;;  %858 = vst [vmem:[#allocation1 + $0x1e0] sm:$0x3] %v855_v45  ;;  %v2550_v17 = vld [vmem:[#allocation1 + $0x191] ss:$8 sm:$0xf]   ;;  %v660_v46 = vunpack.c.l.bf16 %v4628_v37  ;;  %v450_v50 = vunpack.c.l.bf16 %v4614_v42  ;;  %s2757_s13 = smov 48 }
  0x44   :  { %873 = vst [vmem:[#allocation1 + $0x1d8] sm:$0x3] %v870_v47  ;;  %v2554_v25 = vsel %vm2361_vm2, %v5652_v16, %v2550_v17  ;;  %v675_v47 = vunpack.c.l.bf16 %v4629_v39  ;;  %v4608_v12 = vld [vmem:[%s6625_s0 + $0x5d] sm:$0x1]  ;;  %v4609_v14 = vld [vmem:[%s6625_s0 + $0x5c] sm:$0x1] }
  0x45   :  { %888 = vst [vmem:[#allocation1 + $0x1d0] sm:$0x3] %v885_v51  ;;  %v4617_v51 = vld [vmem:[%s6625_s0 + $0x54] sm:$0x1]  ;;  %v4610_v15 = vld [vmem:[%s6625_s0 + $0x5b] sm:$0x1]  ;;  %v360_v24 = vunpack.c.l.bf16 %v4608_v12 }
  0x46   :  { %v2531_v63 = vld [vmem:[#allocation1 + $0x180] ss:$8 sm:$0xf]   ;;  %v2539_v4 = vld [vmem:[#allocation1 + $0x151] ss:$8 sm:%s2538_s10]   ;;  %s2762_s14 = smov 192 }
  0x47   :  { %v2534_v0 = vld [vmem:[#allocation1 + $0x180] ss:$8 sm:%s2533_s9]   ;;  %903 = vst [vmem:[#allocation1 + $0x1c8] sm:$0x3] %v900_v56  ;;  %s2915_s19 = smov 192  ;;  %s2794_s20 = smov 192 }
  0x48   :  { %v2536_v2 = vsel %vm2343_vm0, %v2534_v0, %v2531_v63  ;;  %918 = vst [vmem:[#allocation1 + $0x1c0] sm:$0x3] %v915_v57  ;;  %v5683_v44 = vld.sshfl [vmem:[#allocation1 + $0x1f0] sm:$0xff pattern:$0x80911111]   ;;  %v465_v57 = vunpack.c.l.bf16 %v4615_v43  ;;  %v495_v63 = vunpack.c.l.bf16 %v4617_v51  ;;  %s2851_s21 = smov 192 }
  0x49   :  { %v2541_v7 = vsel %vm2348_vm1, %v2539_v4, %v2536_v2  ;;  %693 = vst [vmem:[#allocation1 + $0x238] sm:$0x3] %v690_v59  ;;  %v4620_v2 = vld [vmem:[%s6625_s0 + $0x51] sm:$0x1]  ;;  %v4621_v4 = vld [vmem:[%s6625_s0 + $0x50] sm:$0x1] }
  0x4a   :  { %v5199_v9 = vpack.i.bf16 %v2541_v7, %v2522_v62  ;;  %708 = vst [vmem:[#allocation1 + $0x230] sm:$0x3] %v705_v1  ;;  %v510_v1 = vunpack.c.l.bf16 %v4618_v52  ;;  %v4607_v7 = vld [vmem:[%s6625_s0 + $0x5e] sm:$0x1]  ;;  %v555_v11 = vunpack.c.l.bf16 %v4621_v4  ;;  %v4601_v43 = vld [vmem:[%s6625_s0 + $0x64] sm:$0x1] }
  0x4b   :  { %723 = vst [vmem:[#allocation1 + $0x228] sm:$0x3] %v720_v5  ;;  %v525_v5 = vunpack.c.l.bf16 %v4619_v61  ;;  %v345_v20 = vunpack.c.l.bf16 %v4607_v7  ;;  %v4605_v61 = vld [vmem:[%s6625_s0 + $0x60] sm:$0x1]  ;;  %s2878_s22 = smov 48  ;;  %s2883_s24 = smov 192 }
  0x4c   :  { %5200 = vrot.lane.b32.xlu0 %v5199_v9, %s5369_s23  ;;  %738 = vst [vmem:[#allocation1 + $0x220] sm:$0x3] %v735_v8  ;;  %v2582_v45 = vld [vmem:[#allocation1 + $0x1d1] ss:$8 sm:$0xf]   ;;  %s3006_s25 = smov 48 }
  0x4d   :  { %753 = vst [vmem:[#allocation1 + $0x218] sm:$0x3] %v750_v10  ;;  %v2586_v53 = vsel %vm2361_vm2, %v5683_v44, %v2582_v45  ;;  %v540_v10 = vunpack.c.l.bf16 %v4620_v2  ;;  %v4602_v45 = vld [vmem:[%s6625_s0 + $0x63] sm:$0x1]  ;;  %s2947_s30 = smov 192  ;;  %s2979_s2 = smov 192 }
  0x4e   :  { %768 = vst [vmem:[#allocation1 + $0x210] sm:$0x3] %v765_v13  ;;  %v330_v13 = vunpack.c.l.bf16 %v4606_v6  ;;  %v4592_v6 = vld [vmem:[%s6625_s0 + $0x6d] sm:$0x1]  ;;  %s3102_s3 = smov 48  ;;  %s3038_s4 = smov 48 }
  0x4f   :  { %v2563_v26 = vld [vmem:[#allocation1 + $0x1c0] ss:$8 sm:$0xf]   ;;  %v2571_v30 = vld [vmem:[#allocation1 + $0x191] ss:$8 sm:%s2570_s29]   ;;  %s3011_s29 = smov 192 }
  0x50   :  { %v2566_v27 = vld [vmem:[#allocation1 + $0x1c0] ss:$8 sm:%s2565_s28]   ;;  %783 = vst [vmem:[#allocation1 + $0x208] sm:$0x3] %v780_v18  ;;  %s2942_s28 = smov 48  ;;  %s3134_s9 = smov 48 }
  0x51   :  { %v2568_v29 = vsel %vm2343_vm0, %v2566_v27, %v2563_v26  ;;  %798 = vst [vmem:[#allocation1 + $0x200] sm:$0x3] %v795_v19  ;;  %v5714_v8 = vld.sshfl [vmem:[#allocation1 + $0x230] sm:$0xff pattern:$0x80911111]   ;;  %v375_v27 = vunpack.c.l.bf16 %v4609_v14  ;;  %s3198_s10 = smov 48 }
  0x52   :  { %v2573_v33 = vsel %vm2348_vm1, %v2571_v30, %v2568_v29  ;;  %573 = vst [vmem:[#allocation1 + $0x278] sm:$0x3] %v570_v21  ;;  %v390_v29 = vunpack.c.l.bf16 %v4610_v15  ;;  %v4612_v30 = vld [vmem:[%s6625_s0 + $0x59] sm:$0x1]  ;;  %s3139_s11 = smov 192  ;;  %s3203_s12 = smov 192 }
  0x53   :  { %v5204_v35 = vpack.i.bf16 %v2573_v33, %v2554_v25  ;;  %588 = vst [vmem:[#allocation1 + $0x270] sm:$0x3] %v585_v28  ;;  %v4611_v25 = vld [vmem:[%s6625_s0 + $0x5a] sm:$0x1]  ;;  %v4598_v33 = vld [vmem:[%s6625_s0 + $0x67] sm:$0x1]  ;;  %v420_v37 = vunpack.c.l.bf16 %v4612_v30 }
  0x54   :  { %603 = vst [vmem:[#allocation1 + $0x268] sm:$0x3] %v600_v31  ;;  %v4613_v31 = vld [vmem:[%s6625_s0 + $0x58] sm:$0x1]  ;;  %v405_v32 = vunpack.c.l.bf16 %v4611_v25  ;;  %v210_v42 = vunpack.c.l.bf16 %v4598_v33  ;;  %v4596_v25 = vld [vmem:[%s6625_s0 + $0x69] sm:$0x1] }
  0x55   :  { %5205 = vrot.lane.b32.xlu1 %v5204_v35, %s5369_s23  ;;  %618 = vst [vmem:[#allocation1 + $0x260] sm:$0x3] %v615_v34  ;;  %v2614_v9 = vld [vmem:[#allocation1 + $0x211] ss:$8 sm:$0xf]   ;;  %v435_v39 = vunpack.c.l.bf16 %v4613_v31 }
  0x56   :  { %633 = vst [vmem:[#allocation1 + $0x258] sm:$0x3] %v630_v36  ;;  %v2618_v17 = vsel %vm2361_vm2, %v5714_v8, %v2614_v9  ;;  %v4599_v34 = vld [vmem:[%s6625_s0 + $0x66] sm:$0x1]  ;;  %v4593_v9 = vld [vmem:[%s6625_s0 + $0x6c] sm:$0x1] }
  0x57   :  { %648 = vst [vmem:[#allocation1 + $0x250] sm:$0x3] %v645_v40  ;;  %v4600_v40 = vld [vmem:[%s6625_s0 + $0x65] sm:$0x1] }
  0x58   :  { %v2595_v55 = vld [vmem:[#allocation1 + $0x200] ss:$8 sm:$0xf]   ;;  %v2603_v59 = vld [vmem:[#allocation1 + $0x1d1] ss:$8 sm:%s2602_s18]   ;;  %s2789_s18 = smov 48 }
  0x59   :  { %v2598_v56 = vld [vmem:[#allocation1 + $0x200] ss:$8 sm:%s2597_s17]   ;;  %663 = vst [vmem:[#allocation1 + $0x248] sm:$0x3] %v660_v46  ;;  %s2846_s17 = smov 48 }
  0x5a   :  { %v2600_v58 = vsel %vm2343_vm0, %v2598_v56, %v2595_v55  ;;  %678 = vst [vmem:[#allocation1 + $0x240] sm:$0x3] %v675_v47  ;;  %v5745_v35 = vld.sshfl [vmem:[#allocation1 + $0x270] sm:$0xff pattern:$0x80911111]  }
  0x5b   :  { %v2605_v62 = vsel %vm2348_vm1, %v2603_v59, %v2600_v58  ;;  %453 = vst [vmem:[#allocation1 + $0x2b8] sm:$0x3] %v450_v50  ;;  %v225_v50 = vunpack.c.l.bf16 %v4599_v34  ;;  %v4603_v55 = vld [vmem:[%s6625_s0 + $0x62] sm:$0x1]  ;;  %v270_v59 = vunpack.c.l.bf16 %v4602_v45  ;;  %v4587_v34 = vld [vmem:[%s6625_s0 + $0x72] sm:$0x1] }
  0x5c   :  { %v5209_v0 = vpack.i.bf16 %v2605_v62, %v2586_v53  ;;  %468 = vst [vmem:[#allocation1 + $0x2b0] sm:$0x3] %v465_v57  ;;  %v240_v53 = vunpack.c.l.bf16 %v4600_v40  ;;  %v255_v57 = vunpack.c.l.bf16 %v4601_v43  ;;  %v285_v62 = vunpack.c.l.bf16 %v4603_v55 }
  0x5d   :  { %483 = vst [vmem:[#allocation1 + $0x2a8] sm:$0x3] %v480_v60  ;;  %v4604_v60 = vld [vmem:[%s6625_s0 + $0x61] sm:$0x1] }
  0x5e   :  { %5210 = vrot.lane.b32.xlu2 %v5209_v0, %s5369_s23  ;;  %498 = vst [vmem:[#allocation1 + $0x2a0] sm:$0x3] %v495_v63  ;;  %v2646_v36 = vld [vmem:[#allocation1 + $0x251] ss:$8 sm:$0xf]   ;;  %v300_v4 = vunpack.c.l.bf16 %v4604_v60 }
  0x5f   :  { %513 = vst [vmem:[#allocation1 + $0x298] sm:$0x3] %v510_v1  ;;  %v2650_v46 = vsel %vm2361_vm2, %v5745_v35, %v2646_v36  ;;  %v4590_v63 = vld [vmem:[%s6625_s0 + $0x6f] sm:$0x1]  ;;  %v4591_v0 = vld [vmem:[%s6625_s0 + $0x6e] sm:$0x1] }
  0x60   :  { %528 = vst [vmem:[#allocation1 + $0x290] sm:$0x3] %v525_v5  ;;  %v315_v5 = vunpack.c.l.bf16 %v4605_v61  ;;  %v90_v7 = vunpack.c.l.bf16 %v4590_v63  ;;  %v105_v14 = vunpack.c.l.bf16 %v4591_v0 }
  0x61   :  { %v2627_v18 = vld [vmem:[#allocation1 + $0x240] ss:$8 sm:$0xf]   ;;  %v2635_v23 = vld [vmem:[#allocation1 + $0x211] ss:$8 sm:%s2634_s8]   ;;  %s3075_s8 = smov 192 }
  0x62   :  { %v2630_v19 = vld [vmem:[#allocation1 + $0x240] ss:$8 sm:%s2629_s7]   ;;  %543 = vst [vmem:[#allocation1 + $0x288] sm:$0x3] %v540_v10  ;;  %v4594_v10 = vld [vmem:[%s6625_s0 + $0x6b] sm:$0x1] }
  0x63   :  { %v2632_v21 = vsel %vm2343_vm0, %v2630_v19, %v2627_v18  ;;  %558 = vst [vmem:[#allocation1 + $0x280] sm:$0x3] %v555_v11  ;;  %v5776_v1 = vld.sshfl [vmem:[#allocation1 + $0x2b0] sm:$0xff pattern:$0x80911111]   ;;  %v120_v18 = vunpack.c.l.bf16 %v4592_v6  ;;  %s3070_s7 = smov 48 }
  0x64   :  { %v2637_v26 = vsel %vm2348_vm1, %v2635_v23, %v2632_v21  ;;  %333 = vst [vmem:[#allocation1 + $0x2f8] sm:$0x3] %v330_v13  ;;  %v4595_v19 = vld [vmem:[%s6625_s0 + $0x6a] sm:$0x1]  ;;  %v135_v21 = vunpack.c.l.bf16 %v4593_v9 }
  0x65   :  { %v5214_v28 = vpack.i.bf16 %v2637_v26, %v2618_v17  ;;  %348 = vst [vmem:[#allocation1 + $0x2f0] sm:$0x3] %v345_v20  ;;  %v4597_v26 = vld [vmem:[%s6625_s0 + $0x68] sm:$0x1] }
  0x66   :  { %363 = vst [vmem:[#allocation1 + $0x2e8] sm:$0x3] %v360_v24  ;;  %v150_v24 = vunpack.c.l.bf16 %v4594_v10  ;;  %v195_v33 = vunpack.c.l.bf16 %v4597_v26  ;;  %v2908_v9 = vld [vmem:[#allocation1 + $0xc0] ss:$8 sm:$0xf]  }
  0x67   :  { %5215 = vrot.lane.b32.xlu0 %v5214_v28, %s5369_s23  ;;  %378 = vst [vmem:[#allocation1 + $0x2e0] sm:$0x3] %v375_v27  ;;  %v2678_v2 = vld [vmem:[#allocation1 + $0x291] ss:$8 sm:$0xf]   ;;  %v165_v27 = vunpack.c.l.bf16 %v4595_v19 }
  0x68   :  { %393 = vst [vmem:[#allocation1 + $0x2d8] sm:$0x3] %v390_v29  ;;  %v2682_v11 = vsel %vm2361_vm2, %v5776_v1, %v2678_v2  ;;  %v4585_v28 = vld [vmem:[%s6625_s0 + $0x74] sm:$0x1]  ;;  %v4586_v29 = vld [vmem:[%s6625_s0 + $0x73] sm:$0x1] }
  0x69   :  { %408 = vst [vmem:[#allocation1 + $0x2d0] sm:$0x3] %v405_v32  ;;  %v180_v32 = vunpack.c.l.bf16 %v4596_v25  ;;  %v15_v36 = vunpack.c.l.bf16 %v4585_v28  ;;  %v30_v45 = vunpack.c.l.bf16 %v4586_v29  ;;  %v2852_v26 = vld [vmem:[#allocation1 + $0x11] ss:$8 sm:%s2851_s21]   ;;  %s3287_s21 = smov 48 }
  0x6a   :  { %v2659_v47 = vld [vmem:[#allocation1 + $0x280] ss:$8 sm:$0xf]   ;;  %v2667_v52 = vld [vmem:[#allocation1 + $0x251] ss:$8 sm:%s2666_s27]   ;;  %s2806_s27 = smov 3 }
  0x6b   :  { %v2662_v49 = vld [vmem:[#allocation1 + $0x280] ss:$8 sm:%s2661_s26]   ;;  %423 = vst [vmem:[#allocation1 + $0x2c8] sm:$0x3] %v420_v37  ;;  %v4588_v37 = vld [vmem:[%s6625_s0 + $0x71] sm:$0x1] }
  0x6c   :  { %v2664_v51 = vsel %vm2343_vm0, %v2662_v49, %v2659_v47  ;;  %438 = vst [vmem:[#allocation1 + $0x2c0] sm:$0x3] %v435_v39  ;;  %v5807_v30 = vld.sshfl [vmem:[#allocation1 + $0x2f0] sm:$0xff pattern:$0x80911111]   ;;  %v45_v49 = vunpack.c.l.bf16 %v4587_v34  ;;  %s5370_s26 = smov 64  }
  0x6d   :  { %v2669_v56 = vsel %vm2348_vm1, %v2667_v52, %v2664_v51  ;;  %213 = vst [vmem:[#allocation1 + $0x338] sm:$0x3] %v210_v42  ;;  %v4589_v39 = vld [vmem:[%s6625_s0 + $0x70] sm:$0x1]  ;;  %v60_v51 = vunpack.c.l.bf16 %v4588_v37  ;;  %s2814_s0 = smov 48 }
  0x6e   :  { %v5219_v58 = vpack.i.bf16 %v2669_v56, %v2650_v46  ;;  %228 = vst [vmem:[#allocation1 + $0x330] sm:$0x3] %v225_v50  ;;  %v2815_v61 = vld [vmem:[#allocation1] ss:$8 sm:%s2814_s0]   ;;  %v2884_v34 = vld [vmem:[#allocation1 + $0x51] ss:$8 sm:%s2883_s24]  }
  0x6f   :  { %243 = vst [vmem:[#allocation1 + $0x328] sm:$0x3] %v240_v53  ;;  %v75_v53 = vunpack.c.l.bf16 %v4589_v39  ;;  %v2876_v29 = vld [vmem:[#allocation1 + $0x80] ss:$8 sm:$0xf]   ;;  %s3166_s0 = smov 48 }
  0x70   :  { %5220 = vrot.lane.b32.xlu1 %v5219_v58, %s5369_s23  ;;  %258 = vst [vmem:[#allocation1 + $0x320] sm:$0x3] %v255_v57  ;;  %v2710_v31 = vld [vmem:[#allocation1 + $0x2d1] ss:$8 sm:$0xf]   ;;  %s3351_s24 = smov 48 }
  0x71   :  { %273 = vst [vmem:[#allocation1 + $0x318] sm:$0x3] %v270_v59  ;;  %v2714_v40 = vsel %vm2361_vm2, %v5807_v30, %v2710_v31  ;;  %v2813_v58 = vld [vmem:[#allocation1] ss:$8 sm:$0xf]  }
  0x72   :  { %288 = vst [vmem:[#allocation1 + $0x310] sm:$0x3] %v285_v62  ;;  %v2879_v31 = vld [vmem:[#allocation1 + $0x80] ss:$8 sm:%s2878_s22]   ;;  %s5922_s22 = smov 192 }
  0x73   :  { %v2691_v12 = vld [vmem:[#allocation1 + $0x2c0] ss:$8 sm:$0xf]   ;;  %v2699_v17 = vld [vmem:[#allocation1 + $0x291] ss:$8 sm:%s2698_s16]   ;;  %s2910_s16 = smov 48 }
  0x74   :  { %v2694_v13 = vld [vmem:[#allocation1 + $0x2c0] ss:$8 sm:%s2693_s15]   ;;  %303 = vst [vmem:[#allocation1 + $0x308] sm:$0x3] %v300_v4  ;;  %s2819_s15 = smov 192 }
  0x75   :  { %v2696_v15 = vsel %vm2343_vm0, %v2694_v13, %v2691_v12  ;;  %318 = vst [vmem:[#allocation1 + $0x300] sm:$0x3] %v315_v5  ;;  %v5824_v56 = vld.sshfl [vmem:[#allocation1 + $0x330] sm:$0xff pattern:$0x80911111]   ;;  %v2817_v5 = vsel %vm2343_vm0, %v2815_v61, %v2813_v58 }
  0x76   :  { %v2701_v20 = vsel %vm2348_vm1, %v2699_v17, %v2696_v15  ;;  %93 = vst [vmem:[#allocation1 + $0x378] sm:$0x3] %v90_v7  ;;  %v2820_v6 = vld [vmem:[#allocation1 - $0x2f] ss:$8 sm:%s2819_s15]   ;;  %v2911_v10 = vld [vmem:[#allocation1 + $0xc0] ss:$8 sm:%s2910_s16]  }
  0x77   :  { %v5224_v23 = vpack.i.bf16 %v2701_v20, %v2682_v11  ;;  %108 = vst [vmem:[#allocation1 + $0x370] sm:$0x3] %v105_v14  ;;  %v2844_v12 = vld [vmem:[#allocation1 + $0x40] ss:$8 sm:$0xf]   ;;  %v2822_v14 = vsel %vm2348_vm1, %v2820_v6, %v2817_v5  ;;  %s3235_s15 = smov 192 }
  0x78   :  { %123 = vst [vmem:[#allocation1 + $0x368] sm:$0x3] %v120_v18  ;;  %v2847_v13 = vld [vmem:[#allocation1 + $0x40] ss:$8 sm:%s2846_s17]   ;;  %v2916_v18 = vld [vmem:[#allocation1 + $0x91] ss:$8 sm:%s2915_s19]  }
  0x79   :  { %5225 = vrot.lane.b32.xlu2 %v5224_v23, %s5369_s23  ;;  %138 = vst [vmem:[#allocation1 + $0x360] sm:$0x3] %v135_v21  ;;  %v2742_v57 = vld [vmem:[#allocation1 + $0x311] ss:$8 sm:$0xf]   ;;  %v2913_v21 = vsel %vm2343_vm0, %v2911_v10, %v2908_v9  ;;  %v2849_v25 = vsel %vm2343_vm0, %v2847_v13, %v2844_v12  ;;  %s3262_s16 = smov 48 }
  0x7a   :  { %153 = vst [vmem:[#allocation1 + $0x358] sm:$0x3] %v150_v24  ;;  %v2746_v62 = vsel %vm2361_vm2, %v5824_v56, %v2742_v57  ;;  %v2831_v15 = vld [vmem:[#allocation1 + $0x11] ss:$8 sm:$0xf]   ;;  %v2918_v28 = vsel %vm2348_vm1, %v2916_v18, %v2913_v21  ;;  %s3267_s17 = smov 192 }
  0x7b   :  { %168 = vst [vmem:[#allocation1 + $0x350] sm:$0x3] %v165_v27  ;;  %v2895_v17 = vld [vmem:[#allocation1 + $0x91] ss:$8 sm:$0xf]   ;;  %v2835_v41 = vsel %vm2361_vm2, %v5529_v41, %v2831_v15  ;;  %s5916_s19 = smov 3 }
  0x7c   :  { %v2723_v42 = vld [vmem:[#allocation1 + $0x300] ss:$8 sm:$0xf]   ;;  %v2731_v47 = vld [vmem:[#allocation1 + $0x2d1] ss:$8 sm:%s2730_s6]   ;;  %v2899_v48 = vsel %vm2361_vm2, %v5537_v48, %v2895_v17  ;;  %s3043_s6 = smov 192 }
  0x7d   :  { %v2726_v43 = vld [vmem:[#allocation1 + $0x300] ss:$8 sm:%s2725_s5]   ;;  %183 = vst [vmem:[#allocation1 + $0x348] sm:$0x3] %v180_v32  ;;  %v2854_v32 = vsel %vm2348_vm1, %v2852_v26, %v2849_v25  ;;  %v2948_v57 = vld [vmem:[#allocation1 + $0xd1] ss:$8 sm:%s2947_s30]  }
  0x7e   :  { %v2728_v46 = vsel %vm2343_vm0, %v2726_v43, %v2723_v42  ;;  %198 = vst [vmem:[#allocation1 + $0x340] sm:$0x3] %v195_v33  ;;  %v5822_v55 = vld.sshfl [vmem:[#allocation1 + $0x370] sm:$0xff pattern:$0x80911111]   ;;  %v2881_v42 = vsel %vm2343_vm0, %v2879_v31, %v2876_v29  ;;  %s3107_s5 = smov 192 }
  0x7f   :  { %v2733_v50 = vsel %vm2348_vm1, %v2731_v47, %v2728_v46  ;;  %18 = vst [vmem:[#allocation1 + $0x3a0] sm:$0x3] %v15_v36  ;;  %v2863_v33 = vld [vmem:[#allocation1 + $0x51] ss:$8 sm:$0xf]   ;;  %v5239_v46 = vpack.i.bf16 %v2854_v32, %v2835_v41  ;;  %s5935_s30 = smov 192 }
  0x80   :  { %v5229_v52 = vpack.i.bf16 %v2733_v50, %v2714_v40  ;;  %33 = vst [vmem:[#allocation1 + $0x398] sm:$0x3] %v30_v45  ;;  %v3007_v36 = vld [vmem:[#allocation1 + $0x180] ss:$8 sm:%s3006_s25]   ;;  %v5249_v40 = vpack.i.bf16 %v2918_v28, %v2899_v48  ;;  %v3012_v50 = vld [vmem:[#allocation1 + $0x151] ss:$8 sm:%s3011_s29]   ;;  %v2867_v3 = vsel %vm2361_vm2, %v5481_v3, %v2863_v33 }
  0x81   :  { %48 = vst [vmem:[#allocation1 + $0x390] sm:$0x3] %v45_v49  ;;  %v3004_v39 = vld [vmem:[#allocation1 + $0x180] ss:$8 sm:$0xf]   ;;  %s3415_s25 = smov 48 }
  0x82   :  { %5230 = vrot.lane.b32.xlu0 %v5229_v52, %s5369_s23  ;;  %v2774_v59 = vld [vmem:[#allocation1 + $0x351] ss:$8 sm:$0xf]   ;;  %63 = vst [vmem:[#allocation1 + $0x388] sm:$0x3] %v60_v51  ;;  %v3009_v49 = vsel %vm2343_vm0, %v3007_v36, %v3004_v39  ;;  %v2886_v51 = vsel %vm2348_vm1, %v2884_v34, %v2881_v42  ;;  %s5933_s29 = smov 48 }
  0x83   :  { %v2778_v60 = vsel %vm2361_vm2, %v5822_v55, %v2774_v59  ;;  %78 = vst [vmem:[#allocation1 + $0x380] sm:$0x3] %v75_v53  ;;  %v2940_v43 = vld [vmem:[#allocation1 + $0x100] ss:$8 sm:$0xf]   ;;  %v3014_v58 = vsel %vm2348_vm1, %v3012_v50, %v3009_v49  ;;  %v5244_v61 = vpack.i.bf16 %v2886_v51, %v2867_v3 }
  0x84   :  { %2779 = vrot.lane.b32.xlu2 %v2778_v60, %s5369_s23  ;;  %v2943_v45 = vld [vmem:[#allocation1 + $0x100] ss:$8 sm:%s2942_s28]   ;;  %v2991_v47 = vld [vmem:[#allocation1 + $0x151] ss:$8 sm:$0xf]   ;;  %s3420_s28 = smov 192 }
  0x85   :  { %v2755_v63 = vld [vmem:[#allocation1 + $0x340] ss:$8 sm:$0xf]   ;;  %v2763_v4 = vld [vmem:[#allocation1 + $0x311] ss:$8 sm:%s2762_s14]   ;;  %v2945_v53 = vsel %vm2343_vm0, %v2943_v45, %v2940_v43  ;;  %v2995_v54 = vsel %vm2361_vm2, %v5621_v54, %v2991_v47  ;;  %s3230_s14 = smov 48 }
  0x86   :  { %v2758_v0 = vld [vmem:[#allocation1 + $0x340] ss:$8 sm:%s2757_s13]   ;;  %v2927_v52 = vld [vmem:[#allocation1 + $0xd1] ss:$8 sm:$0xf]   ;;  %v5264_v5 = vpack.i.bf16 %v3014_v58, %v2995_v54  ;;  %s3171_s13 = smov 192 }
  0x87   :  { %v2760_v2 = vsel %vm2343_vm0, %v2758_v0, %v2755_v63  ;;  %v2807_v37 = vld [vmem:[#allocation1 + $0x399] ss:$8 sm:%s2806_s27]   ;;  %v2972_v59 = vld [vmem:[#allocation1 + $0x140] ss:$8 sm:$0xf]   ;;  %v2931_v38 = vsel %vm2361_vm2, %v5526_v38, %v2927_v52  ;;  %s3356_s27 = smov 192 }
  0x88   :  { %v2765_v7 = vsel %vm2348_vm1, %v2763_v4, %v2760_v2  ;;  %v2959_v63 = vld [vmem:[#allocation1 + $0x111] ss:$8 sm:$0xf]   ;;  %v3100_v2 = vld [vmem:[#allocation1 + $0x240] ss:$8 sm:$0xf]  }
  0x89   :  { %v5234_v11 = vpack.i.bf16 %v2765_v7, %v2746_v62  ;;  %v2950_v62 = vsel %vm2348_vm1, %v2948_v57, %v2945_v53  ;;  %v2980_v0 = vld [vmem:[#allocation1 + $0x111] ss:$8 sm:%s2979_s2]   ;;  %v3103_v4 = vld [vmem:[#allocation1 + $0x240] ss:$8 sm:%s3102_s3]   ;;  %v2963_v22 = vsel %vm2361_vm2, %v5581_v22, %v2959_v63  ;;  %s5944_s2 = smov 192  ;;  %s5946_s3 = smov 48 }
  0x8a   :  { %v2787_v19 = vld [vmem:[#allocation1 + $0x380] ss:$8 sm:$0xf]   ;;  %v2795_v24 = vld [vmem:[#allocation1 + $0x359] ss:$8 sm:%s2794_s20]   ;;  %v5254_v10 = vpack.i.bf16 %v2950_v62, %v2931_v38  ;;  %v3105_v12 = vsel %vm2343_vm0, %v3103_v4, %v3100_v2  ;;  %s3324_s20 = smov 192 }
  0x8b   :  { %5235 = vrot.lane.b32.xlu1 %v5234_v11, %s5369_s23  ;;  %v2790_v20 = vld [vmem:[#allocation1 + $0x41c] ss:$-31 sm:%s2789_s18]   ;;  %v1921_v42 = vld [vmem:[#allocation1 + $0x108] sm:$0x3]   ;;  %v1926_v50 = vld [vmem:[#allocation1 + $0x110] sm:$0x3]  }
  0x8c   :  { %v2792_v23 = vsel %vm2343_vm0, %v2790_v20, %v2787_v19  ;;  %2823 = vrot.lane.b32.xlu2 %v2822_v14, %s5370_s26  ;;  %v3036_v7 = vld [vmem:[#allocation1 + $0x1c0] ss:$8 sm:$0xf]   ;;  %v3087_v11 = vld [vmem:[#allocation1 + $0x211] ss:$8 sm:$0xf]  }
  0x8d   :  { %v2797_v27 = vsel %vm2348_vm1, %v2795_v24, %v2792_v23  ;;  %v3039_v9 = vld [vmem:[#allocation1 + $0x1c0] ss:$8 sm:%s3038_s4]   ;;  %v3108_v13 = vld [vmem:[#allocation1 + $0x211] ss:$8 sm:%s3107_s5]   ;;  %v3091_v8 = vsel %vm2361_vm2, %v5714_v8, %v3087_v11  ;;  %s3319_s18 = smov 48  ;;  %s5954_s4 = smov 192 }
  0x8e   :  { %2798 = vrot.lane.b32.xlu0 %v2797_v27, %s5369_s23  ;;  %v3023_v15 = vld [vmem:[#allocation1 + $0x191] ss:$8 sm:$0xf]   ;;  %v3041_v17 = vsel %vm2343_vm0, %v3039_v9, %v3036_v7  ;;  %v3110_v19 = vsel %vm2348_vm1, %v3108_v13, %v3105_v12  ;;  %v3068_v20 = vld [vmem:[#allocation1 + $0x200] ss:$8 sm:$0xf]   ;;  %v5191_v43 = vpop.permute.xlu2 %5190 }
  0x8f   :  { %v3044_v18 = vld [vmem:[#allocation1 + $0x191] ss:$8 sm:%s3043_s6]   ;;  %v3071_v21 = vld [vmem:[#allocation1 + $0x200] ss:$8 sm:%s3070_s7]   ;;  %v3027_v16 = vsel %vm2361_vm2, %v5652_v16, %v3023_v15  ;;  %v5279_v28 = vpack.i.bf16 %v3110_v19, %v3091_v8  ;;  %v5193_v57 = vunpack.i.h.bf16 %v5191_v43  ;;  %v5192_v63 = vunpack.i.l.bf16 %v5191_v43  ;;  %s5371_s5 = smov 32   ;;  %s5961_s6 = smov 48 }
  0x90   :  { %v3046_v24 = vsel %vm2348_vm1, %v3044_v18, %v3041_v17  ;;  %v3055_v25 = vld [vmem:[#allocation1 + $0x1d1] ss:$8 sm:$0xf]   ;;  %v3196_v27 = vld [vmem:[#allocation1 + $0x300] ss:$8 sm:$0xf]   ;;  %v3073_v29 = vsel %vm2343_vm0, %v3071_v21, %v3068_v20 }
  0x91   :  { %v3076_v26 = vld [vmem:[#allocation1 + $0x1d1] ss:$8 sm:%s3075_s8]   ;;  %v3199_v48 = vld [vmem:[#allocation1 + $0x300] ss:$8 sm:%s3198_s10]   ;;  %v5269_v32 = vpack.i.bf16 %v3046_v24, %v3027_v16  ;;  %v3059_v44 = vsel %vm2361_vm2, %v5683_v44, %v3055_v25  ;;  %s5988_s7 = smov 48  ;;  %s5996_s8 = smov 192 }
  0x92   :  { %v3132_v31 = vld [vmem:[#allocation1 + $0x280] ss:$8 sm:$0xf]   ;;  %v3119_v33 = vld [vmem:[#allocation1 + $0x251] ss:$8 sm:$0xf]   ;;  %v3201_v39 = vsel %vm2343_vm0, %v3199_v48, %v3196_v27  ;;  %v3078_v45 = vsel %vm2348_vm1, %v3076_v26, %v3073_v29 }
  0x93   :  { %2808 = vrot.lane.b32.xlu1 %v2807_v37, %s5369_s23  ;;  %s2974_s23 = smov 48  ;;  %v3135_v41 = vld [vmem:[#allocation1 + $0x280] ss:$8 sm:%s3134_s9]   ;;  %v3140_v34 = vld [vmem:[#allocation1 + $0x251] ss:$8 sm:%s3139_s11]   ;;  %v5274_v54 = vpack.i.bf16 %v3078_v45, %v3059_v44  ;;  %v3123_v58 = vsel %vm2361_vm2, %v5745_v35, %v3119_v33  ;;  %s3607_s9 = smov 48 }
  0x94   :  { %5250 = vrot.lane.b32.xlu2 %v5249_v40, %s5370_s26  ;;  %v2975_v60 = vld [vmem:[#allocation1 + $0x140] ss:$8 sm:%s2974_s23]   ;;  %v3183_v36 = vld [vmem:[#allocation1 + $0x2d1] ss:$8 sm:$0xf]   ;;  %s5939_s23 = smov 48 }
  0x95   :  { %v2977_v6 = vsel %vm2343_vm0, %v2975_v60, %v2972_v59  ;;  %v3204_v37 = vld [vmem:[#allocation1 + $0x2d1] ss:$8 sm:%s3203_s12]   ;;  %v3164_v47 = vld [vmem:[#allocation1 + $0x2c0] ss:$8 sm:$0xf]   ;;  %v3187_v51 = vsel %vm2361_vm2, %v5807_v30, %v3183_v36  ;;  %s6004_s10 = smov 192 }
  0x96   :  { %5240 = vrot.lane.b32.xlu0 %v5239_v46, %s5370_s26  ;;  %v2982_v14 = vsel %vm2348_vm1, %v2980_v0, %v2977_v6  ;;  %v1916_v40 = vld [vmem:[#allocation1 + $0x100] sm:$0x3]   ;;  %v3137_v46 = vsel %vm2343_vm0, %v3135_v41, %v3132_v31  ;;  %1924 = vst.msk [vmem:[#allocation0 + $0x84] ss:$472 sm:$0x3] %vm1758_vm3, %v1921_v42   ;;  %v3206_v52 = vsel %vm2348_vm1, %v3204_v37, %v3201_v39  ;;  %v5931_v41 = vpop.permute.xlu0 %2350   ;;  %s6010_s11 = smov 48 }
  0x97   :  { %v5259_v23 = vpack.i.bf16 %v2982_v14, %v2963_v22  ;;  %v3167_v49 = vld [vmem:[#allocation1 + $0x2c0] ss:$8 sm:%s3166_s0]   ;;  %1919 = vst.msk [vmem:[#allocation0 + $0x80] ss:$472 sm:$0x3] %vm1758_vm3, %v1916_v40   ;;  %v3142_v59 = vsel %vm2348_vm1, %v3140_v34, %v3137_v46  ;;  %v5294_v0 = vpack.i.bf16 %v3206_v52, %v3187_v51  ;;  %s6018_s12 = smov 192 }
  0x98   :  { %v1931_v3 = vld [vmem:[#allocation1 + $0x118] sm:$0x3]   ;;  %1929 = vst.msk [vmem:[#allocation0 + $0x88] ss:$472 sm:$0x3] %vm1758_vm3, %v1926_v50   ;;  %v3169_v2 = vsel %vm2343_vm0, %v3167_v49, %v3164_v47  ;;  %s6024_s0 = smov 48 }
  0x99   :  { %v1936_v53 = vld [vmem:[#allocation1 + $0x120] sm:$0x3]   ;;  %1934 = vst.msk [vmem:[#allocation0 + $0x8c] ss:$472 sm:$0x3] %vm1758_vm3, %v1931_v3  }
  0x9a   :  { %v3151_v60 = vld [vmem:[#allocation1 + $0x291] ss:$8 sm:$0xf]   ;;  %v3228_v62 = vld [vmem:[#allocation1 + $0x340] ss:$8 sm:$0xf]  }
  0x9b   :  { %5245 = vrot.lane.b32.xlu1 %v5244_v61, %s5370_s26  ;;  %v3172_v61 = vld [vmem:[#allocation1 + $0x291] ss:$8 sm:%s3171_s13]   ;;  %1939 = vst.msk [vmem:[#allocation0 + $0x90] ss:$472 sm:$0x3] %vm1758_vm3, %v1936_v53   ;;  %v3155_v11 = vsel %vm2361_vm2, %v5776_v1, %v3151_v60  ;;  %s3703_s13 = smov 48 }
  0x9c   :  { %5265 = vrot.lane.b32.xlu2 %v5264_v5, %s5370_s26  ;;  %v1941_v38 = vld [vmem:[#allocation1 + $0x128] sm:$0x3]   ;;  %v5284_v5 = vpack.i.bf16 %v3142_v59, %v3123_v58  ;;  %2482 = vst.msk [vmem:[#allocation0 + $0x81] ss:$4 sm:$0x3f] %vm1758_vm3, %v5193_v57   ;;  %v3174_v12 = vsel %vm2348_vm1, %v3172_v61, %v3169_v2  ;;  %v5951_v58 = vpop.permute.xlu1 %5180 }
  0x9d   :  { %v3231_v4 = vld [vmem:[#allocation1 + $0x340] ss:$8 sm:%s3230_s14]   ;;  %1944 = vst.msk [vmem:[#allocation0 + $0x94] ss:$472 sm:$0x3] %vm1758_vm3, %v1941_v38   ;;  %v5289_v15 = vpack.i.bf16 %v3174_v12, %v3155_v11  ;;  %s3644_s14 = smov 192 }
  0x9e   :  { %5255 = vrot.lane.b32.xlu0 %v5254_v10, %s5370_s26  ;;  %v3215_v6 = vld [vmem:[#allocation1 + $0x311] ss:$8 sm:$0xf]   ;;  %v3260_v9 = vld [vmem:[#allocation1 + $0x380] ss:$8 sm:$0xf]   ;;  %v5196_v10 = vpop.permute.xlu2 %5195  ;;  %v3233_v13 = vsel %vm2343_vm0, %v3231_v4, %v3228_v62 }
  0x9f   :  { %v3236_v7 = vld [vmem:[#allocation1 + $0x311] ss:$8 sm:%s3235_s15]   ;;  %2484 = vst.msk [vmem:[#allocation0 + $0x241] ss:$4 sm:$0xc0] %vm1758_vm3, %v5193_v57   ;;  %v5198_v14 = vunpack.i.h.bf16 %v5196_v10  ;;  %v3219_v17 = vsel %vm2361_vm2, %v5824_v56, %v3215_v6  ;;  %s3708_s15 = smov 192 }
  0xa0   :  { %v3263_v22 = vld [vmem:[#allocation1 + $0x41c] ss:$-31 sm:%s3262_s16]   ;;  %2463 = vst.msk [vmem:[#allocation0 + $0x241] ss:$4 sm:$0x3f] %vm1758_vm3, %v5192_v63   ;;  %v3238_v18 = vsel %vm2348_vm1, %v3236_v7, %v3233_v13  ;;  %s3671_s16 = smov 48 }
  0xa1   :  { %2465 = vst.msk [vmem:[#allocation0 + $0x61] ss:$4 sm:$0xc0] %vm1758_vm3, %v5192_v63   ;;  %v3265_v8 = vsel %vm2343_vm0, %v3263_v22, %v3260_v9  ;;  %v3268_v19 = vld [vmem:[#allocation1 + $0x359] ss:$8 sm:%s3267_s17]   ;;  %v5299_v24 = vpack.i.bf16 %v3238_v18, %v3219_v17  ;;  %s3676_s17 = smov 192 }
  0xa2   :  { %v3317_v20 = vld [vmem:[#allocation1 + $0x40] ss:$8 sm:$0xf]   ;;  %v3304_v16 = vld [vmem:[#allocation1 + $0x11] ss:$8 sm:$0xf]   ;;  %v3270_v25 = vsel %vm2348_vm1, %v3268_v19, %v3265_v8 }
  0xa3   :  { %5260 = vrot.lane.b32.xlu1 %v5259_v23, %s5370_s26  ;;  %v3320_v21 = vld [vmem:[#allocation1 + $0x40] ss:$8 sm:%s3319_s18]   ;;  %v5197_v23 = vunpack.i.l.bf16 %v5196_v10  ;;  %2514 = vst.msk [vmem:[#allocation0 + $0xa1] ss:$4 sm:$0x3f] %vm1758_vm3, %v5198_v14   ;;  %s3752_s18 = smov 3 }
  0xa4   :  { %5280 = vrot.lane.b32.xlu2 %v5279_v28, %s5370_s26  ;;  %v3306_v26 = vld.sshfl [vmem:[#allocation1 + $0x30] sm:$0xff pattern:$0x80911111]   ;;  %v3322_v27 = vsel %vm2343_vm0, %v3320_v21, %v3317_v20  ;;  %2516 = vst.msk [vmem:[#allocation0 + $0x261] ss:$4 sm:$0xc0] %vm1758_vm3, %v5198_v14  }
  0xa5   :  { %v3325_v48 = vld [vmem:[#allocation1 + $0x11] ss:$8 sm:%s3324_s20]   ;;  %2495 = vst.msk [vmem:[#allocation0 + $0x261] ss:$4 sm:$0x3f] %vm1758_vm3, %v5197_v23   ;;  %v3308_v29 = vsel %vm2361_vm2, %v3306_v26, %v3304_v16  ;;  %s3740_s20 = smov 192 }
  0xa6   :  { %5270 = vrot.lane.b32.xlu0 %v5269_v32, %s5370_s26  ;;  %v3247_v28 = vld [vmem:[#allocation1 + $0x351] ss:$8 sm:$0xf]   ;;  %2497 = vst.msk [vmem:[#allocation0 + $0x81] ss:$4 sm:$0xc0] %vm1758_vm3, %v5197_v23   ;;  %v3327_v31 = vsel %vm2348_vm1, %v3325_v48, %v3322_v27 }
  0xa7   :  { %v3349_v32 = vld [vmem:[#allocation1 + $0x80] ss:$8 sm:$0xf]   ;;  %v3251_v33 = vsel %vm2361_vm2, %v5822_v55, %v3247_v28  ;;  %v3280_v42 = vld [vmem:[#allocation1 + $0x399] ss:$8 sm:%s5916_s19]   ;;  %v5304_v43 = vpack.i.bf16 %v3327_v31, %v3308_v29  ;;  %v5183_v29 = vunpack.i.h.bf16 %v5951_v58  ;;  %s3735_s19 = smov 48 }
  0xa8   :  { %v3286_v34 = vld [vmem:[#allocation1] ss:$8 sm:$0xf]   ;;  %v3400_v45 = vld [vmem:[#allocation1 + $0xd1] ss:$8 sm:$0xf]  }
  0xa9   :  { %v3288_v36 = vld [vmem:[#allocation1] ss:$8 sm:%s3287_s21]   ;;  %v3336_v46 = vld [vmem:[#allocation1 + $0x51] ss:$8 sm:$0xf]  }
  0xaa   :  { %v3413_v37 = vld [vmem:[#allocation1 + $0x100] ss:$8 sm:$0xf]   ;;  %v3357_v49 = vld [vmem:[#allocation1 + $0x51] ss:$8 sm:%s3356_s27]   ;;  %v3290_v38 = vsel %vm2343_vm0, %v3288_v36, %v3286_v34  ;;  %v5182_v34 = vunpack.i.l.bf16 %v5951_v58 }
  0xab   :  { %5275 = vrot.lane.b32.xlu1 %v5274_v54, %s5370_s26  ;;  %v3416_v39 = vld [vmem:[#allocation1 + $0x100] ss:$8 sm:%s3415_s25]   ;;  %v3421_v3 = vld [vmem:[#allocation1 + $0xd1] ss:$8 sm:%s3420_s28]  }
  0xac   :  { %5295 = vrot.lane.b32.xlu2 %v5294_v0, %s5370_s26  ;;  %v3352_v44 = vld [vmem:[#allocation1 + $0x80] ss:$8 sm:%s3351_s24]   ;;  %v3293_v51 = vld [vmem:[#allocation1 - $0x2f] ss:$8 sm:%s5922_s22]   ;;  %v3418_v52 = vsel %vm2343_vm0, %v3416_v39, %v3413_v37 }
  0xad   :  { %v3338_v47 = vld.sshfl [vmem:[#allocation1 + $0x70] sm:$0xff pattern:$0x80911111]   ;;  %v2076_v53 = vld [vmem:[#allocation1 + $0x200] sm:$0x3]   ;;  %v3354_v59 = vsel %vm2343_vm0, %v3352_v44, %v3349_v32  ;;  %v3423_v0 = vsel %vm2348_vm1, %v3421_v3, %v3418_v52  ;;  %v3295_v14 = vsel %vm2348_vm1, %v3293_v51, %v3290_v38 }
  0xae   :  { %5285 = vrot.lane.b32.xlu0 %v5284_v5, %s5370_s26  ;;  %v3402_v50 = vld.sshfl [vmem:[#allocation1 + $0xf0] sm:$0xff pattern:$0x80911111]   ;;  %v2081_v57 = vld [vmem:[#allocation1 + $0x208] sm:$0x3]   ;;  %v5969_v5 = vpop.permute.xlu0 %5175  ;;  %v3340_v6 = vsel %vm2361_vm2, %v3338_v47, %v3336_v46  ;;  %v3359_v7 = vsel %vm2348_vm1, %v3357_v49, %v3354_v59 }
  0xaf   :  { %v2086_v54 = vld [vmem:[#allocation1 + $0x210] sm:$0x3]   ;;  %2079 = vst.msk [vmem:[#allocation0 + $0x100] ss:$472 sm:$0x3] %vm1758_vm3, %v2076_v53   ;;  %v3404_v63 = vsel %vm2361_vm2, %v3402_v50, %v3400_v45  ;;  %v5309_v19 = vpack.i.bf16 %v3359_v7, %v3340_v6  ;;  %v5178_v59 = vunpack.i.h.bf16 %v5969_v5  ;;  %v5177_v5 = vunpack.i.l.bf16 %v5969_v5 }
  0xb0   :  { %v2091_v60 = vld [vmem:[#allocation1 + $0x218] sm:$0x3]   ;;  %2084 = vst.msk [vmem:[#allocation0 + $0x104] ss:$472 sm:$0x3] %vm1758_vm3, %v2081_v57   ;;  %v5319_v17 = vpack.i.bf16 %v3423_v0, %v3404_v63 }
  0xb1   :  { %v3384_v62 = vld [vmem:[#allocation1 + $0xc0] ss:$8 sm:%s5933_s29]   ;;  %2089 = vst.msk [vmem:[#allocation0 + $0x108] ss:$472 sm:$0x3] %vm1758_vm3, %v2086_v54  }
  0xb2   :  { %v3381_v2 = vld [vmem:[#allocation1 + $0xc0] ss:$8 sm:$0xf]   ;;  %v3368_v9 = vld [vmem:[#allocation1 + $0x91] ss:$8 sm:$0xf]  }
  0xb3   :  { %5290 = vrot.lane.b32.xlu1 %v5289_v15, %s5370_s26  ;;  %v3370_v10 = vld.sshfl [vmem:[#allocation1 + $0xb0] sm:$0xff pattern:$0x80911111]   ;;  %2094 = vst.msk [vmem:[#allocation0 + $0x10c] ss:$472 sm:$0x3] %vm1758_vm3, %v2091_v60   ;;  %v3386_v18 = vsel %vm2343_vm0, %v3384_v62, %v3381_v2 }
  0xb4   :  { %3271 = vrot.lane.b32.xlu2 %v3270_v25, %s5370_s26  ;;  %v3389_v11 = vld [vmem:[#allocation1 + $0x91] ss:$8 sm:%s5935_s30]   ;;  %v3445_v12 = vld [vmem:[#allocation1 + $0x140] ss:$8 sm:$0xf]   ;;  %v5990_v25 = vpop.permute.xlu1 %5185  ;;  %v3372_v26 = vsel %vm2361_vm2, %v3370_v10, %v3368_v9 }
  0xb5   :  { %v3448_v13 = vld [vmem:[#allocation1 + $0x140] ss:$8 sm:%s5939_s23]   ;;  %v3496_v8 = vld [vmem:[#allocation1 + $0x191] ss:$8 sm:$0xf]   ;;  %v3391_v27 = vsel %vm2348_vm1, %v3389_v11, %v3386_v18 }
  0xb6   :  { %5300 = vrot.lane.b32.xlu0 %v5299_v24, %s5370_s26  ;;  %v3509_v22 = vld [vmem:[#allocation1 + $0x1c0] ss:$8 sm:$0xf]   ;;  %v3432_v20 = vld [vmem:[#allocation1 + $0x111] ss:$8 sm:$0xf]   ;;  %v3450_v48 = vsel %vm2343_vm0, %v3448_v13, %v3445_v12  ;;  %v5314_v37 = vpack.i.bf16 %v3391_v27, %v3372_v26 }
  0xb7   :  { %v3512_v15 = vld [vmem:[#allocation1 + $0x1c0] ss:$8 sm:%s5946_s3]   ;;  %v3517_v24 = vld [vmem:[#allocation1 + $0x191] ss:$8 sm:%s5954_s4]  }
  0xb8   :  { %v5941_v40 = vpop.permute.xlu2 %5210  ;;  %v3434_v21 = vld.sshfl [vmem:[#allocation1 + $0x130] sm:$0xff pattern:$0x80911111]   ;;  %v3514_v16 = vsel %vm2343_vm0, %v3512_v15, %v3509_v22  ;;  %2354 = vst.msk [vmem:[#allocation0 + $0x1] ss:$4 sm:$0x3f] %vm1758_vm3, %v5931_v41  }
  0xb9   :  { %v5213_v61 = vunpack.i.h.bf16 %v5941_v40  ;;  %v5212_v4 = vunpack.i.l.bf16 %v5941_v40  ;;  %v3498_v23 = vld.sshfl [vmem:[#allocation1 + $0x1b0] sm:$0xff pattern:$0x80911111]   ;;  %2356 = vst.msk [vmem:[#allocation0 + $0x1c1] ss:$4 sm:$0xc0] %vm1758_vm3, %v5931_v41   ;;  %v3519_v41 = vsel %vm2348_vm1, %v3517_v24, %v3514_v16  ;;  %v3436_v39 = vsel %vm2361_vm2, %v3434_v21, %v3432_v20 }
  0xba   :  { %v3453_v28 = vld [vmem:[#allocation1 + $0x111] ss:$8 sm:%s5944_s2]   ;;  %v3500_v31 = vsel %vm2361_vm2, %v3498_v23, %v3496_v8  ;;  %v3477_v32 = vld [vmem:[#allocation1 + $0x180] ss:$8 sm:$0xf]  }
  0xbb   :  { %3252 = vrot.lane.b32.xlu1 %v3251_v33, %s5370_s26  ;;  %2610 = vst.msk [vmem:[#allocation0 + $0x101] ss:$4 sm:$0x3f] %vm1758_vm3, %v5213_v61   ;;  %v3480_v33 = vld [vmem:[#allocation1 + $0x180] ss:$8 sm:%s5961_s6]   ;;  %v3455_v40 = vsel %vm2348_vm1, %v3453_v28, %v3450_v48  ;;  %v5334_v49 = vpack.i.bf16 %v3519_v41, %v3500_v31 }
  0xbc   :  { %5305 = vrot.lane.b32.xlu2 %v5304_v43, %s5371_s5  ;;  %2612 = vst.msk [vmem:[#allocation0 + $0x2c1] ss:$4 sm:$0xc0] %vm1758_vm3, %v5213_v61   ;;  %v3466_v43 = vld.sshfl [vmem:[#allocation1 + $0x170] sm:$0xff pattern:$0x80911111]   ;;  %v3482_v50 = vsel %vm2343_vm0, %v3480_v33, %v3477_v32  ;;  %v5324_v51 = vpack.i.bf16 %v3455_v40, %v3436_v39 }
  0xbd   :  { %2591 = vst.msk [vmem:[#allocation0 + $0x2c1] ss:$4 sm:$0x3f] %vm1758_vm3, %v5212_v4   ;;  %v3541_v45 = vld [vmem:[#allocation1 + $0x200] ss:$8 sm:$0xf]  }
  0xbe   :  { %3281 = vrot.lane.b32.xlu0 %v3280_v42, %s5370_s26  ;;  %s5978_s26 = smov 192  ;;  %2593 = vst.msk [vmem:[#allocation0 + $0xe1] ss:$4 sm:$0xc0] %vm1758_vm3, %v5212_v4   ;;  %v6013_v36 = vpop.permute.xlu0 %5200  ;;  %v3608_v47 = vld [vmem:[#allocation1 + $0x280] ss:$8 sm:%s3607_s9]  }
  0xbf   :  { %v3464_v42 = vld [vmem:[#allocation1 + $0x151] ss:$8 sm:$0xf]   ;;  %v3605_v46 = vld [vmem:[#allocation1 + $0x280] ss:$8 sm:$0xf]  }
  0xc0   :  { %v3485_v44 = vld [vmem:[#allocation1 + $0x151] ss:$8 sm:%s5978_s26]   ;;  %2418 = vst.msk [vmem:[#allocation0 + $0x41] ss:$4 sm:$0x3f] %vm1758_vm3, %v5183_v29   ;;  %v3610_v54 = vsel %vm2343_vm0, %v3608_v47, %v3605_v46  ;;  %v3468_v61 = vsel %vm2361_vm2, %v3466_v43, %v3464_v42 }
  0xc1   :  { %v3544_v3 = vld [vmem:[#allocation1 + $0x200] ss:$8 sm:%s5988_s7]   ;;  %2420 = vst.msk [vmem:[#allocation0 + $0x201] ss:$4 sm:$0xc0] %vm1758_vm3, %v5183_v29   ;;  %v3487_v38 = vsel %vm2348_vm1, %v3485_v44, %v3482_v50 }
  0xc2   :  { %v3528_v52 = vld [vmem:[#allocation1 + $0x1d1] ss:$8 sm:$0xf]   ;;  %2399 = vst.msk [vmem:[#allocation0 + $0x201] ss:$4 sm:$0x3f] %vm1758_vm3, %v5182_v34   ;;  %v3546_v62 = vsel %vm2343_vm0, %v3544_v3, %v3541_v45  ;;  %v5329_v11 = vpack.i.bf16 %v3487_v38, %v3468_v61  ;;  %v5203_v61 = vunpack.i.h.bf16 %v6013_v36  ;;  %v5202_v36 = vunpack.i.l.bf16 %v6013_v36 }
  0xc3   :  { %3296 = vrot.lane.b32.xlu1 %v3295_v14, %s5371_s5  ;;  %v3530_v53 = vld.sshfl [vmem:[#allocation1 + $0x1f0] sm:$0xff pattern:$0x80911111]   ;;  %2401 = vst.msk [vmem:[#allocation0 + $0x21] ss:$4 sm:$0xc0] %vm1758_vm3, %v5182_v34  }
  0xc4   :  { %5320 = vrot.lane.b32.xlu2 %v5319_v17, %s5371_s5  ;;  %v3592_v57 = vld [vmem:[#allocation1 + $0x251] ss:$8 sm:$0xf]   ;;  %v3573_v4 = vld [vmem:[#allocation1 + $0x240] ss:$8 sm:$0xf]   ;;  %v3532_v12 = vsel %vm2361_vm2, %v3530_v53, %v3528_v52  ;;  %v5188_v53 = vunpack.i.h.bf16 %v5990_v25  ;;  %v5187_v25 = vunpack.i.l.bf16 %v5990_v25 }
  0xc5   :  { %v3613_v58 = vld [vmem:[#allocation1 + $0x251] ss:$8 sm:%s6004_s10]   ;;  %v3596_v35 = vsel %vm2361_vm2, %v5745_v35, %v3592_v57  ;;  %v3576_v10 = vld [vmem:[#allocation1 + $0x240] ss:$8 sm:%s6010_s11]  }
  0xc6   :  { %5310 = vrot.lane.b32.xlu0 %v5309_v19, %s5371_s5  ;;  %v3549_v63 = vld [vmem:[#allocation1 + $0x1d1] ss:$8 sm:%s5996_s8]   ;;  %v3615_v6 = vsel %vm2348_vm1, %v3613_v58, %v3610_v54  ;;  %v3637_v14 = vld [vmem:[#allocation1 + $0x2c0] ss:$8 sm:$0xf]   ;;  %v3578_v8 = vsel %vm2343_vm0, %v3576_v10, %v3573_v4 }
  0xc7   :  { %v6032_v60 = vpop.permute.xlu1 %5205  ;;  %v1786_v0 = vld [vmem:[#allocation1 + $0x30] sm:$0x3]   ;;  %v1791_v2 = vld [vmem:[#allocation1 + $0x38] sm:$0x3]   ;;  %v3551_v13 = vsel %vm2348_vm1, %v3549_v63, %v3546_v62  ;;  %v5349_v18 = vpack.i.bf16 %v3615_v6, %v3596_v35  ;;  %v1856_v45 = vld [vmem:[#allocation1 + $0xa0] sm:$0x3]  }
  0xc8   :  { %1789 = vst.msk [vmem:[#allocation0 + $0x18] ss:$472 sm:$0x3] %vm1758_vm3, %v1786_v0   ;;  %v3560_v7 = vld [vmem:[#allocation1 + $0x211] ss:$8 sm:$0xf]   ;;  %v5339_v20 = vpack.i.bf16 %v3551_v13, %v3532_v12  ;;  %v5208_v6 = vunpack.i.h.bf16 %v6032_v60  ;;  %v5207_v60 = vunpack.i.l.bf16 %v6032_v60 }
  0xc9   :  { %v3562_v9 = vld.sshfl [vmem:[#allocation1 + $0x230] sm:$0xff pattern:$0x80911111]   ;;  %1794 = vst.msk [vmem:[#allocation0 + $0x1c] ss:$472 sm:$0x3] %vm1758_vm3, %v1791_v2  }
  0xca   :  { %v3581_v22 = vld [vmem:[#allocation1 + $0x211] ss:$8 sm:%s6018_s12]   ;;  %2386 = vst.msk [vmem:[#allocation0 + $0x21] ss:$4 sm:$0x3f] %vm1758_vm3, %v5178_v59   ;;  %v3564_v16 = vsel %vm2361_vm2, %v3562_v9, %v3560_v7 }
  0xcb   :  { %5315 = vrot.lane.b32.xlu1 %v5314_v37, %s5371_s5  ;;  %v3701_v15 = vld [vmem:[#allocation1 + $0x340] ss:$8 sm:$0xf]   ;;  %2388 = vst.msk [vmem:[#allocation0 + $0x1e1] ss:$4 sm:$0xc0] %vm1758_vm3, %v5178_v59   ;;  %v3583_v29 = vsel %vm2348_vm1, %v3581_v22, %v3578_v8 }
  0xcc   :  { %5335 = vrot.lane.b32.xlu2 %v5334_v49, %s5371_s5  ;;  %v3704_v17 = vld [vmem:[#allocation1 + $0x340] ss:$8 sm:%s3703_s13]   ;;  %2367 = vst.msk [vmem:[#allocation0 + $0x1e1] ss:$4 sm:$0x3f] %vm1758_vm3, %v5177_v5   ;;  %v5344_v40 = vpack.i.bf16 %v3583_v29, %v3564_v16 }
  0xcd   :  { %v3640_v19 = vld [vmem:[#allocation1 + $0x2c0] ss:$8 sm:%s6024_s0]   ;;  %v3624_v21 = vld [vmem:[#allocation1 + $0x291] ss:$8 sm:$0xf]   ;;  %v3706_v27 = vsel %vm2343_vm0, %v3704_v17, %v3701_v15 }
  0xce   :  { %5325 = vrot.lane.b32.xlu0 %v5324_v51, %s5371_s5  ;;  %2369 = vst.msk [vmem:[#allocation0 + $0x1] ss:$4 sm:$0xc0] %vm1758_vm3, %v5177_v5   ;;  %v3688_v23 = vld [vmem:[#allocation1 + $0x311] ss:$8 sm:$0xf]   ;;  %v3642_v32 = vsel %vm2343_vm0, %v3640_v19, %v3637_v14  ;;  %v3628_v1 = vsel %vm2361_vm2, %v5776_v1, %v3624_v21 }
  0xcf   :  { %v3645_v26 = vld [vmem:[#allocation1 + $0x291] ss:$8 sm:%s3644_s14]   ;;  %v3669_v34 = vld [vmem:[#allocation1 + $0x300] ss:$8 sm:$0xf]   ;;  %v3692_v56 = vsel %vm2361_vm2, %v5824_v56, %v3688_v23 }
  0xd0   :  { %v3709_v48 = vld [vmem:[#allocation1 + $0x311] ss:$8 sm:%s3708_s15]   ;;  %v3672_v39 = vld [vmem:[#allocation1 + $0x300] ss:$8 sm:%s3671_s16]   ;;  %v3647_v42 = vsel %vm2348_vm1, %v3645_v26, %v3642_v32 }
  0xd1   :  { %v1846_v28 = vld [vmem:[#allocation1 + $0x90] sm:$0x3]   ;;  %v1851_v33 = vld [vmem:[#allocation1 + $0x98] sm:$0x3]   ;;  %v3711_v37 = vsel %vm2348_vm1, %v3709_v48, %v3706_v27  ;;  %v1861_v46 = vld [vmem:[#allocation1 + $0xa8] sm:$0x3]   ;;  %v3674_v49 = vsel %vm2343_vm0, %v3672_v39, %v3669_v34  ;;  %v5354_v51 = vpack.i.bf16 %v3647_v42, %v3628_v1 }
  0xd2   :  { %1849 = vst.msk [vmem:[#allocation0 + $0x48] ss:$472 sm:$0x3] %vm1758_vm3, %v1846_v28   ;;  %v3656_v43 = vld [vmem:[#allocation1 + $0x2d1] ss:$8 sm:$0xf]   ;;  %v5364_v47 = vpack.i.bf16 %v3711_v37, %v3692_v56 }
  0xd3   :  { %5330 = vrot.lane.b32.xlu1 %v5329_v11, %s5371_s5  ;;  %v5226_v24 = vpop.permute.xlu2 %5225  ;;  %1854 = vst.msk [vmem:[#allocation0 + $0x4c] ss:$472 sm:$0x3] %vm1758_vm3, %v1851_v33   ;;  %v3677_v44 = vld [vmem:[#allocation1 + $0x2d1] ss:$8 sm:%s3676_s17]   ;;  %v3660_v30 = vsel %vm2361_vm2, %v5807_v30, %v3656_v43 }
  0xd4   :  { %v5228_v31 = vunpack.i.h.bf16 %v5226_v24  ;;  %v5227_v41 = vunpack.i.l.bf16 %v5226_v24  ;;  %5350 = vrot.lane.b32.xlu2 %v5349_v18, %s5371_s5  ;;  %v1866_v50 = vld [vmem:[#allocation1 + $0xb0] sm:$0x3]   ;;  %1859 = vst.msk [vmem:[#allocation0 + $0x50] ss:$472 sm:$0x3] %vm1758_vm3, %v1856_v45   ;;  %v3679_v57 = vsel %vm2348_vm1, %v3677_v44, %v3674_v49 }
  0xd5   :  { %v1871_v52 = vld [vmem:[#allocation1 + $0xb8] sm:$0x3]   ;;  %1864 = vst.msk [vmem:[#allocation0 + $0x54] ss:$472 sm:$0x3] %vm1758_vm3, %v1861_v46   ;;  %v5359_v54 = vpack.i.bf16 %v3679_v57, %v3660_v30 }
  0xd6   :  { %5340 = vrot.lane.b32.xlu0 %v5339_v20, %s5371_s5  ;;  %2706 = vst.msk [vmem:[#allocation0 + $0x161] ss:$4 sm:$0x3f] %vm1758_vm3, %v5228_v31   ;;  %v3720_v59 = vld [vmem:[#allocation1 + $0x351] ss:$8 sm:$0xf]  }
  0xd7   :  { %2708 = vst.msk [vmem:[#allocation0 + $0x321] ss:$4 sm:$0xc0] %vm1758_vm3, %v5228_v31   ;;  %v3753_v38 = vld [vmem:[#allocation1 + $0x399] ss:$8 sm:%s3752_s18]   ;;  %v3724_v55 = vsel %vm2361_vm2, %v5822_v55, %v3720_v59 }
  0xd8   :  { %2687 = vst.msk [vmem:[#allocation0 + $0x321] ss:$4 sm:$0x3f] %vm1758_vm3, %v5227_v41   ;;  %v3733_v62 = vld [vmem:[#allocation1 + $0x380] ss:$8 sm:$0xf]  }
  0xd9   :  { %2689 = vst.msk [vmem:[#allocation0 + $0x141] ss:$4 sm:$0xc0] %vm1758_vm3, %v5227_v41   ;;  %v6076_v3 = vpop.permute.xlu0 %5215  ;;  %v3736_v63 = vld [vmem:[#allocation1 + $0x41c] ss:$-31 sm:%s3735_s19]  }
  0xda   :  { %1869 = vst.msk [vmem:[#allocation0 + $0x58] ss:$472 sm:$0x3] %vm1758_vm3, %v1866_v50   ;;  %v3741_v2 = vld [vmem:[#allocation1 + $0x359] ss:$8 sm:%s3740_s20]   ;;  %v3738_v4 = vsel %vm2343_vm0, %v3736_v63, %v3733_v62  ;;  %v5218_v12 = vunpack.i.h.bf16 %v6076_v3  ;;  %v5217_v22 = vunpack.i.l.bf16 %v6076_v3 }
  0xdb   :  { %5345 = vrot.lane.b32.xlu1 %v5344_v40, %s5371_s5  ;;  %1874 = vst.msk [vmem:[#allocation0 + $0x5c] ss:$472 sm:$0x3] %vm1758_vm3, %v1871_v52   ;;  %v2036_v5 = vld [vmem:[#allocation1 + $0x1c0] sm:$0x3]   ;;  %v3743_v9 = vsel %vm2348_vm1, %v3741_v2, %v3738_v4 }
  0xdc   :  { %5365 = vrot.lane.b32.xlu2 %v5364_v47, %s5371_s5  ;;  %2450 = vst.msk [vmem:[#allocation0 + $0x61] ss:$4 sm:$0x3f] %vm1758_vm3, %v5188_v53   ;;  %v2041_v35 = vld [vmem:[#allocation1 + $0x1c8] sm:$0x3]  }
  0xdd   :  { %2452 = vst.msk [vmem:[#allocation0 + $0x221] ss:$4 sm:$0xc0] %vm1758_vm3, %v5188_v53   ;;  %v2136_v10 = vld [vmem:[#allocation1 + $0x260] sm:$0x3]  }
  0xde   :  { %5355 = vrot.lane.b32.xlu0 %v5354_v51, %s5371_s5  ;;  %v2780_v58 = vpop.permute.xlu2 %2779   ;;  %2431 = vst.msk [vmem:[#allocation0 + $0x221] ss:$4 sm:$0x3f] %vm1758_vm3, %v5187_v25   ;;  %v2141_v11 = vld [vmem:[#allocation1 + $0x268] sm:$0x3]  }
  0xdf   :  { %2433 = vst.msk [vmem:[#allocation0 + $0x41] ss:$4 sm:$0xc0] %vm1758_vm3, %v5187_v25   ;;  %v1876_v18 = vld [vmem:[#allocation1 + $0xc0] sm:$0x3]  }
  0xe0   :  { %2783 = vst.msk [vmem:[#allocation0 + $0x381] ss:$4 sm:$0x3f] %vm1758_vm3, %v2780_v58   ;;  %v1881_v19 = vld [vmem:[#allocation1 + $0xc8] sm:$0x3]  }
  0xe1   :  { %2785 = vst.msk [vmem:[#allocation0 + $0x1a1] ss:$4 sm:$0xc0] %vm1758_vm3, %v2780_v58   ;;  %v1886_v20 = vld [vmem:[#allocation1 + $0xd0] sm:$0x3]  }
  0xe2   :  { %v5221_v0 = vpop.permute.xlu1 %5220  ;;  %2546 = vst.msk [vmem:[#allocation0 + $0xc1] ss:$4 sm:$0x3f] %vm1758_vm3, %v5203_v61   ;;  %v1891_v21 = vld [vmem:[#allocation1 + $0xd8] sm:$0x3]  }
  0xe3   :  { %5360 = vrot.lane.b32.xlu1 %v5359_v54, %s5371_s5  ;;  %2548 = vst.msk [vmem:[#allocation0 + $0x281] ss:$4 sm:$0xc0] %vm1758_vm3, %v5203_v61   ;;  %v5223_v14 = vunpack.i.h.bf16 %v5221_v0  ;;  %v5222_v15 = vunpack.i.l.bf16 %v5221_v0  ;;  %v1896_v23 = vld [vmem:[#allocation1 + $0xe0] sm:$0x3]  }
  0xe4   :  { %3754 = vrot.lane.b32.xlu2 %v3753_v38, %s5371_s5  ;;  %2527 = vst.msk [vmem:[#allocation0 + $0x281] ss:$4 sm:$0x3f] %vm1758_vm3, %v5202_v36   ;;  %v1901_v16 = vld [vmem:[#allocation1 + $0xe8] sm:$0x3]  }
  0xe5   :  { %2529 = vst.msk [vmem:[#allocation0 + $0xa1] ss:$4 sm:$0xc0] %vm1758_vm3, %v5202_v36   ;;  %v2236_v29 = vld [vmem:[#allocation1 + $0x300] sm:$0x3]  }
  0xe6   :  { %3725 = vrot.lane.b32.xlu0 %v3724_v55, %s5371_s5  ;;  %v2824_v7 = vpop.permute.xlu2 %2823   ;;  %2039 = vst.msk [vmem:[#allocation0 + $0xe0] ss:$472 sm:$0x3] %vm1758_vm3, %v2036_v5   ;;  %v2241_v31 = vld [vmem:[#allocation1 + $0x308] sm:$0x3]  }
  0xe7   :  { %2044 = vst.msk [vmem:[#allocation0 + $0xe4] ss:$472 sm:$0x3] %vm1758_vm3, %v2041_v35   ;;  %v2256_v41 = vld [vmem:[#allocation1 + $0x320] sm:$0x3]  }
  0xe8   :  { %2578 = vst.msk [vmem:[#allocation0 + $0xe1] ss:$4 sm:$0x3f] %vm1758_vm3, %v5208_v6   ;;  %v2261_v32 = vld [vmem:[#allocation1 + $0x328] sm:$0x3]  }
  0xe9   :  { %2580 = vst.msk [vmem:[#allocation0 + $0x2a1] ss:$4 sm:$0xc0] %vm1758_vm3, %v5208_v6   ;;  %v2116_v46 = vld [vmem:[#allocation1 + $0x240] sm:$0x3]  }
  0xea   :  { %2559 = vst.msk [vmem:[#allocation0 + $0x2a1] ss:$4 sm:$0x3f] %vm1758_vm3, %v5207_v60   ;;  %v2121_v49 = vld [vmem:[#allocation1 + $0x248] sm:$0x3]  }
  0xeb   :  { %3744 = vrot.lane.b32.xlu1 %v3743_v9, %s5371_s5  ;;  %2561 = vst.msk [vmem:[#allocation0 + $0xc1] ss:$4 sm:$0xc0] %vm1758_vm3, %v5207_v60   ;;  %v1796_v52 = vld [vmem:[#allocation1 + $0x40] sm:$0x3]  }
  0xec   :  { %2827 = vst.msk [vmem:[#allocation0 + $0x2] ss:$4 sm:$0x3f] %vm1758_vm3, %v2824_v7   ;;  %v1801_v30 = vld [vmem:[#allocation1 + $0x48] sm:$0x3]  }
  0xed   :  { %2829 = vst.msk [vmem:[#allocation0 + $0x1c2] ss:$4 sm:$0xc0] %vm1758_vm3, %v2824_v7   ;;  %v1816_v57 = vld [vmem:[#allocation1 + $0x60] sm:$0x3]  }
  0xee   :  { %v5251_v13 = vpop.permute.xlu2 %5250  ;;  %2139 = vst.msk [vmem:[#allocation0 + $0x130] ss:$472 sm:$0x3] %vm1758_vm3, %v2136_v10   ;;  %v1821_v25 = vld [vmem:[#allocation1 + $0x68] sm:$0x3]  }
  0xef   :  { %2144 = vst.msk [vmem:[#allocation0 + $0x134] ss:$472 sm:$0x3] %vm1758_vm3, %v2141_v11   ;;  %v5253_v24 = vunpack.i.h.bf16 %v5251_v13  ;;  %v5252_v27 = vunpack.i.l.bf16 %v5251_v13  ;;  %v1836_v36 = vld [vmem:[#allocation1 + $0x80] sm:$0x3]  }
  0xf0   :  { %2642 = vst.msk [vmem:[#allocation0 + $0x121] ss:$4 sm:$0x3f] %vm1758_vm3, %v5218_v12   ;;  %v1841_v63 = vld [vmem:[#allocation1 + $0x88] sm:$0x3]  }
  0xf1   :  { %2644 = vst.msk [vmem:[#allocation0 + $0x2e1] ss:$4 sm:$0xc0] %vm1758_vm3, %v5218_v12   ;;  %v1906_v5 = vld [vmem:[#allocation1 + $0xf0] sm:$0x3]  }
  0xf2   :  { %2623 = vst.msk [vmem:[#allocation0 + $0x2e1] ss:$4 sm:$0x3f] %vm1758_vm3, %v5217_v22   ;;  %v1911_v6 = vld [vmem:[#allocation1 + $0xf8] sm:$0x3]  }
  0xf3   :  { %2625 = vst.msk [vmem:[#allocation0 + $0x101] ss:$4 sm:$0xc0] %vm1758_vm3, %v5217_v22  }
  0xf4   :  { %v5231_v17 = vpop.permute.xlu0 %5230  ;;  %2674 = vst.msk [vmem:[#allocation0 + $0x141] ss:$4 sm:$0x3f] %vm1758_vm3, %v5223_v14  }
  0xf5   :  { %2676 = vst.msk [vmem:[#allocation0 + $0x301] ss:$4 sm:$0xc0] %vm1758_vm3, %v5223_v14   ;;  %v5233_v33 = vunpack.i.h.bf16 %v5231_v17  ;;  %v5232_v56 = vunpack.i.l.bf16 %v5231_v17 }
  0xf6   :  { %v5266_v8 = vpop.permute.xlu2 %5265  ;;  %2655 = vst.msk [vmem:[#allocation0 + $0x301] ss:$4 sm:$0x3f] %vm1758_vm3, %v5222_v15  }
  0xf7   :  { %2657 = vst.msk [vmem:[#allocation0 + $0x121] ss:$4 sm:$0xc0] %vm1758_vm3, %v5222_v15   ;;  %v5268_v39 = vunpack.i.h.bf16 %v5266_v8  ;;  %v5267_v1 = vunpack.i.l.bf16 %v5266_v8 }
  0xf8   :  { %1879 = vst.msk [vmem:[#allocation0 + $0x60] ss:$472 sm:$0x3] %vm1758_vm3, %v1876_v18  }
  0xf9   :  { %1884 = vst.msk [vmem:[#allocation0 + $0x64] ss:$472 sm:$0x3] %vm1758_vm3, %v1881_v19  }
  0xfa   :  { %1889 = vst.msk [vmem:[#allocation0 + $0x68] ss:$472 sm:$0x3] %vm1758_vm3, %v1886_v20  }
  0xfb   :  { %1894 = vst.msk [vmem:[#allocation0 + $0x6c] ss:$472 sm:$0x3] %vm1758_vm3, %v1891_v21  }
  0xfc   :  { %1899 = vst.msk [vmem:[#allocation0 + $0x70] ss:$472 sm:$0x3] %vm1758_vm3, %v1896_v23  }
  0xfd   :  { %v5236_v26 = vpop.permute.xlu1 %5235  ;;  %1904 = vst.msk [vmem:[#allocation0 + $0x74] ss:$472 sm:$0x3] %vm1758_vm3, %v1901_v16  }
  0xfe   :  { %v5281_v48 = vpop.permute.xlu2 %5280  ;;  %2923 = vst.msk [vmem:[#allocation0 + $0x62] ss:$4 sm:$0x3f] %vm1758_vm3, %v5253_v24   ;;  %v5238_v42 = vunpack.i.h.bf16 %v5236_v26  ;;  %v5237_v44 = vunpack.i.l.bf16 %v5236_v26 }
  0xff   :  { %2925 = vst.msk [vmem:[#allocation0 + $0x222] ss:$4 sm:$0xc0] %vm1758_vm3, %v5253_v24   ;;  %v5283_v50 = vunpack.i.h.bf16 %v5281_v48  ;;  %v5282_v51 = vunpack.i.l.bf16 %v5281_v48  ;;  %v2196_v24 = vld [vmem:[#allocation1 + $0x2c0] sm:$0x3]  }
 0x100   :  { %v2799_v28 = vpop.permute.xlu0 %2798   ;;  %2904 = vst.msk [vmem:[#allocation0 + $0x222] ss:$4 sm:$0x3f] %vm1758_vm3, %v5252_v27   ;;  %v2206_v48 = vld [vmem:[#allocation1 + $0x2d0] sm:$0x3]  }
 0x101   :  { %2906 = vst.msk [vmem:[#allocation0 + $0x42] ss:$4 sm:$0xc0] %vm1758_vm3, %v5252_v27   ;;  %v2201_v27 = vld [vmem:[#allocation1 + $0x2c8] sm:$0x3]  }
 0x102   :  { %2239 = vst.msk [vmem:[#allocation0 + $0x180] ss:$472 sm:$0x3] %vm1758_vm3, %v2236_v29   ;;  %v2216_v29 = vld [vmem:[#allocation1 + $0x2e0] sm:$0x3]  }
 0x103   :  { %2244 = vst.msk [vmem:[#allocation0 + $0x184] ss:$472 sm:$0x3] %vm1758_vm3, %v2241_v31  }
 0x104   :  { %2259 = vst.msk [vmem:[#allocation0 + $0x190] ss:$472 sm:$0x3] %vm1758_vm3, %v2256_v41   ;;  %v2221_v41 = vld [vmem:[#allocation1 + $0x2e8] sm:$0x3]  }
 0x105   :  { %v2809_v34 = vpop.permute.xlu1 %2808   ;;  %2264 = vst.msk [vmem:[#allocation0 + $0x194] ss:$472 sm:$0x3] %vm1758_vm3, %v2261_v32  }
 0x106   :  { %v5296_v37 = vpop.permute.xlu2 %5295  ;;  %2738 = vst.msk [vmem:[#allocation0 + $0x181] ss:$4 sm:$0x3f] %vm1758_vm3, %v5233_v33  }
 0x107   :  { %2740 = vst.msk [vmem:[#allocation0 + $0x341] ss:$4 sm:$0xc0] %vm1758_vm3, %v5233_v33   ;;  %v5298_v38 = vunpack.i.h.bf16 %v5296_v37  ;;  %v5297_v62 = vunpack.i.l.bf16 %v5296_v37  ;;  %v2266_v37 = vld [vmem:[#allocation1 + $0x330] sm:$0x3]  }
 0x108   :  { %v5241_v40 = vpop.permute.xlu0 %5240  ;;  %2719 = vst.msk [vmem:[#allocation0 + $0x341] ss:$4 sm:$0x3f] %vm1758_vm3, %v5232_v56  }
 0x109   :  { %2721 = vst.msk [vmem:[#allocation0 + $0x161] ss:$4 sm:$0xc0] %vm1758_vm3, %v5232_v56   ;;  %v5243_v54 = vunpack.i.h.bf16 %v5241_v40  ;;  %v5242_v59 = vunpack.i.l.bf16 %v5241_v40  ;;  %v2251_v56 = vld [vmem:[#allocation1 + $0x318] sm:$0x3]  }
 0x10a   :  { %3019 = vst.msk [vmem:[#allocation0 + $0xc2] ss:$4 sm:$0x3f] %vm1758_vm3, %v5268_v39   ;;  %v2276_v40 = vld [vmem:[#allocation1 + $0x340] sm:$0x3]  }
 0x10b   :  { %3021 = vst.msk [vmem:[#allocation0 + $0x282] ss:$4 sm:$0xc0] %vm1758_vm3, %v5268_v39   ;;  %v2271_v39 = vld [vmem:[#allocation1 + $0x338] sm:$0x3]  }
 0x10c   :  { %3000 = vst.msk [vmem:[#allocation0 + $0x282] ss:$4 sm:$0x3f] %vm1758_vm3, %v5267_v1  }
 0x10d   :  { %v6152_v43 = vpop.permute.xlu1 %5245  ;;  %3002 = vst.msk [vmem:[#allocation0 + $0xa2] ss:$4 sm:$0xc0] %vm1758_vm3, %v5267_v1  }
 0x10e   :  { %2770 = vst.msk [vmem:[#allocation0 + $0x1a1] ss:$4 sm:$0x3f] %vm1758_vm3, %v5238_v42   ;;  %v6162_v47 = vpop.permute.xlu2 %3271   ;;  %v5248_v0 = vunpack.i.h.bf16 %v6152_v43  ;;  %v5247_v55 = vunpack.i.l.bf16 %v6152_v43 }
 0x10f   :  { %2772 = vst.msk [vmem:[#allocation0 + $0x361] ss:$4 sm:$0xc0] %vm1758_vm3, %v5238_v42   ;;  %v2281_v42 = vld [vmem:[#allocation1 + $0x348] sm:$0x3]  }
 0x110   :  { %v6157_v45 = vpop.permute.xlu0 %5255  ;;  %2751 = vst.msk [vmem:[#allocation0 + $0x361] ss:$4 sm:$0x3f] %vm1758_vm3, %v5237_v44  }
 0x111   :  { %2753 = vst.msk [vmem:[#allocation0 + $0x181] ss:$4 sm:$0xc0] %vm1758_vm3, %v5237_v44   ;;  %v5258_v7 = vunpack.i.h.bf16 %v6157_v45  ;;  %v5257_v9 = vunpack.i.l.bf16 %v6157_v45 }
 0x112   :  { %2802 = vst.msk [vmem:[#allocation0 + $0x1c1] ss:$4 sm:$0x1f] %vm1758_vm3, %v2799_v28  }
 0x113   :  { %2804 = vst.msk [vmem:[#allocation0 + $0x385] ss:$4 sm:$0xe0] %vm1758_vm3, %v2799_v28   ;;  %v2211_v28 = vld [vmem:[#allocation1 + $0x2d8] sm:$0x3]  }
 0x114   :  { %2119 = vst.msk [vmem:[#allocation0 + $0x120] ss:$472 sm:$0x3] %vm1758_vm3, %v2116_v46  }
 0x115   :  { %v6166_v3 = vpop.permute.xlu1 %5260  ;;  %2124 = vst.msk [vmem:[#allocation0 + $0x124] ss:$472 sm:$0x3] %vm1758_vm3, %v2121_v49  }
 0x116   :  { %3115 = vst.msk [vmem:[#allocation0 + $0x122] ss:$4 sm:$0x3f] %vm1758_vm3, %v5283_v50   ;;  %v5306_v58 = vpop.permute.xlu2 %5305  ;;  %v5263_v60 = vunpack.i.h.bf16 %v6166_v3  ;;  %v5262_v10 = vunpack.i.l.bf16 %v6166_v3 }
 0x117   :  { %3117 = vst.msk [vmem:[#allocation0 + $0x2e2] ss:$4 sm:$0xc0] %vm1758_vm3, %v5283_v50   ;;  %v5308_v13 = vunpack.i.h.bf16 %v5306_v58  ;;  %v5307_v14 = vunpack.i.l.bf16 %v5306_v58  ;;  %v2021_v58 = vld [vmem:[#allocation1 + $0x1a8] sm:$0x3]  }
 0x118   :  { %3096 = vst.msk [vmem:[#allocation0 + $0x2e2] ss:$4 sm:$0x3f] %vm1758_vm3, %v5282_v51   ;;  %v6173_v53 = vpop.permute.xlu0 %5270 }
 0x119   :  { %3098 = vst.msk [vmem:[#allocation0 + $0x102] ss:$4 sm:$0xc0] %vm1758_vm3, %v5282_v51   ;;  %v5273_v11 = vunpack.i.h.bf16 %v6173_v53  ;;  %v5272_v12 = vunpack.i.l.bf16 %v6173_v53 }
 0x11a   :  { %2812 = vst.msk [vmem:[#allocation0 + $0x3a5] ss:$4 sm:$0x3] %vm1758_vm3, %v2809_v34   ;;  %v2246_v34 = vld [vmem:[#allocation1 + $0x310] sm:$0x3]  }
 0x11b   :  { %1799 = vst.msk [vmem:[#allocation0 + $0x20] ss:$472 sm:$0x3] %vm1758_vm3, %v1796_v52  }
 0x11c   :  { %1804 = vst.msk [vmem:[#allocation0 + $0x24] ss:$472 sm:$0x3] %vm1758_vm3, %v1801_v30  }
 0x11d   :  { %1819 = vst.msk [vmem:[#allocation0 + $0x30] ss:$472 sm:$0x3] %vm1758_vm3, %v1816_v57   ;;  %v6180_v61 = vpop.permute.xlu1 %5275  ;;  %v2006_v57 = vld [vmem:[#allocation1 + $0x190] sm:$0x3]  }
 0x11e   :  { %1824 = vst.msk [vmem:[#allocation0 + $0x34] ss:$472 sm:$0x3] %vm1758_vm3, %v1821_v25   ;;  %v5321_v4 = vpop.permute.xlu2 %5320  ;;  %v5278_v15 = vunpack.i.h.bf16 %v6180_v61  ;;  %v5277_v17 = vunpack.i.l.bf16 %v6180_v61  ;;  %v2011_v25 = vld [vmem:[#allocation1 + $0x198] sm:$0x3]  }
 0x11f   :  { %2859 = vst.msk [vmem:[#allocation0 + $0x22] ss:$4 sm:$0x3f] %vm1758_vm3, %v5243_v54   ;;  %v5323_v21 = vunpack.i.h.bf16 %v5321_v4  ;;  %v5322_v16 = vunpack.i.l.bf16 %v5321_v4  ;;  %v2031_v61 = vld [vmem:[#allocation1 + $0x1b8] sm:$0x3]  }
 0x120   :  { %2861 = vst.msk [vmem:[#allocation0 + $0x1e2] ss:$4 sm:$0xc0] %vm1758_vm3, %v5243_v54   ;;  %v5286_v2 = vpop.permute.xlu0 %5285  ;;  %v2016_v54 = vld [vmem:[#allocation1 + $0x1a0] sm:$0x3]  }
 0x121   :  { %2840 = vst.msk [vmem:[#allocation0 + $0x1e2] ss:$4 sm:$0x3f] %vm1758_vm3, %v5242_v59   ;;  %v5288_v18 = vunpack.i.h.bf16 %v5286_v2  ;;  %v5287_v8 = vunpack.i.l.bf16 %v5286_v2  ;;  %v2326_v2 = vld [vmem:[#allocation1 + $0x390] sm:$0x3]  }
 0x122   :  { %2842 = vst.msk [vmem:[#allocation0 + $0x2] ss:$4 sm:$0xc0] %vm1758_vm3, %v5242_v59   ;;  %v2026_v59 = vld [vmem:[#allocation1 + $0x1b0] sm:$0x3]  }
 0x123   :  { %3211 = vst.msk [vmem:[#allocation0 + $0x182] ss:$4 sm:$0x3f] %vm1758_vm3, %v5298_v38  }
 0x124   :  { %3213 = vst.msk [vmem:[#allocation0 + $0x342] ss:$4 sm:$0xc0] %vm1758_vm3, %v5298_v38   ;;  %v2046_v38 = vld [vmem:[#allocation1 + $0x1d0] sm:$0x3]  }
 0x125   :  { %3192 = vst.msk [vmem:[#allocation0 + $0x342] ss:$4 sm:$0x3f] %vm1758_vm3, %v5297_v62   ;;  %v6197_v35 = vpop.permute.xlu1 %5290 }
 0x126   :  { %3194 = vst.msk [vmem:[#allocation0 + $0x162] ss:$4 sm:$0xc0] %vm1758_vm3, %v5297_v62   ;;  %v6246_v26 = vpop.permute.xlu2 %5335  ;;  %v5293_v32 = vunpack.i.h.bf16 %v6197_v35  ;;  %v5292_v33 = vunpack.i.l.bf16 %v6197_v35  ;;  %v2051_v62 = vld [vmem:[#allocation1 + $0x1d8] sm:$0x3]  }
 0x127   :  { %1839 = vst.msk [vmem:[#allocation0 + $0x40] ss:$472 sm:$0x3] %vm1758_vm3, %v1836_v36   ;;  %v2056_v36 = vld [vmem:[#allocation1 + $0x1e0] sm:$0x3]  }
 0x128   :  { %1844 = vst.msk [vmem:[#allocation0 + $0x44] ss:$472 sm:$0x3] %vm1758_vm3, %v1841_v63   ;;  %v6223_v22 = vpop.permute.xlu0 %5300  ;;  %v2061_v63 = vld [vmem:[#allocation1 + $0x1e8] sm:$0x3]  }
 0x129   :  { %2891 = vst.msk [vmem:[#allocation0 + $0x42] ss:$4 sm:$0x3f] %vm1758_vm3, %v5248_v0   ;;  %v5303_v43 = vunpack.i.h.bf16 %v6223_v22  ;;  %v5302_v49 = vunpack.i.l.bf16 %v6223_v22  ;;  %v2126_v35 = vld [vmem:[#allocation1 + $0x250] sm:$0x3]  }
 0x12a   :  { %2893 = vst.msk [vmem:[#allocation0 + $0x202] ss:$4 sm:$0xc0] %vm1758_vm3, %v5248_v0   ;;  %v5338_v0 = vunpack.i.h.bf16 %v6246_v26 }
 0x12b   :  { %2872 = vst.msk [vmem:[#allocation0 + $0x202] ss:$4 sm:$0x3f] %vm1758_vm3, %v5247_v55  }
 0x12c   :  { %2874 = vst.msk [vmem:[#allocation0 + $0x22] ss:$4 sm:$0xc0] %vm1758_vm3, %v5247_v55   ;;  %v5337_v55 = vunpack.i.l.bf16 %v6246_v26 }
 0x12d   :  { %1909 = vst.msk [vmem:[#allocation0 + $0x78] ss:$472 sm:$0x3] %vm1758_vm3, %v1906_v5   ;;  %v6252_v31 = vpop.permute.xlu1 %3252   ;;  %v2331_v5 = vld [vmem:[#allocation1 + $0x398] sm:$0x3]  }
 0x12e   :  { %1914 = vst.msk [vmem:[#allocation0 + $0x7c] ss:$472 sm:$0x3] %vm1758_vm3, %v1911_v6   ;;  %v6278_v30 = vpop.permute.xlu2 %5350 }
 0x12f   :  { %2955 = vst.msk [vmem:[#allocation0 + $0x82] ss:$4 sm:$0x3f] %vm1758_vm3, %v5258_v7   ;;  %v5352_v26 = vunpack.i.l.bf16 %v6278_v30 }
 0x130   :  { %2957 = vst.msk [vmem:[#allocation0 + $0x242] ss:$4 sm:$0xc0] %vm1758_vm3, %v5258_v7   ;;  %v6266_v1 = vpop.permute.xlu0 %3281  }
 0x131   :  { %2936 = vst.msk [vmem:[#allocation0 + $0x242] ss:$4 sm:$0x3f] %vm1758_vm3, %v5257_v9  }
 0x132   :  { %2938 = vst.msk [vmem:[#allocation0 + $0x62] ss:$4 sm:$0xc0] %vm1758_vm3, %v5257_v9  }
 0x133   :  { %3275 = vst.msk [vmem:[#allocation0 + $0x1c2] ss:$4 sm:$0x1f] %vm1758_vm3, %v6162_v47  }
 0x134   :  { %3277 = vst.msk [vmem:[#allocation0 + $0x386] ss:$4 sm:$0xe0] %vm1758_vm3, %v6162_v47  }
 0x135   :  { %2987 = vst.msk [vmem:[#allocation0 + $0xa2] ss:$4 sm:$0x3f] %vm1758_vm3, %v5263_v60   ;;  %v6305_v4 = vpop.permute.xlu1 %3296  }
 0x136   :  { %2989 = vst.msk [vmem:[#allocation0 + $0x262] ss:$4 sm:$0xc0] %vm1758_vm3, %v5263_v60  }
 0x137   :  { %2968 = vst.msk [vmem:[#allocation0 + $0x262] ss:$4 sm:$0x3f] %vm1758_vm3, %v5262_v10  }
 0x138   :  { %2970 = vst.msk [vmem:[#allocation0 + $0x82] ss:$4 sm:$0xc0] %vm1758_vm3, %v5262_v10   ;;  %v2131_v10 = vld [vmem:[#allocation1 + $0x258] sm:$0x3]  }
 0x139   :  { %3051 = vst.msk [vmem:[#allocation0 + $0xe2] ss:$4 sm:$0x3f] %vm1758_vm3, %v5273_v11  }
 0x13a   :  { %3053 = vst.msk [vmem:[#allocation0 + $0x2a2] ss:$4 sm:$0xc0] %vm1758_vm3, %v5273_v11  }
 0x13b   :  { %3032 = vst.msk [vmem:[#allocation0 + $0x2a2] ss:$4 sm:$0x3f] %vm1758_vm3, %v5272_v12  }
 0x13c   :  { %3034 = vst.msk [vmem:[#allocation0 + $0xc2] ss:$4 sm:$0xc0] %vm1758_vm3, %v5272_v12  }
 0x13d   :  { %3332 = vst.msk [vmem:[#allocation0 + $0x23] ss:$4 sm:$0x3f] %vm1758_vm3, %v5308_v13  }
 0x13e   :  { %3334 = vst.msk [vmem:[#allocation0 + $0x1e3] ss:$4 sm:$0xc0] %vm1758_vm3, %v5308_v13  }
 0x13f   :  { %3313 = vst.msk [vmem:[#allocation0 + $0x1e3] ss:$4 sm:$0x3f] %vm1758_vm3, %v5307_v14  }
 0x140   :  { %3315 = vst.msk [vmem:[#allocation0 + $0x3] ss:$4 sm:$0xc0] %vm1758_vm3, %v5307_v14  }
 0x141   :  { %3083 = vst.msk [vmem:[#allocation0 + $0x102] ss:$4 sm:$0x3f] %vm1758_vm3, %v5278_v15  }
 0x142   :  { %3085 = vst.msk [vmem:[#allocation0 + $0x2c2] ss:$4 sm:$0xc0] %vm1758_vm3, %v5278_v15   ;;  %v2146_v15 = vld [vmem:[#allocation1 + $0x270] sm:$0x3]  }
 0x143   :  { %3064 = vst.msk [vmem:[#allocation0 + $0x2c2] ss:$4 sm:$0x3f] %vm1758_vm3, %v5277_v17  }
 0x144   :  { %3066 = vst.msk [vmem:[#allocation0 + $0xe2] ss:$4 sm:$0xc0] %vm1758_vm3, %v5277_v17   ;;  %v2151_v17 = vld [vmem:[#allocation1 + $0x278] sm:$0x3]  }
 0x145   :  { %v4201_v19 = vld [vmem:[#allocation0 + $0x1f8] sm:$0xff]  ;;  %3147 = vst.msk [vmem:[#allocation0 + $0x142] ss:$4 sm:$0x3f] %vm1758_vm3, %v5288_v18  }
 0x146   :  { %v4194_v20 = vld [vmem:[#allocation0 + $0x1f0] sm:$0xff]  ;;  %3149 = vst.msk [vmem:[#allocation0 + $0x302] ss:$4 sm:$0xc0] %vm1758_vm3, %v5288_v18   ;;  %v6323_v18 = vpop.permute.xlu0 %5310 }
 0x147   :  { %v4976_v23 = vpack.c.bf16 %v4201_v19, %v4194_v20  ;;  %3128 = vst.msk [vmem:[#allocation0 + $0x302] ss:$4 sm:$0x3f] %vm1758_vm3, %v5287_v8   ;;  %v2161_v19 = vld [vmem:[#allocation1 + $0x288] sm:$0x3]  }
 0x148   :  { %3130 = vst.msk [vmem:[#allocation0 + $0x122] ss:$4 sm:$0xc0] %vm1758_vm3, %v5287_v8   ;;  %v2156_v8 = vld [vmem:[#allocation1 + $0x280] sm:$0x3]  }
 0x149   :  { %5143 = vst [vmem:[%s6626_s1 + $0xf8] sm:$0xff] %v4976_v23   ;;  %v2166_v20 = vld [vmem:[#allocation1 + $0x290] sm:$0x3]   ;;  %v2176_v23 = vld [vmem:[#allocation1 + $0x2a0] sm:$0x3]  }
 0x14a   :  { %3428 = vst.msk [vmem:[#allocation0 + $0x83] ss:$4 sm:$0x3f] %vm1758_vm3, %v5323_v21  }
 0x14b   :  { %3430 = vst.msk [vmem:[#allocation0 + $0x243] ss:$4 sm:$0xc0] %vm1758_vm3, %v5323_v21   ;;  %v2171_v21 = vld [vmem:[#allocation1 + $0x298] sm:$0x3]  }
 0x14c   :  { %3409 = vst.msk [vmem:[#allocation0 + $0x243] ss:$4 sm:$0x3f] %vm1758_vm3, %v5322_v16  }
 0x14d   :  { %3411 = vst.msk [vmem:[#allocation0 + $0x63] ss:$4 sm:$0xc0] %vm1758_vm3, %v5322_v16   ;;  %v2181_v16 = vld [vmem:[#allocation1 + $0x2a8] sm:$0x3]  }
 0x14e   :  { %2199 = vst.msk [vmem:[#allocation0 + $0x160] ss:$472 sm:$0x3] %vm1758_vm3, %v2196_v24   ;;  %v5353_v24 = vunpack.i.h.bf16 %v6278_v30 }
 0x14f   :  { %2204 = vst.msk [vmem:[#allocation0 + $0x164] ss:$472 sm:$0x3] %vm1758_vm3, %v2201_v27   ;;  %v1757_v27 = vld [vmem:[#allocation1] sm:$0x3]  }
 0x150   :  { %2209 = vst.msk [vmem:[#allocation0 + $0x168] ss:$472 sm:$0x3] %vm1758_vm3, %v2206_v48   ;;  %v1761_v48 = vld [vmem:[#allocation1 + $0x8] sm:$0x3]  }
 0x151   :  { %2214 = vst.msk [vmem:[#allocation0 + $0x16c] ss:$472 sm:$0x3] %vm1758_vm3, %v2211_v28   ;;  %v3872_v44 = vld [vmem:[#allocation0 + $0x80] sm:$0xff]  ;;  %v3879_v45 = vld [vmem:[#allocation0 + $0x88] sm:$0xff]  ;;  %v5366_v28 = vpop.permute.xlu2 %5365 }
 0x152   :  { %2219 = vst.msk [vmem:[#allocation0 + $0x170] ss:$472 sm:$0x3] %vm1758_vm3, %v2216_v29   ;;  %v4285_v3 = vld [vmem:[#allocation0 + $0x258] sm:$0xff]  ;;  %v4861_v51 = vpack.c.bf16 %v3879_v45, %v3872_v44  ;;  %v1766_v29 = vld [vmem:[#allocation1 + $0x10] sm:$0x3]  }
 0x153   :  { %2224 = vst.msk [vmem:[#allocation0 + $0x174] ss:$472 sm:$0x3] %vm1758_vm3, %v2221_v41   ;;  %v4264_v46 = vld [vmem:[#allocation0 + $0x240] sm:$0xff]  ;;  %v4271_v47 = vld [vmem:[#allocation0 + $0x248] sm:$0xff]  ;;  %v4278_v50 = vld [vmem:[#allocation0 + $0x250] sm:$0xff] }
 0x154   :  { %3179 = vst.msk [vmem:[#allocation0 + $0x162] ss:$4 sm:$0x3f] %vm1758_vm3, %v5293_v32   ;;  %v5001_v52 = vpack.c.bf16 %v4271_v47, %v4264_v46  ;;  %v5006_v53 = vpack.c.bf16 %v4285_v3, %v4278_v50  ;;  %v1771_v41 = vld [vmem:[#allocation1 + $0x18] sm:$0x3]   ;;  %v5313_v3 = vunpack.i.h.bf16 %v6323_v18 }
 0x155   :  { %3181 = vst.msk [vmem:[#allocation0 + $0x322] ss:$4 sm:$0xc0] %vm1758_vm3, %v5293_v32   ;;  %v1776_v32 = vld [vmem:[#allocation1 + $0x20] sm:$0x3]  }
 0x156   :  { %3160 = vst.msk [vmem:[#allocation0 + $0x322] ss:$4 sm:$0x3f] %vm1758_vm3, %v5292_v33   ;;  %v1806_v45 = vld [vmem:[#allocation1 + $0x50] sm:$0x3]  }
 0x157   :  { %3162 = vst.msk [vmem:[#allocation0 + $0x142] ss:$4 sm:$0xc0] %vm1758_vm3, %v5292_v33   ;;  %v1781_v33 = vld [vmem:[#allocation1 + $0x28] sm:$0x3]  }
 0x158   :  { %2249 = vst.msk [vmem:[#allocation0 + $0x188] ss:$472 sm:$0x3] %vm1758_vm3, %v2246_v34   ;;  %v1811_v46 = vld [vmem:[#allocation1 + $0x58] sm:$0x3]  }
 0x159   :  { %2254 = vst.msk [vmem:[#allocation0 + $0x18c] ss:$472 sm:$0x3] %vm1758_vm3, %v2251_v56   ;;  %v1826_v47 = vld [vmem:[#allocation1 + $0x70] sm:$0x3]  }
 0x15a   :  { %2269 = vst.msk [vmem:[#allocation0 + $0x198] ss:$472 sm:$0x3] %vm1758_vm3, %v2266_v37   ;;  %v1831_v50 = vld [vmem:[#allocation1 + $0x78] sm:$0x3]  }
 0x15b   :  { %2274 = vst.msk [vmem:[#allocation0 + $0x19c] ss:$472 sm:$0x3] %vm1758_vm3, %v2271_v39  }
 0x15c   :  { %2279 = vst.msk [vmem:[#allocation0 + $0x1a0] ss:$472 sm:$0x3] %vm1758_vm3, %v2276_v40  }
 0x15d   :  { %2284 = vst.msk [vmem:[#allocation0 + $0x1a4] ss:$472 sm:$0x3] %vm1758_vm3, %v2281_v42  }
 0x15e   :  { %3243 = vst.msk [vmem:[#allocation0 + $0x1a2] ss:$4 sm:$0x3f] %vm1758_vm3, %v5303_v43  }
 0x15f   :  { %3245 = vst.msk [vmem:[#allocation0 + $0x362] ss:$4 sm:$0xc0] %vm1758_vm3, %v5303_v43  }
 0x160   :  { %3224 = vst.msk [vmem:[#allocation0 + $0x362] ss:$4 sm:$0x3f] %vm1758_vm3, %v5302_v49  }
 0x161   :  { %3226 = vst.msk [vmem:[#allocation0 + $0x182] ss:$4 sm:$0xc0] %vm1758_vm3, %v5302_v49   ;;  %v6363_v49 = vpop.permute.xlu0 %5325 }
 0x162   :  { %5120 = vst [vmem:[%s6626_s1 + $0x40] sm:$0xff] %v4861_v51   ;;  %v3781_v51 = vld [vmem:[#allocation0 + $0x18] sm:$0xff] }
 0x163   :  { %5148 = vst [vmem:[%s6626_s1 + $0x120] sm:$0xff] %v5001_v52  }
 0x164   :  { %5149 = vst [vmem:[%s6626_s1 + $0x128] sm:$0xff] %v5006_v53  }
 0x165   :  { %2009 = vst.msk [vmem:[#allocation0 + $0xc8] ss:$472 sm:$0x3] %vm1758_vm3, %v2006_v57  }
 0x166   :  { %2014 = vst.msk [vmem:[#allocation0 + $0xcc] ss:$472 sm:$0x3] %vm1758_vm3, %v2011_v25  }
 0x167   :  { %2019 = vst.msk [vmem:[#allocation0 + $0xd0] ss:$472 sm:$0x3] %vm1758_vm3, %v2016_v54   ;;  %v5312_v54 = vunpack.i.l.bf16 %v6323_v18  ;;  %v1951_v18 = vld [vmem:[#allocation1 + $0x138] sm:$0x3]  }
 0x168   :  { %2024 = vst.msk [vmem:[#allocation0 + $0xd4] ss:$472 sm:$0x3] %vm1758_vm3, %v2021_v58   ;;  %v5368_v58 = vunpack.i.h.bf16 %v5366_v28 }
 0x169   :  { %2029 = vst.msk [vmem:[#allocation0 + $0xd8] ss:$472 sm:$0x3] %vm1758_vm3, %v2026_v59  }
 0x16a   :  { %2034 = vst.msk [vmem:[#allocation0 + $0xdc] ss:$472 sm:$0x3] %vm1758_vm3, %v2031_v61  }
 0x16b   :  { %2049 = vst.msk [vmem:[#allocation0 + $0xe8] ss:$472 sm:$0x3] %vm1758_vm3, %v2046_v38   ;;  %v5367_v38 = vunpack.i.l.bf16 %v5366_v28 }
 0x16c   :  { %2054 = vst.msk [vmem:[#allocation0 + $0xec] ss:$472 sm:$0x3] %vm1758_vm3, %v2051_v62  }
 0x16d   :  { %2059 = vst.msk [vmem:[#allocation0 + $0xf0] ss:$472 sm:$0x3] %vm1758_vm3, %v2056_v36  }
 0x16e   :  { %2064 = vst.msk [vmem:[#allocation0 + $0xf4] ss:$472 sm:$0x3] %vm1758_vm3, %v2061_v63  }
 0x16f   :  { %3524 = vst.msk [vmem:[#allocation0 + $0xe3] ss:$4 sm:$0x3f] %vm1758_vm3, %v5338_v0  }
 0x170   :  { %3526 = vst.msk [vmem:[#allocation0 + $0x2a3] ss:$4 sm:$0xc0] %vm1758_vm3, %v5338_v0  }
 0x171   :  { %3505 = vst.msk [vmem:[#allocation0 + $0x2a3] ss:$4 sm:$0x3f] %vm1758_vm3, %v5337_v55  }
 0x172   :  { %3507 = vst.msk [vmem:[#allocation0 + $0xc3] ss:$4 sm:$0xc0] %vm1758_vm3, %v5337_v55   ;;  %v6387_v55 = vpop.permute.xlu2 %3754  }
 0x173   :  { %3256 = vst.msk [vmem:[#allocation0 + $0x382] ss:$4 sm:$0x3f] %vm1758_vm3, %v6252_v31  }
 0x174   :  { %3258 = vst.msk [vmem:[#allocation0 + $0x1a2] ss:$4 sm:$0xc0] %vm1758_vm3, %v6252_v31   ;;  %v6342_v31 = vpop.permute.xlu1 %5315 }
 0x175   :  { %2329 = vst.msk [vmem:[#allocation0 + $0x1c8] ss:$472 sm:$0x3] %vm1758_vm3, %v2326_v2   ;;  %v5318_v36 = vunpack.i.h.bf16 %v6342_v31  ;;  %v5317_v0 = vunpack.i.l.bf16 %v6342_v31  ;;  %v3788_v2 = vld [vmem:[#allocation0 + $0x20] sm:$0xff] }
 0x176   :  { %v3956_v6 = vld [vmem:[#allocation0 + $0xe0] sm:$0xff]  ;;  %v3963_v7 = vld [vmem:[#allocation0 + $0xe8] sm:$0xff]  ;;  %2334 = vst.msk [vmem:[#allocation0 + $0x1cc] ss:$472 sm:$0x3] %vm1758_vm3, %v2331_v5  }
 0x177   :  { %v4891_v9 = vpack.c.bf16 %v3963_v7, %v3956_v6  ;;  %v4369_v60 = vld [vmem:[#allocation0 + $0x2b8] sm:$0xff]  ;;  %3285 = vst.msk [vmem:[#allocation0 + $0x3a6] ss:$4 sm:$0x3] %vm1758_vm3, %v6266_v1  }
 0x178   :  { %v4348_v11 = vld [vmem:[#allocation0 + $0x2a0] sm:$0xff]  ;;  %v4355_v12 = vld [vmem:[#allocation0 + $0x2a8] sm:$0xff]  ;;  %v4362_v13 = vld [vmem:[#allocation0 + $0x2b0] sm:$0xff]  ;;  %2129 = vst.msk [vmem:[#allocation0 + $0x128] ss:$472 sm:$0x3] %vm1758_vm3, %v2126_v35  }
 0x179   :  { %5126 = vst [vmem:[%s6626_s1 + $0x70] sm:$0xff] %v4891_v9   ;;  %v5031_v22 = vpack.c.bf16 %v4355_v12, %v4348_v11  ;;  %v5036_v14 = vpack.c.bf16 %v4369_v60, %v4362_v13  ;;  %v3802_v13 = vld [vmem:[#allocation0 + $0x30] sm:$0xff] }
 0x17a   :  { %2134 = vst.msk [vmem:[#allocation0 + $0x12c] ss:$472 sm:$0x3] %vm1758_vm3, %v2131_v10  }
 0x17b   :  { %5154 = vst [vmem:[%s6626_s1 + $0x150] sm:$0xff] %v5031_v22  }
 0x17c   :  { %5155 = vst [vmem:[%s6626_s1 + $0x158] sm:$0xff] %v5036_v14   ;;  %v6394_v12 = vpop.permute.xlu1 %5330 }
 0x17d   :  { %2149 = vst.msk [vmem:[#allocation0 + $0x138] ss:$472 sm:$0x3] %vm1758_vm3, %v2146_v15  }
 0x17e   :  { %2154 = vst.msk [vmem:[#allocation0 + $0x13c] ss:$472 sm:$0x3] %vm1758_vm3, %v2151_v17   ;;  %v1946_v17 = vld [vmem:[#allocation1 + $0x130] sm:$0x3]  }
 0x17f   :  { %2159 = vst.msk [vmem:[#allocation0 + $0x140] ss:$472 sm:$0x3] %vm1758_vm3, %v2156_v8   ;;  %v1956_v8 = vld [vmem:[#allocation1 + $0x140] sm:$0x3]  }
 0x180   :  { %2164 = vst.msk [vmem:[#allocation0 + $0x144] ss:$472 sm:$0x3] %vm1758_vm3, %v2161_v19   ;;  %v1961_v19 = vld [vmem:[#allocation1 + $0x148] sm:$0x3]  }
 0x181   :  { %2169 = vst.msk [vmem:[#allocation0 + $0x148] ss:$472 sm:$0x3] %vm1758_vm3, %v2166_v20   ;;  %v1966_v20 = vld [vmem:[#allocation1 + $0x150] sm:$0x3]  }
 0x182   :  { %2174 = vst.msk [vmem:[#allocation0 + $0x14c] ss:$472 sm:$0x3] %vm1758_vm3, %v2171_v21   ;;  %v1971_v21 = vld [vmem:[#allocation1 + $0x158] sm:$0x3]  }
 0x183   :  { %2179 = vst.msk [vmem:[#allocation0 + $0x150] ss:$472 sm:$0x3] %vm1758_vm3, %v2176_v23   ;;  %v6416_v23 = vpop.permute.xlu0 %5340 }
 0x184   :  { %2184 = vst.msk [vmem:[#allocation0 + $0x154] ss:$472 sm:$0x3] %vm1758_vm3, %v2181_v16   ;;  %v1976_v16 = vld [vmem:[#allocation1 + $0x160] sm:$0x3]  }
 0x185   :  { %3620 = vst.msk [vmem:[#allocation0 + $0x143] ss:$4 sm:$0x3f] %vm1758_vm3, %v5353_v24  }
 0x186   :  { %3622 = vst.msk [vmem:[#allocation0 + $0x303] ss:$4 sm:$0xc0] %vm1758_vm3, %v5353_v24   ;;  %v1981_v24 = vld [vmem:[#allocation1 + $0x168] sm:$0x3]  }
 0x187   :  { %3601 = vst.msk [vmem:[#allocation0 + $0x303] ss:$4 sm:$0x3f] %vm1758_vm3, %v5352_v26  }
 0x188   :  { %3603 = vst.msk [vmem:[#allocation0 + $0x123] ss:$4 sm:$0xc0] %vm1758_vm3, %v5352_v26   ;;  %v5328_v26 = vunpack.i.h.bf16 %v6363_v49 }
 0x189   :  { %1759 = vst.msk [vmem:[#allocation0] ss:$472 sm:$0x3] %vm1758_vm3, %v1757_v27  }
 0x18a   :  { %1764 = vst.msk [vmem:[#allocation0 + $0x4] ss:$472 sm:$0x3] %vm1758_vm3, %v1761_v48  }
 0x18b   :  { %1769 = vst.msk [vmem:[#allocation0 + $0x8] ss:$472 sm:$0x3] %vm1758_vm3, %v1766_v29   ;;  %v5327_v29 = vunpack.i.l.bf16 %v6363_v49 }
 0x18c   :  { %v4040_v34 = vld [vmem:[#allocation0 + $0x140] sm:$0xff]  ;;  %v4047_v56 = vld [vmem:[#allocation0 + $0x148] sm:$0xff]  ;;  %1774 = vst.msk [vmem:[#allocation0 + $0xc] ss:$472 sm:$0x3] %vm1758_vm3, %v1771_v41  }
 0x18d   :  { %v4921_v37 = vpack.c.bf16 %v4047_v56, %v4040_v34  ;;  %v4453_v39 = vld [vmem:[#allocation0 + $0x318] sm:$0xff]  ;;  %1779 = vst.msk [vmem:[#allocation0 + $0x10] ss:$472 sm:$0x3] %vm1758_vm3, %v1776_v32  }
 0x18e   :  { %v4432_v40 = vld [vmem:[#allocation0 + $0x300] sm:$0xff]  ;;  %v4439_v1 = vld [vmem:[#allocation0 + $0x308] sm:$0xff]  ;;  %v4446_v42 = vld [vmem:[#allocation0 + $0x310] sm:$0xff]  ;;  %1784 = vst.msk [vmem:[#allocation0 + $0x14] ss:$472 sm:$0x3] %vm1758_vm3, %v1781_v33  }
 0x18f   :  { %5132 = vst [vmem:[%s6626_s1 + $0xa0] sm:$0xff] %v4921_v37   ;;  %v5061_v43 = vpack.c.bf16 %v4439_v1, %v4432_v40  ;;  %v5066_v44 = vpack.c.bf16 %v4453_v39, %v4446_v42  ;;  %v6429_v1 = vpop.permute.xlu1 %5345  ;;  %v3865_v42 = vld [vmem:[#allocation0 + $0x78] sm:$0xff] }
 0x190   :  { %3300 = vst.msk [vmem:[#allocation0 + $0x3] ss:$4 sm:$0x3f] %vm1758_vm3, %v6305_v4  }
 0x191   :  { %5160 = vst [vmem:[%s6626_s1 + $0x180] sm:$0xff] %v5061_v43  }
 0x192   :  { %5161 = vst [vmem:[%s6626_s1 + $0x188] sm:$0xff] %v5066_v44  }
 0x193   :  { %3302 = vst.msk [vmem:[#allocation0 + $0x1c3] ss:$4 sm:$0xc0] %vm1758_vm3, %v6305_v4   ;;  %v4180_v59 = vld [vmem:[#allocation0 + $0x1e0] sm:$0xff] }
 0x194   :  { %1809 = vst.msk [vmem:[#allocation0 + $0x28] ss:$472 sm:$0x3] %vm1758_vm3, %v1806_v45  }
 0x195   :  { %1814 = vst.msk [vmem:[#allocation0 + $0x2c] ss:$472 sm:$0x3] %vm1758_vm3, %v1811_v46   ;;  %v4187_v61 = vld [vmem:[#allocation0 + $0x1e8] sm:$0xff] }
 0x196   :  { %1829 = vst.msk [vmem:[#allocation0 + $0x38] ss:$472 sm:$0x3] %vm1758_vm3, %v1826_v47   ;;  %v4971_v62 = vpack.c.bf16 %v4187_v61, %v4180_v59 }
 0x197   :  { %v3761_v52 = vld [vmem:[#allocation0] sm:$0xff]  ;;  %v3767_v53 = vld [vmem:[#allocation0 + $0x8] sm:$0xff]  ;;  %v3774_v30 = vld [vmem:[#allocation0 + $0x10] sm:$0xff]  ;;  %1834 = vst.msk [vmem:[#allocation0 + $0x3c] ss:$472 sm:$0x3] %vm1758_vm3, %v1831_v50  }
 0x198   :  { %v4821_v57 = vpack.c.bf16 %v3767_v53, %v3761_v52  ;;  %v4826_v25 = vpack.c.bf16 %v3781_v51, %v3774_v30  ;;  %3364 = vst.msk [vmem:[#allocation0 + $0x43] ss:$4 sm:$0x3f] %vm1758_vm3, %v5313_v3  }
 0x199   :  { %3366 = vst.msk [vmem:[#allocation0 + $0x203] ss:$4 sm:$0xc0] %vm1758_vm3, %v5313_v3  }
 0x19a   :  { %4822 = vst [vmem:[%s6626_s1] sm:$0xff] %v4821_v57  }
 0x19b   :  { %5113 = vst [vmem:[%s6626_s1 + $0x8] sm:$0xff] %v4826_v25  }
 0x19c   :  { %3345 = vst.msk [vmem:[#allocation0 + $0x203] ss:$4 sm:$0x3f] %vm1758_vm3, %v5312_v54   ;;  %v3795_v4 = vld [vmem:[#allocation0 + $0x28] sm:$0xff] }
 0x19d   :  { %3347 = vst.msk [vmem:[#allocation0 + $0x23] ss:$4 sm:$0xc0] %vm1758_vm3, %v5312_v54   ;;  %v4831_v22 = vpack.c.bf16 %v3795_v4, %v3788_v2  ;;  %v3886_v54 = vld [vmem:[#allocation0 + $0x90] sm:$0xff]  ;;  %v2001_v2 = vld [vmem:[#allocation1 + $0x188] sm:$0x3]   ;;  %v5333_v4 = vunpack.i.h.bf16 %v6394_v12 }
 0x19e   :  { %3716 = vst.msk [vmem:[#allocation0 + $0x1a3] ss:$4 sm:$0x3f] %vm1758_vm3, %v5368_v58  }
 0x19f   :  { %3718 = vst.msk [vmem:[#allocation0 + $0x363] ss:$4 sm:$0xc0] %vm1758_vm3, %v5368_v58   ;;  %v3816_v10 = vld [vmem:[#allocation0 + $0x40] sm:$0xff]  ;;  %v3823_v11 = vld [vmem:[#allocation0 + $0x48] sm:$0xff]  ;;  %v3830_v31 = vld [vmem:[#allocation0 + $0x50] sm:$0xff] }
 0x1a0   :  { %3697 = vst.msk [vmem:[#allocation0 + $0x363] ss:$4 sm:$0x3f] %vm1758_vm3, %v5367_v38   ;;  %v4229_v63 = vld [vmem:[#allocation0 + $0x218] sm:$0xff]  ;;  %v4841_v15 = vpack.c.bf16 %v3823_v11, %v3816_v10 }
 0x1a1   :  { %3699 = vst.msk [vmem:[#allocation0 + $0x183] ss:$4 sm:$0xc0] %vm1758_vm3, %v5367_v38   ;;  %v3949_v10 = vld [vmem:[#allocation0 + $0xd8] sm:$0xff] }
 0x1a2   :  { %5142 = vst [vmem:[%s6626_s1 + $0xf0] sm:$0xff] %v4971_v62  }
 0x1a3   :  { %v4208_v5 = vld [vmem:[#allocation0 + $0x200] sm:$0xff]  ;;  %v4215_v35 = vld [vmem:[#allocation0 + $0x208] sm:$0xff]  ;;  %v4222_v6 = vld [vmem:[#allocation0 + $0x210] sm:$0xff]  ;;  %3396 = vst.msk [vmem:[#allocation0 + $0x63] ss:$4 sm:$0x3f] %vm1758_vm3, %v5318_v36  }
 0x1a4   :  { %v4981_v7 = vpack.c.bf16 %v4215_v35, %v4208_v5  ;;  %v4986_v9 = vpack.c.bf16 %v4229_v63, %v4222_v6  ;;  %v3809_v60 = vld [vmem:[#allocation0 + $0x38] sm:$0xff]  ;;  %3398 = vst.msk [vmem:[#allocation0 + $0x223] ss:$4 sm:$0xc0] %vm1758_vm3, %v5318_v36   ;;  %v1986_v36 = vld [vmem:[#allocation1 + $0x170] sm:$0x3]   ;;  %v6460_v63 = vpop.permute.xlu0 %5355  ;;  %v5332_v5 = vunpack.i.l.bf16 %v6394_v12  ;;  %v6475_v35 = vpop.permute.xlu1 %5360 }
 0x1a5   :  { %3377 = vst.msk [vmem:[#allocation0 + $0x223] ss:$4 sm:$0x3f] %vm1758_vm3, %v5317_v0   ;;  %v4836_v14 = vpack.c.bf16 %v3809_v60, %v3802_v13  ;;  %v2066_v6 = vld [vmem:[#allocation1 + $0x1f0] sm:$0x3]   ;;  %v5342_v60 = vunpack.i.l.bf16 %v6416_v23 }
 0x1a6   :  { %5144 = vst [vmem:[%s6626_s1 + $0x100] sm:$0xff] %v4981_v7   ;;  %v4537_v32 = vld [vmem:[#allocation0 + $0x378] sm:$0xff]  ;;  %v2071_v7 = vld [vmem:[#allocation1 + $0x1f8] sm:$0x3]  }
 0x1a7   :  { %5145 = vst [vmem:[%s6626_s1 + $0x108] sm:$0xff] %v4986_v9   ;;  %v4516_v48 = vld [vmem:[#allocation0 + $0x360] sm:$0xff]  ;;  %v4523_v28 = vld [vmem:[#allocation0 + $0x368] sm:$0xff]  ;;  %v4530_v41 = vld [vmem:[#allocation0 + $0x370] sm:$0xff]  ;;  %v5343_v9 = vunpack.i.h.bf16 %v6416_v23 }
 0x1a8   :  { %3379 = vst.msk [vmem:[#allocation0 + $0x43] ss:$4 sm:$0xc0] %vm1758_vm3, %v5317_v0   ;;  %v5091_v37 = vpack.c.bf16 %v4523_v28, %v4516_v48  ;;  %v5096_v40 = vpack.c.bf16 %v4537_v32, %v4530_v41  ;;  %v1991_v0 = vld [vmem:[#allocation1 + $0x178] sm:$0x3]   ;;  %v5348_v28 = vunpack.i.h.bf16 %v6429_v1  ;;  %v3970_v41 = vld [vmem:[#allocation0 + $0xf0] sm:$0xff] }
 0x1a9   :  { %5114 = vst [vmem:[%s6626_s1 + $0x10] sm:$0xff] %v4831_v22   ;;  %v2111_v48 = vld [vmem:[#allocation1 + $0x238] sm:$0x3]  }
 0x1aa   :  { %5115 = vst [vmem:[%s6626_s1 + $0x18] sm:$0xff] %v4836_v14   ;;  %v3844_v34 = vld [vmem:[#allocation0 + $0x60] sm:$0xff]  ;;  %v3851_v56 = vld [vmem:[#allocation0 + $0x68] sm:$0xff]  ;;  %v3858_v39 = vld [vmem:[#allocation0 + $0x70] sm:$0xff] }
 0x1ab   :  { %5116 = vst [vmem:[%s6626_s1 + $0x20] sm:$0xff] %v4841_v15   ;;  %v4851_v45 = vpack.c.bf16 %v3851_v56, %v3844_v34  ;;  %v4856_v46 = vpack.c.bf16 %v3865_v42, %v3858_v39  ;;  %v4257_v51 = vld [vmem:[#allocation0 + $0x238] sm:$0xff]  ;;  %v2191_v34 = vld [vmem:[#allocation1 + $0x2b8] sm:$0x3]   ;;  %v5358_v56 = vunpack.i.h.bf16 %v6460_v63 }
 0x1ac   :  { %1949 = vst.msk [vmem:[#allocation0 + $0x98] ss:$472 sm:$0x3] %vm1758_vm3, %v1946_v17   ;;  %v4236_v43 = vld [vmem:[#allocation0 + $0x220] sm:$0xff]  ;;  %v4243_v44 = vld [vmem:[#allocation0 + $0x228] sm:$0xff]  ;;  %v4250_v3 = vld [vmem:[#allocation0 + $0x230] sm:$0xff] }
 0x1ad   :  { %1954 = vst.msk [vmem:[#allocation0 + $0x9c] ss:$472 sm:$0x3] %vm1758_vm3, %v1951_v18   ;;  %v4991_v50 = vpack.c.bf16 %v4243_v44, %v4236_v43  ;;  %v4996_v62 = vpack.c.bf16 %v4257_v51, %v4250_v3 }
 0x1ae   :  { %1959 = vst.msk [vmem:[#allocation0 + $0xa0] ss:$472 sm:$0x3] %vm1758_vm3, %v1956_v8  }
 0x1af   :  { %1964 = vst.msk [vmem:[#allocation0 + $0xa4] ss:$472 sm:$0x3] %vm1758_vm3, %v1961_v19   ;;  %v3837_v27 = vld [vmem:[#allocation0 + $0x58] sm:$0xff] }
 0x1b0   :  { %1969 = vst.msk [vmem:[#allocation0 + $0xa8] ss:$472 sm:$0x3] %vm1758_vm3, %v1966_v20   ;;  %v4846_v33 = vpack.c.bf16 %v3837_v27, %v3830_v31  ;;  %v2106_v27 = vld [vmem:[#allocation1 + $0x230] sm:$0x3]   ;;  %v5347_v31 = vunpack.i.l.bf16 %v6429_v1  ;;  %v5357_v1 = vunpack.i.l.bf16 %v6460_v63 }
 0x1b1   :  { %1974 = vst.msk [vmem:[#allocation0 + $0xac] ss:$472 sm:$0x3] %vm1758_vm3, %v1971_v21  }
 0x1b2   :  { %1979 = vst.msk [vmem:[#allocation0 + $0xb0] ss:$472 sm:$0x3] %vm1758_vm3, %v1976_v16  }
 0x1b3   :  { %1984 = vst.msk [vmem:[#allocation0 + $0xb4] ss:$472 sm:$0x3] %vm1758_vm3, %v1981_v24   ;;  %v2096_v24 = vld [vmem:[#allocation1 + $0x220] sm:$0x3]  }
 0x1b4   :  { %3460 = vst.msk [vmem:[#allocation0 + $0xa3] ss:$4 sm:$0x3f] %vm1758_vm3, %v5328_v26  }
 0x1b5   :  { %3462 = vst.msk [vmem:[#allocation0 + $0x263] ss:$4 sm:$0xc0] %vm1758_vm3, %v5328_v26   ;;  %v2101_v26 = vld [vmem:[#allocation1 + $0x228] sm:$0x3]  }
 0x1b6   :  { %3441 = vst.msk [vmem:[#allocation0 + $0x263] ss:$4 sm:$0x3f] %vm1758_vm3, %v5327_v29  }
 0x1b7   :  { %3443 = vst.msk [vmem:[#allocation0 + $0x83] ss:$4 sm:$0xc0] %vm1758_vm3, %v5327_v29  }
 0x1b8   :  { %5117 = vst [vmem:[%s6626_s1 + $0x28] sm:$0xff] %v4846_v33   ;;  %v2186_v33 = vld [vmem:[#allocation1 + $0x2b0] sm:$0x3]  }
 0x1b9   :  { %5166 = vst [vmem:[%s6626_s1 + $0x1b0] sm:$0xff] %v5091_v37   ;;  %v6514_v37 = vpop.permute.xlu0 %3725  }
 0x1ba   :  { %5167 = vst [vmem:[%s6626_s1 + $0x1b8] sm:$0xff] %v5096_v40  }
 0x1bb   :  { %v3900_v47 = vld [vmem:[#allocation0 + $0xa0] sm:$0xff]  ;;  %v3907_v49 = vld [vmem:[#allocation0 + $0xa8] sm:$0xff]  ;;  %3758 = vst.msk [vmem:[#allocation0 + $0x3a7] ss:$4 sm:$0x3] %vm1758_vm3, %v6387_v55   ;;  %v3914_v19 = vld [vmem:[#allocation0 + $0xb0] sm:$0xff] }
 0x1bc   :  { %v4871_v52 = vpack.c.bf16 %v3907_v49, %v3900_v47  ;;  %v4313_v53 = vld [vmem:[#allocation0 + $0x278] sm:$0xff]  ;;  %5118 = vst [vmem:[%s6626_s1 + $0x30] sm:$0xff] %v4851_v45   ;;  %v1996_v55 = vld [vmem:[#allocation1 + $0x180] sm:$0x3]  }
 0x1bd   :  { %v4292_v30 = vld [vmem:[#allocation0 + $0x260] sm:$0xff]  ;;  %v4299_v57 = vld [vmem:[#allocation0 + $0x268] sm:$0xff]  ;;  %v4306_v25 = vld [vmem:[#allocation0 + $0x270] sm:$0xff]  ;;  %5119 = vst [vmem:[%s6626_s1 + $0x38] sm:$0xff] %v4856_v46  }
 0x1be   :  { %5122 = vst [vmem:[%s6626_s1 + $0x50] sm:$0xff] %v4871_v52   ;;  %v3893_v58 = vld [vmem:[#allocation0 + $0x98] sm:$0xff]  ;;  %v5011_v59 = vpack.c.bf16 %v4299_v57, %v4292_v30  ;;  %v5016_v61 = vpack.c.bf16 %v4313_v53, %v4306_v25  ;;  %v2226_v52 = vld [vmem:[#allocation1 + $0x2f0] sm:$0x3]   ;;  %v2231_v53 = vld [vmem:[#allocation1 + $0x2f8] sm:$0x3]   ;;  %v5363_v30 = vunpack.i.h.bf16 %v6475_v35 }
 0x1bf   :  { %v4866_v38 = vpack.c.bf16 %v3893_v58, %v3886_v54  ;;  %5146 = vst [vmem:[%s6626_s1 + $0x110] sm:$0xff] %v4991_v50   ;;  %v6540_v54 = vpop.permute.xlu1 %3744  }
 0x1c0   :  { %5150 = vst [vmem:[%s6626_s1 + $0x130] sm:$0xff] %v5011_v59  }
 0x1c1   :  { %5151 = vst [vmem:[%s6626_s1 + $0x138] sm:$0xff] %v5016_v61  }
 0x1c2   :  { %5121 = vst [vmem:[%s6626_s1 + $0x48] sm:$0xff] %v4866_v38   ;;  %v5362_v38 = vunpack.i.l.bf16 %v6475_v35 }
 0x1c3   :  { %5147 = vst [vmem:[%s6626_s1 + $0x118] sm:$0xff] %v4996_v62  }
 0x1c4   :  { %1989 = vst.msk [vmem:[#allocation0 + $0xb8] ss:$472 sm:$0x3] %vm1758_vm3, %v1986_v36  }
 0x1c5   :  { %1994 = vst.msk [vmem:[#allocation0 + $0xbc] ss:$472 sm:$0x3] %vm1758_vm3, %v1991_v0  }
 0x1c6   :  { %1999 = vst.msk [vmem:[#allocation0 + $0xc0] ss:$472 sm:$0x3] %vm1758_vm3, %v1996_v55  }
 0x1c7   :  { %2004 = vst.msk [vmem:[#allocation0 + $0xc4] ss:$472 sm:$0x3] %vm1758_vm3, %v2001_v2   ;;  %v4033_v2 = vld [vmem:[#allocation0 + $0x138] sm:$0xff] }
 0x1c8   :  { %3492 = vst.msk [vmem:[#allocation0 + $0xc3] ss:$4 sm:$0x3f] %vm1758_vm3, %v5333_v4  }
 0x1c9   :  { %3494 = vst.msk [vmem:[#allocation0 + $0x283] ss:$4 sm:$0xc0] %vm1758_vm3, %v5333_v4  }
 0x1ca   :  { %3473 = vst.msk [vmem:[#allocation0 + $0x283] ss:$4 sm:$0x3f] %vm1758_vm3, %v5332_v5  }
 0x1cb   :  { %3475 = vst.msk [vmem:[#allocation0 + $0xa3] ss:$4 sm:$0xc0] %vm1758_vm3, %v5332_v5  }
 0x1cc   :  { %2069 = vst.msk [vmem:[#allocation0 + $0xf8] ss:$472 sm:$0x3] %vm1758_vm3, %v2066_v6   ;;  %v4054_v6 = vld [vmem:[#allocation0 + $0x150] sm:$0xff] }
 0x1cd   :  { %2074 = vst.msk [vmem:[#allocation0 + $0xfc] ss:$472 sm:$0x3] %vm1758_vm3, %v2071_v7  }
 0x1ce   :  { %3556 = vst.msk [vmem:[#allocation0 + $0x103] ss:$4 sm:$0x3f] %vm1758_vm3, %v5343_v9  }
 0x1cf   :  { %v3928_v11 = vld [vmem:[#allocation0 + $0xc0] sm:$0xff]  ;;  %v3935_v12 = vld [vmem:[#allocation0 + $0xc8] sm:$0xff]  ;;  %v3942_v13 = vld [vmem:[#allocation0 + $0xd0] sm:$0xff]  ;;  %3558 = vst.msk [vmem:[#allocation0 + $0x2c3] ss:$4 sm:$0xc0] %vm1758_vm3, %v5343_v9  }
 0x1d0   :  { %v4881_v22 = vpack.c.bf16 %v3935_v12, %v3928_v11  ;;  %v4341_v14 = vld [vmem:[#allocation0 + $0x298] sm:$0xff]  ;;  %v4886_v15 = vpack.c.bf16 %v3949_v10, %v3942_v13  ;;  %3537 = vst.msk [vmem:[#allocation0 + $0x2c3] ss:$4 sm:$0x3f] %vm1758_vm3, %v5342_v60   ;;  %v2286_v10 = vld [vmem:[#allocation1 + $0x350] sm:$0x3]  }
 0x1d1   :  { %v4320_v17 = vld [vmem:[#allocation0 + $0x280] sm:$0xff]  ;;  %v4327_v18 = vld [vmem:[#allocation0 + $0x288] sm:$0xff]  ;;  %v4334_v8 = vld [vmem:[#allocation0 + $0x290] sm:$0xff]  ;;  %3539 = vst.msk [vmem:[#allocation0 + $0xe3] ss:$4 sm:$0xc0] %vm1758_vm3, %v5342_v60  }
 0x1d2   :  { %5124 = vst [vmem:[%s6626_s1 + $0x60] sm:$0xff] %v4881_v22   ;;  %v3921_v20 = vld [vmem:[#allocation0 + $0xb8] sm:$0xff]  ;;  %v5021_v21 = vpack.c.bf16 %v4327_v18, %v4320_v17  ;;  %v5026_v23 = vpack.c.bf16 %v4341_v14, %v4334_v8  ;;  %v2291_v12 = vld [vmem:[#allocation1 + $0x358] sm:$0x3]   ;;  %v2296_v13 = vld [vmem:[#allocation1 + $0x360] sm:$0x3]  }
 0x1d3   :  { %v4876_v16 = vpack.c.bf16 %v3921_v20, %v3914_v19  ;;  %5125 = vst [vmem:[%s6626_s1 + $0x68] sm:$0xff] %v4886_v15  }
 0x1d4   :  { %5152 = vst [vmem:[%s6626_s1 + $0x140] sm:$0xff] %v5021_v21   ;;  %v2301_v21 = vld [vmem:[#allocation1 + $0x368] sm:$0x3]  }
 0x1d5   :  { %5153 = vst [vmem:[%s6626_s1 + $0x148] sm:$0xff] %v5026_v23   ;;  %v3984_v39 = vld [vmem:[#allocation0 + $0x100] sm:$0xff]  ;;  %v3991_v40 = vld [vmem:[#allocation0 + $0x108] sm:$0xff] }
 0x1d6   :  { %5123 = vst [vmem:[%s6626_s1 + $0x58] sm:$0xff] %v4876_v16   ;;  %v4397_v45 = vld [vmem:[#allocation0 + $0x2d8] sm:$0xff]  ;;  %v4901_v46 = vpack.c.bf16 %v3991_v40, %v3984_v39  ;;  %v4124_v39 = vld [vmem:[#allocation0 + $0x1a0] sm:$0xff] }
 0x1d7   :  { %2099 = vst.msk [vmem:[#allocation0 + $0x110] ss:$472 sm:$0x3] %vm1758_vm3, %v2096_v24   ;;  %v4376_v42 = vld [vmem:[#allocation0 + $0x2c0] sm:$0xff]  ;;  %v4383_v43 = vld [vmem:[#allocation0 + $0x2c8] sm:$0xff]  ;;  %v4390_v44 = vld [vmem:[#allocation0 + $0x2d0] sm:$0xff] }
 0x1d8   :  { %v3977_v29 = vld [vmem:[#allocation0 + $0xf8] sm:$0xff]  ;;  %2104 = vst.msk [vmem:[#allocation0 + $0x114] ss:$472 sm:$0x3] %vm1758_vm3, %v2101_v26   ;;  %v5041_v50 = vpack.c.bf16 %v4383_v43, %v4376_v42  ;;  %v5046_v51 = vpack.c.bf16 %v4397_v45, %v4390_v44  ;;  %v2306_v24 = vld [vmem:[#allocation1 + $0x370] sm:$0x3]  }
 0x1d9   :  { %2109 = vst.msk [vmem:[#allocation0 + $0x118] ss:$472 sm:$0x3] %vm1758_vm3, %v2106_v27   ;;  %v4896_v32 = vpack.c.bf16 %v3977_v29, %v3970_v41 }
 0x1da   :  { %2114 = vst.msk [vmem:[#allocation0 + $0x11c] ss:$472 sm:$0x3] %vm1758_vm3, %v2111_v48   ;;  %v2311_v48 = vld [vmem:[#allocation1 + $0x378] sm:$0x3]  }
 0x1db   :  { %3588 = vst.msk [vmem:[#allocation0 + $0x123] ss:$4 sm:$0x3f] %vm1758_vm3, %v5348_v28  }
 0x1dc   :  { %3590 = vst.msk [vmem:[#allocation0 + $0x2e3] ss:$4 sm:$0xc0] %vm1758_vm3, %v5348_v28  }
 0x1dd   :  { %3569 = vst.msk [vmem:[#allocation0 + $0x2e3] ss:$4 sm:$0x3f] %vm1758_vm3, %v5347_v31  }
 0x1de   :  { %3571 = vst.msk [vmem:[#allocation0 + $0x103] ss:$4 sm:$0xc0] %vm1758_vm3, %v5347_v31   ;;  %v2316_v31 = vld [vmem:[#allocation1 + $0x380] sm:$0x3]  }
 0x1df   :  { %5127 = vst [vmem:[%s6626_s1 + $0x78] sm:$0xff] %v4896_v32   ;;  %v3998_v62 = vld [vmem:[#allocation0 + $0x110] sm:$0xff] }
 0x1e0   :  { %2189 = vst.msk [vmem:[#allocation0 + $0x158] ss:$472 sm:$0x3] %vm1758_vm3, %v2186_v33   ;;  %v2321_v33 = vld [vmem:[#allocation1 + $0x388] sm:$0x3]  }
 0x1e1   :  { %2194 = vst.msk [vmem:[#allocation0 + $0x15c] ss:$472 sm:$0x3] %vm1758_vm3, %v2191_v34   ;;  %v2336_v34 = vld [vmem:[#allocation1 + $0x3a0] sm:$0x3]  }
 0x1e2   :  { %3652 = vst.msk [vmem:[#allocation0 + $0x163] ss:$4 sm:$0x3f] %vm1758_vm3, %v5358_v56   ;;  %v4012_v25 = vld [vmem:[#allocation0 + $0x120] sm:$0xff]  ;;  %v4019_v58 = vld [vmem:[#allocation0 + $0x128] sm:$0xff]  ;;  %v4026_v36 = vld [vmem:[#allocation0 + $0x130] sm:$0xff] }
 0x1e3   :  { %3654 = vst.msk [vmem:[#allocation0 + $0x323] ss:$4 sm:$0xc0] %vm1758_vm3, %v5358_v56   ;;  %v4425_v5 = vld [vmem:[#allocation0 + $0x2f8] sm:$0xff]  ;;  %v4911_v35 = vpack.c.bf16 %v4019_v58, %v4012_v25  ;;  %v4916_v7 = vpack.c.bf16 %v4033_v2, %v4026_v36 }
 0x1e4   :  { %v4404_v47 = vld [vmem:[#allocation0 + $0x2e0] sm:$0xff]  ;;  %v4411_v49 = vld [vmem:[#allocation0 + $0x2e8] sm:$0xff]  ;;  %3633 = vst.msk [vmem:[#allocation0 + $0x323] ss:$4 sm:$0x3f] %vm1758_vm3, %v5357_v1   ;;  %v4418_v4 = vld [vmem:[#allocation0 + $0x2f0] sm:$0xff] }
 0x1e5   :  { %v5051_v3 = vpack.c.bf16 %v4411_v49, %v4404_v47  ;;  %3635 = vst.msk [vmem:[#allocation0 + $0x143] ss:$4 sm:$0xc0] %vm1758_vm3, %v5357_v1   ;;  %v4005_v57 = vld [vmem:[#allocation0 + $0x118] sm:$0xff]  ;;  %v5056_v60 = vpack.c.bf16 %v4425_v5, %v4418_v4 }
 0x1e6   :  { %5128 = vst [vmem:[%s6626_s1 + $0x80] sm:$0xff] %v4901_v46   ;;  %v4906_v55 = vpack.c.bf16 %v4005_v57, %v3998_v62  ;;  %v4117_v1 = vld [vmem:[#allocation0 + $0x198] sm:$0xff] }
 0x1e7   :  { %5158 = vst [vmem:[%s6626_s1 + $0x170] sm:$0xff] %v5051_v3  }
 0x1e8   :  { %5156 = vst [vmem:[%s6626_s1 + $0x160] sm:$0xff] %v5041_v50  }
 0x1e9   :  { %5157 = vst [vmem:[%s6626_s1 + $0x168] sm:$0xff] %v5046_v51   ;;  %v4082_v17 = vld [vmem:[#allocation0 + $0x170] sm:$0xff]  ;;  %v4068_v23 = vld [vmem:[#allocation0 + $0x160] sm:$0xff]  ;;  %v4075_v16 = vld [vmem:[#allocation0 + $0x168] sm:$0xff] }
 0x1ea   :  { %2229 = vst.msk [vmem:[#allocation0 + $0x178] ss:$472 sm:$0x3] %vm1758_vm3, %v2226_v52   ;;  %v4481_v27 = vld [vmem:[#allocation0 + $0x338] sm:$0xff]  ;;  %v4931_v28 = vpack.c.bf16 %v4075_v16, %v4068_v23 }
 0x1eb   :  { %v4460_v59 = vld [vmem:[#allocation0 + $0x320] sm:$0xff]  ;;  %v4467_v61 = vld [vmem:[#allocation0 + $0x328] sm:$0xff]  ;;  %2234 = vst.msk [vmem:[#allocation0 + $0x17c] ss:$472 sm:$0x3] %vm1758_vm3, %v2231_v53   ;;  %v4474_v26 = vld [vmem:[#allocation0 + $0x330] sm:$0xff] }
 0x1ec   :  { %v5071_v63 = vpack.c.bf16 %v4467_v61, %v4460_v59  ;;  %3684 = vst.msk [vmem:[#allocation0 + $0x183] ss:$4 sm:$0x3f] %vm1758_vm3, %v5363_v30   ;;  %v4061_v0 = vld [vmem:[#allocation0 + $0x158] sm:$0xff]  ;;  %v5076_v29 = vpack.c.bf16 %v4481_v27, %v4474_v26 }
 0x1ed   :  { %3686 = vst.msk [vmem:[#allocation0 + $0x343] ss:$4 sm:$0xc0] %vm1758_vm3, %v5363_v30   ;;  %v4926_v9 = vpack.c.bf16 %v4061_v0, %v4054_v6  ;;  %v4173_v51 = vld [vmem:[#allocation0 + $0x1d8] sm:$0xff] }
 0x1ee   :  { %5162 = vst [vmem:[%s6626_s1 + $0x190] sm:$0xff] %v5071_v63  }
 0x1ef   :  { %3665 = vst.msk [vmem:[#allocation0 + $0x343] ss:$4 sm:$0x3f] %vm1758_vm3, %v5362_v38  }
 0x1f0   :  { %3667 = vst.msk [vmem:[#allocation0 + $0x163] ss:$4 sm:$0xc0] %vm1758_vm3, %v5362_v38  }
 0x1f1   :  { %5129 = vst [vmem:[%s6626_s1 + $0x88] sm:$0xff] %v4906_v55  }
 0x1f2   :  { %5130 = vst [vmem:[%s6626_s1 + $0x90] sm:$0xff] %v4911_v35  }
 0x1f3   :  { %5131 = vst [vmem:[%s6626_s1 + $0x98] sm:$0xff] %v4916_v7   ;;  %v4096_v41 = vld [vmem:[#allocation0 + $0x180] sm:$0xff]  ;;  %v4103_v32 = vld [vmem:[#allocation0 + $0x188] sm:$0xff]  ;;  %v4110_v56 = vld [vmem:[#allocation0 + $0x190] sm:$0xff] }
 0x1f4   :  { %v4509_v11 = vld [vmem:[#allocation0 + $0x358] sm:$0xff]  ;;  %5133 = vst [vmem:[%s6626_s1 + $0xa8] sm:$0xff] %v4926_v9   ;;  %v4946_v47 = vpack.c.bf16 %v4117_v1, %v4110_v56 }
 0x1f5   :  { %5159 = vst [vmem:[%s6626_s1 + $0x178] sm:$0xff] %v5056_v60  }
 0x1f6   :  { %v4488_v22 = vld [vmem:[#allocation0 + $0x340] sm:$0xff]  ;;  %v4495_v14 = vld [vmem:[#allocation0 + $0x348] sm:$0xff]  ;;  %v4502_v15 = vld [vmem:[#allocation0 + $0x350] sm:$0xff]  ;;  %2289 = vst.msk [vmem:[#allocation0 + $0x1a8] ss:$472 sm:$0x3] %vm1758_vm3, %v2286_v10  }
 0x1f7   :  { %v4089_v18 = vld [vmem:[#allocation0 + $0x178] sm:$0xff]  ;;  %v5081_v8 = vpack.c.bf16 %v4495_v14, %v4488_v22  ;;  %v5086_v19 = vpack.c.bf16 %v4509_v11, %v4502_v15  ;;  %2294 = vst.msk [vmem:[#allocation0 + $0x1ac] ss:$472 sm:$0x3] %vm1758_vm3, %v2291_v12  }
 0x1f8   :  { %v4936_v20 = vpack.c.bf16 %v4089_v18, %v4082_v17  ;;  %2299 = vst.msk [vmem:[#allocation0 + $0x1b0] ss:$472 sm:$0x3] %vm1758_vm3, %v2296_v13  }
 0x1f9   :  { %5164 = vst [vmem:[%s6626_s1 + $0x1a0] sm:$0xff] %v5081_v8  }
 0x1fa   :  { %5135 = vst [vmem:[%s6626_s1 + $0xb8] sm:$0xff] %v4936_v20  }
 0x1fb   :  { %5165 = vst [vmem:[%s6626_s1 + $0x1a8] sm:$0xff] %v5086_v19  }
 0x1fc   :  { %2304 = vst.msk [vmem:[#allocation0 + $0x1b4] ss:$472 sm:$0x3] %vm1758_vm3, %v2301_v21  }
 0x1fd   :  { %2309 = vst.msk [vmem:[#allocation0 + $0x1b8] ss:$472 sm:$0x3] %vm1758_vm3, %v2306_v24  }
 0x1fe   :  { %2314 = vst.msk [vmem:[#allocation0 + $0x1bc] ss:$472 sm:$0x3] %vm1758_vm3, %v2311_v48   ;;  %v4131_v40 = vld [vmem:[#allocation0 + $0x1a8] sm:$0xff] }
 0x1ff   :  { %3729 = vst.msk [vmem:[#allocation0 + $0x383] ss:$4 sm:$0x3f] %vm1758_vm3, %v6514_v37   ;;  %v4951_v50 = vpack.c.bf16 %v4131_v40, %v4124_v39 }
 0x200   :  { %3731 = vst.msk [vmem:[#allocation0 + $0x1a3] ss:$4 sm:$0xc0] %vm1758_vm3, %v6514_v37   ;;  %v4941_v37 = vpack.c.bf16 %v4103_v32, %v4096_v41 }
 0x201   :  { %5134 = vst [vmem:[%s6626_s1 + $0xb0] sm:$0xff] %v4931_v28  }
 0x202   :  { %5163 = vst [vmem:[%s6626_s1 + $0x198] sm:$0xff] %v5076_v29  }
 0x203   :  { %2319 = vst.msk [vmem:[#allocation0 + $0x1c0] ss:$472 sm:$0x3] %vm1758_vm3, %v2316_v31   ;;  %v4138_v44 = vld [vmem:[#allocation0 + $0x1b0] sm:$0xff] }
 0x204   :  { %2324 = vst.msk [vmem:[#allocation0 + $0x1c4] ss:$472 sm:$0x3] %vm1758_vm3, %v2321_v33  }
 0x205   :  { %2339 = vst.msk [vmem:[#allocation0 + $0x1d0] ss:$472 sm:$0x3] %vm1758_vm3, %v2336_v34  }
 0x206   :  { %v4544_v42 = vld [vmem:[#allocation0 + $0x380] sm:$0xff]  ;;  %v4551_v43 = vld [vmem:[#allocation0 + $0x388] sm:$0xff]  ;;  %3748 = vst.msk [vmem:[#allocation0 + $0x1c3] ss:$4 sm:$0x1f] %vm1758_vm3, %v6540_v54   ;;  %v4558_v3 = vld [vmem:[#allocation0 + $0x390] sm:$0xff] }
 0x207   :  { %v4145_v45 = vld [vmem:[#allocation0 + $0x1b8] sm:$0xff]  ;;  %v5101_v46 = vpack.c.bf16 %v4551_v43, %v4544_v42  ;;  %3750 = vst.msk [vmem:[#allocation0 + $0x387] ss:$4 sm:$0xe0] %vm1758_vm3, %v6540_v54  }
 0x208   :  { %v4956_v49 = vpack.c.bf16 %v4145_v45, %v4138_v44  ;;  %5136 = vst [vmem:[%s6626_s1 + $0xc0] sm:$0xff] %v4941_v37  }
 0x209   :  { %5168 = vst [vmem:[%s6626_s1 + $0x1c0] sm:$0xff] %v5101_v46  }
 0x20a   :  { %5139 = vst [vmem:[%s6626_s1 + $0xd8] sm:$0xff] %v4956_v49  }
 0x20b   :  { %5137 = vst [vmem:[%s6626_s1 + $0xc8] sm:$0xff] %v4946_v47  }
 0x20c   :  { %5138 = vst [vmem:[%s6626_s1 + $0xd0] sm:$0xff] %v4951_v50   ;;  %v4579_v59 = vld [vmem:[#allocation0 + $0x3a8] sm:$0xff] }
 0x20d   :  { %v4152_v52 = vld [vmem:[#allocation0 + $0x1c0] sm:$0xff]  ;;  %v4159_v53 = vld [vmem:[#allocation0 + $0x1c8] sm:$0xff]  ;;  %v4166_v30 = vld [vmem:[#allocation0 + $0x1d0] sm:$0xff] }
 0x20e   :  { %v4961_v57 = vpack.c.bf16 %v4159_v53, %v4152_v52  ;;  %v4966_v25 = vpack.c.bf16 %v4173_v51, %v4166_v30  ;;  %v4565_v54 = vld [vmem:[#allocation0 + $0x398] sm:$0xff]  ;;  %v4572_v58 = vld [vmem:[#allocation0 + $0x3a0] sm:$0xff] }
 0x20f   :  { %v5106_v61 = vpack.c.bf16 %v4565_v54, %v4558_v3  ;;  %v5111_v38 = vpack.c.bf16 %v4579_v59, %v4572_v58 }
 0x210   :  { %5140 = vst [vmem:[%s6626_s1 + $0xe0] sm:$0xff] %v4961_v57  }
 0x211   :  { %5141 = vst [vmem:[%s6626_s1 + $0xe8] sm:$0xff] %v4966_v25  }
 0x212   :  { %5169 = vst [vmem:[%s6626_s1 + $0x1c8] sm:$0xff] %v5106_v61  }
 0x213   :  { %5170 = vst [vmem:[%s6626_s1 + $0x1d0] sm:$0xff] %v5111_v38  }

// kernel: maf_cnn_forward.2
= control target key start
LH: loop header
LB: loop body
LE: loop exit
PB: predicated region body
PF: predicated region fallthrough
CT: control target
= control target key end

     0   :  { %s1996_s12 = smov 0   ;;  %s2397_s0 = inlined_call_operand.vmem [shape: bf16[2,512,256], index: 0, kind: input, shape index: {}]   ;;  %s2398_s1 = inlined_call_operand.vmem [shape: bf16[256,128], index: 1, kind: input, shape index: {}]   ;;  %s2399_s2 = inlined_call_operand.vmem [shape: f32[1,128], index: 2, kind: input, shape index: {}]   ;;  %s2400_s3 = inlined_call_operand.vmem [shape: f32[2,57,128], index: 3, kind: output, shape index: {}]  }
   0x1 LB: > { %s1529_s13 = sadd.s32 4294967295, %s1974_s12   ;;  %p1533_p0 = scmp.ge.s32.totalorder %s1974_s12, 1  ;;  %s1974_s12 = sphi %s1996_s12, %s13_s12  }
   0x2   : > { %p137_p1 = scmp.lt.s32.totalorder %s1974_s12, 3 }
   0x4   : > { %p138_p2 = pnand %p1533_p0, %p137_p1 }
   0x5   : > { %p161_p3 = scmp.lt.s32.totalorder (!%p138_p2), %s1529_s13, 1 }
   0x6   : > { %141 = sbr.rel (%p138_p2) target bundleno = 437 (0x1b5), region = 32 }
   0xb   : > { %v1933_v0 = vld [vmem:[%s2398_s1 + $0x38] sm:$0xff]  ;;  %v1932_v2 = vld [vmem:[%s2398_s1 + $0x30] sm:$0xff]  ;;  %v1931_v4 = vld [vmem:[%s2398_s1 + $0x28] sm:$0xff]  ;;  %s2402_s13 = smov (!%p161_p3, %s1529_s13), 1  ;;  %vm1410_vm0 = vcmask 1040384   ;;  %vm1412_vm1 = vcmask 1041408  }
   0xc   : > { %v1941_v1 = vld [vmem:[%s2398_s1 + $0x78] sm:$0xff]  ;;  %687 = vmatpush.bf16.msra.mxu0 %v1933_v0  ;;  %1942 = vmatpush.bf16.msra.mxu2 %v1933_v0  ;;  %v1940_v3 = vld [vmem:[%s2398_s1 + $0x70] sm:$0xff]  ;;  %v1939_v5 = vld [vmem:[%s2398_s1 + $0x68] sm:$0xff]  ;;  %s1860_s11 = sshll.u32 %s2402_s13, 9  ;;  %vm1414_vm2 = vcmask 1042432   ;;  %vm1416_vm3 = vcmask 1043456  }
   0xd   : > { %849 = vmatpush.bf16.msra.mxu1 %v1941_v1  ;;  %1950 = vmatpush.bf16.msra.mxu3 %v1941_v1  ;;  %v1930_v6 = vld [vmem:[%s2398_s1 + $0x20] sm:$0xff]  ;;  %v1929_v8 = vld [vmem:[%s2398_s1 + $0x18] sm:$0xff]  ;;  %v1928_v10 = vld [vmem:[%s2398_s1 + $0x10] sm:$0xff]  ;;  %s2053_s18 = scalar_lea.vmem %s2397_s0, %s1860_s11  ;;  %vm1418_vm4 = vcmask 1044480   ;;  %s1861_s27 = sshll.u32 %s2402_s13, 6  ;;  %vm1420_vm5 = vcmask 1045504  }
   0xe   : > { %v1938_v7 = vld [vmem:[%s2398_s1 + $0x60] sm:$0xff]  ;;  %v1937_v9 = vld [vmem:[%s2398_s1 + $0x58] sm:$0xff]  ;;  %v1936_v11 = vld [vmem:[%s2398_s1 + $0x50] sm:$0xff]  ;;  %vm1422_vm6 = vcmask 1046528   ;;  %s2226_s29 = scalar_lea.vmem %s2400_s3, %s1861_s27 }
   0xf   : > { %v1927_v12 = vld [vmem:[%s2398_s1 + $0x8] sm:$0xff]  ;;  %v1926_v14 = vld [vmem:[%s2398_s1] sm:$0xff]  ;;  %v1548_v28 = vld [vmem:[%s2053_s18 + $0x10] sm:$0xf] }
  0x10   : > { %688 = vmatpush.bf16.msra.mxu0 %v1932_v2  ;;  %1943 = vmatpush.bf16.msra.mxu2 %v1932_v2  ;;  %v1935_v13 = vld [vmem:[%s2398_s1 + $0x48] sm:$0xff]  ;;  %v1934_v15 = vld [vmem:[%s2398_s1 + $0x40] sm:$0xff]  ;;  %v1865_v29 = vld [vmem:[%s2053_s18 + $0x14] sm:$0xf0] }
  0x11   : > { %850 = vmatpush.bf16.msra.mxu1 %v1940_v3  ;;  %1951 = vmatpush.bf16.msra.mxu3 %v1940_v3  ;;  %v1540_v16 = vld [vmem:[%s2053_s18] sm:$0xf]  ;;  %v1863_v17 = vld [vmem:[%s2053_s18 + $0x4] sm:$0xf0]  ;;  %v1862_v20 = vld [vmem:[%s2053_s18 + $0x4] sm:$0xf]  ;;  %v1549_v36 = vor.u32 %v1865_v29, %v1548_v28 }
  0x12   : > { %v1668_v18 = vld [vmem:[%s2053_s18 + $0x100] sm:$0xf]  ;;  %v1895_v19 = vld [vmem:[%s2053_s18 + $0x104] sm:$0xf0]  ;;  %v1542_v21 = vld [vmem:[%s2053_s18 + $0x8] sm:$0xf0]  ;;  %v1541_v24 = vor.u32 %v1863_v17, %v1540_v16 }
  0x13   : > { %v1894_v22 = vld [vmem:[%s2053_s18 + $0x104] sm:$0xf]  ;;  %v1670_v23 = vld [vmem:[%s2053_s18 + $0x108] sm:$0xf0]  ;;  %v1669_v25 = vor.u32 %v1895_v19, %v1668_v18  ;;  %v1545_v26 = vor.u32 %v1862_v20, %v1542_v21  ;;  %v1676_v30 = vld [vmem:[%s2053_s18 + $0x110] sm:$0xf] }
  0x14   : > { %689 = vmatpush.bf16.msra.mxu0 %v1931_v4  ;;  %1944 = vmatpush.bf16.msra.mxu2 %v1931_v4  ;;  %v1673_v27 = vor.u32 %v1894_v22, %v1670_v23  ;;  %v1897_v31 = vld [vmem:[%s2053_s18 + $0x114] sm:$0xf0]  ;;  %v1864_v32 = vld [vmem:[%s2053_s18 + $0x14] sm:$0xf]  ;;  %v1550_v33 = vld [vmem:[%s2053_s18 + $0x18] sm:$0xf0] }
  0x15   : > { %851 = vmatpush.bf16.msra.mxu1 %v1939_v5  ;;  %1952 = vmatpush.bf16.msra.mxu3 %v1939_v5  ;;  %v1896_v34 = vld [vmem:[%s2053_s18 + $0x114] sm:$0xf]  ;;  %v1678_v35 = vld [vmem:[%s2053_s18 + $0x118] sm:$0xf0]  ;;  %v1677_v37 = vor.u32 %v1897_v31, %v1676_v30  ;;  %v1553_v38 = vor.u32 %v1864_v32, %v1550_v33  ;;  %v1556_v40 = vld [vmem:[%s2053_s18 + $0x20] sm:$0xf] }
  0x16   : > { %v1681_v39 = vor.u32 %v1896_v34, %v1678_v35  ;;  %v1867_v41 = vld [vmem:[%s2053_s18 + $0x24] sm:$0xf0]  ;;  %v1684_v42 = vld [vmem:[%s2053_s18 + $0x120] sm:$0xf]  ;;  %v1866_v44 = vld [vmem:[%s2053_s18 + $0x24] sm:$0xf] }
  0x17   : > { %v1899_v43 = vld [vmem:[%s2053_s18 + $0x124] sm:$0xf0]  ;;  %v1558_v45 = vld [vmem:[%s2053_s18 + $0x28] sm:$0xf0]  ;;  %v1898_v46 = vld [vmem:[%s2053_s18 + $0x124] sm:$0xf]  ;;  %v1557_v48 = vor.u32 %v1867_v41, %v1556_v40 }
  0x18   : > { %690 = vmatpush.bf16.msra.mxu0 %v1930_v6  ;;  %1945 = vmatpush.bf16.msra.mxu2 %v1930_v6  ;;  %v1686_v47 = vld [vmem:[%s2053_s18 + $0x128] sm:$0xf0]  ;;  %v1685_v49 = vor.u32 %v1899_v43, %v1684_v42  ;;  %v1561_v50 = vor.u32 %v1866_v44, %v1558_v45  ;;  %v1564_v52 = vld [vmem:[%s2053_s18 + $0x30] sm:$0xf]  ;;  %v1869_v53 = vld [vmem:[%s2053_s18 + $0x34] sm:$0xf0] }
  0x19   : > { %852 = vmatpush.bf16.msra.mxu1 %v1938_v7  ;;  %1953 = vmatpush.bf16.msra.mxu3 %v1938_v7  ;;  %v1689_v51 = vor.u32 %v1898_v46, %v1686_v47  ;;  %v1692_v54 = vld [vmem:[%s2053_s18 + $0x130] sm:$0xf]  ;;  %v1901_v55 = vld [vmem:[%s2053_s18 + $0x134] sm:$0xf0]  ;;  %v1868_v56 = vld [vmem:[%s2053_s18 + $0x34] sm:$0xf]  ;;  %v1565_v60 = vor.u32 %v1869_v53, %v1564_v52 }
  0x1a   : > { %v1566_v57 = vld [vmem:[%s2053_s18 + $0x38] sm:$0xf0]  ;;  %v1900_v58 = vld [vmem:[%s2053_s18 + $0x134] sm:$0xf]  ;;  %v1693_v61 = vor.u32 %v1901_v55, %v1692_v54  ;;  %v1572_v0 = vld [vmem:[%s2053_s18 + $0x40] sm:$0xf] }
  0x1b   : > { %v1694_v59 = vld [vmem:[%s2053_s18 + $0x138] sm:$0xf0]  ;;  %v1569_v62 = vor.u32 %v1868_v56, %v1566_v57  ;;  %v1871_v1 = vld [vmem:[%s2053_s18 + $0x44] sm:$0xf0]  ;;  %v1700_v2 = vld [vmem:[%s2053_s18 + $0x140] sm:$0xf] }
  0x1c   : > { %691 = vmatpush.bf16.msra.mxu0 %v1929_v8  ;;  %1946 = vmatpush.bf16.msra.mxu2 %v1929_v8  ;;  %v1697_v63 = vor.u32 %v1900_v58, %v1694_v59  ;;  %v1903_v3 = vld [vmem:[%s2053_s18 + $0x144] sm:$0xf0]  ;;  %v1870_v4 = vld [vmem:[%s2053_s18 + $0x44] sm:$0xf]  ;;  %v1574_v5 = vld [vmem:[%s2053_s18 + $0x48] sm:$0xf0]  ;;  %v1573_v8 = vor.u32 %v1871_v1, %v1572_v0 }
  0x1d   : > { %853 = vmatpush.bf16.msra.mxu1 %v1937_v9  ;;  %1954 = vmatpush.bf16.msra.mxu3 %v1937_v9  ;;  %v1902_v6 = vld [vmem:[%s2053_s18 + $0x144] sm:$0xf]  ;;  %v1702_v7 = vld [vmem:[%s2053_s18 + $0x148] sm:$0xf0]  ;;  %v1701_v9 = vor.u32 %v1903_v3, %v1700_v2  ;;  %v1872_v16 = vld [vmem:[%s2053_s18 + $0x54] sm:$0xf] }
  0x1e   : > { %v1582_v17 = vld [vmem:[%s2053_s18 + $0x58] sm:$0xf0]  ;;  %v1904_v18 = vld [vmem:[%s2053_s18 + $0x154] sm:$0xf]  ;;  %v1874_v28 = vld [vmem:[%s2053_s18 + $0x64] sm:$0xf] }
  0x1f   : > { %v1710_v19 = vld [vmem:[%s2053_s18 + $0x158] sm:$0xf0]  ;;  %v1585_v22 = vor.u32 %v1872_v16, %v1582_v17  ;;  %v1590_v29 = vld [vmem:[%s2053_s18 + $0x68] sm:$0xf0]  ;;  %v1906_v30 = vld [vmem:[%s2053_s18 + $0x164] sm:$0xf] }
  0x20   : > { %692 = vmatpush.bf16.msra.mxu0 %v1928_v10  ;;  %1947 = vmatpush.bf16.msra.mxu2 %v1928_v10  ;;  %v1577_v10 = vor.u32 %v1870_v4, %v1574_v5  ;;  %v1713_v23 = vor.u32 %v1904_v18, %v1710_v19  ;;  %v1718_v31 = vld [vmem:[%s2053_s18 + $0x168] sm:$0xf0]  ;;  %v1593_v34 = vor.u32 %v1874_v28, %v1590_v29  ;;  %v1876_v40 = vld [vmem:[%s2053_s18 + $0x74] sm:$0xf]  ;;  %v1598_v41 = vld [vmem:[%s2053_s18 + $0x78] sm:$0xf0] }
  0x21   : > { %854 = vmatpush.bf16.msra.mxu1 %v1936_v11  ;;  %1955 = vmatpush.bf16.msra.mxu3 %v1936_v11  ;;  %v1705_v11 = vor.u32 %v1902_v6, %v1702_v7  ;;  %v1721_v35 = vor.u32 %v1906_v30, %v1718_v31  ;;  %v1908_v42 = vld [vmem:[%s2053_s18 + $0x174] sm:$0xf]  ;;  %v1726_v43 = vld [vmem:[%s2053_s18 + $0x178] sm:$0xf0]  ;;  %v1601_v46 = vor.u32 %v1876_v40, %v1598_v41  ;;  %v1878_v52 = vld [vmem:[%s2053_s18 + $0x84] sm:$0xf] }
  0x22   : > { %v1729_v47 = vor.u32 %v1908_v42, %v1726_v43  ;;  %v1606_v53 = vld [vmem:[%s2053_s18 + $0x88] sm:$0xf0]  ;;  %v1910_v54 = vld [vmem:[%s2053_s18 + $0x184] sm:$0xf]  ;;  %v1612_v2 = vld [vmem:[%s2053_s18 + $0x90] sm:$0xf] }
  0x23   : > { %v1734_v55 = vld [vmem:[%s2053_s18 + $0x188] sm:$0xf0]  ;;  %v1609_v59 = vor.u32 %v1878_v52, %v1606_v53  ;;  %v1881_v3 = vld [vmem:[%s2053_s18 + $0x94] sm:$0xf0]  ;;  %v1740_v4 = vld [vmem:[%s2053_s18 + $0x190] sm:$0xf] }
  0x24   : > { %693 = vmatpush.bf16.msra.mxu0 %v1927_v12  ;;  %1948 = vmatpush.bf16.msra.mxu2 %v1927_v12  ;;  %v1580_v12 = vld [vmem:[%s2053_s18 + $0x50] sm:$0xf]  ;;  %v1913_v5 = vld [vmem:[%s2053_s18 + $0x194] sm:$0xf0]  ;;  %v1880_v6 = vld [vmem:[%s2053_s18 + $0x94] sm:$0xf] }
  0x25   : > { %855 = vmatpush.bf16.msra.mxu1 %v1935_v13  ;;  %1956 = vmatpush.bf16.msra.mxu3 %v1935_v13  ;;  %v1873_v13 = vld [vmem:[%s2053_s18 + $0x54] sm:$0xf0]  ;;  %v1614_v7 = vld [vmem:[%s2053_s18 + $0x98] sm:$0xf0]  ;;  %v2147_v17 = vld [vmem:[%s2399_s2] ss:$0 sm:$0xff] }
  0x26   : > { %v1581_v20 = vor.u32 %v1873_v13, %v1580_v12  ;;  %v1613_v12 = vor.u32 %v1881_v3, %v1612_v2  ;;  %v1741_v13 = vor.u32 %v1913_v5, %v1740_v4  ;;  %v1883_v28 = vld [vmem:[%s2053_s18 + $0xa4] sm:$0xf0]  ;;  %v1748_v29 = vld [vmem:[%s2053_s18 + $0x1a0] sm:$0xf]  ;;  %v1882_v31 = vld [vmem:[%s2053_s18 + $0xa4] sm:$0xf] }
  0x27   : > { %v1915_v30 = vld [vmem:[%s2053_s18 + $0x1a4] sm:$0xf0] }
  0x28   : > { %694 = vmatpush.bf16.msra.mxu0 %v1926_v14  ;;  %1949 = vmatpush.bf16.msra.mxu2 %v1926_v14  ;;  %v1708_v14 = vld [vmem:[%s2053_s18 + $0x150] sm:$0xf]  ;;  %v1749_v43 = vor.u32 %v1915_v30, %v1748_v29 }
  0x29   : > { %856 = vmatpush.bf16.msra.mxu1 %v1934_v15  ;;  %1957 = vmatpush.bf16.msra.mxu3 %v1934_v15  ;;  %v1905_v15 = vld [vmem:[%s2053_s18 + $0x154] sm:$0xf0] }
  0x2a   : > { %v1709_v21 = vor.u32 %v1905_v15, %v1708_v14  ;;  %v1617_v15 = vor.u32 %v1880_v6, %v1614_v7 }
  0x2b   : > { %695 = vmatmul.bf16.vlgmr.msra.gmra.mxu0 %v1541_v24  ;;  %775 = vmatmul.bf16.vlgmr.msra.gmra.mxu2 %v1669_v25  ;;  %v1588_v24 = vld [vmem:[%s2053_s18 + $0x60] sm:$0xf]  ;;  %v1875_v25 = vld [vmem:[%s2053_s18 + $0x64] sm:$0xf0] }
  0x2c   : > { %857 = vmatmul.bf16.vlgmr.msra.gmra.mxu1 %v1545_v26  ;;  %937 = vmatmul.bf16.vlgmr.msra.gmra.mxu3 %v1673_v27  ;;  %v1716_v26 = vld [vmem:[%s2053_s18 + $0x160] sm:$0xf]  ;;  %v1907_v27 = vld [vmem:[%s2053_s18 + $0x164] sm:$0xf0]  ;;  %v1589_v32 = vor.u32 %v1875_v25, %v1588_v24 }
  0x2d   : > { %v1717_v33 = vor.u32 %v1907_v27, %v1716_v26  ;;  %v1620_v27 = vld [vmem:[%s2053_s18 + $0xa0] sm:$0xf] }
  0x2e   : > { %v1621_v42 = vor.u32 %v1883_v28, %v1620_v27  ;;  %v1916_v27 = vld [vmem:[%s2053_s18 + $0x1b4] sm:$0xf]  ;;  %v1758_v28 = vld [vmem:[%s2053_s18 + $0x1b8] sm:$0xf0] }
  0x3b   : > { %700 = vmatmul.bf16.gmra.mxu0 %v1549_v36  ;;  %780 = vmatmul.bf16.gmra.mxu2 %v1677_v37  ;;  %v1596_v36 = vld [vmem:[%s2053_s18 + $0x70] sm:$0xf]  ;;  %v1877_v37 = vld [vmem:[%s2053_s18 + $0x74] sm:$0xf0] }
  0x3c   : > { %862 = vmatmul.bf16.gmra.mxu1 %v1553_v38  ;;  %942 = vmatmul.bf16.gmra.mxu3 %v1681_v39  ;;  %v1724_v38 = vld [vmem:[%s2053_s18 + $0x170] sm:$0xf]  ;;  %v1909_v39 = vld [vmem:[%s2053_s18 + $0x174] sm:$0xf0]  ;;  %v1597_v44 = vor.u32 %v1877_v37, %v1596_v36  ;;  %v1914_v36 = vld [vmem:[%s2053_s18 + $0x1a4] sm:$0xf] }
  0x3d   : > { %v1725_v45 = vor.u32 %v1909_v39, %v1724_v38  ;;  %v1750_v37 = vld [vmem:[%s2053_s18 + $0x1a8] sm:$0xf0] }
  0x4b   : > { %705 = vmatmul.bf16.gmra.mxu0 %v1557_v48  ;;  %785 = vmatmul.bf16.gmra.mxu2 %v1685_v49  ;;  %v1604_v48 = vld [vmem:[%s2053_s18 + $0x80] sm:$0xf]  ;;  %v1879_v49 = vld [vmem:[%s2053_s18 + $0x84] sm:$0xf0] }
  0x4c   : > { %867 = vmatmul.bf16.gmra.mxu1 %v1561_v50  ;;  %947 = vmatmul.bf16.gmra.mxu3 %v1689_v51  ;;  %v1732_v50 = vld [vmem:[%s2053_s18 + $0x180] sm:$0xf]  ;;  %v1911_v51 = vld [vmem:[%s2053_s18 + $0x184] sm:$0xf0]  ;;  %v1605_v56 = vor.u32 %v1879_v49, %v1604_v48 }
  0x4d   : > { %v1733_v57 = vor.u32 %v1911_v51, %v1732_v50 }
  0x5b   : > { %710 = vmatmul.bf16.gmra.mxu0 %v1565_v60  ;;  %790 = vmatmul.bf16.gmra.mxu2 %v1693_v61  ;;  %v1737_v60 = vor.u32 %v1910_v54, %v1734_v55 }
  0x5c   : > { %872 = vmatmul.bf16.gmra.mxu1 %v1569_v62  ;;  %952 = vmatmul.bf16.gmra.mxu3 %v1697_v63 }
  0x6b   : > { %715 = vmatmul.bf16.gmra.mxu0 %v1573_v8  ;;  %795 = vmatmul.bf16.gmra.mxu2 %v1701_v9  ;;  %v1912_v8 = vld [vmem:[%s2053_s18 + $0x194] sm:$0xf]  ;;  %v1742_v9 = vld [vmem:[%s2053_s18 + $0x198] sm:$0xf0] }
  0x6c   : > { %877 = vmatmul.bf16.gmra.mxu1 %v1577_v10  ;;  %957 = vmatmul.bf16.gmra.mxu3 %v1705_v11  ;;  %v1745_v16 = vor.u32 %v1912_v8, %v1742_v9 }
  0x7b   : > { %720 = vmatmul.bf16.gmra.mxu0 %v1581_v20  ;;  %800 = vmatmul.bf16.gmra.mxu2 %v1709_v21 }
  0x7c   : > { %882 = vmatmul.bf16.gmra.mxu1 %v1585_v22  ;;  %962 = vmatmul.bf16.gmra.mxu3 %v1713_v23 }
  0x8b   : > { %725 = vmatmul.bf16.gmra.mxu0 %v1589_v32  ;;  %805 = vmatmul.bf16.gmra.mxu2 %v1717_v33  ;;  %v1622_v32 = vld [vmem:[%s2053_s18 + $0xa8] sm:$0xf0] }
  0x8c   : > { %887 = vmatmul.bf16.gmra.mxu1 %v1593_v34  ;;  %967 = vmatmul.bf16.gmra.mxu3 %v1721_v35 }
  0x9b   : > { %730 = vmatmul.bf16.gmra.mxu0 %v1597_v44  ;;  %810 = vmatmul.bf16.gmra.mxu2 %v1725_v45  ;;  %v1625_v45 = vor.u32 %v1882_v31, %v1622_v32 }
  0x9c   : > { %892 = vmatmul.bf16.gmra.mxu1 %v1601_v46  ;;  %972 = vmatmul.bf16.gmra.mxu3 %v1729_v47  ;;  %v1753_v46 = vor.u32 %v1914_v36, %v1750_v37 }
  0xa8   : > { %v696_v58 = vpop.f32.mrf.mxu0 }
  0xa9   : > { %v858_v61 = vpop.f32.mrf.mxu1  ;;  %v697_v19 = vadd.f32 %v2147_v17, %v696_v58 }
  0xab   : > { %735 = vmatmul.bf16.gmra.mxu0 %v1605_v56  ;;  %815 = vmatmul.bf16.gmra.mxu2 %v1733_v57  ;;  %v859_v23 = vadd.f32 %v858_v61, %v697_v19 }
  0xac   : > { %897 = vmatmul.bf16.gmra.mxu1 %v1609_v59  ;;  %977 = vmatmul.bf16.gmra.mxu3 %v1737_v60 }
  0xad   : > { %v1011_v33 = vmax.f32 %v859_v23, 0.0 }
  0xae   : > { %v776_v62 = vpop.f32.mrf.mxu2 }
  0xaf   : > { %v938_v63 = vpop.f32.mrf.mxu3  ;;  %v777_v24 = vadd.f32 %v2147_v17, %v776_v62  ;;  %v1068_v47 = vrot.slane %v1011_v33, 4 }
  0xb0   : > { %v698_v0 = vpop.f32.mrf.mxu0 }
  0xb1   : > { %v860_v1 = vpop.f32.mrf.mxu1  ;;  %v699_v26 = vadd.f32 %v2147_v17, %v698_v0  ;;  %v939_v34 = vadd.f32 %v938_v63, %v777_v24  ;;  %v1069_v55 = vmax.f32 %v1011_v33, %v1068_v47 }
  0xb3   : > { %v861_v38 = vadd.f32 %v860_v1, %v699_v26  ;;  %v1043_v48 = vmax.f32 %v939_v34, 0.0  ;;  %v1070_v2 = vrot.slane %v1069_v55, 2 }
  0xb5   : > { %v1012_v51 = vmax.f32 %v861_v38, 0.0  ;;  %v1260_v56 = vrot.slane %v1043_v48, 4  ;;  %v1071_v23 = vmax.f32 %v1069_v55, %v1070_v2 }
  0xb6   : > { %v778_v10 = vpop.f32.mrf.mxu2 }
  0xb7   : > { %v940_v11 = vpop.f32.mrf.mxu3  ;;  %v779_v35 = vadd.f32 %v2147_v17, %v778_v10  ;;  %v1074_v58 = vrot.slane %v1012_v51, 4  ;;  %v1261_v3 = vmax.f32 %v1043_v48, %v1260_v56  ;;  %v1628_v10 = vld [vmem:[%s2053_s18 + $0xb0] sm:$0xf]  ;;  %v1072_v48 = vrot.slane %v1071_v23, 1 }
  0xb8   : > { %v701_v14 = vpop.f32.mrf.mxu0 }
  0xb9   : > { %v863_v18 = vpop.f32.mrf.mxu1  ;;  %v702_v40 = vadd.f32 %v2147_v17, %v701_v14  ;;  %v941_v49 = vadd.f32 %v940_v11, %v779_v35  ;;  %v1075_v7 = vmax.f32 %v1012_v51, %v1074_v58  ;;  %v1885_v11 = vld [vmem:[%s2053_s18 + $0xb4] sm:$0xf0]  ;;  %v1262_v24 = vrot.slane %v1261_v3, 2 }
  0xba   : > { %v1629_v33 = vor.u32 %v1885_v11, %v1628_v10 }
  0xbb   : > { %740 = vmatmul.bf16.gmra.mxu0 %v1613_v12  ;;  %820 = vmatmul.bf16.gmra.mxu2 %v1741_v13  ;;  %v864_v53 = vadd.f32 %v863_v18, %v702_v40  ;;  %v1044_v57 = vmax.f32 %v941_v49, 0.0  ;;  %v1076_v29 = vrot.slane %v1075_v7, 2  ;;  %v2184_v55 = vmax.f32 %v1261_v3, %v1262_v24 }
  0xbc   : > { %902 = vmatmul.bf16.gmra.mxu1 %v1617_v15  ;;  %982 = vmatmul.bf16.gmra.mxu3 %v1745_v16  ;;  %v1756_v15 = vld [vmem:[%s2053_s18 + $0x1b0] sm:$0xf]  ;;  %v1917_v16 = vld [vmem:[%s2053_s18 + $0x1b4] sm:$0xf0] }
  0xbd   : > { %v1013_v61 = vmax.f32 %v864_v53, 0.0  ;;  %v1266_v4 = vrot.slane %v1044_v57, 4  ;;  %v1757_v37 = vor.u32 %v1917_v16, %v1756_v15  ;;  %v1077_v49 = vmax.f32 %v1075_v7, %v1076_v29 }
  0xbe   : > { %v781_v20 = vpop.f32.mrf.mxu2 }
  0xbf   : > { %v2150_v21 = vpop.f32.mrf.mxu3  ;;  %v782_v63 = vadd.f32 %v2147_v17, %v781_v20  ;;  %v1080_v12 = vrot.slane %v1013_v61, 4  ;;  %v1884_v20 = vld [vmem:[%s2053_s18 + $0xb4] sm:$0xf] }
  0xc0   : > { %v703_v22 = vpop.f32.mrf.mxu0 }
  0xc1   : > { %v865_v25 = vpop.f32.mrf.mxu1  ;;  %v704_v52 = vadd.f32 %v2147_v17, %v703_v22  ;;  %v944_v18 = vadd.f32 %v2150_v21, %v782_v63  ;;  %v1630_v22 = vld [vmem:[%s2053_s18 + $0xb8] sm:$0xf0]  ;;  %v1081_v34 = vmax.f32 %v1013_v61, %v1080_v12  ;;  %v1078_v63 = vrot.slane %v1077_v49, 1 }
  0xc3   : > { %v866_v59 = vadd.f32 %v865_v25, %v704_v52  ;;  %v1267_v25 = vmax.f32 %v1044_v57, %v1266_v4  ;;  %v1045_v38 = vmax.f32 %v944_v18, 0.0  ;;  %v1082_v52 = vrot.slane %v1081_v34, 2 }
  0xc5   : > { %v1014_v8 = vmax.f32 %v866_v59, 0.0  ;;  %v1272_v56 = vrot.slane %v1045_v38, 4  ;;  %v1083_v4 = vmax.f32 %v1081_v34, %v1082_v52 }
  0xc6   : > { %v783_v39 = vpop.f32.mrf.mxu2 }
  0xc7   : > { %v945_v41 = vpop.f32.mrf.mxu3  ;;  %v784_v9 = vadd.f32 %v2147_v17, %v783_v39  ;;  %v1086_v30 = vrot.slane %v1014_v8, 4 }
  0xc8   : > { %v706_v44 = vpop.f32.mrf.mxu0 }
  0xc9   : > { %v868_v50 = vpop.f32.mrf.mxu1  ;;  %v707_v54 = vadd.f32 %v2147_v17, %v706_v44  ;;  %v946_v31 = vadd.f32 %v945_v41, %v784_v9  ;;  %v1268_v44 = vrot.slane %v1267_v25, 2  ;;  %v1273_v9 = vmax.f32 %v1045_v38, %v1272_v56 }
  0xcb   : > { %745 = vmatmul.bf16.gmra.mxu0 %v1621_v42  ;;  %825 = vmatmul.bf16.gmra.mxu2 %v1749_v43  ;;  %v869_v0 = vadd.f32 %v868_v50, %v707_v54  ;;  %v1633_v42 = vor.u32 %v1884_v20, %v1630_v22  ;;  %v1761_v43 = vor.u32 %v1916_v27, %v1758_v28  ;;  %v1046_v51 = vmax.f32 %v946_v31, 0.0  ;;  %v1638_v27 = vld [vmem:[%s2053_s18 + $0xc8] sm:$0xf0] }
  0xcc   : > { %907 = vmatmul.bf16.gmra.mxu1 %v1625_v45  ;;  %987 = vmatmul.bf16.gmra.mxu3 %v1753_v46  ;;  %v1087_v50 = vmax.f32 %v1014_v8, %v1086_v30  ;;  %v2186_v59 = vmax.f32 %v1267_v25, %v1268_v44  ;;  %v1264_v8 = vrot.slane %v2184_v55, 1  ;;  %v1079_v20 = vmax.f32 %v1077_v49, %v1078_v63  ;;  %v1887_v25 = vld [vmem:[%s2053_s18 + $0xc4] sm:$0xf0] }
  0xcd   : > { %v1015_v19 = vmax.f32 %v869_v0, 0.0  ;;  %v1084_v28 = vrot.slane %v1083_v4, 1 }
  0xce   : > { %v786_v60 = vpop.f32.mrf.mxu2  ;;  %v1088_v0 = vrot.slane %v1087_v50, 2 }
  0xcf   : > { %v948_v62 = vpop.f32.mrf.mxu3  ;;  %v787_v13 = vadd.f32 %v2147_v17, %v786_v60  ;;  %v1092_v39 = vrot.slane %v1015_v19, 4 }
  0xd0   : > { %v708_v1 = vpop.f32.mrf.mxu0  ;;  %v1089_v22 = vmax.f32 %v1087_v50, %v1088_v0 }
  0xd1   : > { %v709_v5 = vadd.f32 %v2147_v17, %v708_v1  ;;  %v870_v6 = vpop.f32.mrf.mxu1  ;;  %v2179_v35 = vadd.f32 %v948_v62, %v787_v13  ;;  %v1093_v57 = vmax.f32 %v1015_v19, %v1092_v39  ;;  %v2188_v62 = vmax.f32 %v1071_v23, %v1072_v48  ;;  %v1636_v19 = vld [vmem:[%s2053_s18 + $0xc0] sm:$0xf] }
  0xd2   : > { %v1278_v1 = vrot.slane %v1046_v51, 4  ;;  %v1270_v13 = vrot.slane %v2186_v59, 1  ;;  %v1637_v39 = vor.u32 %v1887_v25, %v1636_v19  ;;  %v1090_v44 = vrot.slane %v1089_v22, 1 }
  0xd3   : > { %v871_v14 = vadd.f32 %v870_v6, %v709_v5  ;;  %v1047_v53 = vmax.f32 %v2179_v35, 0.0  ;;  %v1094_v10 = vrot.slane %v1093_v57, 2 }
  0xd4   : > { %v1279_v23 = vmax.f32 %v1046_v51, %v1278_v1 }
  0xd5   : > { %v1016_v26 = vmax.f32 %v871_v14, 0.0  ;;  %v1284_v5 = vrot.slane %v1047_v53, 4 }
  0xd6   : > { %v788_v32 = vpop.f32.mrf.mxu2 }
  0xd7   : > { %v789_v36 = vadd.f32 %v2147_v17, %v788_v32  ;;  %v950_v21 = vpop.f32.mrf.mxu3  ;;  %v1098_v45 = vrot.slane %v1016_v26, 4  ;;  %v1285_v29 = vmax.f32 %v1047_v53, %v1284_v5  ;;  %v1274_v32 = vrot.slane %v1273_v9, 2 }
  0xd8   : > { %v711_v40 = vpop.f32.mrf.mxu0 }
  0xd9   : > { %v712_v46 = vadd.f32 %v2147_v17, %v711_v40  ;;  %v873_v47 = vpop.f32.mrf.mxu1  ;;  %v951_v41 = vadd.f32 %v950_v21, %v789_v36  ;;  %v1099_v60 = vmax.f32 %v1016_v26, %v1098_v45  ;;  %v1886_v26 = vld [vmem:[%s2053_s18 + $0xc4] sm:$0xf]  ;;  %v1764_v36 = vld [vmem:[%s2053_s18 + $0x1c0] sm:$0xf]  ;;  %v1919_v21 = vld [vmem:[%s2053_s18 + $0x1c4] sm:$0xf0] }
  0xda   : > { %v1641_v40 = vor.u32 %v1886_v26, %v1638_v27  ;;  %v1280_v45 = vrot.slane %v1279_v23, 2  ;;  %v1286_v48 = vrot.slane %v1285_v29, 2  ;;  %v1765_v52 = vor.u32 %v1919_v21, %v1764_v36 }
  0xdb   : > { %v874_v54 = vadd.f32 %v873_v47, %v712_v46  ;;  %750 = vmatmul.bf16.gmra.mxu0 %v1629_v33  ;;  %830 = vmatmul.bf16.gmra.mxu2 %v1757_v37  ;;  %v1048_v58 = vmax.f32 %v951_v41, 0.0  ;;  %v1100_v14 = vrot.slane %v1099_v60, 2  ;;  %v1095_v33 = vmax.f32 %v1093_v57, %v1094_v10 }
  0xdc   : > { %912 = vmatmul.bf16.gmra.mxu1 %v1633_v42  ;;  %992 = vmatmul.bf16.gmra.mxu3 %v1761_v43  ;;  %v1918_v42 = vld [vmem:[%s2053_s18 + $0x1c4] sm:$0xf]  ;;  %v1766_v43 = vld [vmem:[%s2053_s18 + $0x1c8] sm:$0xf0]  ;;  %v1091_v10 = vmax.f32 %v1089_v22, %v1090_v44  ;;  %v1265_v21 = vmax.f32 %v2184_v55, %v1264_v8  ;;  %v1889_v44 = vld [vmem:[%s2053_s18 + $0xd4] sm:$0xf0] }
  0xdd   : > { %v1017_v61 = vmax.f32 %v874_v54, 0.0  ;;  %v1290_v11 = vrot.slane %v1048_v58, 4  ;;  %v1101_v37 = vmax.f32 %v1099_v60, %v1100_v14  ;;  %v1096_v53 = vrot.slane %v1095_v33, 1  ;;  %v1921_v55 = vld [vmem:[%s2053_s18 + $0x1d4] sm:$0xf0] }
  0xde   : > { %v791_v2 = vpop.f32.mrf.mxu2  ;;  %v1085_v60 = vmax.f32 %v1083_v4, %v1084_v28  ;;  %v1271_v4 = vmax.f32 %v2186_v59, %v1270_v13 }
  0xdf   : > { %v1104_v3 = vrot.slane %v1017_v61, 4  ;;  %v792_v6 = vadd.f32 %v2147_v17, %v791_v2  ;;  %v953_v7 = vpop.f32.mrf.mxu3  ;;  %v1291_v34 = vmax.f32 %v1048_v58, %v1290_v11  ;;  %v1769_v58 = vor.u32 %v1918_v42, %v1766_v43  ;;  %v1644_v43 = vld [vmem:[%s2053_s18 + $0xd0] sm:$0xf] }
  0xe0   : > { %v713_v12 = vpop.f32.mrf.mxu0  ;;  %v1102_v63 = vrot.slane %v1101_v37, 1  ;;  %v1281_v2 = vmax.f32 %v1279_v23, %v1280_v45  ;;  %v1287_v11 = vmax.f32 %v1285_v29, %v1286_v48  ;;  %v1445_v45 = vsel %vm1410_vm0, %v1265_v21, %v1271_v4  ;;  %v1772_v48 = vld [vmem:[%s2053_s18 + $0x1d0] sm:$0xf] }
  0xe1   : > { %v1105_v15 = vmax.f32 %v1017_v61, %v1104_v3  ;;  %v714_v16 = vadd.f32 %v2147_v17, %v713_v12  ;;  %v875_v18 = vpop.f32.mrf.mxu1  ;;  %v954_v24 = vadd.f32 %v953_v7, %v792_v6  ;;  %v1292_v54 = vrot.slane %v1291_v34, 2 }
  0xe2   : > { %v1275_v61 = vmax.f32 %v1273_v9, %v1274_v32  ;;  %v1411_v7 = vsel %vm1410_vm0, %v2188_v62, %v1079_v20  ;;  %v1097_v9 = vmax.f32 %v1095_v33, %v1096_v53  ;;  %v1282_v20 = vrot.slane %v1281_v2, 1 }
  0xe3   : > { %v1106_v30 = vrot.slane %v1105_v15, 2  ;;  %v876_v31 = vadd.f32 %v875_v18, %v714_v16  ;;  %v1049_v35 = vmax.f32 %v954_v24, 0.0  ;;  %v1293_v14 = vmax.f32 %v1291_v34, %v1292_v54 }
  0xe4   : > { %v1276_v16 = vrot.slane %v1275_v61, 1  ;;  %v1103_v18 = vmax.f32 %v1101_v37, %v1102_v63  ;;  %v1413_v62 = vsel %vm1412_vm1, %v1411_v7, %v1085_v60  ;;  %v1288_v59 = vrot.slane %v1287_v11, 1 }
  0xe5   : > { %v1018_v38 = vmax.f32 %v876_v31, 0.0  ;;  %v1107_v46 = vmax.f32 %v1105_v15, %v1106_v30  ;;  %v1296_v47 = vrot.slane %v1049_v35, 4  ;;  %v1415_v26 = vsel %vm1414_vm2, %v1413_v62, %v1091_v10  ;;  %v1654_v62 = vld [vmem:[%s2053_s18 + $0xe8] sm:$0xf0] }
  0xe6   : > { %v793_v41 = vpop.f32.mrf.mxu2  ;;  %v1417_v28 = vsel %vm1416_vm3, %v1415_v26, %v1097_v9  ;;  %v1294_v29 = vrot.slane %v1293_v14, 1  ;;  %v1277_v32 = vmax.f32 %v1275_v61, %v1276_v16  ;;  %v1283_v37 = vmax.f32 %v1281_v2, %v1282_v20  ;;  %v1780_v20 = vld [vmem:[%s2053_s18 + $0x1e0] sm:$0xf] }
  0xe7   : > { %v1110_v49 = vrot.slane %v1018_v38, 4  ;;  %v794_v50 = vadd.f32 %v2147_v17, %v793_v41  ;;  %v955_v51 = vpop.f32.mrf.mxu3  ;;  %v1297_v56 = vmax.f32 %v1049_v35, %v1296_v47  ;;  %v1108_v5 = vrot.slane %v1107_v46, 1  ;;  %v1888_v41 = vld [vmem:[%s2053_s18 + $0xd4] sm:$0xf] }
  0xe8   : > { %v2203_v57 = vpop.f32.mrf.mxu0  ;;  %v1419_v33 = vsel %vm1418_vm4, %v1417_v28, %v1103_v18  ;;  %v1446_v8 = vsel %vm1412_vm1, %v1445_v45, %v1277_v32  ;;  %v1645_v61 = vor.u32 %v1889_v44, %v1644_v43  ;;  %v1773_v63 = vor.u32 %v1921_v55, %v1772_v48  ;;  %v1652_v18 = vld [vmem:[%s2053_s18 + $0xe0] sm:$0xf] }
  0xe9   : > { %v1111_v0 = vmax.f32 %v1018_v38, %v1110_v49  ;;  %v2205_v1 = vpop.f32.mrf.mxu1  ;;  %v1298_v3 = vrot.slane %v1297_v56, 2  ;;  %v956_v6 = vadd.f32 %v955_v51, %v794_v50  ;;  %v1109_v22 = vmax.f32 %v1107_v46, %v1108_v5  ;;  %v1646_v50 = vld [vmem:[%s2053_s18 + $0xd8] sm:$0xf0]  ;;  %v1920_v51 = vld [vmem:[%s2053_s18 + $0x1d4] sm:$0xf] }
  0xea   : > { %v1295_v46 = vmax.f32 %v1293_v14, %v1294_v29  ;;  %v1447_v53 = vsel %vm1414_vm2, %v1446_v8, %v1283_v37 }
  0xeb   : > { %v1112_v12 = vrot.slane %v1111_v0, 2  ;;  %755 = vmatmul.bf16.gmra.mxu0 %v1637_v39  ;;  %835 = vmatmul.bf16.gmra.mxu2 %v1765_v52  ;;  %v1050_v15 = vmax.f32 %v956_v6, 0.0  ;;  %v1299_v23 = vmax.f32 %v1297_v56, %v1298_v3  ;;  %v1421_v38 = vsel %vm1420_vm5, %v1419_v33, %v1109_v22  ;;  %v1774_v52 = vld [vmem:[%s2053_s18 + $0x1d8] sm:$0xf0]  ;;  %v1923_v22 = vld [vmem:[%s2053_s18 + $0x1e4] sm:$0xf0] }
  0xec   : > { %917 = vmatmul.bf16.gmra.mxu1 %v1641_v40  ;;  %997 = vmatmul.bf16.gmra.mxu3 %v1769_v58  ;;  %v1289_v40 = vmax.f32 %v1287_v11, %v1288_v59  ;;  %v1649_v3 = vor.u32 %v1888_v41, %v1646_v50  ;;  %v1777_v6 = vor.u32 %v1920_v51, %v1774_v52  ;;  %v1922_v59 = vld [vmem:[%s2053_s18 + $0x1e4] sm:$0xf] }
  0xed   : > { %v1113_v19 = vmax.f32 %v1111_v0, %v1112_v12  ;;  %v1302_v24 = vrot.slane %v1050_v15, 4  ;;  %v1300_v35 = vrot.slane %v1299_v23, 1  ;;  %v717_v12 = vadd.f32 %v2147_v17, %v2203_v57 }
  0xee   : > { %v2214_v25 = vpop.f32.mrf.mxu2  ;;  %v1448_v58 = vsel %vm1416_vm3, %v1447_v53, %v1289_v40 }
  0xef   : > { %v1114_v13 = vrot.slane %v1113_v19, 1  ;;  %v2217_v27 = vpop.f32.mrf.mxu3  ;;  %v1303_v30 = vmax.f32 %v1050_v15, %v1302_v24  ;;  %v1301_v49 = vmax.f32 %v1299_v23, %v1300_v35  ;;  %v1449_v0 = vsel %vm1418_vm4, %v1448_v58, %v1295_v46  ;;  %v1890_v23 = vld [vmem:[%s2053_s18 + $0xe4] sm:$0xf]  ;;  %v1893_v58 = vld [vmem:[%s2053_s18 + $0xf4] sm:$0xf0] }
  0xf0   : > { %v2220_v31 = vpop.f32.mrf.mxu0  ;;  %v879_v15 = vadd.f32 %v2205_v1, %v717_v12  ;;  %v797_v26 = vadd.f32 %v2147_v17, %v2214_v25  ;;  %v1781_v1 = vor.u32 %v1923_v22, %v1780_v20 }
  0xf1   : > { %v1115_v34 = vmax.f32 %v1113_v19, %v1114_v13  ;;  %v2228_v36 = vpop.f32.mrf.mxu1  ;;  %v1304_v39 = vrot.slane %v1303_v30, 2  ;;  %v1450_v7 = vsel %vm1420_vm5, %v1449_v0, %v1301_v49  ;;  %v1891_v19 = vld [vmem:[%s2053_s18 + $0xe4] sm:$0xf0]  ;;  %v1782_v13 = vld [vmem:[%s2053_s18 + $0x1e8] sm:$0xf0]  ;;  %v719_v57 = vadd.f32 %v2147_v17, %v2220_v31 }
  0xf2   : > { %v1019_v24 = vmax.f32 %v879_v15, 0.0  ;;  %v1785_v35 = vor.u32 %v1922_v59, %v1782_v13  ;;  %v959_v37 = vadd.f32 %v2217_v27, %v797_v26  ;;  %v1790_v15 = vld [vmem:[%s2053_s18 + $0x1f8] sm:$0xf0] }
  0xf3   : > { %v1423_v42 = vsel %vm1422_vm6, %v1421_v38, %v1115_v34  ;;  %v1305_v47 = vmax.f32 %v1303_v30, %v1304_v39  ;;  %v1653_v30 = vor.u32 %v1891_v19, %v1652_v18  ;;  %v1657_v34 = vor.u32 %v1890_v23, %v1654_v62 }
  0xf4   : > { %1466 = vst [vmem:[%s2226_s29] sm:$0xff] %v1423_v42  ;;  %v1116_v21 = vrot.slane %v1019_v24, 4  ;;  %v881_v25 = vadd.f32 %v2228_v36, %v719_v57  ;;  %v1051_v43 = vmax.f32 %v959_v37, 0.0 }
  0xf5   : > { %v1306_v54 = vrot.slane %v1305_v47, 1 }
  0xf6   : > { %v798_v56 = vpop.f32.mrf.mxu2  ;;  %v1117_v42 = vmax.f32 %v1019_v24, %v1116_v21  ;;  %v1020_v44 = vmax.f32 %v881_v25, 0.0  ;;  %v1308_v8 = vrot.slane %v1051_v43, 4 }
  0xf7   : > { %v2248_v60 = vpop.f32.mrf.mxu3  ;;  %v1307_v2 = vmax.f32 %v1305_v47, %v1306_v54  ;;  %v799_v45 = vadd.f32 %v2147_v17, %v798_v56  ;;  %v1660_v56 = vld [vmem:[%s2053_s18 + $0xf0] sm:$0xf] }
  0xf8   : > { %v721_v5 = vpop.f32.mrf.mxu0  ;;  %v1118_v55 = vrot.slane %v1117_v42, 2  ;;  %v1122_v52 = vrot.slane %v1020_v44, 4  ;;  %v1309_v12 = vmax.f32 %v1051_v43, %v1308_v8  ;;  %v1661_v62 = vor.u32 %v1893_v58, %v1660_v56 }
  0xf9   : > { %v883_v10 = vpop.f32.mrf.mxu1  ;;  %v1451_v11 = vsel %vm1422_vm6, %v1450_v7, %v1307_v2  ;;  %v722_v32 = vadd.f32 %v2147_v17, %v721_v5  ;;  %v2280_v53 = vadd.f32 %v2248_v60, %v799_v45  ;;  %v1892_v2 = vld [vmem:[%s2053_s18 + $0xf4] sm:$0xf]  ;;  %v1662_v5 = vld [vmem:[%s2053_s18 + $0xf8] sm:$0xf0]  ;;  %v1788_v7 = vld [vmem:[%s2053_s18 + $0x1f0] sm:$0xf] }
  0xfa   : > { %1470 = vst [vmem:[%s2226_s29 + $0x20] sm:$0xff] %v1451_v11  ;;  %v1119_v11 = vmax.f32 %v1117_v42, %v1118_v55  ;;  %v1310_v37 = vrot.slane %v1309_v12, 2 }
  0xfb   : > { %760 = vmatmul.bf16.gmra.mxu0 %v1645_v61  ;;  %839 = vmatmul.bf16.gmra.mxu2 %v1773_v63  ;;  %v884_v31 = vadd.f32 %v883_v10, %v722_v32  ;;  %v1925_v10 = vld [vmem:[%s2053_s18 + $0x1f4] sm:$0xf0]  ;;  %v1052_v18 = vmax.f32 %v2280_v53, 0.0 }
  0xfc   : > { %922 = vmatmul.bf16.gmra.mxu1 %v1649_v3  ;;  %1001 = vmatmul.bf16.gmra.mxu3 %v1777_v6  ;;  %v1789_v59 = vor.u32 %v1925_v10, %v1788_v7 }
  0xfd   : > { %v1021_v36 = vmax.f32 %v884_v31, 0.0  ;;  %v1314_v42 = vrot.slane %v1052_v18, 4 }
  0xfe   : > { %v801_v4 = vpop.f32.mrf.mxu2 }
  0xff   : > { %v2256_v9 = vpop.f32.mrf.mxu3  ;;  %v802_v49 = vadd.f32 %v2147_v17, %v801_v4  ;;  %v1128_v3 = vrot.slane %v1021_v36, 4 }
 0x100   : > { %v723_v14 = vpop.f32.mrf.mxu0 }
 0x101   : > { %v885_v16 = vpop.f32.mrf.mxu1  ;;  %v724_v39 = vadd.f32 %v2147_v17, %v723_v14  ;;  %v964_v60 = vadd.f32 %v2256_v9, %v802_v49  ;;  %v1924_v14 = vld [vmem:[%s2053_s18 + $0x1f4] sm:$0xf]  ;;  %v1129_v13 = vmax.f32 %v1021_v36, %v1128_v3 }
 0x102   : > { %v1793_v9 = vor.u32 %v1924_v14, %v1790_v15 }
 0x103   : > { %v886_v46 = vadd.f32 %v885_v16, %v724_v39  ;;  %v1123_v16 = vmax.f32 %v1020_v44, %v1122_v52 }
 0x105   : > { %v1022_v61 = vmax.f32 %v886_v46, 0.0  ;;  %v1124_v21 = vrot.slane %v1123_v16, 2 }
 0x106   : > { %v803_v28 = vpop.f32.mrf.mxu2 }
 0x107   : > { %v965_v29 = vpop.f32.mrf.mxu3  ;;  %v804_v54 = vadd.f32 %v2147_v17, %v803_v28  ;;  %v1134_v20 = vrot.slane %v1022_v61, 4  ;;  %v1125_v36 = vmax.f32 %v1123_v16, %v1124_v21 }
 0x108   : > { %v726_v33 = vpop.f32.mrf.mxu0 }
 0x109   : > { %v888_v38 = vpop.f32.mrf.mxu1  ;;  %v727_v40 = vadd.f32 %v2147_v17, %v726_v33  ;;  %v966_v19 = vadd.f32 %v965_v29, %v804_v54  ;;  %v1120_v29 = vrot.slane %v1119_v11, 1  ;;  %v1135_v25 = vmax.f32 %v1022_v61, %v1134_v20 }
 0x10a   : > { %v1315_v54 = vmax.f32 %v1052_v18, %v1314_v42 }
 0x10b   : > { %765 = vmatmul.bf16.gmra.mxu0 %v1653_v30  ;;  %842 = vmatmul.bf16.gmra.mxu2 %v1781_v1  ;;  %v889_v41 = vadd.f32 %v888_v38, %v727_v40  ;;  %v1665_v30 = vor.u32 %v1892_v2, %v1662_v5  ;;  %v1053_v1 = vmax.f32 %v964_v60, 0.0  ;;  %v1054_v38 = vmax.f32 %v966_v19, 0.0 }
 0x10c   : > { %927 = vmatmul.bf16.gmra.mxu1 %v1657_v34  ;;  %1004 = vmatmul.bf16.gmra.mxu3 %v1785_v35  ;;  %v1130_v40 = vrot.slane %v1129_v13, 2  ;;  %v1136_v8 = vrot.slane %v1135_v25, 2  ;;  %v1316_v15 = vrot.slane %v1315_v54, 2 }
 0x10d   : > { %v1023_v6 = vmax.f32 %v889_v41, 0.0  ;;  %v1320_v45 = vrot.slane %v1053_v1, 4  ;;  %v2296_v41 = vmax.f32 %v1309_v12, %v1310_v37 }
 0x10e   : > { %v806_v27 = vpop.f32.mrf.mxu2  ;;  %v1131_v53 = vmax.f32 %v1129_v13, %v1130_v40  ;;  %v1137_v12 = vmax.f32 %v1135_v25, %v1136_v8 }
 0x10f   : > { %v968_v47 = vpop.f32.mrf.mxu3  ;;  %v807_v63 = vadd.f32 %v2147_v17, %v806_v27  ;;  %v1140_v57 = vrot.slane %v1023_v6, 4  ;;  %v1312_v7 = vrot.slane %v2296_v41, 1 }
 0x110   : > { %v728_v48 = vpop.f32.mrf.mxu0 }
 0x111   : > { %v729_v50 = vadd.f32 %v2147_v17, %v728_v48  ;;  %v890_v51 = vpop.f32.mrf.mxu1  ;;  %v969_v22 = vadd.f32 %v968_v47, %v807_v63  ;;  %v1141_v43 = vmax.f32 %v1023_v6, %v1140_v57  ;;  %v1121_v47 = vmax.f32 %v1119_v11, %v1120_v29 }
 0x112   : > { %v1326_v48 = vrot.slane %v1054_v38, 4  ;;  %v1321_v63 = vmax.f32 %v1053_v1, %v1320_v45  ;;  %v1126_v6 = vrot.slane %v1125_v36, 1 }
 0x113   : > { %v891_v0 = vadd.f32 %v890_v51, %v729_v50  ;;  %v1055_v39 = vmax.f32 %v969_v22, 0.0  ;;  %v1142_v56 = vrot.slane %v1141_v43, 2 }
 0x114   : > { %v1327_v10 = vmax.f32 %v1054_v38, %v1326_v48 }
 0x115   : > { %v1024_v4 = vmax.f32 %v891_v0, 0.0  ;;  %v1332_v49 = vrot.slane %v1055_v39, 4  ;;  %v1143_v16 = vmax.f32 %v1141_v43, %v1142_v56 }
 0x116   : > { %v808_v23 = vpop.f32.mrf.mxu2 }
 0x117   : > { %v809_v24 = vadd.f32 %v2147_v17, %v808_v23  ;;  %v970_v26 = vpop.f32.mrf.mxu3  ;;  %v1146_v32 = vrot.slane %v1024_v4, 4  ;;  %v1333_v60 = vmax.f32 %v1055_v39, %v1332_v49  ;;  %v1132_v23 = vrot.slane %v1131_v53, 1 }
 0x118   : > { %v731_v28 = vpop.f32.mrf.mxu0 }
 0x119   : > { %v732_v33 = vadd.f32 %v2147_v17, %v731_v28  ;;  %v893_v34 = vpop.f32.mrf.mxu1  ;;  %v971_v35 = vadd.f32 %v970_v26, %v809_v24  ;;  %v1147_v27 = vmax.f32 %v1024_v4, %v1146_v32  ;;  %v1127_v24 = vmax.f32 %v1125_v36, %v1126_v6 }
 0x11a   : > { %v1328_v26 = vrot.slane %v1327_v10, 2  ;;  %v1138_v28 = vrot.slane %v1137_v12, 1  ;;  %v1133_v37 = vmax.f32 %v1131_v53, %v1132_v23 }
 0x11b   : > { %v894_v31 = vadd.f32 %v893_v34, %v732_v33  ;;  %770 = vmatmul.bf16.gmra.mxu0 %v1661_v62  ;;  %845 = vmatmul.bf16.gmra.mxu2 %v1789_v59  ;;  %v1056_v44 = vmax.f32 %v971_v35, 0.0  ;;  %v1148_v0 = vrot.slane %v1147_v27, 2  ;;  %v1322_v62 = vrot.slane %v1321_v63, 2 }
 0x11c   : > { %932 = vmatmul.bf16.gmra.mxu1 %v1665_v30  ;;  %1007 = vmatmul.bf16.gmra.mxu3 %v1793_v9  ;;  %v1334_v30 = vrot.slane %v1333_v60, 2  ;;  %v1317_v33 = vmax.f32 %v1315_v54, %v1316_v15  ;;  %v1144_v34 = vrot.slane %v1143_v16, 1  ;;  %v1329_v40 = vmax.f32 %v1327_v10, %v1328_v26 }
 0x11d   : > { %v1025_v46 = vmax.f32 %v894_v31, 0.0  ;;  %v1338_v58 = vrot.slane %v1056_v44, 4  ;;  %v1149_v20 = vmax.f32 %v1147_v27, %v1148_v0  ;;  %v1323_v38 = vmax.f32 %v1321_v63, %v1322_v62 }
 0x11e   : > { %v811_v55 = vpop.f32.mrf.mxu2  ;;  %v1424_v45 = vsel %vm1410_vm0, %v1121_v47, %v1127_v24  ;;  %v1139_v27 = vmax.f32 %v1137_v12, %v1138_v28  ;;  %v1318_v48 = vrot.slane %v1317_v33, 1  ;;  %v1330_v56 = vrot.slane %v1329_v40, 1 }
 0x11f   : > { %v1152_v50 = vrot.slane %v1025_v46, 4  ;;  %v812_v51 = vadd.f32 %v2147_v17, %v811_v55  ;;  %v973_v52 = vpop.f32.mrf.mxu3  ;;  %v1339_v18 = vmax.f32 %v1056_v44, %v1338_v58  ;;  %v1150_v25 = vrot.slane %v1149_v20, 1 }
 0x120   : > { %v733_v61 = vpop.f32.mrf.mxu0  ;;  %v1145_v55 = vmax.f32 %v1143_v16, %v1144_v34  ;;  %v1425_v54 = vsel %vm1412_vm1, %v1424_v45, %v1133_v37 }
 0x121   : > { %v1153_v2 = vmax.f32 %v1025_v46, %v1152_v50  ;;  %v734_v5 = vadd.f32 %v2147_v17, %v733_v61  ;;  %v895_v3 = vpop.f32.mrf.mxu1  ;;  %v974_v11 = vadd.f32 %v973_v52, %v812_v51  ;;  %v1340_v35 = vrot.slane %v1339_v18, 2 }
 0x122   : > { %v1335_v46 = vmax.f32 %v1333_v60, %v1334_v30  ;;  %v1324_v50 = vrot.slane %v1323_v38, 1  ;;  %v1151_v51 = vmax.f32 %v1149_v20, %v1150_v25  ;;  %v1426_v0 = vsel %vm1414_vm2, %v1425_v54, %v1139_v27 }
 0x123   : > { %v1154_v4 = vrot.slane %v1153_v2, 2  ;;  %v896_v14 = vadd.f32 %v895_v3, %v734_v5  ;;  %v1057_v19 = vmax.f32 %v974_v11, 0.0  ;;  %v1341_v8 = vmax.f32 %v1339_v18, %v1340_v35 }
 0x124   : > { %v1336_v47 = vrot.slane %v1335_v46, 1  ;;  %v1319_v3 = vmax.f32 %v1317_v33, %v1318_v48  ;;  %v1427_v6 = vsel %vm1416_vm3, %v1426_v0, %v1145_v55  ;;  %v1325_v60 = vmax.f32 %v1323_v38, %v1324_v50  ;;  %v2334_v50 = vld [vmem:[%s2399_s2] ss:$0 sm:$0xff] }
 0x125   : > { %v1026_v22 = vmax.f32 %v896_v14, 0.0  ;;  %v1155_v59 = vmax.f32 %v1153_v2, %v1154_v4  ;;  %v1344_v13 = vrot.slane %v1057_v19, 4  ;;  %v1342_v10 = vrot.slane %v1341_v8, 1 }
 0x126   : > { %v813_v57 = vpop.f32.mrf.mxu2  ;;  %v1428_v4 = vsel %vm1418_vm4, %v1427_v6, %v1151_v51  ;;  %v1313_v18 = vmax.f32 %v2296_v41, %v1312_v7  ;;  %v1337_v20 = vmax.f32 %v1335_v46, %v1336_v47 }
 0x127   : > { %v1158_v9 = vrot.slane %v1026_v22, 4  ;;  %v814_v1 = vadd.f32 %v2147_v17, %v813_v57  ;;  %v975_v32 = vpop.f32.mrf.mxu3  ;;  %v1345_v29 = vmax.f32 %v1057_v19, %v1344_v13  ;;  %v1156_v42 = vrot.slane %v1155_v59, 1 }
 0x128   : > { %v2302_v21 = vpop.f32.mrf.mxu0  ;;  %v1331_v19 = vmax.f32 %v1329_v40, %v1330_v56  ;;  %v1452_v24 = vsel %vm1410_vm0, %v1313_v18, %v1319_v3  ;;  %v1343_v26 = vmax.f32 %v1341_v8, %v1342_v10 }
 0x129   : > { %v1159_v39 = vmax.f32 %v1026_v22, %v1158_v9  ;;  %v2304_v31 = vpop.f32.mrf.mxu1  ;;  %v1346_v43 = vrot.slane %v1345_v29, 2  ;;  %v976_v44 = vadd.f32 %v975_v32, %v814_v1  ;;  %v1157_v58 = vmax.f32 %v1155_v59, %v1156_v42 }
 0x12a   : > { %v1453_v13 = vsel %vm1412_vm1, %v1452_v24, %v1325_v60  ;;  %v737_v37 = vadd.f32 %v2147_v17, %v2302_v21 }
 0x12b   : > { %v1160_v36 = vrot.slane %v1159_v39, 2  ;;  %v1058_v49 = vmax.f32 %v976_v44, 0.0  ;;  %v1347_v53 = vmax.f32 %v1345_v29, %v1346_v43  ;;  %v1429_v23 = vsel %vm1420_vm5, %v1428_v4, %v1157_v58 }
 0x12c   : > { %v1454_v28 = vsel %vm1414_vm2, %v1453_v13, %v1331_v19  ;;  %v899_v42 = vadd.f32 %v2304_v31, %v737_v37 }
 0x12d   : > { %v1161_v52 = vmax.f32 %v1159_v39, %v1160_v36  ;;  %v1350_v61 = vrot.slane %v1058_v49, 4  ;;  %v1348_v15 = vrot.slane %v1347_v53, 1  ;;  %v1455_v7 = vsel %vm1416_vm3, %v1454_v28, %v1337_v20 }
 0x12e   : > { %v816_v63 = vpop.f32.mrf.mxu2  ;;  %v1456_v1 = vsel %vm1418_vm4, %v1455_v7, %v1343_v26  ;;  %v1027_v43 = vmax.f32 %v899_v42, 0.0 }
 0x12f   : > { %v1162_v2 = vrot.slane %v1161_v52, 1  ;;  %v978_v5 = vpop.f32.mrf.mxu3  ;;  %v1351_v11 = vmax.f32 %v1058_v49, %v1350_v61  ;;  %v1349_v57 = vmax.f32 %v1347_v53, %v1348_v15  ;;  %v817_v44 = vadd.f32 %v2147_v17, %v816_v63 }
 0x130   : > { %v738_v12 = vpop.f32.mrf.mxu0  ;;  %v1164_v8 = vrot.slane %v1027_v43, 4 }
 0x131   : > { %v1163_v14 = vmax.f32 %v1161_v52, %v1162_v2  ;;  %v900_v16 = vpop.f32.mrf.mxu1  ;;  %v1352_v62 = vrot.slane %v1351_v11, 2  ;;  %v1457_v34 = vsel %vm1420_vm5, %v1456_v1, %v1349_v57  ;;  %v739_v45 = vadd.f32 %v2147_v17, %v738_v12 }
 0x132   : > { %v979_v21 = vadd.f32 %v978_v5, %v817_v44  ;;  %v1165_v54 = vmax.f32 %v1027_v43, %v1164_v8 }
 0x133   : > { %v1430_v22 = vsel %vm1422_vm6, %v1429_v23, %v1163_v14  ;;  %v1353_v59 = vmax.f32 %v1351_v11, %v1352_v62  ;;  %v901_v49 = vadd.f32 %v900_v16, %v739_v45 }
 0x134   : > { %1467 = vst [vmem:[%s2226_s29 + $0x8] sm:$0xff] %v1430_v22  ;;  %v1059_v58 = vmax.f32 %v979_v21, 0.0  ;;  %v1166_v11 = vrot.slane %v1165_v54, 2 }
 0x135   : > { %v1354_v30 = vrot.slane %v1353_v59, 1  ;;  %v1028_v56 = vmax.f32 %v901_v49, 0.0 }
 0x136   : > { %v818_v41 = vpop.f32.mrf.mxu2  ;;  %v1356_v60 = vrot.slane %v1059_v58, 4  ;;  %v1167_v22 = vmax.f32 %v1165_v54, %v1166_v11 }
 0x137   : > { %v980_v9 = vpop.f32.mrf.mxu3  ;;  %v1355_v32 = vmax.f32 %v1353_v59, %v1354_v30  ;;  %v819_v51 = vadd.f32 %v2334_v50, %v818_v41  ;;  %v1170_v12 = vrot.slane %v1028_v56, 4 }
 0x138   : > { %v741_v33 = vpop.f32.mrf.mxu0  ;;  %v1357_v26 = vmax.f32 %v1059_v58, %v1356_v60 }
 0x139   : > { %v903_v35 = vpop.f32.mrf.mxu1  ;;  %v1458_v29 = vsel %vm1422_vm6, %v1457_v34, %v1355_v32  ;;  %v742_v48 = vadd.f32 %v2147_v17, %v741_v33  ;;  %v981_v0 = vadd.f32 %v980_v9, %v819_v51  ;;  %v1171_v24 = vmax.f32 %v1028_v56, %v1170_v12 }
 0x13a   : > { %1471 = vst [vmem:[%s2226_s29 + $0x28] sm:$0xff] %v1458_v29 }
 0x13b   : > { %v904_v53 = vadd.f32 %v903_v35, %v742_v48  ;;  %v1060_v18 = vmax.f32 %v981_v0, 0.0 }
 0x13d   : > { %v1029_v3 = vmax.f32 %v904_v53, 0.0  ;;  %v1362_v7 = vrot.slane %v1060_v18, 4 }
 0x13e   : > { %v821_v38 = vpop.f32.mrf.mxu2 }
 0x13f   : > { %v983_v25 = vpop.f32.mrf.mxu3  ;;  %v822_v47 = vadd.f32 %v2334_v50, %v821_v38  ;;  %v1176_v62 = vrot.slane %v1029_v3, 4  ;;  %v1168_v38 = vrot.slane %v1167_v22, 1  ;;  %v1363_v45 = vmax.f32 %v1060_v18, %v1362_v7 }
 0x140   : > { %v743_v39 = vpop.f32.mrf.mxu0 }
 0x141   : > { %v905_v40 = vpop.f32.mrf.mxu1  ;;  %v744_v31 = vadd.f32 %v2334_v50, %v743_v39  ;;  %v984_v19 = vadd.f32 %v983_v25, %v822_v47  ;;  %v1177_v33 = vmax.f32 %v1029_v3, %v1176_v62  ;;  %v1172_v25 = vrot.slane %v1171_v24, 2 }
 0x142   : > { %v1358_v39 = vrot.slane %v1357_v26, 2  ;;  %v1169_v49 = vmax.f32 %v1167_v22, %v1168_v38 }
 0x143   : > { %v906_v61 = vadd.f32 %v905_v40, %v744_v31  ;;  %v1061_v9 = vmax.f32 %v984_v19, 0.0  ;;  %v1178_v48 = vrot.slane %v1177_v33, 2  ;;  %v1173_v21 = vmax.f32 %v1171_v24, %v1172_v25 }
 0x144   : > { %v2345_v31 = vmax.f32 %v1357_v26, %v1358_v39 }
 0x145   : > { %v1030_v14 = vmax.f32 %v906_v61, 0.0  ;;  %v1364_v61 = vrot.slane %v1363_v45, 2  ;;  %v1174_v12 = vrot.slane %v1173_v21, 1 }
 0x146   : > { %v823_v27 = vpop.f32.mrf.mxu2  ;;  %v1360_v60 = vrot.slane %v2345_v31, 1 }
 0x147   : > { %v985_v46 = vpop.f32.mrf.mxu3  ;;  %v824_v4 = vadd.f32 %v2334_v50, %v823_v27  ;;  %v1182_v57 = vrot.slane %v1030_v14, 4  ;;  %v1368_v27 = vrot.slane %v1061_v9, 4  ;;  %v1365_v26 = vmax.f32 %v1363_v45, %v1364_v61 }
 0x148   : > { %v746_v36 = vpop.f32.mrf.mxu0 }
 0x149   : > { %v908_v55 = vpop.f32.mrf.mxu1  ;;  %v747_v52 = vadd.f32 %v2334_v50, %v746_v36  ;;  %v986_v59 = vadd.f32 %v985_v46, %v824_v4  ;;  %v1183_v42 = vmax.f32 %v1030_v14, %v1182_v57  ;;  %v1175_v57 = vmax.f32 %v1173_v21, %v1174_v12 }
 0x14b   : > { %v909_v2 = vadd.f32 %v908_v55, %v747_v52  ;;  %v1062_v40 = vmax.f32 %v986_v59, 0.0  ;;  %v1184_v53 = vrot.slane %v1183_v42, 2 }
 0x14d   : > { %v1031_v23 = vmax.f32 %v909_v2, 0.0  ;;  %v1374_v51 = vrot.slane %v1062_v40, 4 }
 0x14e   : > { %v826_v17 = vpop.f32.mrf.mxu2 }
 0x14f   : > { %v988_v63 = vpop.f32.mrf.mxu3  ;;  %v827_v15 = vadd.f32 %v2334_v50, %v826_v17  ;;  %v1188_v1 = vrot.slane %v1031_v23, 4  ;;  %v1375_v4 = vmax.f32 %v1062_v40, %v1374_v51  ;;  %v1366_v40 = vrot.slane %v1365_v26, 1 }
 0x150   : > { %v748_v5 = vpop.f32.mrf.mxu0 }
 0x151   : > { %v749_v6 = vadd.f32 %v2334_v50, %v748_v5  ;;  %v910_v10 = vpop.f32.mrf.mxu1  ;;  %v989_v28 = vadd.f32 %v988_v63, %v827_v15  ;;  %v1189_v46 = vmax.f32 %v1031_v23, %v1188_v1  ;;  %v1369_v63 = vmax.f32 %v1061_v9, %v1368_v27 }
 0x152   : > { %v1179_v5 = vmax.f32 %v1177_v33, %v1178_v48  ;;  %v1185_v15 = vmax.f32 %v1183_v42, %v1184_v53  ;;  %v1431_v48 = vsel %vm1410_vm0, %v1169_v49, %v1175_v57 }
 0x153   : > { %v911_v16 = vadd.f32 %v910_v10, %v749_v6  ;;  %v1063_v43 = vmax.f32 %v989_v28, 0.0  ;;  %v1190_v0 = vrot.slane %v1189_v46, 2  ;;  %v1370_v23 = vrot.slane %v1369_v63, 2 }
 0x154   : > { %v1180_v24 = vrot.slane %v1179_v5, 1  ;;  %v1376_v28 = vrot.slane %v1375_v4, 2  ;;  %v1186_v9 = vrot.slane %v1185_v15, 1 }
 0x155   : > { %v1032_v20 = vmax.f32 %v911_v16, 0.0  ;;  %v1380_v54 = vrot.slane %v1063_v43, 4  ;;  %v1191_v62 = vmax.f32 %v1189_v46, %v1190_v0 }
 0x156   : > { %v828_v13 = vpop.f32.mrf.mxu2  ;;  %v1181_v39 = vmax.f32 %v1179_v5, %v1180_v24  ;;  %v1377_v45 = vmax.f32 %v1375_v4, %v1376_v28 }
 0x157   : > { %v829_v30 = vadd.f32 %v2334_v50, %v828_v13  ;;  %v990_v41 = vpop.f32.mrf.mxu3  ;;  %v1194_v34 = vrot.slane %v1032_v20, 4  ;;  %v1381_v16 = vmax.f32 %v1063_v43, %v1380_v54 }
 0x158   : > { %v751_v32 = vpop.f32.mrf.mxu0  ;;  %v1378_v0 = vrot.slane %v1377_v45, 1 }
 0x159   : > { %v752_v35 = vadd.f32 %v2334_v50, %v751_v32  ;;  %v913_v29 = vpop.f32.mrf.mxu1  ;;  %v991_v37 = vadd.f32 %v990_v41, %v829_v30  ;;  %v1195_v55 = vmax.f32 %v1032_v20, %v1194_v34  ;;  %v1382_v1 = vrot.slane %v1381_v16, 2 }
 0x15a   : > { %v1379_v24 = vmax.f32 %v1377_v45, %v1378_v0 }
 0x15b   : > { %v914_v44 = vadd.f32 %v913_v29, %v752_v35  ;;  %v1064_v36 = vmax.f32 %v991_v37, 0.0  ;;  %v1196_v3 = vrot.slane %v1195_v55, 2  ;;  %v1371_v35 = vmax.f32 %v1369_v63, %v1370_v23 }
 0x15c   : > { %v1192_v29 = vrot.slane %v1191_v62, 1  ;;  %v1432_v63 = vsel %vm1412_vm1, %v1431_v48, %v1181_v39 }
 0x15d   : > { %v1033_v8 = vmax.f32 %v914_v44, 0.0  ;;  %v1386_v47 = vrot.slane %v1064_v36, 4  ;;  %v1197_v59 = vmax.f32 %v1195_v55, %v1196_v3  ;;  %v1187_v55 = vmax.f32 %v1185_v15, %v1186_v9 }
 0x15e   : > { %v831_v52 = vpop.f32.mrf.mxu2  ;;  %v1372_v51 = vrot.slane %v1371_v35, 1 }
 0x15f   : > { %v1200_v56 = vrot.slane %v1033_v8, 4  ;;  %v832_v58 = vadd.f32 %v2334_v50, %v831_v52  ;;  %v993_v17 = vpop.f32.mrf.mxu3  ;;  %v1387_v20 = vmax.f32 %v1064_v36, %v1386_v47  ;;  %v1198_v42 = vrot.slane %v1197_v59, 1 }
 0x160   : > { %v753_v2 = vpop.f32.mrf.mxu0  ;;  %v1193_v52 = vmax.f32 %v1191_v62, %v1192_v29  ;;  %v1433_v3 = vsel %vm1414_vm2, %v1432_v63, %v1187_v55  ;;  %v1373_v12 = vmax.f32 %v1371_v35, %v1372_v51 }
 0x161   : > { %v1201_v6 = vmax.f32 %v1033_v8, %v1200_v56  ;;  %v754_v10 = vadd.f32 %v2334_v50, %v753_v2  ;;  %v915_v11 = vpop.f32.mrf.mxu1  ;;  %v994_v14 = vadd.f32 %v993_v17, %v832_v58  ;;  %v1388_v37 = vrot.slane %v1387_v20, 2 }
 0x162   : > { %v1383_v8 = vmax.f32 %v1381_v16, %v1382_v1  ;;  %v1367_v56 = vmax.f32 %v1365_v26, %v1366_v40  ;;  %v1199_v58 = vmax.f32 %v1197_v59, %v1198_v42  ;;  %v1434_v4 = vsel %vm1416_vm3, %v1433_v3, %v1193_v52 }
 0x163   : > { %v1202_v18 = vrot.slane %v1201_v6, 2  ;;  %v916_v19 = vadd.f32 %v915_v11, %v754_v10  ;;  %v1065_v22 = vmax.f32 %v994_v14, 0.0  ;;  %v1389_v53 = vmax.f32 %v1387_v20, %v1388_v37 }
 0x164   : > { %v1384_v49 = vrot.slane %v1383_v8, 1 }
 0x165   : > { %v1034_v13 = vmax.f32 %v916_v19, 0.0  ;;  %v1203_v30 = vmax.f32 %v1201_v6, %v1202_v18  ;;  %v1392_v41 = vrot.slane %v1065_v22, 4  ;;  %v1390_v14 = vrot.slane %v1389_v53, 1 }
 0x166   : > { %v833_v7 = vpop.f32.mrf.mxu2  ;;  %v1435_v18 = vsel %vm1418_vm4, %v1434_v4, %v1199_v58 }
 0x167   : > { %v1206_v32 = vrot.slane %v1034_v13, 4  ;;  %v834_v33 = vadd.f32 %v2334_v50, %v833_v7  ;;  %v995_v34 = vpop.f32.mrf.mxu3  ;;  %v1393_v38 = vmax.f32 %v1065_v22, %v1392_v41  ;;  %v1204_v27 = vrot.slane %v1203_v30, 1 }
 0x168   : > { %v2351_v25 = vpop.f32.mrf.mxu0  ;;  %v1361_v22 = vmax.f32 %v2345_v31, %v1360_v60  ;;  %v1391_v41 = vmax.f32 %v1389_v53, %v1390_v14 }
 0x169   : > { %v1207_v43 = vmax.f32 %v1034_v13, %v1206_v32  ;;  %v2353_v44 = vpop.f32.mrf.mxu1  ;;  %v1394_v46 = vrot.slane %v1393_v38, 2  ;;  %v996_v36 = vadd.f32 %v995_v34, %v834_v33  ;;  %v1205_v47 = vmax.f32 %v1203_v30, %v1204_v27 }
 0x16a   : > { %v1385_v13 = vmax.f32 %v1383_v8, %v1384_v49  ;;  %v1459_v30 = vsel %vm1410_vm0, %v1361_v22, %v1367_v56 }
 0x16b   : > { %v1208_v21 = vrot.slane %v1207_v43, 2  ;;  %v1066_v54 = vmax.f32 %v996_v36, 0.0  ;;  %v1395_v61 = vmax.f32 %v1393_v38, %v1394_v46  ;;  %v1436_v26 = vsel %vm1420_vm5, %v1435_v18, %v1205_v47 }
 0x16c   : > { %v1460_v9 = vsel %vm1412_vm1, %v1459_v30, %v1373_v12 }
 0x16d   : > { %v1209_v17 = vmax.f32 %v1207_v43, %v1208_v21  ;;  %v1398_v2 = vrot.slane %v1066_v54, 4  ;;  %v1396_v23 = vrot.slane %v1395_v61, 1  ;;  %v1461_v31 = vsel %vm1414_vm2, %v1460_v9, %v1379_v24 }
 0x16e   : > { %v836_v5 = vpop.f32.mrf.mxu2  ;;  %v1462_v34 = vsel %vm1416_vm3, %v1461_v31, %v1385_v13 }
 0x16f   : > { %v1210_v6 = vrot.slane %v1209_v17, 1  ;;  %v837_v10 = vadd.f32 %v2334_v50, %v836_v5  ;;  %v998_v11 = vpop.f32.mrf.mxu3  ;;  %v1399_v15 = vmax.f32 %v1066_v54, %v1398_v2  ;;  %v1397_v1 = vmax.f32 %v1395_v61, %v1396_v23 }
 0x170   : > { %v758_v16 = vpop.f32.mrf.mxu0  ;;  %v1463_v37 = vsel %vm1418_vm4, %v1462_v34, %v1391_v41 }
 0x171   : > { %v1211_v19 = vmax.f32 %v1209_v17, %v1210_v6  ;;  %v920_v62 = vpop.f32.mrf.mxu1  ;;  %v999_v20 = vadd.f32 %v998_v11, %v837_v10  ;;  %v1400_v59 = vrot.slane %v1399_v15, 2  ;;  %v1464_v40 = vsel %vm1420_vm5, %v1463_v37, %v1397_v1 }
 0x172   : > { %v759_v54 = vadd.f32 %v2334_v50, %v758_v16  ;;  %v757_v17 = vadd.f32 %v2334_v50, %v2351_v25 }
 0x173   : > { %v1437_v57 = vsel %vm1422_vm6, %v1436_v26, %v1211_v19  ;;  %v1067_v28 = vmax.f32 %v999_v20, 0.0  ;;  %v1401_v7 = vmax.f32 %v1399_v15, %v1400_v59 }
 0x174   : > { %1468 = vst [vmem:[%s2226_s29 + $0x10] sm:$0xff] %v1437_v57  ;;  %v921_v0 = vadd.f32 %v920_v62, %v759_v54  ;;  %v919_v5 = vadd.f32 %v2353_v44, %v757_v17 }
 0x175   : > { %v1404_v32 = vrot.slane %v1067_v28, 4  ;;  %v1402_v60 = vrot.slane %v1401_v7, 1 }
 0x176   : > { %v838_v33 = vpop.f32.mrf.mxu2  ;;  %v1036_v11 = vmax.f32 %v921_v0, 0.0  ;;  %v1035_v15 = vmax.f32 %v919_v5, 0.0 }
 0x177   : > { %v1405_v35 = vmax.f32 %v1067_v28, %v1404_v32  ;;  %v1000_v29 = vpop.f32.mrf.mxu3  ;;  %v1403_v38 = vmax.f32 %v1401_v7, %v1402_v60 }
 0x178   : > { %v761_v39 = vpop.f32.mrf.mxu0  ;;  %v1218_v19 = vrot.slane %v1036_v11, 4  ;;  %v1212_v22 = vrot.slane %v1035_v15, 4 }
 0x179   : > { %v1406_v42 = vrot.slane %v1405_v35, 2  ;;  %v923_v43 = vpop.f32.mrf.mxu1  ;;  %v1465_v45 = vsel %vm1422_vm6, %v1464_v40, %v1403_v38  ;;  %v762_v58 = vadd.f32 %v2334_v50, %v761_v39 }
 0x17a   : > { %1472 = vst [vmem:[%s2226_s29 + $0x30] sm:$0xff] %v1465_v45  ;;  %v1219_v13 = vmax.f32 %v1036_v11, %v1218_v19  ;;  %v1213_v7 = vmax.f32 %v1035_v15, %v1212_v22 }
 0x17b   : > { %v1407_v27 = vmax.f32 %v1405_v35, %v1406_v42  ;;  %v924_v47 = vadd.f32 %v923_v43, %v762_v58 }
 0x17c   : > { %v1220_v31 = vrot.slane %v1219_v13, 2  ;;  %v1214_v29 = vrot.slane %v1213_v7, 2 }
 0x17d   : > { %v1408_v46 = vrot.slane %v1407_v27, 1  ;;  %v1037_v14 = vmax.f32 %v924_v47, 0.0 }
 0x17e   : > { %v840_v36 = vpop.f32.mrf.mxu2  ;;  %v1221_v43 = vmax.f32 %v1219_v13, %v1220_v31 }
 0x17f   : > { %v1409_v48 = vmax.f32 %v1407_v27, %v1408_v46  ;;  %v1002_v55 = vpop.f32.mrf.mxu3  ;;  %v1224_v62 = vrot.slane %v1037_v14, 4 }
 0x180   : > { %v763_v8 = vpop.f32.mrf.mxu0  ;;  %v1215_v55 = vmax.f32 %v1213_v7, %v1214_v29 }
 0x181   : > { %1473 = vst [vmem:[%s2226_s29 + $0x38] sm:$0x1] %v1409_v48  ;;  %v925_v21 = vpop.f32.mrf.mxu1  ;;  %v764_v61 = vadd.f32 %v2334_v50, %v763_v8  ;;  %v1225_v41 = vmax.f32 %v1037_v14, %v1224_v62 }
 0x183   : > { %v926_v3 = vadd.f32 %v925_v21, %v764_v61  ;;  %v1226_v34 = vrot.slane %v1225_v41, 2 }
 0x185   : > { %v1038_v25 = vmax.f32 %v926_v3, 0.0  ;;  %v1227_v36 = vmax.f32 %v1225_v41, %v1226_v34 }
 0x186   : > { %v841_v51 = vpop.f32.mrf.mxu2 }
 0x187   : > { %v1003_v52 = vpop.f32.mrf.mxu3  ;;  %v1230_v24 = vrot.slane %v1038_v25, 4  ;;  %v1228_v58 = vrot.slane %v1227_v36, 1 }
 0x188   : > { %v766_v53 = vpop.f32.mrf.mxu0 }
 0x189   : > { %v928_v56 = vpop.f32.mrf.mxu1  ;;  %v767_v63 = vadd.f32 %v2334_v50, %v766_v53  ;;  %v1231_v9 = vmax.f32 %v1038_v25, %v1230_v24  ;;  %v1222_v53 = vrot.slane %v1221_v43, 1 }
 0x18b   : > { %v929_v6 = vadd.f32 %v928_v56, %v767_v63  ;;  %v1232_v37 = vrot.slane %v1231_v9, 2  ;;  %v1216_v63 = vrot.slane %v1215_v55, 1  ;;  %v1223_v3 = vmax.f32 %v1221_v43, %v1222_v53 }
 0x18d   : > { %v1039_v18 = vmax.f32 %v929_v6, 0.0  ;;  %v1233_v8 = vmax.f32 %v1231_v9, %v1232_v37  ;;  %v1229_v6 = vmax.f32 %v1227_v36, %v1228_v58  ;;  %v1217_v11 = vmax.f32 %v1215_v55, %v1216_v63 }
 0x18e   : > { %v843_v2 = vpop.f32.mrf.mxu2 }
 0x18f   : > { %v1005_v49 = vpop.f32.mrf.mxu3  ;;  %v1236_v26 = vrot.slane %v1039_v18, 4  ;;  %v1234_v0 = vrot.slane %v1233_v8, 1  ;;  %v1438_v15 = vsel %vm1410_vm0, %v1217_v11, %v1223_v3 }
 0x190   : > { %v768_v10 = vpop.f32.mrf.mxu0 }
 0x191   : > { %v769_v12 = vadd.f32 %v2334_v50, %v768_v10  ;;  %v930_v4 = vpop.f32.mrf.mxu1  ;;  %v1237_v32 = vmax.f32 %v1039_v18, %v1236_v26  ;;  %v1439_v18 = vsel %vm1412_vm1, %v1438_v15, %v1229_v6 }
 0x193   : > { %v931_v16 = vadd.f32 %v930_v4, %v769_v12  ;;  %v1238_v40 = vrot.slane %v1237_v32, 2  ;;  %v1235_v12 = vmax.f32 %v1233_v8, %v1234_v0 }
 0x195   : > { %v1040_v23 = vmax.f32 %v931_v16, 0.0  ;;  %v1239_v52 = vmax.f32 %v1237_v32, %v1238_v40 }
 0x196   : > { %v844_v20 = vpop.f32.mrf.mxu2 }
 0x197   : > { %v1006_v44 = vpop.f32.mrf.mxu3  ;;  %v1242_v57 = vrot.slane %v1040_v23, 4  ;;  %v1240_v5 = vrot.slane %v1239_v52, 1 }
 0x198   : > { %v771_v59 = vpop.f32.mrf.mxu0 }
 0x199   : > { %v772_v28 = vadd.f32 %v2334_v50, %v771_v59  ;;  %v933_v30 = vpop.f32.mrf.mxu1  ;;  %v1243_v60 = vmax.f32 %v1040_v23, %v1242_v57  ;;  %v1241_v14 = vmax.f32 %v1239_v52, %v1240_v5  ;;  %v1440_v23 = vsel %vm1414_vm2, %v1439_v18, %v1235_v12 }
 0x19b   : > { %v934_v1 = vadd.f32 %v933_v30, %v772_v28  ;;  %v1244_v45 = vrot.slane %v1243_v60, 2  ;;  %v1441_v20 = vsel %vm1416_vm3, %v1440_v23, %v1241_v14 }
 0x19d   : > { %v1041_v33 = vmax.f32 %v934_v1, 0.0  ;;  %v1245_v54 = vmax.f32 %v1243_v60, %v1244_v45 }
 0x19e   : > { %v846_v35 = vpop.f32.mrf.mxu2 }
 0x19f   : > { %v1248_v38 = vrot.slane %v1041_v33, 4  ;;  %v1008_v39 = vpop.f32.mrf.mxu3 }
 0x1a0   : > { %v773_v42 = vpop.f32.mrf.mxu0 }
 0x1a1   : > { %v1249_v27 = vmax.f32 %v1041_v33, %v1248_v38  ;;  %v774_v46 = vadd.f32 %v2334_v50, %v773_v42  ;;  %v935_v48 = vpop.f32.mrf.mxu1  ;;  %v1246_v50 = vrot.slane %v1245_v54, 1 }
 0x1a3   : > { %v1250_v21 = vrot.slane %v1249_v27, 2  ;;  %v936_v51 = vadd.f32 %v935_v48, %v774_v46  ;;  %v1247_v25 = vmax.f32 %v1245_v54, %v1246_v50 }
 0x1a5   : > { %v1042_v56 = vmax.f32 %v936_v51, 0.0  ;;  %v1251_v17 = vmax.f32 %v1249_v27, %v1250_v21  ;;  %v1442_v22 = vsel %vm1418_vm4, %v1441_v20, %v1247_v25 }
 0x1a6   : > { %v847_v61 = vpop.f32.mrf.mxu2 }
 0x1a7   : > { %v1254_v47 = vrot.slane %v1042_v56, 4  ;;  %v1009_v2 = vpop.f32.mrf.mxu3  ;;  %v1252_v10 = vrot.slane %v1251_v17, 1 }
 0x1a9   : > { %v1255_v49 = vmax.f32 %v1042_v56, %v1254_v47  ;;  %v1253_v19 = vmax.f32 %v1251_v17, %v1252_v10 }
 0x1ab   : > { %v1256_v4 = vrot.slane %v1255_v49, 2  ;;  %v1443_v44 = vsel %vm1420_vm5, %v1442_v22, %v1253_v19 }
 0x1ad   : > { %v1257_v16 = vmax.f32 %v1255_v49, %v1256_v4 }
 0x1af   : > { %v1258_v62 = vrot.slane %v1257_v16, 1 }
 0x1b1   : > { %v1259_v24 = vmax.f32 %v1257_v16, %v1258_v62 }
 0x1b3   : > { %v1444_v26 = vsel %vm1422_vm6, %v1443_v44, %v1259_v24 }
 0x1b4   : > { %1469 = vst [vmem:[%s2226_s29 + $0x18] sm:$0xff] %v1444_v26 }
 0x1b5 PF: > { %s13_s12 = sadd.s32 1, %s1974_s12  }
 0x1b6   : > { %p10_p4 = scmp.ge.s32.totalorder %s13_s12, 4  }
 0x1b8   :  { %12 = sbr.rel (!%p10_p4) target bundleno = 1 (0x1), region = 62 }

// kernel: maf_cnn_forward.3
= control target key start
LH: loop header
LB: loop body
LE: loop exit
PB: predicated region body
PF: predicated region fallthrough
CT: control target
= control target key end

     0   :  { %s6472_s0 = inlined_call_operand.vmem [shape: f32[2,57,128], index: 0, kind: input, shape index: {}]   ;;  %s6473_s1 = inlined_call_operand.vmem [shape: f32[448,128], index: 1, kind: input, shape index: {}]   ;;  %s6474_s2 = inlined_call_operand.vmem [shape: f32[1,128], index: 2, kind: input, shape index: {}]   ;;  %s6475_s3 = inlined_call_operand.vmem [shape: f32[896,64], index: 3, kind: input, shape index: {}]   ;;  %s6476_s4 = inlined_call_operand.vmem [shape: f32[1,64], index: 4, kind: input, shape index: {}]   ;;  %s6477_s5 = inlined_call_operand.vmem [shape: f32[320,32], index: 5, kind: input, shape index: {}]   ;;  %s6478_s6 = inlined_call_operand.vmem [shape: f32[1,32], index: 6, kind: input, shape index: {}]   ;;  %s6479_s7 = inlined_call_operand.vmem [shape: f32[256,32], index: 7, kind: input, shape index: {}]   ;;  %s6480_s8 = inlined_call_operand.vmem [shape: f32[1,32], index: 8, kind: input, shape index: {}]   ;;  %s6481_s9 = inlined_call_operand.vmem [shape: f32[192,32], index: 9, kind: input, shape index: {}]   ;;  %s6482_s10 = inlined_call_operand.vmem [shape: f32[1,32], index: 10, kind: input, shape index: {}]   ;;  %s6483_s11 = inlined_call_operand.vmem [shape: f32[2,32], index: 11, kind: input, shape index: {}]   ;;  %s6484_s12 = inlined_call_operand.vmem [shape: f32[2,32], index: 12, kind: input, shape index: {}]   ;;  %s6485_s13 = inlined_call_operand.vmem [shape: f32[256,512], index: 13, kind: input, shape index: {}]   ;;  %s6486_s14 = inlined_call_operand.vmem [shape: f32[1,512], index: 14, kind: input, shape index: {}]   ;;  %s6487_s15 = inlined_call_operand.vmem [shape: f32[512,128], index: 15, kind: input, shape index: {}]   ;;  %s6488_s16 = inlined_call_operand.vmem [shape: f32[1,128], index: 16, kind: input, shape index: {}]   ;;  %s6489_s17 = inlined_call_operand.vmem [shape: f32[128,128], index: 17, kind: input, shape index: {}]   ;;  %s6490_s18 = inlined_call_operand.vmem [shape: f32[1,128], index: 18, kind: input, shape index: {}]   ;;  %s6491_s19 = inlined_call_operand.hbm [shape: f32[2,128], index: 19, kind: output, shape index: {0}]   ;;  %s6492_s20 = inlined_call_operand.hbm [shape: f32[2,128], index: 20, kind: output, shape index: {1}]  }
   0x1   :  { %6571 = sst [smem:[#allocation61_spill]] %s6472_s0 }
   0x2   :  { %6572 = sst [smem:[#allocation62_spill]] %s6473_s1 }
   0x3   :  { %6573 = sst [smem:[#allocation63_spill]] %s6474_s2 }
   0x4   :  { %6574 = sst [smem:[#allocation64_spill]] %s6475_s3 }
   0x5   :  { %6575 = sst [smem:[#allocation65_spill]] %s6476_s4 }
   0x6   :  { %26 = vsyncpa [#allocation3], 0  ;;  %s6576_s23 = sld [smem:[#allocation61_spill]]  ;;  %vm146_vm0 = vcmask 1046528   ;;  %vm258_vm1 = vcmask 1042432   ;;  %vm202_vm2 = vcmask 1044480  }
   0x7   :  { %s3246_s29 = smov 64  }
   0xc   :  { %v3360_v0 = vld [vmem:[%s6576_s23] sm:$0xff]  ;;  %v3365_v1 = vld [vmem:[%s6576_s23 + $0x8] sm:$0xff]  ;;  %v3370_v2 = vld [vmem:[%s6576_s23 + $0x10] sm:$0xff] }
   0xd   :  { %v147_v3 = vrot.slane %v3360_v0, 1  ;;  %v148_v4 = vrot.slane %v3365_v1, 1  ;;  %v259_v5 = vrot.slane %v3360_v0, 5  ;;  %v260_v6 = vrot.slane %v3365_v1, 5  ;;  %v3379_v7 = vld [vmem:[%s6576_s23 + $0x18] sm:$0xff]  ;;  %v3394_v19 = vld [vmem:[%s6576_s23 + $0x20] sm:$0xff] }
   0xe   :  { %v150_v8 = vrot.slane %v3370_v2, 1  ;;  %v204_v9 = vrot.slane %v3365_v1, 3  ;;  %v206_v10 = vrot.slane %v3370_v2, 3  ;;  %v203_v13 = vrot.slane %v3360_v0, 3  ;;  %v3404_v24 = vld [vmem:[%s6576_s23 + $0x28] sm:$0xff] }
   0xf   :  { %v149_v11 = vsel %vm146_vm0, %v147_v3, %v148_v4  ;;  %v261_v12 = vsel %vm258_vm1, %v259_v5, %v260_v6  ;;  %v262_v14 = vrot.slane %v3370_v2, 5  ;;  %v152_v18 = vrot.slane %v3379_v7, 1  ;;  %6577 = vst [vmem:[#allocation8_spill] sm:$0xff] %v3404_v24 }
  0x10   :  { %v3051_v15 = vpack.i.bf16 %v149_v11, %v261_v12  ;;  %v151_v16 = vsel %vm146_vm0, %v148_v4, %v150_v8  ;;  %v207_v17 = vsel %vm202_vm2, %v204_v9, %v206_v10  ;;  %v264_v21 = vrot.slane %v3379_v7, 5 }
  0x11   :  { %v3061_v20 = vpack.i.bf16 %v207_v17, %v151_v16  ;;  %v205_v22 = vsel %vm202_vm2, %v203_v13, %v204_v9  ;;  %v263_v23 = vsel %vm258_vm1, %v260_v6, %v262_v14  ;;  %v266_v25 = vrot.slane %v3394_v19, 5 }
  0x12   :  { %3052 = vrot.lane.b32.xlu0 %v3051_v15, %s3246_s29  ;;  %v153_v26 = vsel %vm146_vm0, %v150_v8, %v152_v18  ;;  %v265_v27 = vsel %vm258_vm1, %v262_v14, %v264_v21 }
  0x13   :  { %3062 = vrot.lane.b32.xlu1 %v3061_v20, %s3246_s29 }
  0x14   :  { %27 = vsyncpa [#allocation5], 0  ;;  %v3412_v28 = vld [vmem:[%s6576_s23 + $0x30] sm:$0xff]  ;;  %v208_v29 = vrot.slane %v3379_v7, 3  ;;  %v267_v30 = vsel %vm258_vm1, %v264_v21, %v266_v25  ;;  %v3056_v31 = vpack.i.bf16 %v263_v23, %v205_v22  ;;  %v154_v32 = vrot.slane %v3394_v19, 1  ;;  %s6579_s2 = sld [smem:[#allocation62_spill]] }
  0x15   :  { %6578 = vst [vmem:[#allocation9_spill] sm:$0xff] %v3412_v28  ;;  %v156_v33 = vrot.slane %v3404_v24, 1  ;;  %v3066_v34 = vpack.i.bf16 %v153_v26, %v265_v27  ;;  %v268_v35 = vrot.slane %v3404_v24, 5  ;;  %v210_v37 = vrot.slane %v3394_v19, 3  ;;  %v3456_v51 = vld [vmem:[%s6576_s23 + $0x40] sm:$0xff]  ;;  %v3467_v53 = vld [vmem:[%s6576_s23 + $0x48] sm:$0xff] }
  0x16   :  { %v209_v36 = vsel %vm202_vm2, %v206_v10, %v208_v29  ;;  %v212_v38 = vrot.slane %v3404_v24, 3  ;;  %v270_v39 = vrot.slane %v3412_v28, 5  ;;  %v155_v45 = vsel %vm146_vm0, %v152_v18, %v154_v32  ;;  %6580 = vst [vmem:[#allocation10_spill] sm:$0xff] %v3456_v51  ;;  %v3520_v8 = vld [vmem:[%s6576_s23 + $0x50] sm:$0xff]  ;;  %v3531_v10 = vld [vmem:[%s6576_s23 + $0x58] sm:$0xff]  ;;  %s6610_s0 = sld [smem:[#allocation64_spill]] }
  0x17   :  { %v3071_v40 = vpack.i.bf16 %v267_v30, %v209_v36  ;;  %v157_v41 = vsel %vm146_vm0, %v154_v32, %v156_v33  ;;  %v269_v44 = vsel %vm258_vm1, %v266_v25, %v268_v35  ;;  %v211_v46 = vsel %vm202_vm2, %v208_v29, %v210_v37  ;;  %6581 = vst [vmem:[#allocation11_spill] sm:$0xff] %v3467_v53  ;;  %s6633_s3 = sld [smem:[#allocation63_spill]]  ;;  %s3249_s24 = smov 96  }
  0x18   :  { %v213_v49 = vsel %vm202_vm2, %v210_v37, %v212_v38  ;;  %v271_v50 = vsel %vm258_vm1, %v268_v35, %v270_v39  ;;  %v3081_v56 = vpack.i.bf16 %v157_v41, %v269_v44  ;;  %v3076_v57 = vpack.i.bf16 %v211_v46, %v155_v45  ;;  %6582 = vst [vmem:[#allocation12_spill] sm:$0xff] %v3520_v8  ;;  %s6718_s4 = sld [smem:[#allocation65_spill]]  ;;  %s3250_s26 = smov [#allocation2]  }
  0x19   :  { %3072 = vrot.lane.b32.xlu2 %v3071_v40, %s3246_s29  ;;  %v3086_v60 = vpack.i.bf16 %v271_v50, %v213_v49  ;;  %v515_v61 = vrot.slane %v3456_v51, 1  ;;  %v516_v62 = vrot.slane %v3467_v53, 1  ;;  %v158_v3 = vrot.slane %v3412_v28, 1  ;;  %6583 = vst [vmem:[#allocation13_spill] sm:$0xff] %v3531_v10  ;;  %v3644_v49 = vld [vmem:[%s6576_s23 + $0x68] sm:$0xff] }
  0x1a   :  { %3057 = vrot.lane.b32.xlu0 %v3056_v31, %s3246_s29  ;;  %v3429_v42 = vld [vmem:[%s6579_s2 + $0x78] sm:$0xff]  ;;  %v3444_v47 = vld [vmem:[%s6579_s2 + $0x70] sm:$0xff]  ;;  %v3462_v52 = vld [vmem:[%s6579_s2 + $0x68] sm:$0xff]  ;;  %v214_v4 = vrot.slane %v3412_v28, 3  ;;  %v518_v23 = vrot.slane %v3520_v8, 1  ;;  %v520_v25 = vrot.slane %v3531_v10, 1 }
  0x1b   :  { %v3434_v43 = vld [vmem:[%s6579_s2 + $0x178] sm:$0xff]  ;;  %3067 = vrot.lane.b32.xlu1 %v3066_v34, %s3246_s29  ;;  %349 = vmatpush.msra.mxu0 %v3429_v42  ;;  %v3449_v48 = vld [vmem:[%s6579_s2 + $0x170] sm:$0xff]  ;;  %v3473_v54 = vld [vmem:[%s6579_s2 + $0x168] sm:$0xff]  ;;  %v159_v11 = vsel %vm146_vm0, %v156_v33, %v158_v3  ;;  %v517_v15 = vsel %vm146_vm0, %v515_v61, %v516_v62  ;;  %v3096_v22 = vpack.i.bf16 %v158_v3, %v270_v39  ;;  %v623_v30 = vrot.slane %v3456_v51, 5 }
  0x1c   :  { %425 = vmatpush.msra.mxu2 %v3434_v43  ;;  %v3478_v55 = vld [vmem:[%s6579_s2 + $0xf8] sm:$0xff]  ;;  %v3484_v58 = vld [vmem:[%s6579_s2 + $0x60] sm:$0xff]  ;;  %v3490_v59 = vld [vmem:[%s6579_s2 + $0xf0] sm:$0xff]  ;;  %v215_v12 = vsel %vm202_vm2, %v212_v38, %v214_v4  ;;  %v3101_v29 = vpack.i.bf16 %v214_v4, %v517_v15  ;;  %v624_v31 = vrot.slane %v3467_v53, 5  ;;  %v569_v32 = vrot.slane %v3456_v51, 3 }
  0x1d   :  { %350 = vmatpush.msra.mxu0 %v3444_v47  ;;  %387 = vmatpush.msra.mxu1 %v3478_v55  ;;  %v3499_v63 = vld [vmem:[%s6579_s2 + $0x160] sm:$0xff]  ;;  %v3508_v5 = vld [vmem:[%s6579_s2 + $0x58] sm:$0xff]  ;;  %v3513_v6 = vld [vmem:[%s6579_s2 + $0xe8] sm:$0xff]  ;;  %v3091_v26 = vpack.i.bf16 %v215_v12, %v159_v11  ;;  %v570_v34 = vrot.slane %v3467_v53, 3  ;;  %v572_v35 = vrot.slane %v3520_v8, 3  ;;  %v626_v36 = vrot.slane %v3520_v8, 5 }
  0x1e   :  { %426 = vmatpush.msra.mxu2 %v3449_v48  ;;  %v3525_v9 = vld [vmem:[%s6579_s2 + $0x158] sm:$0xff]  ;;  %v3539_v13 = vld [vmem:[%s6579_s2 + $0x50] sm:$0xff]  ;;  %v3544_v14 = vld [vmem:[%s6579_s2 + $0xe0] sm:$0xff]  ;;  %v521_v41 = vsel %vm146_vm0, %v518_v23, %v520_v25  ;;  %v625_v46 = vsel %vm258_vm1, %v623_v30, %v624_v31  ;;  %v519_v50 = vsel %vm146_vm0, %v516_v62, %v518_v23  ;;  %v6498_v23 = vrot.slane %v3644_v49, 1 }
  0x1f   :  { %351 = vmatpush.msra.mxu0 %v3462_v52  ;;  %388 = vmatpush.msra.mxu1 %v3490_v59  ;;  %v3553_v16 = vld [vmem:[%s6579_s2 + $0x150] sm:$0xff]  ;;  %v3559_v17 = vld [vmem:[%s6579_s2 + $0x1b8] sm:$0xff]  ;;  %v3565_v18 = vld [vmem:[%s6579_s2 + $0x48] sm:$0xff]  ;;  %v573_v61 = vsel %vm202_vm2, %v570_v34, %v572_v35  ;;  %v627_v3 = vsel %vm258_vm1, %v624_v31, %v626_v36  ;;  %v3111_v15 = vpack.i.bf16 %v521_v41, %v625_v46  ;;  %v628_v31 = vrot.slane %v3531_v10, 5 }
  0x20   :  { %427 = vmatpush.msra.mxu2 %v3473_v54  ;;  %v3570_v20 = vld [vmem:[%s6579_s2 + $0xd8] sm:$0xff]  ;;  %471 = vmatpush.msra.mxu3 %v3559_v17  ;;  %v3576_v21 = vld [vmem:[%s6579_s2 + $0x1b0] sm:$0xff]  ;;  %v3584_v27 = vld [vmem:[%s6579_s2 + $0x148] sm:$0xff]  ;;  %v3116_v30 = vpack.i.bf16 %v627_v3, %v573_v61  ;;  %v578_v51 = vrot.slane %v3644_v49, 3  ;;  %v632_v24 = vrot.slane %v3644_v49, 5  ;;  %vm294_vm3 = vcmask 1041408  }
  0x21   :  { %352 = vmatpush.msra.mxu0 %v3484_v58  ;;  %3077 = vrot.lane.b32.xlu2 %v3076_v57, %s3246_s29  ;;  %v3595_v33 = vld [vmem:[%s6579_s2 + $0x1a8] sm:$0xff]  ;;  %v3604_v37 = vld [vmem:[%s6579_s2 + $0x40] sm:$0xff]  ;;  %v3621_v40 = vld [vmem:[%s6579_s2 + $0xd0] sm:$0xff]  ;;  %vm310_vm4 = vcmask 523264   ;;  %vm237_vm5 = vcmask 1043456   ;;  %vm181_vm6 = vcmask 1045504  }
  0x22   :  { %3082 = vrot.lane.b32.xlu0 %v3081_v56, %s3246_s29  ;;  %428 = vmatpush.msra.mxu2 %v3499_v63  ;;  %v3610_v38 = vld [vmem:[%s6576_s23 + $0x60] sm:$0xff]  ;;  %v3632_v44 = vld [vmem:[%s6579_s2 + $0x38] sm:$0xff]  ;;  %v571_v56 = vsel %vm202_vm2, %v569_v32, %v570_v34  ;;  %v3667_v62 = vld [vmem:[%s6579_s2 + $0x30] sm:$0xff]  ;;  %v574_v32 = vrot.slane %v3531_v10, 3  ;;  %v629_v34 = vsel %vm258_vm1, %v626_v36, %v628_v31  ;;  %vm1715_vm7 = vcmask 519168  }
  0x23   :  { %3087 = vrot.lane.b32.xlu1 %v3086_v60, %s3246_s29  ;;  %353 = vmatpush.msra.mxu0 %v3508_v5  ;;  %v3616_v39 = vld [vmem:[%s6579_s2 + $0x140] sm:$0xff]  ;;  %v3654_v57 = vld [vmem:[%s6579_s2 + $0x138] sm:$0xff]  ;;  %v3659_v60 = vld [vmem:[%s6579_s2 + $0xc8] sm:$0xff]  ;;  %v630_v41 = vrot.slane %v3610_v38, 5  ;;  %v6585_v36 = vrot.slane %v3610_v38, 3  ;;  %vm1723_vm8 = vcmask 523268  }
  0x24   :  { %389 = vmatpush.msra.mxu1 %v3513_v6  ;;  %429 = vmatpush.msra.mxu2 %v3525_v9  ;;  %v3637_v45 = vld [vmem:[%s6579_s2 + $0x1a0] sm:$0xff]  ;;  %v3673_v4 = vld [vmem:[%s6579_s2 + $0x198] sm:$0xff]  ;;  %v3679_v11 = vld [vmem:[%s6579_s2 + $0x130] sm:$0xff]  ;;  %v575_v8 = vsel %vm202_vm2, %v572_v35, %v574_v32  ;;  %vm1794_vm9 = vcmask 1040384   ;;  %vm2366_vm10 = vcmask 261120   ;;  %vm2398_vm12 = vcmask 1041409  }
  0x25   :  { %354 = vmatpush.msra.mxu0 %v3539_v13  ;;  %472 = vmatpush.msra.mxu3 %v3576_v21  ;;  %v3684_v12 = vld [vmem:[%s6579_s2 + $0xc0] sm:$0xff]  ;;  %v3706_v46 = vld [vmem:[%s6579_s2 + $0x128] sm:$0xff]  ;;  %v631_v10 = vsel %vm258_vm1, %v628_v31, %v630_v41  ;;  %v3761_v35 = vld [vmem:[%s6579_s2 + $0x118] sm:$0xff]  ;;  %vm2401_vm13 = vcmask 254976  }
  0x26   :  { %390 = vmatpush.msra.mxu1 %v3544_v14  ;;  %430 = vmatpush.msra.mxu2 %v3553_v16  ;;  %v3728_v3 = vld [vmem:[%s6579_s2 + $0x120] sm:$0xff]  ;;  %6586 = vst [vmem:[#allocation15_spill] sm:$0xff] %v3761_v35 }
  0x27   :  { %355 = vmatpush.msra.mxu0 %v3565_v18  ;;  %473 = vmatpush.msra.mxu3 %v3595_v33  ;;  %6584 = vst [vmem:[#allocation14_spill] sm:$0xff] %v3728_v3 }
  0x28   :  { %391 = vmatpush.msra.mxu1 %v3570_v20  ;;  %431 = vmatpush.msra.mxu2 %v3584_v27 }
  0x29   :  { %3092 = vrot.lane.b32.xlu2 %v3091_v26, %s3246_s29  ;;  %356 = vmatpush.msra.mxu0 %v3604_v37  ;;  %v3106_v26 = vpack.i.bf16 %v571_v56, %v519_v50  ;;  %v3713_v50 = vld [vmem:[%s6579_s2 + $0x20] sm:$0xff]  ;;  %v3718_v56 = vld [vmem:[%s6579_s2 + $0xb8] sm:$0xff] }
  0x2a   :  { %3097 = vrot.lane.b32.xlu0 %v3096_v22, %s3246_s29  ;;  %432 = vmatpush.msra.mxu2 %v3616_v39  ;;  %v522_v22 = vrot.slane %v3610_v38, 1 }
  0x2b   :  { %3102 = vrot.lane.b32.xlu1 %v3101_v29, %s3246_s29  ;;  %392 = vmatpush.msra.mxu1 %v3621_v40  ;;  %v3693_v29 = vld [vmem:[%s6579_s2 + $0x28] sm:$0xff] }
  0x2c   :  { %357 = vmatpush.msra.mxu0 %v3632_v44  ;;  %474 = vmatpush.msra.mxu3 %v3637_v45  ;;  %v525_v61 = vsel %vm146_vm0, %v522_v22, %v6498_v23  ;;  %v3745_v23 = vld [vmem:[%s6579_s2 + $0xb0] sm:$0xff] }
  0x2d   :  { %433 = vmatpush.msra.mxu2 %v3654_v57  ;;  %393 = vmatpush.msra.mxu1 %v3659_v60  ;;  %v3126_v31 = vpack.i.bf16 %v525_v61, %v629_v34  ;;  %v633_v34 = vsel %vm258_vm1, %v630_v41, %v632_v24  ;;  %v3803_v41 = vld [vmem:[%s6579_s2 + $0xa8] sm:$0xff] }
  0x2e   :  { %358 = vmatpush.msra.mxu0 %v3667_v62  ;;  %475 = vmatpush.msra.mxu3 %v3673_v4 }
  0x2f   :  { %434 = vmatpush.msra.mxu2 %v3679_v11  ;;  %394 = vmatpush.msra.mxu1 %v3684_v12 }
  0x30   :  { %359 = vmatpush.msra.mxu0 %v3693_v29 }
  0x31   :  { %3107 = vrot.lane.b32.xlu2 %v3106_v26, %s3246_s29  ;;  %435 = vmatpush.msra.mxu2 %v3706_v46  ;;  %v3740_v26 = vld [vmem:[%s6579_s2 + $0x18] sm:$0xff] }
  0x32   :  { %3112 = vrot.lane.b32.xlu0 %v3111_v15, %s3246_s29  ;;  %v523_v15 = vsel %vm146_vm0, %v520_v25, %v522_v22  ;;  %v3754_v25 = vld [vmem:[%s6576_s23 + $0x70] sm:$0xff]  ;;  %360 = vmatpush.msra.mxu0 %v3713_v50 }
  0x33   :  { %3117 = vrot.lane.b32.xlu1 %v3116_v30, %s3246_s29  ;;  %v577_v30 = vsel %vm202_vm2, %v574_v32, %v6585_v36  ;;  %395 = vmatpush.msra.mxu1 %v3718_v56  ;;  %v3767_v22 = vld [vmem:[%s6579_s2 + $0x10] sm:$0xff]  ;;  %v3121_v32 = vpack.i.bf16 %v575_v8, %v523_v15  ;;  %v6510_v28 = vrot.slane %v3754_v25, 3  ;;  %v634_v8 = vrot.slane %v3754_v25, 5 }
  0x34   :  { %436 = vmatpush.msra.mxu2 %v3728_v3  ;;  %6587 = vst [vmem:[#allocation16_spill] sm:$0xff] %v3767_v22  ;;  %361 = vmatpush.msra.mxu0 %v3740_v26  ;;  %v3774_v36 = vld [vmem:[%s6579_s2 + $0x110] sm:$0xff]  ;;  %v3131_v53 = vpack.i.bf16 %v631_v10, %v577_v30  ;;  %v526_v61 = vrot.slane %v3754_v25, 1 }
  0x35   :  { %396 = vmatpush.msra.mxu1 %v3745_v23  ;;  %6588 = vst [vmem:[#allocation17_spill] sm:$0xff] %v3774_v36  ;;  %v581_v10 = vsel %vm202_vm2, %v578_v51, %v6510_v28  ;;  %v635_v15 = vsel %vm258_vm1, %v632_v24, %v634_v8  ;;  %v3808_v24 = vld [vmem:[%s6579_s2 + $0x108] sm:$0xff]  ;;  %v295_v28 = vrot.slane %v3360_v0, 6 }
  0x36   :  { %437 = vmatpush.msra.mxu2 %v3761_v35  ;;  %362 = vmatpush.msra.mxu0 %v3767_v22  ;;  %v3141_v30 = vpack.i.bf16 %v581_v10, %v633_v34  ;;  %v3146_v35 = vpack.i.bf16 %v635_v15, %v526_v61  ;;  %6590 = vst [vmem:[#allocation19_spill] sm:$0xff] %v3808_v24  ;;  %v3839_v10 = vld [vmem:[%s6579_s2 + $0x188] sm:$0xff]  ;;  %v3846_v34 = vld [vmem:[%s6579_s2 + $0x98] sm:$0xff]  ;;  %v3851_v15 = vld [vmem:[%s6579_s2 + $0x180] sm:$0xff] }
  0x37   :  { %397 = vmatpush.msra.mxu1 %v3803_v41  ;;  %v3876_v22 = vld [vmem:[%s6579_s2 + $0x88] sm:$0xff] }
  0x38   :  { %438 = vmatpush.msra.mxu2 %v3774_v36 }
  0x39   :  { %3122 = vrot.lane.b32.xlu2 %v3121_v32, %s3246_s29  ;;  %v3825_v32 = vld [vmem:[%s6579_s2 + $0xa0] sm:$0xff] }
  0x3a   :  { %3127 = vrot.lane.b32.xlu0 %v3126_v31, %s3246_s29  ;;  %v3820_v31 = vld [vmem:[%s6579_s2] sm:$0xff]  ;;  %439 = vmatpush.msra.mxu2 %v3808_v24 }
  0x3b   :  { %3132 = vrot.lane.b32.xlu1 %v3131_v53, %s3246_s29  ;;  %v3798_v53 = vld [vmem:[%s6579_s2 + $0x8] sm:$0xff]  ;;  %6591 = vst [vmem:[#allocation20_spill] sm:$0xff] %v3820_v31  ;;  %398 = vmatpush.msra.mxu1 %v3825_v32 }
  0x3c   :  { %6589 = vst [vmem:[#allocation18_spill] sm:$0xff] %v3798_v53  ;;  %363 = vmatpush.msra.mxu0 %v3798_v53  ;;  %v6594_v53 = vrot.slane %v3610_v38, 3 }
  0x3d   :  { %399 = vmatpush.msra.mxu1 %v3846_v34 }
  0x3e   :  { %364 = vmatpush.msra.mxu0 %v3820_v31  ;;  %v6593_v31 = vrot.slane %v3644_v49, 1  ;;  %v579_v3 = vsel %vm202_vm2, %v6594_v53, %v578_v51 }
  0x40   :  { %746 = vmatpush.msrb.mxu0 %v3478_v55  ;;  %v527_v36 = vsel %vm146_vm0, %v6593_v31, %v526_v61  ;;  %v6605_v61 = vld [vmem:[#allocation9_spill] sm:$0xff] }
  0x41   :  { %v3136_v55 = vpack.i.bf16 %v579_v3, %v527_v36  ;;  %v185_v36 = vrot.slane %v3370_v2, 2  ;;  %v306_v53 = vrot.slane %v6605_v61, 6 }
  0x42   :  { %3142 = vrot.lane.b32.xlu0 %v3141_v30, %s3246_s29  ;;  %v3856_v30 = vld [vmem:[%s6579_s2 + $0x90] sm:$0xff]  ;;  %747 = vmatpush.msrb.mxu0 %v3490_v59 }
  0x43   :  { %3147 = vrot.lane.b32.xlu1 %v3146_v35, %s3246_s29  ;;  %v3815_v35 = vld [vmem:[%s6579_s2 + $0x190] sm:$0xff]  ;;  %400 = vmatpush.msra.mxu1 %v3856_v30 }
  0x44   :  { %476 = vmatpush.msra.mxu3 %v3815_v35  ;;  %3137 = vrot.lane.b32.xlu2 %v3136_v55, %s3246_s29  ;;  %v73_v55 = vld [vmem:[%s6576_s23 + $0x38] sm:$0x1] }
  0x45   :  { %401 = vmatpush.msra.mxu1 %v3876_v22  ;;  %748 = vmatpush.msrb.mxu0 %v3513_v6 }
  0x46   :  { %477 = vmatpush.msra.mxu3 %v3839_v10 }
  0x47   :  { %749 = vmatpush.msrb.mxu0 %v3544_v14  ;;  %v6596_v14 = vld [vmem:[#allocation16_spill] sm:$0xff] }
  0x48   :  { %478 = vmatpush.msra.mxu3 %v3851_v15 }
  0x49   :  { %750 = vmatpush.msrb.mxu0 %v3570_v20 }
  0x4a   :  { %648 = vrot.lane.b32.xlu0 %v634_v8, %s3246_s29  ;;  %v3832_v8 = vld [vmem:[%s6579_s2 + $0x100] sm:$0xff]  ;;  %708 = vmatpush.msrb.mxu3 %v3429_v42  ;;  %v298_v42 = vrot.slane %v3370_v2, 6 }
  0x4b   :  { %6592 = vst [vmem:[#allocation21_spill] sm:$0xff] %v3832_v8  ;;  %440 = vmatpush.msra.mxu2 %v3832_v8  ;;  %v296_v8 = vrot.slane %v3365_v1, 6  ;;  %751 = vmatpush.msrb.mxu0 %v3621_v40  ;;  %v6599_v40 = vld [vmem:[#allocation18_spill] sm:$0xff] }
  0x4c   :  { %709 = vmatpush.msrb.mxu3 %v3444_v47  ;;  %v300_v47 = vrot.slane %v3379_v7, 6 }
  0x4d   :  { %v297_v24 = vsel %vm294_vm3, %v295_v28, %v296_v8  ;;  %830 = vmatpush.msrb.mxu2 %v3559_v17  ;;  %v3885_v28 = vld [vmem:[%s6579_s2 + $0x80] sm:$0xff]  ;;  %v299_v51 = vsel %vm294_vm3, %v296_v8, %v298_v42  ;;  %752 = vmatpush.msrb.mxu0 %v3659_v60  ;;  %v6601_v60 = vld [vmem:[#allocation17_spill] sm:$0xff] }
  0x4e   :  { %3026 = vmatmul.msk.f32.vlgmr.msra.gmra.mxu3 %vm310_vm4, %v297_v24  ;;  %402 = vmatpush.msra.mxu1 %v3885_v28 }
  0x4f   :  { %831 = vmatpush.msrb.mxu2 %v3576_v21  ;;  %710 = vmatpush.msrb.mxu3 %v3462_v52  ;;  %v238_v52 = vrot.slane %v3360_v0, 4  ;;  %v182_v21 = vrot.slane %v3360_v0, 2 }
  0x50   :  { %784 = vmatpush.msrb.mxu1 %v3434_v43  ;;  %v6595_v43 = vrot.slane %v3754_v25, 3  ;;  %753 = vmatpush.msrb.mxu0 %v3684_v12 }
  0x51   :  { %832 = vmatpush.msrb.mxu2 %v3595_v33  ;;  %711 = vmatpush.msrb.mxu3 %v3484_v58  ;;  %v302_v58 = vrot.slane %v3394_v19, 6  ;;  %v241_v33 = vrot.slane %v3370_v2, 4 }
  0x52   :  { %785 = vmatpush.msrb.mxu1 %v3449_v48  ;;  %594 = vrot.lane.b32.xlu2 %v6595_v43, %s3246_s29  ;;  %v301_v48 = vsel %vm294_vm3, %v298_v42, %v300_v47  ;;  %v245_v42 = vrot.slane %v3394_v19, 4 }
  0x53   :  { %712 = vmatpush.msrb.mxu3 %v3508_v5  ;;  %833 = vmatpush.msrb.mxu2 %v3637_v45  ;;  %v303_v59 = vsel %vm294_vm3, %v300_v47, %v302_v58 }
  0x54   :  { %786 = vmatpush.msrb.mxu1 %v3473_v54  ;;  %754 = vmatpush.msrb.mxu0 %v3718_v56  ;;  %v239_v54 = vrot.slane %v3365_v1, 4  ;;  %v243_v56 = vrot.slane %v3379_v7, 4 }
  0x55   :  { %713 = vmatpush.msrb.mxu3 %v3539_v13  ;;  %834 = vmatpush.msrb.mxu2 %v3673_v4 }
  0x56   :  { %3027 = vmatmul.msk.f32.gmra.mxu3 %vm310_vm4, %v299_v51  ;;  %787 = vmatpush.msrb.mxu1 %v3499_v63  ;;  %v240_v5 = vsel %vm237_vm5, %v238_v52, %v239_v54  ;;  %v242_v4 = vsel %vm237_vm5, %v239_v54, %v241_v33  ;;  %v308_v51 = vrot.slane %v73_v55, 6  ;;  %v6609_v55 = vld [vmem:[#allocation13_spill] sm:$0xff] }
  0x57   :  { %714 = vmatpush.msrb.mxu3 %v3565_v18  ;;  %755 = vmatpush.msrb.mxu0 %v3745_v23 }
  0x58   :  { %788 = vmatpush.msrb.mxu1 %v3525_v9  ;;  %835 = vmatpush.msrb.mxu2 %v3815_v35 }
  0x59   :  { %715 = vmatpush.msrb.mxu3 %v3604_v37  ;;  %756 = vmatpush.msrb.mxu0 %v3803_v41  ;;  %v6598_v37 = vld [vmem:[#allocation8_spill] sm:$0xff] }
  0x5a   :  { %789 = vmatpush.msrb.mxu1 %v3553_v16  ;;  %836 = vmatpush.msrb.mxu2 %v3839_v10  ;;  %v6597_v16 = vld [vmem:[#allocation14_spill] sm:$0xff] }
  0x5b   :  { %716 = vmatpush.msrb.mxu3 %v3632_v44  ;;  %757 = vmatpush.msrb.mxu0 %v3825_v32  ;;  %v6600_v44 = vld [vmem:[#allocation15_spill] sm:$0xff] }
  0x5c   :  { %790 = vmatpush.msrb.mxu1 %v3584_v27  ;;  %837 = vmatpush.msrb.mxu2 %v3851_v15  ;;  %v183_v27 = vrot.slane %v3365_v1, 2 }
  0x5d   :  { %717 = vmatpush.msrb.mxu3 %v3667_v62  ;;  %758 = vmatpush.msrb.mxu0 %v3846_v34 }
  0x5e   :  { %3028 = vmatmul.msk.f32.gmra.mxu3 %vm310_vm4, %v301_v48  ;;  %791 = vmatpush.msrb.mxu1 %v3616_v39  ;;  %v304_v39 = vrot.slane %v6598_v37, 6  ;;  %v184_v62 = vsel %vm181_vm6, %v182_v21, %v183_v27  ;;  %v186_v8 = vsel %vm181_vm6, %v183_v27, %v185_v36  ;;  %v309_v48 = vsel %vm294_vm3, %v306_v53, %v308_v51 }
  0x5f   :  { %718 = vmatpush.msrb.mxu3 %v3693_v29  ;;  %759 = vmatpush.msrb.mxu0 %v3856_v30 }
  0x60   :  { %792 = vmatpush.msrb.mxu1 %v3654_v57  ;;  %v305_v57 = vsel %vm294_vm3, %v302_v58, %v304_v39  ;;  %v307_v31 = vsel %vm294_vm3, %v304_v39, %v306_v53  ;;  %v6608_v53 = vld [vmem:[#allocation12_spill] sm:$0xff] }
  0x61   :  { %719 = vmatpush.msrb.mxu3 %v3713_v50  ;;  %760 = vmatpush.msrb.mxu0 %v3876_v22  ;;  %v6604_v22 = vld [vmem:[#allocation21_spill] sm:$0xff] }
  0x62   :  { %793 = vmatpush.msrb.mxu1 %v3679_v11  ;;  %v6602_v11 = vld [vmem:[#allocation20_spill] sm:$0xff] }
  0x63   :  { %720 = vmatpush.msrb.mxu3 %v3740_v26  ;;  %761 = vmatpush.msrb.mxu0 %v3885_v28  ;;  %v187_v28 = vrot.slane %v3379_v7, 2 }
  0x64   :  { %794 = vmatpush.msrb.mxu1 %v3706_v46  ;;  %v6603_v46 = vld [vmem:[#allocation19_spill] sm:$0xff] }
  0x65   :  { %721 = vmatpush.msrb.mxu3 %v6596_v14  ;;  %v188_v58 = vsel %vm181_vm6, %v185_v36, %v187_v28  ;;  %v193_v36 = vrot.slane %v6605_v61, 2 }
  0x66   :  { %3029 = vmatmul.msk.f32.gmra.mxu3 %vm310_vm4, %v303_v59  ;;  %795 = vmatpush.msrb.mxu1 %v6597_v16  ;;  %v246_v59 = vsel %vm237_vm5, %v243_v56, %v245_v42  ;;  %v189_v16 = vrot.slane %v3394_v19, 2 }
  0x67   :  { %722 = vmatpush.msrb.mxu3 %v6599_v40 }
  0x68   :  { %796 = vmatpush.msrb.mxu1 %v6600_v44  ;;  %v190_v40 = vsel %vm181_vm6, %v187_v28, %v189_v16 }
  0x69   :  { %723 = vmatpush.msrb.mxu3 %v6602_v11 }
  0x6a   :  { %797 = vmatpush.msrb.mxu1 %v6601_v60  ;;  %v191_v60 = vrot.slane %v6598_v37, 2 }
  0x6c   :  { %798 = vmatpush.msrb.mxu1 %v6603_v46 }
  0x6e   :  { %3030 = vmatmul.msk.f32.gmra.mxu3 %vm310_vm4, %v305_v57  ;;  %799 = vmatpush.msrb.mxu1 %v6604_v22 }
  0x73   :  { %v3950_v20 = vpop.permute.xlu2 %3072 }
  0x74   :  { %v3074_v52 = vunpack.i.l.bf16 %v3950_v20 }
  0x76   :  { %3031 = vmatmul.msk.f32.gmra.mxu3 %vm310_vm4, %v307_v31 }
  0x7b   :  { %v3078_v24 = vpop.permute.xlu2 %3077 }
  0x7c   :  { %v3079_v47 = vunpack.i.l.bf16 %v3078_v24 }
  0x7e   :  { %3032 = vmatmul.msk.f32.gmra.mxu3 %vm310_vm4, %v309_v48 }
  0x83   :  { %v3988_v43 = vpop.permute.xlu2 %3092 }
  0x84   :  { %v3053_v63 = vpop.permute.xlu0 %3052  ;;  %v3095_v31 = vunpack.i.h.bf16 %v3988_v43 }
  0x85   :  { %v3055_v6 = vunpack.i.h.bf16 %v3053_v63  ;;  %v3054_v9 = vunpack.i.l.bf16 %v3053_v63  ;;  %v3063_v13 = vpop.permute.xlu1 %3062 }
  0x86   :  { %v3064_v45 = vunpack.i.l.bf16 %v3063_v13  ;;  %v3065_v32 = vunpack.i.h.bf16 %v3063_v13  ;;  %v320_v13 = vsel %vm310_vm4, %v188_v58, %v3074_v52 }
  0x87   :  { %v311_v17 = vsel %vm310_vm4, %v3360_v0, %v3055_v6  ;;  %v325_v18 = vsel %vm310_vm4, %v240_v5, %v3054_v9  ;;  %v314_v5 = vsel %vm310_vm4, %v3379_v7, %v3079_v47  ;;  %v247_v6 = vrot.slane %v6598_v37, 4 }
  0x88   :  { %365 = vmatmul.f32.vlgmr.msra.gmra.mxu0 %v311_v17  ;;  %441 = vmatmul.f32.vlgmr.msra.gmra.mxu2 %v325_v18  ;;  %v312_v50 = vsel %vm310_vm4, %v3365_v1, %v3064_v45  ;;  %v244_v1 = vsel %vm237_vm5, %v241_v33, %v243_v56  ;;  %v319_v30 = vsel %vm310_vm4, %v186_v8, %v3065_v32  ;;  %v6606_v17 = vld [vmem:[#allocation10_spill] sm:$0xff]  ;;  %v3080_v33 = vunpack.i.h.bf16 %v3078_v24 }
  0x89   :  { %v248_v27 = vsel %vm237_vm5, %v245_v42, %v247_v6  ;;  %v194_v32 = vsel %vm181_vm6, %v191_v60, %v193_v36  ;;  %v4049_v42 = vld [vmem:[%s6610_s0 + $0x78] sm:$0xff] }
  0x8a   :  { %1098 = vmatpush.msra.mxu3 %v4049_v42 }
  0x8b   :  { %v4007_v21 = vpop.permute.xlu2 %3107 }
  0x8c   :  { %v3058_v0 = vpop.permute.xlu0 %3057  ;;  %v3109_v44 = vunpack.i.l.bf16 %v4007_v21  ;;  %v3110_v47 = vunpack.i.h.bf16 %v4007_v21 }
  0x8d   :  { %v3060_v12 = vunpack.i.h.bf16 %v3058_v0  ;;  %v3059_v23 = vunpack.i.l.bf16 %v3058_v0  ;;  %v3068_v29 = vpop.permute.xlu1 %3067  ;;  %v249_v0 = vrot.slane %v6605_v61, 4 }
  0x8e   :  { %v3069_v41 = vunpack.i.l.bf16 %v3068_v29  ;;  %v3070_v35 = vunpack.i.h.bf16 %v3068_v29  ;;  %v192_v29 = vsel %vm181_vm6, %v189_v16, %v191_v60  ;;  %v4077_v16 = vld [vmem:[%s6610_s0 + $0xf8] sm:$0xff]  ;;  %v554_v60 = vrot.slane %v6609_v55, 2 }
  0x8f   :  { %v318_v3 = vsel %vm310_vm4, %v184_v62, %v3059_v23  ;;  %v326_v26 = vsel %vm310_vm4, %v242_v4, %v3060_v12  ;;  %v321_v62 = vsel %vm310_vm4, %v190_v40, %v3080_v33  ;;  %v6607_v4 = vld [vmem:[#allocation11_spill] sm:$0xff]  ;;  %v250_v46 = vsel %vm237_vm5, %v247_v6, %v249_v0  ;;  %1133 = vmatpush.msra.mxu0 %v4077_v16 }
  0x90   :  { %403 = vmatmul.f32.vlgmr.msra.gmra.mxu1 %v318_v3  ;;  %444 = vmatmul.f32.gmra.mxu2 %v326_v26  ;;  %v327_v10 = vsel %vm310_vm4, %v244_v1, %v3069_v41  ;;  %v313_v15 = vsel %vm310_vm4, %v3370_v2, %v3070_v35  ;;  %v3075_v2 = vunpack.i.h.bf16 %v3950_v20  ;;  %v674_v11 = vsel %vm310_vm4, %v6607_v4, %v3109_v44  ;;  %v4093_v33 = vld [vmem:[%s6610_s0 + $0x60] sm:$0xff] }
  0x91   :  { %368 = vmatmul.f32.gmra.mxu0 %v312_v50  ;;  %v604_v6 = vrot.slane %v6607_v4, 4 }
  0x92   :  { %v328_v14 = vsel %vm310_vm4, %v246_v59, %v3075_v2 }
  0x93   :  { %v4033_v35 = vpop.permute.xlu2 %3122 }
  0x94   :  { %v3083_v54 = vpop.permute.xlu0 %3082  ;;  %v3124_v8 = vunpack.i.l.bf16 %v4033_v35 }
  0x95   :  { %v3088_v34 = vpop.permute.xlu1 %3087  ;;  %v3084_v20 = vunpack.i.l.bf16 %v3083_v54  ;;  %v3085_v7 = vunpack.i.h.bf16 %v3083_v54 }
  0x96   :  { %v3090_v12 = vunpack.i.h.bf16 %v3088_v34  ;;  %v3089_v23 = vunpack.i.l.bf16 %v3088_v34  ;;  %v323_v34 = vsel %vm310_vm4, %v194_v32, %v3095_v31  ;;  %v676_v28 = vsel %vm310_vm4, %v6609_v55, %v3124_v8  ;;  %v4156_v31 = vld [vmem:[%s6610_s0 + $0x48] sm:$0xff]  ;;  %v4161_v32 = vld [vmem:[%s6610_s0 + $0xd8] sm:$0xff]  ;;  %v4166_v8 = vld [vmem:[%s6610_s0 + $0x40] sm:$0xff] }
  0x97   :  { %v329_v45 = vsel %vm310_vm4, %v248_v27, %v3084_v20  ;;  %v315_v57 = vsel %vm310_vm4, %v3394_v19, %v3085_v7  ;;  %v3094_v19 = vunpack.i.l.bf16 %v3988_v43  ;;  %v659_v43 = vrot.slane %v6607_v4, 6  ;;  %v4085_v20 = vld [vmem:[%s6610_s0 + $0x68] sm:$0xff] }
  0x98   :  { %406 = vmatmul.f32.gmra.mxu1 %v319_v30  ;;  %447 = vmatmul.f32.gmra.mxu2 %v327_v10  ;;  %v322_v3 = vsel %vm310_vm4, %v192_v29, %v3089_v23  ;;  %v330_v26 = vsel %vm310_vm4, %v250_v46, %v3090_v12  ;;  %v550_v30 = vrot.slane %v6607_v4, 2  ;;  %v4111_v4 = vld [vmem:[%s6610_s0 + $0xf0] sm:$0xff]  ;;  %v663_v23 = vrot.slane %v6609_v55, 6  ;;  %v4123_v29 = vld [vmem:[%s6610_s0 + $0xe8] sm:$0xff] }
  0x99   :  { %371 = vmatmul.f32.gmra.mxu0 %v313_v15  ;;  %v316_v22 = vsel %vm310_vm4, %v6598_v37, %v3094_v19  ;;  %v549_v15 = vrot.slane %v6606_v17, 2  ;;  %v4128_v46 = vld [vmem:[%s6610_s0 + $0x50] sm:$0xff] }
  0x9a   :  { %1134 = vmatpush.msra.mxu0 %v4111_v4 }
  0x9b   :  { %v551_v48 = vsel %vm181_vm6, %v549_v15, %v550_v30 }
  0x9c   :  { %v3098_v39 = vpop.permute.xlu0 %3097  ;;  %1135 = vmatpush.msra.mxu0 %v4123_v29 }
  0x9d   :  { %v3996_v63 = vpop.permute.xlu1 %3102  ;;  %v3099_v24 = vunpack.i.l.bf16 %v3098_v39  ;;  %v3100_v1 = vunpack.i.h.bf16 %v3098_v39 }
  0x9e   :  { %v3104_v9 = vunpack.i.l.bf16 %v3996_v63  ;;  %v3105_v51 = vunpack.i.h.bf16 %v3996_v63  ;;  %v680_v63 = vsel %vm310_vm4, %v551_v48, %v3110_v47  ;;  %v4202_v47 = vld [vmem:[%s6610_s0 + $0x1f8] sm:$0xff]  ;;  %v4207_v48 = vld [vmem:[%s6610_s0 + $0x170] sm:$0xff] }
  0x9f   :  { %v331_v37 = vsel %vm310_vm4, %v249_v0, %v3099_v24  ;;  %v317_v10 = vsel %vm310_vm4, %v6605_v61, %v3100_v1  ;;  %v658_v61 = vrot.slane %v6606_v17, 6  ;;  %v4104_v0 = vpop.permute.xlu2 %3137  ;;  %v556_v1 = vrot.slane %v3610_v38, 2  ;;  %1203 = vmatpush.msra.mxu2 %v4202_v47 }
  0xa0   :  { %409 = vmatmul.f32.gmra.mxu1 %v320_v13  ;;  %450 = vmatmul.f32.gmra.mxu2 %v328_v14  ;;  %v673_v18 = vsel %vm310_vm4, %v6606_v17, %v3104_v9  ;;  %v324_v58 = vsel %vm310_vm4, %v193_v36, %v3105_v51  ;;  %v552_v9 = vrot.slane %v6608_v53, 2  ;;  %v4072_v14 = vld [vmem:[%s6610_s0 + $0x70] sm:$0xff]  ;;  %v4189_v51 = vld [vmem:[%s6610_s0 + $0x178] sm:$0xff] }
  0xa1   :  { %374 = vmatmul.f32.gmra.mxu0 %v314_v5  ;;  %724 = vmatmul.f32.vlgmr.msrb.gmra.mxu3 %v673_v18  ;;  %v660_v59 = vsel %vm294_vm3, %v658_v61, %v659_v43  ;;  %v603_v5 = vrot.slane %v6606_v17, 4  ;;  %v661_v18 = vrot.slane %v6608_v53, 6  ;;  %v557_v61 = vsel %vm181_vm6, %v554_v60, %v556_v1 }
  0xa2   :  { %1099 = vmatpush.msra.mxu3 %v4072_v14  ;;  %v553_v27 = vsel %vm181_vm6, %v550_v30, %v552_v9  ;;  %1168 = vmatpush.msra.mxu1 %v4189_v51 }
  0xa3   :  { %v605_v21 = vsel %vm237_vm5, %v603_v5, %v604_v6  ;;  %v662_v44 = vsel %vm294_vm3, %v659_v43, %v661_v18  ;;  %v4196_v43 = vld [vmem:[%s6610_s0 + $0xc8] sm:$0xff] }
  0xa4   :  { %v4023_v50 = vpop.permute.xlu0 %3112  ;;  %1100 = vmatpush.msra.mxu3 %v4085_v20  ;;  %v4230_v5 = vld [vmem:[%s6610_s0 + $0x28] sm:$0xff]  ;;  %1169 = vmatpush.msra.mxu1 %v4207_v48 }
  0xa5   :  { %v3115_v56 = vunpack.i.h.bf16 %v4023_v50  ;;  %v3118_v52 = vpop.permute.xlu1 %3117  ;;  %v3114_v17 = vunpack.i.l.bf16 %v4023_v50  ;;  %v3125_v50 = vunpack.i.h.bf16 %v4033_v35  ;;  %v608_v35 = vrot.slane %v6609_v55, 4 }
  0xa6   :  { %v3119_v7 = vunpack.i.l.bf16 %v3118_v52  ;;  %1101 = vmatpush.msra.mxu3 %v4093_v33  ;;  %v3120_v12 = vunpack.i.h.bf16 %v3118_v52  ;;  %v4218_v52 = vld [vmem:[%s6610_s0 + $0x1f0] sm:$0xff] }
  0xa7   :  { %v675_v41 = vsel %vm310_vm4, %v6608_v53, %v3115_v56  ;;  %v687_v40 = vsel %vm310_vm4, %v605_v21, %v3114_v17  ;;  %1204 = vmatpush.msra.mxu2 %v4218_v52 }
  0xa8   :  { %412 = vmatmul.f32.gmra.mxu1 %v321_v62  ;;  %453 = vmatmul.f32.gmra.mxu2 %v329_v45  ;;  %v681_v45 = vsel %vm310_vm4, %v553_v27, %v3119_v7  ;;  %v3139_v62 = vunpack.i.l.bf16 %v4104_v0 }
  0xa9   :  { %377 = vmatmul.f32.gmra.mxu0 %v315_v57  ;;  %727 = vmatmul.f32.gmra.mxu3 %v674_v11  ;;  %v606_v57 = vrot.slane %v6608_v53, 4  ;;  %v4116_v11 = vld [vmem:[%s6610_s0 + $0x58] sm:$0xff]  ;;  %v664_v53 = vsel %vm294_vm3, %v661_v18, %v663_v23  ;;  %v3140_v18 = vunpack.i.h.bf16 %v4104_v0 }
  0xaa   :  { %1102 = vmatpush.msra.mxu3 %v4116_v11  ;;  %v678_v56 = vsel %vm310_vm4, %v3644_v49, %v3139_v62 }
  0xab   :  { %v607_v19 = vsel %vm237_vm5, %v604_v6, %v606_v57  ;;  %v609_v30 = vsel %vm237_vm5, %v606_v57, %v608_v35  ;;  %v558_v6 = vrot.slane %v3644_v49, 2 }
  0xac   :  { %v4057_v2 = vpop.permute.xlu0 %3127  ;;  %1103 = vmatpush.msra.mxu3 %v4128_v46  ;;  %v688_v36 = vsel %vm310_vm4, %v607_v19, %v3120_v12 }
  0xad   :  { %v3130_v54 = vunpack.i.h.bf16 %v4057_v2  ;;  %v4095_v39 = vpop.permute.xlu1 %3132  ;;  %v559_v21 = vsel %vm181_vm6, %v556_v1, %v558_v6  ;;  %v4308_v1 = vld [vmem:[%s6610_s0 + $0x158] sm:$0xff] }
  0xae   :  { %1104 = vmatpush.msra.mxu3 %v4156_v31  ;;  %v3134_v55 = vunpack.i.l.bf16 %v4095_v39 }
  0xaf   :  { %v677_v13 = vsel %vm310_vm4, %v3610_v38, %v3130_v54 }
  0xb0   :  { %415 = vmatmul.f32.gmra.mxu1 %v322_v3  ;;  %456 = vmatmul.f32.gmra.mxu2 %v330_v26  ;;  %v555_v3 = vsel %vm181_vm6, %v552_v9, %v554_v60  ;;  %v4139_v26 = vld [vmem:[%s6610_s0 + $0xe0] sm:$0xff]  ;;  %v669_v60 = vrot.slane %v3754_v25, 6 }
  0xb1   :  { %380 = vmatmul.f32.gmra.mxu0 %v316_v22  ;;  %730 = vmatmul.f32.gmra.mxu3 %v675_v41  ;;  %v682_v24 = vsel %vm310_vm4, %v555_v3, %v3125_v50  ;;  %v4238_v9 = vld [vmem:[%s6610_s0 + $0xc0] sm:$0xff]  ;;  %v4268_v50 = vld [vmem:[%s6610_s0 + $0x1e8] sm:$0xff] }
  0xb2   :  { %1136 = vmatpush.msra.mxu0 %v4139_v26  ;;  %1105 = vmatpush.msra.mxu3 %v4166_v8 }
  0xb3   :  { %1205 = vmatpush.msra.mxu2 %v4268_v50 }
  0xb4   :  { %1137 = vmatpush.msra.mxu0 %v4161_v32 }
  0xb5   :  { %v4142_v22 = vpop.permute.xlu1 %3147 }
  0xb6   :  { %v3149_v41 = vunpack.i.l.bf16 %v4142_v22 }
  0xb8   :  { %418 = vmatmul.f32.gmra.mxu1 %v323_v34  ;;  %459 = vmatmul.f32.gmra.mxu2 %v331_v37  ;;  %v3129_v37 = vunpack.i.l.bf16 %v4057_v2  ;;  %v4174_v34 = vld [vmem:[%s6610_s0 + $0xd0] sm:$0xff]  ;;  %v679_v15 = vsel %vm310_vm4, %v3754_v25, %v3149_v41  ;;  %v4285_v41 = vld [vmem:[%s6610_s0 + $0x20] sm:$0xff] }
  0xb9   :  { %383 = vmatmul.f32.gmra.mxu0 %v317_v10  ;;  %733 = vmatmul.f32.gmra.mxu3 %v676_v28  ;;  %v665_v10 = vrot.slane %v3610_v38, 6  ;;  %v4184_v28 = vld [vmem:[%s6610_s0 + $0x38] sm:$0xff]  ;;  %v4213_v2 = vld [vmem:[%s6610_s0 + $0x30] sm:$0xff] }
  0xba   :  { %1138 = vmatpush.msra.mxu0 %v4174_v34  ;;  %v689_v54 = vsel %vm310_vm4, %v609_v30, %v3129_v37  ;;  %1106 = vmatpush.msra.mxu3 %v4184_v28  ;;  %v3150_v37 = vunpack.i.h.bf16 %v4142_v22  ;;  %v4324_v22 = vld [vmem:[%s6610_s0 + $0x18] sm:$0xff] }
  0xbc   :  { %1139 = vmatpush.msra.mxu0 %v4196_v43  ;;  %1107 = vmatpush.msra.mxu3 %v4213_v2 }
  0xbe   :  { %1108 = vmatpush.msra.mxu3 %v4230_v5  ;;  %1140 = vmatpush.msra.mxu0 %v4238_v9 }
  0xc0   :  { %421 = vmatmul.f32.gmra.mxu1 %v324_v58  ;;  %3033 = vmatmul.msk.f32.vlgmr.msrb.gmra.mxu2 %vm310_vm4, %v660_v59  ;;  %v666_v58 = vsel %vm294_vm3, %v663_v23, %v665_v10  ;;  %v683_v59 = vsel %vm310_vm4, %v557_v61, %v3134_v55  ;;  %v595_v55 = vpop.permute.xlu2 %594  ;;  %v4329_v61 = vld [vmem:[%s6610_s0 + $0xa8] sm:$0xff] }
  0xc1   :  { %762 = vmatmul.f32.vlgmr.msrb.gmra.mxu0 %v680_v63  ;;  %736 = vmatmul.f32.gmra.mxu3 %v677_v13  ;;  %v610_v63 = vrot.slane %v3610_v38, 4  ;;  %v3135_v38 = vunpack.i.h.bf16 %v4095_v39  ;;  %v667_v13 = vrot.slane %v3644_v49, 6  ;;  %v684_v39 = vsel %vm310_vm4, %v559_v21, %v3140_v18  ;;  %v4365_v18 = vld [vmem:[%s6610_s0 + $0x140] sm:$0xff]  ;;  %v4371_v21 = vld [vmem:[%s6610_s0 + $0x10] sm:$0xff] }
  0xc2   :  { %1109 = vmatpush.msra.mxu3 %v4285_v41 }
  0xc3   :  { %v611_v17 = vsel %vm237_vm5, %v608_v35, %v610_v63  ;;  %v668_v27 = vsel %vm294_vm3, %v665_v10, %v667_v13  ;;  %v670_v19 = vsel %vm294_vm3, %v667_v13, %v669_v60  ;;  %v4302_v35 = vld [vmem:[%s6610_s0 + $0xb0] sm:$0xff] }
  0xc4   :  { %v690_v7 = vsel %vm310_vm4, %v611_v17, %v3135_v38  ;;  %1110 = vmatpush.msra.mxu3 %v4324_v22  ;;  %v4359_v17 = vld [vmem:[%s6610_s0 + $0x1c8] sm:$0xff] }
  0xc6   :  { %1111 = vmatpush.msra.mxu3 %v4371_v21 }
  0xc8   :  { %800 = vmatmul.f32.vlgmr.msrb.gmra.mxu1 %v687_v40  ;;  %3034 = vmatmul.msk.f32.gmra.mxu2 %vm310_vm4, %v662_v44  ;;  %v3143_v40 = vpop.permute.xlu0 %3142  ;;  %v612_v44 = vrot.slane %v3644_v49, 4  ;;  %v4263_v49 = vld [vmem:[%s6610_s0 + $0x168] sm:$0xff] }
  0xc9   :  { %765 = vmatmul.f32.gmra.mxu0 %v681_v45  ;;  %739 = vmatmul.f32.gmra.mxu3 %v678_v56  ;;  %v560_v45 = vrot.slane %v3754_v25, 2  ;;  %v3144_v57 = vunpack.i.l.bf16 %v3143_v40  ;;  %v3145_v0 = vunpack.i.h.bf16 %v3143_v40  ;;  %v81_v56 = vld [vmem:[%s6576_s23 + $0x78] sm:$0x1]  ;;  %s2999_s23 = sshll.u32 %s3250_s26, 4  ;;  %s3000_s23 = int_to_ptr.vmem [resolvable:$true] %s2999_s23 }
  0xca   :  { %v613_v62 = vsel %vm237_vm5, %v610_v63, %v612_v44  ;;  %1170 = vmatpush.msra.mxu1 %v4263_v49  ;;  %v671_v10 = vrot.slane %v81_v56, 6  ;;  %v4439_v56 = vld [vmem:[%s6610_s0 + $0x1a8] sm:$0xff] }
  0xcb   :  { %v561_v12 = vsel %vm181_vm6, %v558_v6, %v560_v45  ;;  %v691_v23 = vsel %vm310_vm4, %v613_v62, %v3144_v57  ;;  %v4350_v6 = vld [vmem:[%s6610_s0 + $0x148] sm:$0xff]  ;;  %v686_v38 = vsel %vm310_vm4, %v560_v45, %v595_v55  ;;  %v4400_v45 = vld [vmem:[%s6610_s0 + $0x130] sm:$0xff]  ;;  %v4422_v62 = vld [vmem:[%s6610_s0] sm:$0xff]  ;;  %6617 = vst [vmem:[#allocation20_spill] sm:$0xff] %v4439_v56 }
  0xcc   :  { %v685_v3 = vsel %vm310_vm4, %v561_v12, %v3145_v0  ;;  %v672_v63 = vsel %vm294_vm3, %v669_v60, %v671_v10  ;;  %6613 = vst [vmem:[#allocation8_spill] sm:$0xff] %v4400_v45  ;;  %v4405_v57 = vld [vmem:[%s6610_s0 + $0x1b0] sm:$0xff]  ;;  %v4410_v60 = vld [vmem:[%s6610_s0 + $0xa0] sm:$0xff]  ;;  %v4417_v0 = vld [vmem:[%s6610_s0 + $0x98] sm:$0xff] }
  0xcd   :  { %6614 = vst [vmem:[#allocation18_spill] sm:$0xff] %v4405_v57  ;;  %v4463_v10 = vld [vmem:[%s6610_s0 + $0x90] sm:$0xff] }
  0xce   :  { %6615 = vst [vmem:[#allocation15_spill] sm:$0xff] %v4417_v0  ;;  %v4475_v55 = vld [vmem:[%s6610_s0 + $0x110] sm:$0xff] }
  0xcf   :  { %6621 = vst [vmem:[#allocation10_spill] sm:$0xff] %v4463_v10 }
  0xd0   :  { %803 = vmatmul.f32.gmra.mxu1 %v688_v36  ;;  %3035 = vmatmul.msk.f32.gmra.mxu2 %vm310_vm4, %v664_v53  ;;  %v614_v36 = vrot.slane %v3754_v25, 4  ;;  %v4278_v53 = vld [vmem:[%s6610_s0 + $0xb8] sm:$0xff]  ;;  %v4297_v25 = vld [vmem:[%s6610_s0 + $0x1e0] sm:$0xff]  ;;  %v649_v40 = vpop.permute.xlu0 %648  ;;  %6623 = vst [vmem:[#allocation12_spill] sm:$0xff] %v4475_v55 }
  0xd1   :  { %768 = vmatmul.f32.gmra.mxu0 %v682_v24  ;;  %742 = vmatmul.f32.gmra.mxu3 %v679_v15  ;;  %v4290_v24 = vld [vmem:[%s6610_s0 + $0x160] sm:$0xff]  ;;  %v4315_v15 = vld [vmem:[%s6610_s0 + $0x1d8] sm:$0xff]  ;;  %v4354_v13 = vpop.f32.mrf.mxu3 }
  0xd2   :  { %1141 = vmatpush.msra.mxu0 %v4278_v53  ;;  %1171 = vmatpush.msra.mxu1 %v4290_v24  ;;  %v615_v30 = vsel %vm237_vm5, %v612_v44, %v614_v36  ;;  %v4394_v44 = vld [vmem:[%s6610_s0 + $0x1b8] sm:$0xff]  ;;  %v693_v12 = vsel %vm310_vm4, %v614_v36, %v649_v40  ;;  %v4451_v36 = vld [vmem:[%s6610_s0 + $0x1a0] sm:$0xff]  ;;  %v4498_v40 = vld [vmem:[%s6610_s0 + $0x190] sm:$0xff] }
  0xd3   :  { %1206 = vmatpush.msra.mxu2 %v4297_v25  ;;  %6612 = vst [vmem:[#allocation14_spill] sm:$0xff] %v4394_v44 }
  0xd4   :  { %1142 = vmatpush.msra.mxu0 %v4302_v35  ;;  %1172 = vmatpush.msra.mxu1 %v4308_v1  ;;  %6619 = vst [vmem:[#allocation21_spill] sm:$0xff] %v4451_v36 }
  0xd5   :  { %1207 = vmatpush.msra.mxu2 %v4315_v15  ;;  %6625 = vst [vmem:[#allocation22_spill] sm:$0xff] %v4498_v40 }
  0xd6   :  { %1143 = vmatpush.msra.mxu0 %v4329_v61 }
  0xd8   :  { %806 = vmatmul.f32.gmra.mxu1 %v689_v54  ;;  %3036 = vmatmul.msk.f32.gmra.mxu2 %vm310_vm4, %v666_v58  ;;  %v4334_v54 = vld [vmem:[%s6610_s0 + $0x150] sm:$0xff] }
  0xd9   :  { %771 = vmatmul.f32.gmra.mxu0 %v683_v59  ;;  %v4341_v58 = vld [vmem:[%s6610_s0 + $0x1d0] sm:$0xff]  ;;  %v692_v59 = vsel %vm310_vm4, %v615_v30, %v3150_v37  ;;  %1173 = vmatpush.msra.mxu1 %v4334_v54  ;;  %v4458_v37 = vld [vmem:[%s6610_s0 + $0x118] sm:$0xff] }
  0xda   :  { %1208 = vmatpush.msra.mxu2 %v4341_v58  ;;  %1144 = vmatpush.msra.mxu0 %v4410_v60  ;;  %6620 = vst [vmem:[#allocation9_spill] sm:$0xff] %v4458_v37  ;;  %v4470_v30 = vld [vmem:[%s6610_s0 + $0x198] sm:$0xff] }
  0xdb   :  { %1174 = vmatpush.msra.mxu1 %v4350_v6  ;;  %6622 = vst [vmem:[#allocation11_spill] sm:$0xff] %v4470_v30 }
  0xdc   :  { %1209 = vmatpush.msra.mxu2 %v4359_v17  ;;  %1145 = vmatpush.msra.mxu0 %v4417_v0 }
  0xdd   :  { %1175 = vmatpush.msra.mxu1 %v4365_v18 }
  0xde   :  { %1146 = vmatpush.msra.mxu0 %v4463_v10 }
  0xe0   :  { %809 = vmatmul.f32.gmra.mxu1 %v690_v7  ;;  %3037 = vmatmul.msk.f32.gmra.mxu2 %vm310_vm4, %v668_v27  ;;  %v4376_v7 = vld [vmem:[%s6610_s0 + $0x1c0] sm:$0xff]  ;;  %v4382_v27 = vld [vmem:[%s6610_s0 + $0x138] sm:$0xff] }
  0xe1   :  { %774 = vmatmul.f32.gmra.mxu0 %v684_v39  ;;  %6611 = vst [vmem:[#allocation16_spill] sm:$0xff] %v4376_v7  ;;  %v4389_v39 = vld [vmem:[%s6610_s0 + $0x8] sm:$0xff]  ;;  %1210 = vmatpush.msra.mxu2 %v4376_v7 }
  0xe2   :  { %1112 = vmatpush.msra.mxu3 %v4389_v39  ;;  %1176 = vmatpush.msra.mxu1 %v4382_v27 }
  0xe3   :  { %1211 = vmatpush.msra.mxu2 %v4394_v44 }
  0xe4   :  { %1177 = vmatpush.msra.mxu1 %v4400_v45  ;;  %1113 = vmatpush.msra.mxu3 %v4422_v62 }
  0xe5   :  { %1212 = vmatpush.msra.mxu2 %v4405_v57 }
  0xe7   :  { %1213 = vmatpush.msra.mxu2 %v4439_v56  ;;  %v4514_v56 = vld [vmem:[%s6610_s0 + $0x80] sm:$0xff] }
  0xe8   :  { %812 = vmatmul.f32.gmra.mxu1 %v691_v23  ;;  %3038 = vmatmul.msk.f32.gmra.mxu2 %vm310_vm4, %v670_v19  ;;  %v4429_v23 = vpop.f32.mrf.mxu3  ;;  %v4434_v19 = vld [vmem:[%s6610_s0 + $0x128] sm:$0xff]  ;;  %6627 = vst [vmem:[#allocation24_spill] sm:$0xff] %v4514_v56 }
  0xe9   :  { %777 = vmatmul.f32.gmra.mxu0 %v685_v3  ;;  %6616 = vst [vmem:[#allocation17_spill] sm:$0xff] %v4434_v19  ;;  %v4446_v3 = vld [vmem:[%s6610_s0 + $0x120] sm:$0xff]  ;;  %1178 = vmatpush.msra.mxu1 %v4434_v19  ;;  %v4604_v19 = vld [vmem:[%s6610_s0 + $0x2d8] sm:$0xff] }
  0xea   :  { %6618 = vst [vmem:[#allocation19_spill] sm:$0xff] %v4446_v3  ;;  %1214 = vmatpush.msra.mxu2 %v4451_v36 }
  0xeb   :  { %1179 = vmatpush.msra.mxu1 %v4446_v3  ;;  %v4586_v3 = vld [vmem:[%s6610_s0 + $0x250] sm:$0xff]  ;;  %6637 = vst [vmem:[#allocation33_spill] sm:$0xff] %v4604_v19 }
  0xec   :  { %1215 = vmatpush.msra.mxu2 %v4470_v30  ;;  %v4519_v30 = vld [vmem:[%s6610_s0 + $0x188] sm:$0xff] }
  0xed   :  { %1180 = vmatpush.msra.mxu1 %v4458_v37  ;;  %6628 = vst [vmem:[#allocation25_spill] sm:$0xff] %v4519_v30  ;;  %v4532_v37 = vld [vmem:[%s6610_s0 + $0x180] sm:$0xff] }
  0xee   :  { %1216 = vmatpush.msra.mxu2 %v4498_v40  ;;  %6630 = vst [vmem:[#allocation27_spill] sm:$0xff] %v4532_v37  ;;  %v4539_v40 = vld [vmem:[%s6610_s0 + $0x268] sm:$0xff] }
  0xef   :  { %1181 = vmatpush.msra.mxu1 %v4475_v55  ;;  %v4526_v55 = vld [vmem:[%s6610_s0 + $0x100] sm:$0xff] }
  0xf0   :  { %815 = vmatmul.f32.gmra.mxu1 %v692_v59  ;;  %3039 = vmatmul.msk.f32.gmra.mxu2 %vm310_vm4, %v672_v63  ;;  %v4481_v59 = vld [vmem:[%s6610_s0 + $0x278] sm:$0xff]  ;;  %v4486_v63 = vld [vmem:[%s6610_s0 + $0x88] sm:$0xff]  ;;  %v4509_v36 = vpop.f32.mrf.mxu3  ;;  %6629 = vst [vmem:[#allocation26_spill] sm:$0xff] %v4526_v55 }
  0xf1   :  { %780 = vmatmul.f32.gmra.mxu0 %v686_v38  ;;  %6624 = vst [vmem:[#allocation13_spill] sm:$0xff] %v4486_v63  ;;  %v4491_v38 = vld [vmem:[%s6610_s0 + $0x270] sm:$0xff]  ;;  %1238 = vmatpush.msrb.mxu3 %v4481_v59 }
  0xf2   :  { %1147 = vmatpush.msra.mxu0 %v4486_v63  ;;  %1217 = vmatpush.msra.mxu2 %v4519_v30  ;;  %v4557_v30 = vld [vmem:[%s6610_s0 + $0x2f0] sm:$0xff] }
  0xf3   :  { %1239 = vmatpush.msrb.mxu3 %v4491_v38  ;;  %6632 = vst [vmem:[#allocation29_spill] sm:$0xff] %v4557_v30 }
  0xf4   :  { %1148 = vmatpush.msra.mxu0 %v4514_v56  ;;  %1218 = vmatpush.msra.mxu2 %v4532_v37  ;;  %v4550_v56 = vld [vmem:[%s6610_s0 + $0x260] sm:$0xff] }
  0xf5   :  { %1240 = vmatpush.msrb.mxu3 %v4539_v40 }
  0xf6   :  { %1464 = vmatpush.msrb.mxu2 %v4049_v42 }
  0xf7   :  { %1241 = vmatpush.msrb.mxu3 %v4550_v56 }
  0xf8   :  { %818 = vmatmul.f32.gmra.mxu1 %v693_v12  ;;  %v4505_v12 = vld [vmem:[%s6610_s0 + $0x108] sm:$0xff]  ;;  %1465 = vmatpush.msrb.mxu2 %v4072_v14  ;;  %v4574_v63 = vpop.f32.mrf.mxu3  ;;  %v4591_v14 = vld [vmem:[%s6610_s0 + $0x2e0] sm:$0xff] }
  0xf9   :  { %6626 = vst [vmem:[#allocation23_spill] sm:$0xff] %v4505_v12  ;;  %1182 = vmatpush.msra.mxu1 %v4505_v12  ;;  %v4545_v12 = vld [vmem:[%s6610_s0 + $0x2f8] sm:$0xff] }
  0xfa   :  { %6631 = vst [vmem:[#allocation28_spill] sm:$0xff] %v4545_v12  ;;  %1273 = vmatpush.msrb.mxu0 %v4545_v12  ;;  %v4570_v12 = vld [vmem:[%s6633_s3] ss:$0 sm:$0xff]  ;;  %1466 = vmatpush.msrb.mxu2 %v4085_v20  ;;  %s3248_s3 = smov 32  }
  0xfb   :  { %1183 = vmatpush.msra.mxu1 %v4526_v55  ;;  %v4562_v55 = vld [vmem:[%s6610_s0 + $0x258] sm:$0xff]  ;;  %6635 = vst [vmem:[#allocation31_spill] sm:$0xff] %v4591_v14 }
  0xfc   :  { %1274 = vmatpush.msrb.mxu0 %v4557_v30  ;;  %1242 = vmatpush.msrb.mxu3 %v4562_v55  ;;  %v4581_v30 = vld [vmem:[%s6610_s0 + $0x2e8] sm:$0xff] }
  0xfd   :  { %6634 = vst [vmem:[#allocation30_spill] sm:$0xff] %v4581_v30  ;;  %1467 = vmatpush.msrb.mxu2 %v4093_v33 }
  0xfe   :  { %1275 = vmatpush.msrb.mxu0 %v4581_v30  ;;  %1243 = vmatpush.msrb.mxu3 %v4586_v3 }
  0xff   :  { %1468 = vmatpush.msrb.mxu2 %v4116_v11 }
 0x100   :  { %1276 = vmatpush.msrb.mxu0 %v4591_v14  ;;  %v4618_v11 = vpop.f32.mrf.mxu3 }
 0x101   :  { %1469 = vmatpush.msrb.mxu2 %v4128_v46 }
 0x102   :  { %1277 = vmatpush.msrb.mxu0 %v4604_v19 }
 0x103   :  { %1470 = vmatpush.msrb.mxu2 %v4156_v31  ;;  %v4637_v31 = vld [vmem:[%s6610_s0 + $0x238] sm:$0xff] }
 0x104   :  { %6641 = vst [vmem:[#allocation37_spill] sm:$0xff] %v4637_v31 }
 0x105   :  { %v366_v37 = vpop.f32.mrf.mxu0  ;;  %1471 = vmatpush.msrb.mxu2 %v4166_v8  ;;  %v4656_v8 = vld [vmem:[%s6610_s0 + $0x230] sm:$0xff] }
 0x106   :  { %v367_v42 = vadd.f32 %v4570_v12, %v366_v37  ;;  %v4599_v37 = vld [vmem:[%s6610_s0 + $0x248] sm:$0xff]  ;;  %6644 = vst [vmem:[#allocation40_spill] sm:$0xff] %v4656_v8 }
 0x107   :  { %6636 = vst [vmem:[#allocation32_spill] sm:$0xff] %v4599_v37  ;;  %1244 = vmatpush.msrb.mxu3 %v4599_v37  ;;  %1472 = vmatpush.msrb.mxu2 %v4184_v28  ;;  %v4742_v37 = vld [vmem:[%s6610_s0 + $0x218] sm:$0xff] }
 0x108   :  { %6655 = vst [vmem:[#allocation51_spill] sm:$0xff] %v4742_v37 }
 0x109   :  { %1473 = vmatpush.msrb.mxu2 %v4213_v2  ;;  %v4699_v2 = vld [vmem:[%s6610_s0 + $0x2b8] sm:$0xff] }
 0x10a   :  { %6650 = vst [vmem:[#allocation46_spill] sm:$0xff] %v4699_v2 }
 0x10b   :  { %v442_v57 = vpop.f32.mrf.mxu2  ;;  %1474 = vmatpush.msrb.mxu2 %v4230_v5  ;;  %v4734_v5 = vld [vmem:[%s6610_s0 + $0x2b0] sm:$0xff] }
 0x10c   :  { %6654 = vst [vmem:[#allocation50_spill] sm:$0xff] %v4734_v5 }
 0x10d   :  { %v404_v20 = vpop.f32.mrf.mxu1  ;;  %1475 = vmatpush.msrb.mxu2 %v4285_v41 }
 0x10e   :  { %v405_v10 = vadd.f32 %v404_v20, %v367_v42  ;;  %v369_v44 = vpop.f32.mrf.mxu0  ;;  %v4615_v42 = vld [vmem:[%s6610_s0 + $0x378] sm:$0xff] }
 0x10f   :  { %6638 = vst [vmem:[#allocation34_spill] sm:$0xff] %v4615_v42  ;;  %1308 = vmatpush.msrb.mxu1 %v4615_v42  ;;  %v370_v46 = vadd.f32 %v4570_v12, %v369_v44  ;;  %v4645_v44 = vld [vmem:[%s6610_s0 + $0x2c8] sm:$0xff]  ;;  %1476 = vmatpush.msrb.mxu2 %v4324_v22 }
 0x110   :  { %v443_v33 = vadd.f32 %v442_v57, %v405_v10  ;;  %v4632_v57 = vld [vmem:[%s6610_s0 + $0x2d0] sm:$0xff]  ;;  %6642 = vst [vmem:[#allocation38_spill] sm:$0xff] %v4645_v44 }
 0x111   :  { %6640 = vst [vmem:[#allocation36_spill] sm:$0xff] %v4632_v57  ;;  %1278 = vmatpush.msrb.mxu0 %v4632_v57  ;;  %v4662_v57 = vld [vmem:[%s6610_s0 + $0x368] sm:$0xff]  ;;  %1477 = vmatpush.msrb.mxu2 %v4371_v21  ;;  %v4868_v21 = vld [vmem:[%s6610_s0 + $0x280] sm:$0xff] }
 0x112   :  { %v481_v30 = vadd.f32 %v4354_v13, %v443_v33  ;;  %v4627_v13 = vld [vmem:[%s6610_s0 + $0x240] sm:$0xff]  ;;  %6645 = vst [vmem:[#allocation41_spill] sm:$0xff] %v4662_v57 }
 0x113   :  { %v445_v20 = vpop.f32.mrf.mxu2  ;;  %6639 = vst [vmem:[#allocation35_spill] sm:$0xff] %v4627_v13  ;;  %1245 = vmatpush.msrb.mxu3 %v4627_v13  ;;  %1279 = vmatpush.msrb.mxu0 %v4645_v44  ;;  %v4679_v44 = vld [vmem:[%s6610_s0 + $0x358] sm:$0xff] }
 0x114   :  { %v4621_v14 = vmax.f32 %v481_v30, 0.0  ;;  %v4650_v30 = vld [vmem:[%s6610_s0 + $0x370] sm:$0xff]  ;;  %6647 = vst [vmem:[#allocation43_spill] sm:$0xff] %v4679_v44  ;;  %1478 = vmatpush.msrb.mxu2 %v4389_v39 }
 0x115   :  { %v407_v10 = vpop.f32.mrf.mxu1  ;;  %6643 = vst [vmem:[#allocation39_spill] sm:$0xff] %v4650_v30  ;;  %1309 = vmatpush.msrb.mxu1 %v4650_v30  ;;  %1246 = vmatpush.msrb.mxu3 %v4637_v31 }
 0x116   :  { %v408_v33 = vadd.f32 %v407_v10, %v370_v46  ;;  %1114 = vmatmul.f32.vlgmr.msra.gmra.mxu3 %v4621_v14  ;;  %v372_v19 = vpop.f32.mrf.mxu0  ;;  %v4670_v10 = vld [vmem:[%s6610_s0 + $0x360] sm:$0xff]  ;;  %v1020_v42 = vrot.slane %v4621_v14, 3  ;;  %1479 = vmatpush.msrb.mxu2 %v4422_v62 }
 0x117   :  { %1310 = vmatpush.msrb.mxu1 %v4662_v57  ;;  %6646 = vst [vmem:[#allocation42_spill] sm:$0xff] %v4670_v10  ;;  %1247 = vmatpush.msrb.mxu3 %v4656_v8  ;;  %v373_v57 = vadd.f32 %v4570_v12, %v372_v19  ;;  %v4716_v8 = vld [vmem:[%s6610_s0 + $0x350] sm:$0xff] }
 0x118   :  { %v446_v46 = vadd.f32 %v445_v20, %v408_v33  ;;  %v4685_v33 = vld [vmem:[%s6610_s0 + $0x228] sm:$0xff]  ;;  %6652 = vst [vmem:[#allocation48_spill] sm:$0xff] %v4716_v8 }
 0x119   :  { %1311 = vmatpush.msrb.mxu1 %v4670_v10  ;;  %6648 = vst [vmem:[#allocation44_spill] sm:$0xff] %v4685_v33  ;;  %1248 = vmatpush.msrb.mxu3 %v4685_v33  ;;  %v1003_v10 = vrot.slane %v4621_v14, 2  ;;  %v4710_v33 = vpop.f32.mrf.mxu3 }
 0x11a   :  { %v484_v30 = vadd.f32 %v4429_v23, %v446_v46  ;;  %v4693_v23 = vld [vmem:[%s6610_s0 + $0x2c0] sm:$0xff] }
 0x11b   :  { %v448_v20 = vpop.f32.mrf.mxu2  ;;  %6649 = vst [vmem:[#allocation45_spill] sm:$0xff] %v4693_v23  ;;  %v4704_v46 = vld [vmem:[%s6610_s0 + $0x220] sm:$0xff]  ;;  %1312 = vmatpush.msrb.mxu1 %v4679_v44  ;;  %1280 = vmatpush.msrb.mxu0 %v4693_v23  ;;  %v4727_v23 = vld [vmem:[%s6610_s0 + $0x348] sm:$0xff] }
 0x11c   :  { %v4687_v28 = vmax.f32 %v484_v30, 0.0  ;;  %6651 = vst [vmem:[#allocation47_spill] sm:$0xff] %v4704_v46  ;;  %v986_v30 = vrot.slane %v4621_v14, 1  ;;  %1249 = vmatpush.msrb.mxu3 %v4704_v46 }
 0x11d   :  { %v410_v19 = vpop.f32.mrf.mxu1  ;;  %1313 = vmatpush.msrb.mxu1 %v4716_v8  ;;  %6653 = vst [vmem:[#allocation49_spill] sm:$0xff] %v4727_v23  ;;  %1281 = vmatpush.msrb.mxu0 %v4699_v2  ;;  %v4748_v2 = vld [vmem:[%s6610_s0 + $0x340] sm:$0xff] }
 0x11e   :  { %v411_v31 = vadd.f32 %v410_v19, %v373_v57  ;;  %1117 = vmatmul.f32.gmra.mxu3 %v4687_v28  ;;  %v375_v44 = vpop.f32.mrf.mxu0  ;;  %v987_v0 = vrot.slane %v4687_v28, 1  ;;  %v1004_v13 = vrot.slane %v4687_v28, 2  ;;  %v1021_v7 = vrot.slane %v4687_v28, 3  ;;  %6656 = vst [vmem:[#allocation52_spill] sm:$0xff] %v4748_v2 }
 0x11f   :  { %1314 = vmatpush.msrb.mxu1 %v4727_v23  ;;  %1282 = vmatpush.msrb.mxu0 %v4734_v5 }
 0x120   :  { %v449_v57 = vadd.f32 %v448_v20, %v411_v31  ;;  %v988_v19 = vsel %vm146_vm0, %v986_v30, %v987_v0  ;;  %v1005_v45 = vsel %vm181_vm6, %v1003_v10, %v1004_v13  ;;  %v1022_v8 = vsel %vm202_vm2, %v1020_v42, %v1021_v7  ;;  %v4756_v42 = vld [vmem:[%s6610_s0 + $0x210] sm:$0xff]  ;;  %1250 = vmatpush.msrb.mxu3 %v4742_v37  ;;  %v4780_v30 = vld [vmem:[%s6610_s0 + $0x208] sm:$0xff] }
 0x121   :  { %1149 = vmatmul.f32.vlgmr.msra.gmra.mxu0 %v988_v19  ;;  %1184 = vmatmul.f32.vlgmr.msra.gmra.mxu1 %v1005_v45  ;;  %v376_v10 = vadd.f32 %v4570_v12, %v375_v44  ;;  %6657 = vst [vmem:[#allocation53_spill] sm:$0xff] %v4756_v42  ;;  %v4763_v45 = vld [vmem:[%s6610_s0 + $0x338] sm:$0xff]  ;;  %v4770_v44 = vld [vmem:[%s6610_s0 + $0x2a8] sm:$0xff]  ;;  %v4788_v19 = vld [vmem:[%s6610_s0 + $0x330] sm:$0xff] }
 0x122   :  { %v487_v31 = vadd.f32 %v4509_v36, %v449_v57  ;;  %1219 = vmatmul.f32.vlgmr.msra.gmra.mxu2 %v1022_v8  ;;  %1315 = vmatpush.msrb.mxu1 %v4748_v2  ;;  %6658 = vst [vmem:[#allocation54_spill] sm:$0xff] %v4763_v45  ;;  %v4775_v8 = vld [vmem:[%s6610_s0 + $0x2a0] sm:$0xff] }
 0x123   :  { %v451_v20 = vpop.f32.mrf.mxu2  ;;  %6659 = vst [vmem:[#allocation55_spill] sm:$0xff] %v4770_v44  ;;  %1283 = vmatpush.msrb.mxu0 %v4770_v44  ;;  %1251 = vmatpush.msrb.mxu3 %v4756_v42  ;;  %v4795_v44 = vpop.f32.mrf.mxu3 }
 0x124   :  { %v4765_v36 = vmax.f32 %v487_v31, 0.0  ;;  %6660 = vst [vmem:[#allocation56_spill] sm:$0xff] %v4775_v8  ;;  %1316 = vmatpush.msrb.mxu1 %v4763_v45  ;;  %v4816_v45 = vld [vmem:[%s6610_s0 + $0x328] sm:$0xff]  ;;  %1604 = vmatpush.msra.mxu2 %v4481_v59 }
 0x125   :  { %v413_v57 = vpop.f32.mrf.mxu1  ;;  %1284 = vmatpush.msrb.mxu0 %v4775_v8  ;;  %1252 = vmatpush.msrb.mxu3 %v4780_v30  ;;  %v4811_v8 = vld [vmem:[%s6610_s0 + $0x298] sm:$0xff]  ;;  %6661 = vst [vmem:[#allocation57_spill] sm:$0xff] %v4816_v45 }
 0x126   :  { %v414_v31 = vadd.f32 %v413_v57, %v376_v10  ;;  %1120 = vmatmul.f32.gmra.mxu3 %v4765_v36  ;;  %v378_v2 = vpop.f32.mrf.mxu0  ;;  %v989_v5 = vrot.slane %v4765_v36, 1  ;;  %v1006_v23 = vrot.slane %v4765_v36, 2  ;;  %v1023_v41 = vrot.slane %v4765_v36, 3  ;;  %v4802_v10 = vld [vmem:[%s6610_s0 + $0x200] sm:$0xff]  ;;  %1317 = vmatpush.msrb.mxu1 %v4788_v19 }
 0x127   :  { %1253 = vmatpush.msrb.mxu3 %v4802_v10  ;;  %1285 = vmatpush.msrb.mxu0 %v4811_v8 }
 0x128   :  { %v452_v57 = vadd.f32 %v451_v20, %v414_v31  ;;  %v990_v42 = vsel %vm146_vm0, %v987_v0, %v989_v5  ;;  %v1007_v37 = vsel %vm181_vm6, %v1004_v13, %v1006_v23  ;;  %v1024_v46 = vsel %vm202_vm2, %v1021_v7, %v1023_v41  ;;  %v4823_v7 = vld [vmem:[%s6610_s0 + $0x290] sm:$0xff]  ;;  %v4828_v13 = vld [vmem:[%s6610_s0 + $0x320] sm:$0xff]  ;;  %1318 = vmatpush.msrb.mxu1 %v4816_v45 }
 0x129   :  { %1152 = vmatmul.f32.gmra.mxu0 %v990_v42  ;;  %1187 = vmatmul.f32.gmra.mxu1 %v1007_v37  ;;  %6662 = vst [vmem:[#allocation58_spill] sm:$0xff] %v4823_v7  ;;  %v4845_v42 = vld [vmem:[%s6610_s0 + $0x288] sm:$0xff] }
 0x12a   :  { %v490_v0 = vadd.f32 %v4574_v63, %v452_v57  ;;  %1222 = vmatmul.f32.gmra.mxu2 %v1024_v46  ;;  %6663 = vst [vmem:[#allocation59_spill] sm:$0xff] %v4828_v13  ;;  %v379_v63 = vadd.f32 %v4570_v12, %v378_v2  ;;  %1499 = vmatpush.msra.mxu3 %v4077_v16  ;;  %v4839_v46 = vld [vmem:[%s6610_s0 + $0x318] sm:$0xff] }
 0x12b   :  { %v454_v20 = vpop.f32.mrf.mxu2  ;;  %6664 = vst [vmem:[#allocation60_spill] sm:$0xff] %v4839_v46  ;;  %1286 = vmatpush.msrb.mxu0 %v4823_v7  ;;  %1319 = vmatpush.msrb.mxu1 %v4828_v13  ;;  %v4859_v13 = vld [vmem:[%s6610_s0 + $0x310] sm:$0xff] }
 0x12c   :  { %v4832_v37 = vmax.f32 %v490_v0, 0.0  ;;  %1500 = vmatpush.msra.mxu3 %v4111_v4  ;;  %1605 = vmatpush.msra.mxu2 %v4491_v38  ;;  %v1039_v38 = vrot.slane %v4687_v28, 4 }
 0x12d   :  { %v416_v31 = vpop.f32.mrf.mxu1  ;;  %1320 = vmatpush.msrb.mxu1 %v4839_v46  ;;  %1287 = vmatpush.msrb.mxu0 %v4845_v42  ;;  %v725_v46 = vpop.f32.mrf.mxu3 }
 0x12e   :  { %v417_v2 = vadd.f32 %v416_v31, %v379_v63  ;;  %1123 = vmatmul.f32.gmra.mxu3 %v4832_v37  ;;  %v991_v16 = vrot.slane %v4832_v37, 1  ;;  %v1008_v57 = vrot.slane %v4832_v37, 2  ;;  %v1025_v0 = vrot.slane %v4832_v37, 3  ;;  %v381_v22 = vpop.f32.mrf.mxu0  ;;  %1606 = vmatpush.msra.mxu2 %v4539_v40 }
 0x12f   :  { %1321 = vmatpush.msrb.mxu1 %v4859_v13  ;;  %1288 = vmatpush.msrb.mxu0 %v4868_v21 }
 0x130   :  { %v455_v63 = vadd.f32 %v454_v20, %v417_v2  ;;  %v992_v31 = vsel %vm146_vm0, %v989_v5, %v991_v16  ;;  %v1009_v7 = vsel %vm181_vm6, %v1006_v23, %v1008_v57  ;;  %v1026_v45 = vsel %vm202_vm2, %v1023_v41, %v1025_v0  ;;  %v4873_v20 = vld [vmem:[%s6610_s0 + $0x308] sm:$0xff]  ;;  %v4883_v41 = vld [vmem:[%s6610_s0 + $0x300] sm:$0xff]  ;;  %1501 = vmatpush.msra.mxu3 %v4123_v29  ;;  %s3012_s0 = sshll.u32 %s6492_s20, 4  ;;  %s3013_s0 = int_to_ptr.hbm [resolvable:$true] %s3012_s0 }
 0x131   :  { %1155 = vmatmul.f32.gmra.mxu0 %v992_v31  ;;  %1190 = vmatmul.f32.gmra.mxu1 %v1009_v7  ;;  %v382_v23 = vadd.f32 %v4570_v12, %v381_v22 }
 0x132   :  { %v493_v5 = vadd.f32 %v4618_v11, %v455_v63  ;;  %1225 = vmatmul.f32.gmra.mxu2 %v1026_v45  ;;  %1322 = vmatpush.msrb.mxu1 %v4873_v20 }
 0x133   :  { %v457_v4 = vpop.f32.mrf.mxu2  ;;  %1534 = vmatpush.msra.mxu0 %v4189_v51  ;;  %1502 = vmatpush.msra.mxu3 %v4139_v26 }
 0x134   :  { %v4885_v7 = vmax.f32 %v493_v5, 0.0  ;;  %1323 = vmatpush.msrb.mxu1 %v4883_v41  ;;  %1607 = vmatpush.msra.mxu2 %v4550_v56  ;;  %v1057_v56 = vrot.slane %v4621_v14, 5 }
 0x135   :  { %v419_v11 = vpop.f32.mrf.mxu1  ;;  %1535 = vmatpush.msra.mxu0 %v4207_v48  ;;  %1503 = vmatpush.msra.mxu3 %v4161_v32  ;;  %v728_v26 = vpop.f32.mrf.mxu3 }
 0x136   :  { %v420_v45 = vadd.f32 %v419_v11, %v382_v23  ;;  %1126 = vmatmul.f32.gmra.mxu3 %v4885_v7  ;;  %v993_v39 = vrot.slane %v4885_v7, 1  ;;  %v1010_v2 = vrot.slane %v4885_v7, 2  ;;  %v1027_v22 = vrot.slane %v4885_v7, 3  ;;  %v4895_v63 = vpop.f32.mrf.mxu0  ;;  %1569 = vmatpush.msra.mxu1 %v4202_v47 }
 0x137   :  { %1536 = vmatpush.msra.mxu0 %v4263_v49  ;;  %1504 = vmatpush.msra.mxu3 %v4174_v34 }
 0x138   :  { %v458_v29 = vadd.f32 %v457_v4, %v420_v45  ;;  %v994_v51 = vsel %vm146_vm0, %v991_v16, %v993_v39  ;;  %v1011_v62 = vsel %vm181_vm6, %v1008_v57, %v1010_v2  ;;  %v1028_v31 = vsel %vm202_vm2, %v1025_v0, %v1027_v22  ;;  %1570 = vmatpush.msra.mxu1 %v4218_v52  ;;  %v6668_v45 = vld [vmem:[#allocation35_spill] sm:$0xff] }
 0x139   :  { %1158 = vmatmul.f32.gmra.mxu0 %v994_v51  ;;  %1193 = vmatmul.f32.gmra.mxu1 %v1011_v62  ;;  %v729_v0 = vadd.f32 %v4570_v12, %v728_v26 }
 0x13a   :  { %v496_v5 = vadd.f32 %v4710_v33, %v458_v29  ;;  %1228 = vmatmul.f32.gmra.mxu2 %v1028_v31  ;;  %1537 = vmatpush.msra.mxu0 %v4290_v24  ;;  %v726_v33 = vadd.f32 %v4570_v12, %v725_v46  ;;  %v6671_v31 = vld [vmem:[#allocation14_spill] sm:$0xff] }
 0x13b   :  { %v4906_v23 = vpop.f32.mrf.mxu2  ;;  %1571 = vmatpush.msra.mxu1 %v4268_v50  ;;  %1505 = vmatpush.msra.mxu3 %v4196_v43  ;;  %v1038_v43 = vrot.slane %v4621_v14, 4 }
 0x13c   :  { %v4910_v48 = vmax.f32 %v496_v5, 0.0  ;;  %1538 = vmatpush.msra.mxu0 %v4308_v1  ;;  %1608 = vmatpush.msra.mxu2 %v4562_v55  ;;  %v6666_v55 = vld [vmem:[#allocation8_spill] sm:$0xff]  ;;  %v6672_v5 = vld [vmem:[#allocation37_spill] sm:$0xff] }
 0x13d   :  { %v4914_v47 = vpop.f32.mrf.mxu1  ;;  %1506 = vmatpush.msra.mxu3 %v4238_v9  ;;  %1572 = vmatpush.msra.mxu1 %v4297_v25  ;;  %v1040_v1 = vsel %vm237_vm5, %v1038_v43, %v1039_v38  ;;  %v731_v57 = vpop.f32.mrf.mxu3 }
 0x13e   :  { %1129 = vmatmul.f32.gmra.mxu3 %v4910_v48  ;;  %v995_v32 = vrot.slane %v4910_v48, 1  ;;  %v1012_v49 = vrot.slane %v4910_v48, 2  ;;  %v1029_v59 = vrot.slane %v4910_v48, 3  ;;  %v763_v16 = vpop.f32.mrf.mxu0  ;;  %1539 = vmatpush.msra.mxu0 %v4334_v54 }
 0x13f   :  { %v764_v46 = vadd.f32 %v763_v16, %v726_v33  ;;  %1507 = vmatpush.msra.mxu3 %v4278_v53  ;;  %1573 = vmatpush.msra.mxu1 %v4315_v15  ;;  %v1041_v53 = vrot.slane %v4765_v36, 4  ;;  %v1079_v33 = vrot.slane %v4765_v36, 6 }
 0x140   :  { %v996_v34 = vsel %vm146_vm0, %v993_v39, %v995_v32  ;;  %v1013_v52 = vsel %vm181_vm6, %v1010_v2, %v1012_v49  ;;  %v1030_v24 = vsel %vm202_vm2, %v1027_v22, %v1029_v59  ;;  %1540 = vmatpush.msra.mxu0 %v4350_v6  ;;  %1609 = vmatpush.msra.mxu2 %v4586_v3  ;;  %v6665_v6 = vld [vmem:[#allocation32_spill] sm:$0xff]  ;;  %v6669_v2 = vld [vmem:[#allocation15_spill] sm:$0xff]  ;;  %v6670_v22 = vld [vmem:[#allocation17_spill] sm:$0xff] }
 0x141   :  { %1161 = vmatmul.f32.gmra.mxu0 %v996_v34  ;;  %1196 = vmatmul.f32.gmra.mxu1 %v1013_v52  ;;  %v6674_v34 = vld [vmem:[#allocation19_spill] sm:$0xff]  ;;  %v6675_v52 = vld [vmem:[#allocation18_spill] sm:$0xff] }
 0x142   :  { %1231 = vmatmul.f32.gmra.mxu2 %v1030_v24  ;;  %1508 = vmatpush.msra.mxu3 %v4302_v35  ;;  %v1058_v35 = vrot.slane %v4687_v28, 5  ;;  %v6676_v24 = vld [vmem:[#allocation13_spill] sm:$0xff] }
 0x143   :  { %v839_v50 = vpop.f32.mrf.mxu2  ;;  %1541 = vmatpush.msra.mxu0 %v4365_v18  ;;  %1574 = vmatpush.msra.mxu1 %v4341_v58  ;;  %v1077_v58 = vrot.slane %v4687_v28, 6  ;;  %v1042_v18 = vsel %vm237_vm5, %v1039_v38, %v1041_v53  ;;  %v732_v28 = vadd.f32 %v4570_v12, %v731_v57  ;;  %v6677_v38 = vld [vmem:[#allocation40_spill] sm:$0xff] }
 0x144   :  { %1509 = vmatpush.msra.mxu3 %v4329_v61  ;;  %1610 = vmatpush.msra.mxu2 %v6665_v6  ;;  %v6667_v61 = vld [vmem:[#allocation16_spill] sm:$0xff]  ;;  %v1059_v29 = vsel %vm258_vm1, %v1057_v56, %v1058_v35 }
 0x145   :  { %v801_v40 = vpop.f32.mrf.mxu1  ;;  %1542 = vmatpush.msra.mxu0 %v4382_v27  ;;  %1575 = vmatpush.msra.mxu1 %v4359_v17  ;;  %v1076_v17 = vrot.slane %v4621_v14, 6  ;;  %v734_v39 = vpop.f32.mrf.mxu3  ;;  %v1043_v14 = vrot.slane %v4832_v37, 4  ;;  %v6679_v57 = vld [vmem:[#allocation20_spill] sm:$0xff] }
 0x146   :  { %1254 = vmatmul.f32.vlgmr.msrb.gmra.mxu3 %v1040_v1  ;;  %v802_v9 = vadd.f32 %v801_v40, %v764_v46  ;;  %v766_v4 = vpop.f32.mrf.mxu0  ;;  %1611 = vmatpush.msra.mxu2 %v6668_v45  ;;  %v6681_v6 = vld [vmem:[#allocation24_spill] sm:$0xff] }
 0x147   :  { %v767_v15 = vadd.f32 %v766_v4, %v729_v0  ;;  %1510 = vmatpush.msra.mxu3 %v4410_v60  ;;  %1543 = vmatpush.msra.mxu0 %v6666_v55  ;;  %v1078_v51 = vsel %vm294_vm3, %v1076_v17, %v1077_v58  ;;  %v1044_v1 = vsel %vm237_vm5, %v1041_v53, %v1043_v14  ;;  %v6684_v55 = vld [vmem:[#allocation47_spill] sm:$0xff] }
 0x148   :  { %v840_v25 = vadd.f32 %v839_v50, %v802_v9  ;;  %1576 = vmatpush.msra.mxu1 %v6667_v61  ;;  %1612 = vmatpush.msra.mxu2 %v6672_v5  ;;  %v385_v50 = vadd.f32 %v4570_v12, %v4895_v63  ;;  %v1080_v53 = vsel %vm294_vm3, %v1077_v58, %v1079_v33 }
 0x149   :  { %1164 = vmatmul.f32.gmra.mxu0 %v995_v32  ;;  %1199 = vmatmul.f32.gmra.mxu1 %v1012_v49  ;;  %v6673_v32 = vld [vmem:[#allocation10_spill] sm:$0xff] }
 0x14a   :  { %1234 = vmatmul.f32.gmra.mxu2 %v1029_v59  ;;  %v4958_v27 = vmax.f32 %v840_v25, 0.0  ;;  %1511 = vmatpush.msra.mxu3 %v6669_v2  ;;  %v1060_v59 = vrot.slane %v4765_v36, 5  ;;  %v6678_v36 = vld [vmem:[#allocation9_spill] sm:$0xff]  ;;  %v735_v25 = vadd.f32 %v4570_v12, %v734_v39  ;;  %v1062_v39 = vrot.slane %v4832_v37, 5 }
 0x14b   :  { %v842_v54 = vpop.f32.mrf.mxu2  ;;  %1544 = vmatpush.msra.mxu0 %v6670_v22  ;;  %1577 = vmatpush.msra.mxu1 %v6671_v31  ;;  %v1081_v2 = vrot.slane %v4832_v37, 6 }
 0x14c   :  { %1512 = vmatpush.msra.mxu3 %v6673_v32  ;;  %1613 = vmatpush.msra.mxu2 %v6677_v38  ;;  %v1426_v46 = vrot.slane %v4958_v27, 5  ;;  %v1445_v43 = vrot.slane %v4958_v27, 6  ;;  %v1061_v63 = vsel %vm258_vm1, %v1058_v35, %v1060_v59  ;;  %v1045_v35 = vrot.slane %v4885_v7, 4  ;;  %v6690_v32 = vld [vmem:[#allocation22_spill] sm:$0xff] }
 0x14d   :  { %v804_v3 = vpop.f32.mrf.mxu1  ;;  %1545 = vmatpush.msra.mxu0 %v6674_v34  ;;  %1578 = vmatpush.msra.mxu1 %v6675_v52  ;;  %v737_v58 = vpop.f32.mrf.mxu3 }
 0x14e   :  { %1257 = vmatmul.f32.gmra.mxu3 %v1042_v18  ;;  %v805_v11 = vadd.f32 %v804_v3, %v767_v15  ;;  %v769_v60 = vpop.f32.mrf.mxu0  ;;  %v6682_v18 = vld [vmem:[#allocation12_spill] sm:$0xff]  ;;  %v6683_v3 = vld [vmem:[#allocation21_spill] sm:$0xff]  ;;  %v1046_v5 = vsel %vm237_vm5, %v1043_v14, %v1045_v35  ;;  %v1082_v14 = vsel %vm294_vm3, %v1079_v33, %v1081_v2  ;;  %v6696_v33 = vld [vmem:[#allocation27_spill] sm:$0xff] }
 0x14f   :  { %v770_v26 = vadd.f32 %v769_v60, %v732_v28  ;;  %1513 = vmatpush.msra.mxu3 %v6676_v24  ;;  %1546 = vmatpush.msra.mxu0 %v6678_v36  ;;  %v6685_v60 = vld [vmem:[#allocation28_spill] sm:$0xff]  ;;  %v738_v24 = vadd.f32 %v4570_v12, %v737_v58  ;;  %v6700_v58 = vld [vmem:[#allocation41_spill] sm:$0xff] }
 0x150   :  { %v843_v62 = vadd.f32 %v842_v54, %v805_v11  ;;  %1579 = vmatpush.msra.mxu1 %v6679_v57  ;;  %v6680_v54 = vld [vmem:[#allocation44_spill] sm:$0xff]  ;;  %v423_v11 = vadd.f32 %v4914_v47, %v385_v50  ;;  %v6687_v47 = vld [vmem:[#allocation51_spill] sm:$0xff] }
 0x151   :  { %1289 = vmatmul.f32.vlgmr.msrb.gmra.mxu0 %v1059_v29  ;;  %1324 = vmatmul.f32.vlgmr.msrb.gmra.mxu1 %v1078_v51  ;;  %v6686_v29 = vld [vmem:[#allocation11_spill] sm:$0xff] }
 0x152   :  { %1480 = vmatmul.f32.vlgmr.msrb.gmra.mxu2 %v4958_v27  ;;  %v4972_v49 = vmax.f32 %v843_v62, 0.0  ;;  %1514 = vmatpush.msra.mxu3 %v6681_v6  ;;  %v6688_v51 = vld [vmem:[#allocation23_spill] sm:$0xff]  ;;  %v6689_v62 = vld [vmem:[#allocation29_spill] sm:$0xff]  ;;  %v461_v31 = vadd.f32 %v4906_v23, %v423_v11  ;;  %v1063_v23 = vsel %vm258_vm1, %v1060_v59, %v1062_v39  ;;  %v1047_v59 = vrot.slane %v4910_v48, 4 }
 0x153   :  { %v845_v16 = vpop.f32.mrf.mxu2  ;;  %1614 = vmatpush.msra.mxu2 %v6680_v54  ;;  %1547 = vmatpush.msra.mxu0 %v6682_v18 }
 0x154   :  { %v1427_v9 = vrot.slane %v4972_v49, 5  ;;  %v1446_v0 = vrot.slane %v4972_v49, 6  ;;  %1580 = vmatpush.msra.mxu1 %v6683_v3  ;;  %1639 = vmatpush.msrb.mxu3 %v6685_v60  ;;  %v1048_v6 = vsel %vm237_vm5, %v1045_v35, %v1047_v59 }
 0x155   :  { %v807_v40 = vpop.f32.mrf.mxu1  ;;  %1615 = vmatpush.msra.mxu2 %v6684_v55  ;;  %1548 = vmatpush.msra.mxu0 %v6688_v51  ;;  %v740_v54 = vpop.f32.mrf.mxu3 }
 0x156   :  { %1260 = vmatmul.f32.gmra.mxu3 %v1044_v1  ;;  %v808_v4 = vadd.f32 %v807_v40, %v770_v26  ;;  %v772_v15 = vpop.f32.mrf.mxu0  ;;  %v4998_v61 = vsel %vm258_vm1, %v1426_v46, %v1427_v9  ;;  %v5001_v17 = vsel %vm294_vm3, %v1445_v43, %v1446_v0  ;;  %1581 = vmatpush.msra.mxu1 %v6686_v29  ;;  %v6692_v46 = vld [vmem:[#allocation26_spill] sm:$0xff]  ;;  %v6693_v43 = vld [vmem:[#allocation25_spill] sm:$0xff] }
 0x157   :  { %v773_v28 = vadd.f32 %v772_v15, %v735_v25  ;;  %1616 = vmatpush.msra.mxu2 %v6687_v47  ;;  %1640 = vmatpush.msrb.mxu3 %v6689_v62  ;;  %v6694_v1 = vld [vmem:[#allocation30_spill] sm:$0xff]  ;;  %v741_v11 = vadd.f32 %v4570_v12, %v740_v54  ;;  %v6710_v54 = vld [vmem:[#allocation52_spill] sm:$0xff] }
 0x158   :  { %v846_v56 = vadd.f32 %v845_v16, %v808_v4  ;;  %1582 = vmatpush.msra.mxu1 %v6690_v32  ;;  %v6691_v16 = vld [vmem:[#allocation53_spill] sm:$0xff]  ;;  %1549 = vmatpush.msra.mxu0 %v6692_v46  ;;  %v6695_v40 = vld [vmem:[#allocation34_spill] sm:$0xff]  ;;  %v499_v4 = vadd.f32 %v4795_v44, %v461_v31  ;;  %v1083_v44 = vrot.slane %v4885_v7, 6  ;;  %v1085_v32 = vrot.slane %v4910_v48, 6 }
 0x159   :  { %1292 = vmatmul.f32.gmra.mxu0 %v1061_v63  ;;  %1327 = vmatmul.f32.gmra.mxu1 %v1080_v53  ;;  %v6698_v63 = vld [vmem:[#allocation39_spill] sm:$0xff]  ;;  %v6702_v47 = vld [vmem:[#allocation42_spill] sm:$0xff] }
 0x15a   :  { %1483 = vmatmul.f32.gmra.mxu2 %v4972_v49  ;;  %v5007_v45 = vmax.f32 %v846_v56, 0.0  ;;  %1583 = vmatpush.msra.mxu1 %v6693_v43  ;;  %v5046_v53 = vmax.f32 %v499_v4, 0.0  ;;  %v6699_v56 = vld [vmem:[#allocation33_spill] sm:$0xff] }
 0x15b   :  { %v848_v22 = vpop.f32.mrf.mxu2  ;;  %1617 = vmatpush.msra.mxu2 %v6691_v16  ;;  %1641 = vmatpush.msrb.mxu3 %v6694_v1  ;;  %v6705_v16 = vld [vmem:[#allocation45_spill] sm:$0xff]  ;;  %v1086_v1 = vsel %vm294_vm3, %v1083_v44, %v1085_v32 }
 0x15c   :  { %v1429_v37 = vrot.slane %v5007_v45, 5  ;;  %v1448_v34 = vrot.slane %v5007_v45, 6  ;;  %1674 = vmatpush.msrb.mxu0 %v6695_v40  ;;  %1584 = vmatpush.msra.mxu1 %v6696_v33  ;;  %v1049_v62 = vrot.slane %v5046_v53, 4  ;;  %v6708_v43 = vld [vmem:[#allocation49_spill] sm:$0xff]  ;;  %v6709_v33 = vld [vmem:[#allocation50_spill] sm:$0xff] }
 0x15d   :  { %v810_v26 = vpop.f32.mrf.mxu1  ;;  %1618 = vmatpush.msra.mxu2 %v4780_v30 }
 0x15e   :  { %1263 = vmatmul.f32.gmra.mxu3 %v1046_v5  ;;  %v811_v52 = vadd.f32 %v810_v26, %v773_v28  ;;  %v775_v38 = vpop.f32.mrf.mxu0  ;;  %v5030_v36 = vsel %vm258_vm1, %v1427_v9, %v1429_v37  ;;  %v5033_v57 = vsel %vm294_vm3, %v1446_v0, %v1448_v34  ;;  %v6697_v9 = vld [vmem:[#allocation31_spill] sm:$0xff]  ;;  %v1064_v0 = vrot.slane %v4885_v7, 5  ;;  %1675 = vmatpush.msrb.mxu0 %v6698_v63  ;;  %v6701_v28 = vld [vmem:[#allocation36_spill] sm:$0xff]  ;;  %v6703_v5 = vld [vmem:[#allocation38_spill] sm:$0xff] }
 0x15f   :  { %v776_v30 = vadd.f32 %v775_v38, %v738_v24  ;;  %1619 = vmatpush.msra.mxu2 %v4802_v10  ;;  %1642 = vmatpush.msrb.mxu3 %v6697_v9  ;;  %v6706_v24 = vld [vmem:[#allocation48_spill] sm:$0xff]  ;;  %v1068_v9 = vrot.slane %v5046_v53, 5 }
 0x160   :  { %v849_v50 = vadd.f32 %v848_v22, %v811_v52  ;;  %1676 = vmatpush.msrb.mxu0 %v6700_v58  ;;  %v1065_v35 = vsel %vm258_vm1, %v1062_v39, %v1064_v0  ;;  %v1084_v22 = vsel %vm294_vm3, %v1081_v2, %v1083_v44  ;;  %v6704_v39 = vld [vmem:[#allocation43_spill] sm:$0xff]  ;;  %v1066_v2 = vrot.slane %v4910_v48, 5 }
 0x161   :  { %1295 = vmatmul.f32.gmra.mxu0 %v1063_v23  ;;  %1330 = vmatmul.f32.gmra.mxu1 %v1082_v14  ;;  %v6707_v14 = vld [vmem:[#allocation46_spill] sm:$0xff]  ;;  %v6711_v44 = vld [vmem:[#allocation55_spill] sm:$0xff]  ;;  %v1358_v58 = vrot.slane %v5007_v45, 1 }
 0x162   :  { %1486 = vmatmul.f32.gmra.mxu2 %v5007_v45  ;;  %v5039_v25 = vmax.f32 %v849_v50, 0.0  ;;  %1643 = vmatpush.msrb.mxu3 %v6699_v56  ;;  %v1067_v50 = vsel %vm258_vm1, %v1064_v0, %v1066_v2  ;;  %v1087_v0 = vrot.slane %v5046_v53, 6 }
 0x163   :  { %v851_v15 = vpop.f32.mrf.mxu2  ;;  %1677 = vmatpush.msrb.mxu0 %v6702_v47 }
 0x164   :  { %v1431_v3 = vrot.slane %v5039_v25, 5  ;;  %v1450_v55 = vrot.slane %v5039_v25, 6  ;;  %1644 = vmatpush.msrb.mxu3 %v6701_v28  ;;  %v1373_v28 = vrot.slane %v4972_v49, 2 }
 0x165   :  { %v813_v18 = vpop.f32.mrf.mxu1  ;;  %1678 = vmatpush.msrb.mxu0 %v6704_v39 }
 0x166   :  { %1266 = vmatmul.f32.gmra.mxu3 %v1048_v6  ;;  %v814_v10 = vadd.f32 %v813_v18, %v776_v30  ;;  %v778_v7 = vpop.f32.mrf.mxu0  ;;  %v5056_v60 = vsel %vm258_vm1, %v1429_v37, %v1431_v3  ;;  %v5062_v51 = vsel %vm294_vm3, %v1448_v34, %v1450_v55  ;;  %v1050_v37 = vsel %vm237_vm5, %v1047_v59, %v1049_v62  ;;  %v6712_v6 = vld [vmem:[#allocation54_spill] sm:$0xff] }
 0x167   :  { %v779_v31 = vadd.f32 %v778_v7, %v741_v11  ;;  %1645 = vmatpush.msrb.mxu3 %v6703_v5  ;;  %1679 = vmatpush.msrb.mxu0 %v6706_v24  ;;  %v1355_v59 = vrot.slane %v4958_v27, 1  ;;  %v1356_v30 = vrot.slane %v4972_v49, 1  ;;  %v1088_v11 = vsel %vm294_vm3, %v1085_v32, %v1087_v0  ;;  %v6716_v5 = vld [vmem:[#allocation59_spill] sm:$0xff] }
 0x168   :  { %v852_v29 = vadd.f32 %v851_v15, %v814_v10  ;;  %v1069_v10 = vsel %vm258_vm1, %v1066_v2, %v1068_v9  ;;  %v1372_v7 = vrot.slane %v4958_v27, 2  ;;  %v1407_v62 = vrot.slane %v4958_v27, 4 }
 0x169   :  { %1298 = vmatmul.f32.gmra.mxu0 %v1065_v35  ;;  %1333 = vmatmul.f32.gmra.mxu1 %v1084_v22  ;;  %v1357_v63 = vsel %vm146_vm0, %v1355_v59, %v1356_v30  ;;  %v1389_v35 = vrot.slane %v4958_v27, 3  ;;  %v1390_v22 = vrot.slane %v4972_v49, 3  ;;  %v1359_v47 = vsel %vm146_vm0, %v1356_v30, %v1358_v58 }
 0x16a   :  { %1489 = vmatmul.f32.gmra.mxu2 %v5039_v25  ;;  %v5067_v26 = vmax.f32 %v852_v29, 0.0  ;;  %1646 = vmatpush.msrb.mxu3 %v6705_v16  ;;  %v6715_v29 = vld [vmem:[#allocation58_spill] sm:$0xff]  ;;  %v1374_v39 = vsel %vm181_vm6, %v1372_v7, %v1373_v28  ;;  %v1360_v16 = vrot.slane %v5039_v25, 1  ;;  %v1375_v27 = vrot.slane %v5007_v45, 2 }
 0x16b   :  { %v854_v52 = vpop.f32.mrf.mxu2  ;;  %1680 = vmatpush.msrb.mxu0 %v6708_v43  ;;  %v1391_v2 = vsel %vm202_vm2, %v1389_v35, %v1390_v22  ;;  %v1377_v24 = vrot.slane %v5039_v25, 2 }
 0x16c   :  { %v1433_v38 = vrot.slane %v5067_v26, 5  ;;  %v1452_v46 = vrot.slane %v5067_v26, 6  ;;  %1647 = vmatpush.msrb.mxu3 %v6707_v14 }
 0x16d   :  { %v816_v34 = vpop.f32.mrf.mxu1  ;;  %1681 = vmatpush.msrb.mxu0 %v6710_v54 }
 0x16e   :  { %1269 = vmatmul.f32.gmra.mxu3 %v1050_v37  ;;  %v817_v23 = vadd.f32 %v816_v34, %v779_v31  ;;  %v5080_v48 = vsel %vm258_vm1, %v1431_v3, %v1433_v38  ;;  %v5085_v4 = vsel %vm294_vm3, %v1450_v55, %v1452_v46  ;;  %v6713_v3 = vld [vmem:[#allocation56_spill] sm:$0xff]  ;;  %v1408_v31 = vrot.slane %v4972_v49, 4 }
 0x16f   :  { %1648 = vmatpush.msrb.mxu3 %v6709_v33  ;;  %1682 = vmatpush.msrb.mxu0 %v6712_v6  ;;  %v1361_v49 = vsel %vm146_vm0, %v1358_v58, %v1360_v16  ;;  %v1410_v37 = vrot.slane %v5007_v45, 4  ;;  %v1376_v34 = vsel %vm181_vm6, %v1373_v28, %v1375_v27  ;;  %v1414_v33 = vrot.slane %v5067_v26, 4 }
 0x170   :  { %v855_v40 = vadd.f32 %v854_v52, %v817_v23  ;;  %v1409_v32 = vsel %vm237_vm5, %v1407_v62, %v1408_v31 }
 0x171   :  { %1301 = vmatmul.f32.gmra.mxu0 %v1067_v50  ;;  %1336 = vmatmul.f32.gmra.mxu1 %v1086_v1  ;;  %v781_v1 = vpop.f32.mrf.mxu0 }
 0x172   :  { %1492 = vmatmul.f32.gmra.mxu2 %v5067_v26  ;;  %v5091_v15 = vmax.f32 %v855_v40, 0.0  ;;  %1649 = vmatpush.msrb.mxu3 %v6711_v44  ;;  %v1379_v40 = vrot.slane %v5067_v26, 2 }
 0x173   :  { %1683 = vmatpush.msrb.mxu0 %v4788_v19  ;;  %v6714_v19 = vld [vmem:[#allocation57_spill] sm:$0xff]  ;;  %v857_v6 = vpop.f32.mrf.mxu2 }
 0x174   :  { %v1435_v18 = vrot.slane %v5091_v15, 5  ;;  %v1454_v56 = vrot.slane %v5091_v15, 6  ;;  %1650 = vmatpush.msrb.mxu3 %v6713_v3  ;;  %v1364_v50 = vrot.slane %v5091_v15, 1  ;;  %v1381_v3 = vrot.slane %v5091_v15, 2 }
 0x175   :  { %1684 = vmatpush.msrb.mxu0 %v6714_v19  ;;  %v819_v54 = vpop.f32.mrf.mxu1 }
 0x176   :  { %1515 = vmatmul.f32.vlgmr.msra.gmra.mxu3 %v1357_v63  ;;  %v5106_v55 = vsel %vm258_vm1, %v1433_v38, %v1435_v18  ;;  %v5111_v53 = vsel %vm294_vm3, %v1452_v46, %v1454_v56  ;;  %v1412_v38 = vrot.slane %v5039_v25, 4  ;;  %v1378_v46 = vsel %vm181_vm6, %v1375_v27, %v1377_v24 }
 0x177   :  { %1651 = vmatpush.msrb.mxu3 %v4811_v8  ;;  %1685 = vmatpush.msrb.mxu0 %v6716_v5  ;;  %v6717_v8 = vld [vmem:[#allocation60_spill] sm:$0xff]  ;;  %v1382_v7 = vsel %vm181_vm6, %v1379_v40, %v1381_v3 }
 0x178   :  { %v1413_v43 = vsel %vm237_vm5, %v1410_v37, %v1412_v38  ;;  %v1415_v63 = vsel %vm237_vm5, %v1412_v38, %v1414_v33 }
 0x179   :  { %1304 = vmatmul.f32.gmra.mxu0 %v1069_v10  ;;  %1339 = vmatmul.f32.gmra.mxu1 %v1088_v11  ;;  %v1398_v10 = vrot.slane %v5091_v15, 3 }
 0x17a   :  { %1495 = vmatmul.f32.gmra.mxu2 %v5091_v15  ;;  %1652 = vmatpush.msrb.mxu3 %v6715_v29 }
 0x17b   :  { %1686 = vmatpush.msrb.mxu0 %v6717_v8 }
 0x17c   :  { %1653 = vmatpush.msrb.mxu3 %v4845_v42  ;;  %v1392_v42 = vrot.slane %v5007_v45, 3  ;;  %v1394_v45 = vrot.slane %v5039_v25, 3  ;;  %v1396_v25 = vrot.slane %v5067_v26, 3 }
 0x17d   :  { %1687 = vmatpush.msrb.mxu0 %v4859_v13  ;;  %v1411_v13 = vsel %vm237_vm5, %v1408_v31, %v1410_v37 }
 0x17e   :  { %1518 = vmatmul.f32.gmra.mxu3 %v1359_v47  ;;  %v1393_v52 = vsel %vm202_vm2, %v1390_v22, %v1392_v42  ;;  %v1395_v23 = vsel %vm202_vm2, %v1392_v42, %v1394_v45  ;;  %v1397_v9 = vsel %vm202_vm2, %v1394_v45, %v1396_v25  ;;  %v1399_v28 = vsel %vm202_vm2, %v1396_v25, %v1398_v10 }
 0x17f   :  { %1654 = vmatpush.msrb.mxu3 %v4868_v21  ;;  %1688 = vmatpush.msrb.mxu0 %v4873_v20  ;;  %v1362_v21 = vrot.slane %v5067_v26, 1  ;;  %v1416_v26 = vrot.slane %v5091_v15, 4 }
 0x181   :  { %1550 = vmatmul.f32.vlgmr.msra.gmra.mxu0 %v1374_v39  ;;  %1585 = vmatmul.f32.vlgmr.msra.gmra.mxu1 %v1391_v2  ;;  %v1363_v20 = vsel %vm146_vm0, %v1360_v16, %v1362_v21  ;;  %v1365_v30 = vsel %vm146_vm0, %v1362_v21, %v1364_v50  ;;  %v1417_v29 = vsel %vm237_vm5, %v1414_v33, %v1416_v26 }
 0x182   :  { %1620 = vmatmul.f32.vlgmr.msra.gmra.mxu2 %v1409_v32  ;;  %1689 = vmatpush.msrb.mxu0 %v4883_v41  ;;  %v743_v41 = vpop.f32.mrf.mxu3 }
 0x183   :  { %v744_v14 = vadd.f32 %v4570_v12, %v743_v41  ;;  %v1380_v12 = vsel %vm181_vm6, %v1377_v24, %v1379_v40 }
 0x185   :  { %v782_v59 = vadd.f32 %v781_v1, %v744_v14 }
 0x186   :  { %1521 = vmatmul.f32.gmra.mxu3 %v1361_v49 }
 0x187   :  { %v820_v0 = vadd.f32 %v819_v54, %v782_v59 }
 0x189   :  { %1553 = vmatmul.f32.gmra.mxu0 %v1376_v34  ;;  %1588 = vmatmul.f32.gmra.mxu1 %v1393_v52  ;;  %v858_v11 = vadd.f32 %v857_v6, %v820_v0 }
 0x18a   :  { %1623 = vmatmul.f32.gmra.mxu2 %v1411_v13 }
 0x18b   :  { %v5167_v35 = vmax.f32 %v858_v11, 0.0 }
 0x18d   :  { %v1418_v62 = vrot.slane %v5167_v35, 4  ;;  %v1456_v59 = vrot.slane %v5167_v35, 6 }
 0x18e   :  { %1524 = vmatmul.f32.gmra.mxu3 %v1363_v20 }
 0x18f   :  { %v1419_v39 = vsel %vm237_vm5, %v1416_v26, %v1418_v62 }
 0x191   :  { %1556 = vmatmul.f32.gmra.mxu0 %v1378_v46  ;;  %1591 = vmatmul.f32.gmra.mxu1 %v1395_v23 }
 0x192   :  { %1626 = vmatmul.f32.gmra.mxu2 %v1413_v43 }
 0x196   :  { %1527 = vmatmul.f32.gmra.mxu3 %v1365_v30 }
 0x199   :  { %v1115_v44 = vpop.f32.mrf.mxu3  ;;  %1559 = vmatmul.f32.gmra.mxu0 %v1380_v12  ;;  %1594 = vmatmul.f32.gmra.mxu1 %v1397_v9 }
 0x19a   :  { %1629 = vmatmul.f32.gmra.mxu2 %v1415_v63 }
 0x19e   :  { %v1150_v58 = vpop.f32.mrf.mxu0  ;;  %v1185_v19 = vpop.f32.mrf.mxu1  ;;  %1530 = vmatmul.f32.gmra.mxu3 %v1364_v50 }
 0x1a1   :  { %v1118_v22 = vpop.f32.mrf.mxu3  ;;  %1562 = vmatmul.f32.gmra.mxu0 %v1382_v7  ;;  %1597 = vmatmul.f32.gmra.mxu1 %v1399_v28 }
 0x1a2   :  { %1632 = vmatmul.f32.gmra.mxu2 %v1417_v29 }
 0x1a5   :  { %v1220_v47 = vpop.f32.mrf.mxu2 }
 0x1a6   :  { %v1153_v31 = vpop.f32.mrf.mxu0  ;;  %v1188_v5 = vpop.f32.mrf.mxu1  ;;  %1655 = vmatmul.f32.vlgmr.msrb.gmra.mxu3 %v4998_v61 }
 0x1a9   :  { %v1121_v8 = vpop.f32.mrf.mxu3  ;;  %1565 = vmatmul.f32.gmra.mxu0 %v1381_v3  ;;  %1600 = vmatmul.f32.gmra.mxu1 %v1398_v10 }
 0x1aa   :  { %1635 = vmatmul.f32.gmra.mxu2 %v1419_v39 }
 0x1ad   :  { %v1223_v16 = vpop.f32.mrf.mxu2 }
 0x1ae   :  { %v1156_v2 = vpop.f32.mrf.mxu0  ;;  %v1191_v32 = vpop.f32.mrf.mxu1  ;;  %1658 = vmatmul.f32.gmra.mxu3 %v5030_v36 }
 0x1b1   :  { %v1124_v27 = vpop.f32.mrf.mxu3  ;;  %1690 = vmatmul.f32.vlgmr.msrb.gmra.mxu0 %v5001_v17  ;;  %v5192_v17 = vld [vmem:[%s6718_s4] ss:$0 sm:$0xff] }
 0x1b2   :  { %v1119_v45 = vadd.f32 %v5192_v17, %v1118_v22  ;;  %v1125_v3 = vadd.f32 %v5192_v17, %v1124_v27 }
 0x1b4   :  { %v1154_v38 = vadd.f32 %v1153_v31, %v1119_v45 }
 0x1b5   :  { %v1226_v61 = vpop.f32.mrf.mxu2 }
 0x1b6   :  { %v1159_v42 = vpop.f32.mrf.mxu0  ;;  %v5175_v49 = vpop.f32.mrf.mxu1  ;;  %1661 = vmatmul.f32.gmra.mxu3 %v5056_v60  ;;  %v1189_v43 = vadd.f32 %v1188_v5, %v1154_v38 }
 0x1b8   :  { %v1224_v40 = vadd.f32 %v1223_v16, %v1189_v43 }
 0x1b9   :  { %v5178_v37 = vpop.f32.mrf.mxu3  ;;  %1693 = vmatmul.f32.gmra.mxu0 %v5033_v57  ;;  %v1116_v57 = vadd.f32 %v5192_v17, %v1115_v44  ;;  %v1457_v44 = vsel %vm294_vm3, %v1454_v56, %v1456_v59 }
 0x1ba   :  { %v1128_v5 = vadd.f32 %v5192_v17, %v5178_v37 }
 0x1bb   :  { %v1151_v24 = vadd.f32 %v1150_v58, %v1116_v57  ;;  %v1160_v58 = vadd.f32 %v1159_v42, %v1125_v3 }
 0x1bd   :  { %v1229_v60 = vpop.f32.mrf.mxu2  ;;  %v1186_v20 = vadd.f32 %v1185_v19, %v1151_v24  ;;  %v1195_v29 = vadd.f32 %v5175_v49, %v1160_v58 }
 0x1be   :  { %v5181_v34 = vpop.f32.mrf.mxu0  ;;  %v5183_v52 = vpop.f32.mrf.mxu1  ;;  %1664 = vmatmul.f32.gmra.mxu3 %v5080_v48 }
 0x1bf   :  { %v1221_v14 = vadd.f32 %v1220_v47, %v1186_v20  ;;  %v1163_v27 = vadd.f32 %v5181_v34, %v1128_v5 }
 0x1c1   :  { %v5186_v36 = vpop.f32.mrf.mxu3  ;;  %1696 = vmatmul.f32.gmra.mxu0 %v5062_v51  ;;  %v1437_v51 = vrot.slane %v5167_v35, 5  ;;  %v1198_v37 = vadd.f32 %v5183_v52, %v1163_v27 }
 0x1c2   :  { %v1131_v34 = vadd.f32 %v5192_v17, %v5186_v36 }
 0x1c3   :  { %v1438_v46 = vsel %vm258_vm1, %v1435_v18, %v1437_v51 }
 0x1c5   :  { %v5203_v41 = vpop.f32.mrf.mxu2 }
 0x1c6   :  { %v5194_v13 = vpop.f32.mrf.mxu0  ;;  %v5196_v21 = vpop.f32.mrf.mxu1  ;;  %1667 = vmatmul.f32.gmra.mxu3 %v5106_v55 }
 0x1c7   :  { %v1166_v52 = vadd.f32 %v5194_v13, %v1131_v34 }
 0x1c9   :  { %v1255_v48 = vpop.f32.mrf.mxu3  ;;  %1699 = vmatmul.f32.gmra.mxu0 %v5085_v4  ;;  %v1122_v4 = vadd.f32 %v5192_v17, %v1121_v8 }
 0x1ca   :  { %v1256_v50 = vadd.f32 %v1255_v48, %v1221_v14  ;;  %v1233_v14 = vadd.f32 %v5203_v41, %v1198_v37 }
 0x1cb   :  { %v1157_v30 = vadd.f32 %v1156_v2, %v1122_v4  ;;  %v1230_v2 = vadd.f32 %v1229_v60, %v1195_v29 }
 0x1cd   :  { %v5211_v18 = vpop.f32.mrf.mxu2  ;;  %v1192_v63 = vadd.f32 %v1191_v32, %v1157_v30 }
 0x1ce   :  { %v1290_v23 = vpop.f32.mrf.mxu0  ;;  %v1325_v55 = vpop.f32.mrf.mxu1  ;;  %1670 = vmatmul.f32.gmra.mxu3 %v1438_v46 }
 0x1cf   :  { %v1291_v25 = vadd.f32 %v1290_v23, %v1256_v50  ;;  %v1227_v10 = vadd.f32 %v1226_v61, %v1192_v63 }
 0x1d1   :  { %v1258_v1 = vpop.f32.mrf.mxu3  ;;  %1702 = vmatmul.f32.gmra.mxu0 %v5111_v53  ;;  %v1326_v9 = vadd.f32 %v1325_v55, %v1291_v25 }
 0x1d2   :  { %v1259_v33 = vadd.f32 %v1258_v1, %v1224_v40 }
 0x1d3   :  { %v1343_v11 = vmax.f32 %v1326_v9, 0.0 }
 0x1d5   :  { %v1716_v35 = vsel %vm1715_vm7, %v1343_v11, -inf  ;;  %v1724_v15 = vsel %vm1723_vm8, %v1343_v11, -inf  ;;  %v5221_v47 = vpop.f32.mrf.mxu2 }
 0x1d6   :  { %v1293_v54 = vpop.f32.mrf.mxu0  ;;  %v1328_v12 = vpop.f32.mrf.mxu1  ;;  %v1717_v8 = vrot.slane %v1716_v35, 4  ;;  %v1725_v39 = vrot.slane %v1724_v15, 4 }
 0x1d7   :  { %v1294_v0 = vadd.f32 %v1293_v54, %v1259_v33 }
 0x1d8   :  { %v1718_v49 = vmax.f32 %v1716_v35, %v1717_v8  ;;  %v1726_v24 = vmax.f32 %v1724_v15, %v1725_v39 }
 0x1d9   :  { %v1329_v53 = vadd.f32 %v1328_v12, %v1294_v0  ;;  %v1261_v6 = vpop.f32.mrf.mxu3  ;;  %1705 = vmatmul.f32.gmra.mxu0 %v1457_v44 }
 0x1da   :  { %v1262_v19 = vadd.f32 %v1261_v6, %v1227_v10  ;;  %v1719_v43 = vrot.slane %v1718_v49, 2  ;;  %v1727_v50 = vrot.slane %v1726_v24, 2  ;;  %v1201_v10 = vadd.f32 %v5196_v21, %v1166_v52 }
 0x1db   :  { %v1344_v26 = vmax.f32 %v1329_v53, 0.0 }
 0x1dc   :  { %v1720_v9 = vmax.f32 %v1718_v49, %v1719_v43  ;;  %v1728_v36 = vmax.f32 %v1726_v24, %v1727_v50 }
 0x1dd   :  { %v1731_v22 = vsel %vm1715_vm7, %v1344_v26, -inf  ;;  %v1738_v42 = vsel %vm1723_vm8, %v1344_v26, -inf  ;;  %v5233_v40 = vpop.f32.mrf.mxu2 }
 0x1de   :  { %v1296_v7 = vpop.f32.mrf.mxu0  ;;  %v1331_v28 = vpop.f32.mrf.mxu1  ;;  %v1732_v32 = vrot.slane %v1731_v22, 4  ;;  %v1739_v20 = vrot.slane %v1738_v42, 4  ;;  %v1729_v35 = vrot.slane %v1728_v36, 1 }
 0x1df   :  { %v1297_v56 = vadd.f32 %v1296_v7, %v1262_v19  ;;  %v1236_v7 = vadd.f32 %v5211_v18, %v1201_v10 }
 0x1e0   :  { %v1733_v45 = vmax.f32 %v1731_v22, %v1732_v32  ;;  %v1740_v4 = vmax.f32 %v1738_v42, %v1739_v20 }
 0x1e1   :  { %v1332_v62 = vadd.f32 %v1331_v28, %v1297_v56  ;;  %v1264_v31 = vpop.f32.mrf.mxu3  ;;  %v1721_v28 = vrot.slane %v1720_v9, 1 }
 0x1e2   :  { %v1265_v57 = vadd.f32 %v1264_v31, %v1230_v2  ;;  %v1734_v1 = vrot.slane %v1733_v45, 2  ;;  %v1741_v53 = vrot.slane %v1740_v4, 2 }
 0x1e3   :  { %v1345_v16 = vmax.f32 %v1332_v62, 0.0  ;;  %v1722_v32 = vmax.f32 %v1720_v9, %v1721_v28 }
 0x1e4   :  { %v1735_v63 = vmax.f32 %v1733_v45, %v1734_v1  ;;  %v1742_v56 = vmax.f32 %v1740_v4, %v1741_v53 }
 0x1e5   :  { %v1745_v61 = vsel %vm1715_vm7, %v1345_v16, -inf  ;;  %v1752_v60 = vsel %vm1723_vm8, %v1345_v16, -inf  ;;  %v5240_v5 = vpop.f32.mrf.mxu2  ;;  %v1730_v16 = vmax.f32 %v1728_v36, %v1729_v35 }
 0x1e6   :  { %v1299_v48 = vpop.f32.mrf.mxu0  ;;  %v1334_v51 = vpop.f32.mrf.mxu1  ;;  %v1746_v46 = vrot.slane %v1745_v61, 4  ;;  %v1753_v25 = vrot.slane %v1752_v60, 4  ;;  %v1736_v15 = vrot.slane %v1735_v63, 1 }
 0x1e7   :  { %v1300_v38 = vadd.f32 %v1299_v48, %v1265_v57  ;;  %v1743_v57 = vrot.slane %v1742_v56, 1  ;;  %v1795_v34 = vsel %vm1794_vm9, %v1722_v32, %v1730_v16 }
 0x1e8   :  { %v1747_v30 = vmax.f32 %v1745_v61, %v1746_v46  ;;  %v1754_v6 = vmax.f32 %v1752_v60, %v1753_v25  ;;  %v1737_v61 = vmax.f32 %v1735_v63, %v1736_v15 }
 0x1e9   :  { %v1335_v23 = vadd.f32 %v1334_v51, %v1300_v38  ;;  %v1267_v55 = vpop.f32.mrf.mxu3 }
 0x1ea   :  { %v1268_v12 = vadd.f32 %v1267_v55, %v1233_v14  ;;  %v1748_v11 = vrot.slane %v1747_v30, 2  ;;  %v1755_v22 = vrot.slane %v1754_v6, 2  ;;  %v1744_v14 = vmax.f32 %v1742_v56, %v1743_v57 }
 0x1eb   :  { %v1346_v59 = vmax.f32 %v1335_v23, 0.0  ;;  %v1796_v50 = vsel %vm294_vm3, %v1795_v34, %v1737_v61 }
 0x1ec   :  { %v1749_v62 = vmax.f32 %v1747_v30, %v1748_v11  ;;  %v1756_v49 = vmax.f32 %v1754_v6, %v1755_v22  ;;  %v1797_v36 = vsel %vm258_vm1, %v1796_v50, %v1744_v14 }
 0x1ed   :  { %v1759_v33 = vsel %vm1715_vm7, %v1346_v59, -inf  ;;  %v1766_v54 = vsel %vm1723_vm8, %v1346_v59, -inf  ;;  %v5247_v9 = vpop.f32.mrf.mxu2 }
 0x1ee   :  { %v1760_v0 = vrot.slane %v1759_v33, 4  ;;  %v1302_v41 = vpop.f32.mrf.mxu0  ;;  %v1337_v44 = vpop.f32.mrf.mxu1  ;;  %v1767_v26 = vrot.slane %v1766_v54, 4  ;;  %v1750_v48 = vrot.slane %v1749_v62, 1  ;;  %v1757_v4 = vrot.slane %v1756_v49, 1 }
 0x1ef   :  { %v1303_v3 = vadd.f32 %v1302_v41, %v1268_v12 }
 0x1f0   :  { %v1761_v13 = vmax.f32 %v1759_v33, %v1760_v0  ;;  %v1768_v31 = vmax.f32 %v1766_v54, %v1767_v26  ;;  %v1751_v1 = vmax.f32 %v1749_v62, %v1750_v48  ;;  %v1758_v0 = vmax.f32 %v1756_v49, %v1757_v4 }
 0x1f1   :  { %v1338_v58 = vadd.f32 %v1337_v44, %v1303_v3  ;;  %v1270_v19 = vpop.f32.mrf.mxu3 }
 0x1f2   :  { %v1762_v8 = vrot.slane %v1761_v13, 2  ;;  %v1271_v2 = vadd.f32 %v1270_v19, %v1236_v7  ;;  %v1769_v51 = vrot.slane %v1768_v31, 2  ;;  %v1798_v63 = vsel %vm237_vm5, %v1797_v36, %v1751_v1 }
 0x1f3   :  { %v1347_v29 = vmax.f32 %v1338_v58, 0.0  ;;  %v1799_v26 = vsel %vm202_vm2, %v1798_v63, %v1758_v0 }
 0x1f4   :  { %v1763_v37 = vmax.f32 %v1761_v13, %v1762_v8  ;;  %v1770_v25 = vmax.f32 %v1768_v31, %v1769_v51  ;;  %v1482_v51 = vadd.f32 %v5192_v17, %v5221_v47 }
 0x1f5   :  { %v1773_v21 = vsel %vm1715_vm7, %v1347_v29, -inf  ;;  %v1780_v39 = vsel %vm1723_vm8, %v1347_v29, -inf  ;;  %v5257_v62 = vpop.f32.mrf.mxu2 }
 0x1f6   :  { %v1774_v18 = vrot.slane %v1773_v21, 4  ;;  %v1781_v27 = vrot.slane %v1780_v39, 4  ;;  %v1305_v42 = vpop.f32.mrf.mxu0  ;;  %v1340_v38 = vpop.f32.mrf.mxu1  ;;  %v1764_v59 = vrot.slane %v1763_v37, 1  ;;  %v1771_v41 = vrot.slane %v1770_v25, 1 }
 0x1f7   :  { %v1306_v24 = vadd.f32 %v1305_v42, %v1271_v2 }
 0x1f8   :  { %v1775_v45 = vmax.f32 %v1773_v21, %v1774_v18  ;;  %v1782_v20 = vmax.f32 %v1780_v39, %v1781_v27  ;;  %v1765_v53 = vmax.f32 %v1763_v37, %v1764_v59  ;;  %v1772_v13 = vmax.f32 %v1770_v25, %v1771_v41 }
 0x1f9   :  { %v1341_v46 = vadd.f32 %v1340_v38, %v1306_v24  ;;  %v1516_v60 = vpop.f32.mrf.mxu3 }
 0x1fa   :  { %v1776_v23 = vrot.slane %v1775_v45, 2  ;;  %v1783_v55 = vrot.slane %v1782_v20, 2  ;;  %v1800_v19 = vsel %vm181_vm6, %v1799_v26, %v1765_v53 }
 0x1fb   :  { %v1348_v43 = vmax.f32 %v1341_v46, 0.0  ;;  %v5254_v56 = vsel %vm146_vm0, %v1800_v19, %v1772_v13 }
 0x1fc   :  { %v1777_v52 = vmax.f32 %v1775_v45, %v1776_v23  ;;  %v1784_v30 = vmax.f32 %v1782_v20, %v1783_v55  ;;  %v1939_v21 = vrot.slane %v5254_v56, 6  ;;  %v1932_v2 = vrot.slane %v5254_v56, 2 }
 0x1fd   :  { %v1787_v33 = vsel %vm1715_vm7, %v1348_v43, -inf  ;;  %v5269_v42 = vpop.f32.mrf.mxu2  ;;  %v1517_v20 = vadd.f32 %v1516_v60, %v1482_v51  ;;  %v1485_v55 = vadd.f32 %v5192_v17, %v5233_v40  ;;  %v1488_v60 = vadd.f32 %v5192_v17, %v5240_v5  ;;  %v5306_v51 = vld [vmem:[%s6477_s5 + $0x68] sm:$0xff] }
 0x1fe   :  { %v1788_v54 = vrot.slane %v1787_v33, 4  ;;  %v1551_v12 = vpop.f32.mrf.mxu0  ;;  %v1778_v6 = vrot.slane %v1777_v52, 1  ;;  %v1785_v3 = vrot.slane %v1784_v30, 1  ;;  %v1586_v49 = vpop.f32.mrf.mxu1 }
 0x1ff   :  { %v1552_v38 = vadd.f32 %v1551_v12, %v1517_v20 }
 0x200   :  { %v1789_v44 = vmax.f32 %v1787_v33, %v1788_v54  ;;  %v1779_v7 = vmax.f32 %v1777_v52, %v1778_v6  ;;  %v1786_v28 = vmax.f32 %v1784_v30, %v1785_v3 }
 0x201   :  { %v1519_v10 = vpop.f32.mrf.mxu3  ;;  %v1587_v34 = vadd.f32 %v1586_v49, %v1552_v38 }
 0x202   :  { %v1790_v11 = vrot.slane %v1789_v44, 2  ;;  %v1802_v29 = vsel %vm1794_vm9, %v1779_v7, %v1786_v28  ;;  %v1520_v43 = vadd.f32 %v1519_v10, %v1485_v55  ;;  %v1491_v10 = vadd.f32 %v5192_v17, %v5247_v9  ;;  %v5292_v7 = vld [vmem:[%s6477_s5 + $0x78] sm:$0xff] }
 0x203   :  { %1952 = vmatpush.msrb.mxu1 %v5292_v7 }
 0x204   :  { %v1791_v58 = vmax.f32 %v1789_v44, %v1790_v11 }
 0x205   :  { %v1621_v24 = vpop.f32.mrf.mxu2 }
 0x206   :  { %v1792_v35 = vrot.slane %v1791_v58, 1  ;;  %v1554_v15 = vpop.f32.mrf.mxu0  ;;  %v1589_v37 = vpop.f32.mrf.mxu1  ;;  %v1622_v50 = vadd.f32 %v1621_v24, %v1587_v34 }
 0x207   :  { %v1555_v1 = vadd.f32 %v1554_v15, %v1520_v43 }
 0x208   :  { %v1793_v22 = vmax.f32 %v1791_v58, %v1792_v35 }
 0x209   :  { %v1522_v31 = vpop.f32.mrf.mxu3  ;;  %v1590_v52 = vadd.f32 %v1589_v37, %v1555_v1 }
 0x20a   :  { %v5260_v8 = vsel %vm294_vm3, %v1802_v29, %v1793_v22  ;;  %v1523_v12 = vadd.f32 %v1522_v31, %v1488_v60 }
 0x20b   :  { %v1940_v39 = vrot.slane %v5260_v8, 6 }
 0x20d   :  { %v1941_v32 = vsel %vm294_vm3, %v1939_v21, %v1940_v39  ;;  %v1624_v23 = vpop.f32.mrf.mxu2 }
 0x20e   :  { %v1557_v16 = vpop.f32.mrf.mxu0  ;;  %v3151_v18 = vpack.i.bf16 %v1932_v2, %v1941_v32  ;;  %v1592_v47 = vpop.f32.mrf.mxu1  ;;  %v1625_v36 = vadd.f32 %v1624_v23, %v1590_v52  ;;  %v5300_v2 = vld [vmem:[%s6477_s5 + $0x70] sm:$0xff]  ;;  %v5314_v23 = vld [vmem:[%s6477_s5 + $0x60] sm:$0xff] }
 0x20f   :  { %v1558_v41 = vadd.f32 %v1557_v16, %v1523_v12  ;;  %1953 = vmatpush.msrb.mxu1 %v5300_v2 }
 0x210   :  { %3152 = vrot.lane.b32.xlu1 %v3151_v18, %s3246_s29 }
 0x211   :  { %v1525_v27 = vpop.f32.mrf.mxu3  ;;  %v1593_v5 = vadd.f32 %v1592_v47, %v1558_v41  ;;  %1954 = vmatpush.msrb.mxu1 %v5306_v51 }
 0x212   :  { %v1526_v58 = vadd.f32 %v1525_v27, %v1491_v10 }
 0x213   :  { %1955 = vmatpush.msrb.mxu1 %v5314_v23 }
 0x215   :  { %v1627_v30 = vpop.f32.mrf.mxu2 }
 0x216   :  { %v1560_v61 = vpop.f32.mrf.mxu0  ;;  %v1628_v28 = vadd.f32 %v1627_v30, %v1593_v5  ;;  %v1595_v35 = vpop.f32.mrf.mxu1  ;;  %v5330_v30 = vld [vmem:[%s6477_s5 + $0x50] sm:$0xff] }
 0x217   :  { %v1561_v9 = vadd.f32 %v1560_v61, %v1526_v58  ;;  %v1494_v61 = vadd.f32 %v5192_v17, %v5257_v62 }
 0x219   :  { %v5271_v57 = vpop.f32.mrf.mxu3  ;;  %v1596_v38 = vadd.f32 %v1595_v35, %v1561_v9 }
 0x21a   :  { %v1529_v55 = vadd.f32 %v5271_v57, %v1494_v61 }
 0x21d   :  { %v1630_v15 = vpop.f32.mrf.mxu2 }
 0x21e   :  { %v5273_v48 = vpop.f32.mrf.mxu0 }
 0x221   :  { %v5277_v45 = vpop.f32.mrf.mxu3 }
 0x226   :  { %v5279_v46 = vpop.f32.mrf.mxu0 }
 0x229   :  { %v1656_v14 = vpop.f32.mrf.mxu3 }
 0x22a   :  { %v1657_v4 = vadd.f32 %v1656_v14, %v1622_v50  ;;  %v1631_v50 = vadd.f32 %v1630_v15, %v1596_v38  ;;  %v1918_v38 = vld [vmem:[%s6477_s5 + $0xe0] sm:$0xff] }
 0x22e   :  { %v1691_v25 = vpop.f32.mrf.mxu0 }
 0x22f   :  { %v1692_v59 = vadd.f32 %v1691_v25, %v1657_v4  ;;  %v5321_v4 = vld [vmem:[%s6477_s5 + $0x58] sm:$0xff]  ;;  %v1564_v25 = vadd.f32 %v5273_v48, %v1529_v55 }
 0x230   :  { %1956 = vmatpush.msrb.mxu1 %v5321_v4 }
 0x231   :  { %v1709_v33 = vmax.f32 %v1692_v59, 0.0  ;;  %v1659_v54 = vpop.f32.mrf.mxu3 }
 0x232   :  { %v1660_v63 = vadd.f32 %v1659_v54, %v1625_v36  ;;  %v1633_v54 = vpop.f32.mrf.mxu2  ;;  %1957 = vmatpush.msrb.mxu1 %v5330_v30 }
 0x233   :  { %v1804_v40 = vsel %vm1715_vm7, %v1709_v33, -inf  ;;  %v1811_v0 = vsel %vm1723_vm8, %v1709_v33, -inf  ;;  %v1598_v33 = vpop.f32.mrf.mxu1 }
 0x234   :  { %v1805_v44 = vrot.slane %v1804_v40, 4  ;;  %v1812_v53 = vrot.slane %v1811_v0, 4  ;;  %v1599_v10 = vadd.f32 %v1598_v33, %v1564_v25 }
 0x236   :  { %v1694_v6 = vpop.f32.mrf.mxu0  ;;  %v1806_v11 = vmax.f32 %v1804_v40, %v1805_v44  ;;  %v1813_v19 = vmax.f32 %v1811_v0, %v1812_v53  ;;  %v5341_v53 = vld [vmem:[%s6477_s5 + $0x40] sm:$0xff] }
 0x237   :  { %v1695_v3 = vadd.f32 %v1694_v6, %v1660_v63  ;;  %v5336_v63 = vld [vmem:[%s6477_s5 + $0x48] sm:$0xff]  ;;  %v1921_v6 = vld [vmem:[%s6477_s5 + $0xf8] sm:$0xff] }
 0x238   :  { %v1807_v32 = vrot.slane %v1806_v11, 2  ;;  %v1814_v18 = vrot.slane %v1813_v19, 2  ;;  %1958 = vmatpush.msrb.mxu1 %v5336_v63  ;;  %1972 = vmatpush.msrb.mxu2 %v1921_v6 }
 0x239   :  { %v1710_v26 = vmax.f32 %v1695_v3, 0.0  ;;  %v1662_v13 = vpop.f32.mrf.mxu3  ;;  %v1497_v3 = vadd.f32 %v5192_v17, %v5269_v42  ;;  %v1919_v17 = vld [vmem:[%s6477_s5 + $0xe8] sm:$0xff]  ;;  %2051 = vmatpush.msra.mxu3 %v1921_v6 }
 0x23a   :  { %v1663_v16 = vadd.f32 %v1662_v13, %v1628_v28  ;;  %v1808_v34 = vmax.f32 %v1806_v11, %v1807_v32  ;;  %v1815_v1 = vmax.f32 %v1813_v19, %v1814_v18  ;;  %v5355_v19 = vld [vmem:[%s6477_s5 + $0x38] sm:$0xff]  ;;  %v1634_v28 = vadd.f32 %v1633_v54, %v1599_v10  ;;  %1959 = vmatpush.msrb.mxu1 %v5341_v53  ;;  %v5407_v10 = vld [vmem:[%s6477_s5 + $0x10] sm:$0xff] }
 0x23b   :  { %v1818_v22 = vsel %vm1715_vm7, %v1710_v26, -inf  ;;  %v1825_v29 = vsel %vm1723_vm8, %v1710_v26, -inf  ;;  %v1920_v26 = vld [vmem:[%s6477_s5 + $0xf0] sm:$0xff]  ;;  %v1532_v42 = vadd.f32 %v5277_v45, %v1497_v3  ;;  %v1601_v25 = vpop.f32.mrf.mxu1 }
 0x23c   :  { %v1819_v31 = vrot.slane %v1818_v22, 4  ;;  %v1826_v39 = vrot.slane %v1825_v29, 4  ;;  %v1809_v12 = vrot.slane %v1808_v34, 1  ;;  %v1816_v48 = vrot.slane %v1815_v1, 1  ;;  %1973 = vmatpush.msrb.mxu2 %v1920_v26  ;;  %2052 = vmatpush.msra.mxu3 %v1920_v26 }
 0x23d   :  { %1960 = vmatpush.msrb.mxu1 %v5355_v19 }
 0x23e   :  { %v1820_v27 = vmax.f32 %v1818_v22, %v1819_v31  ;;  %v1827_v49 = vmax.f32 %v1825_v29, %v1826_v39  ;;  %v1697_v24 = vpop.f32.mrf.mxu0  ;;  %v1810_v22 = vmax.f32 %v1808_v34, %v1809_v12  ;;  %v1817_v29 = vmax.f32 %v1815_v1, %v1816_v48  ;;  %v5365_v39 = vld [vmem:[%s6477_s5 + $0x30] sm:$0xff]  ;;  %1974 = vmatpush.msrb.mxu2 %v1919_v17  ;;  %v5387_v1 = vld [vmem:[%s6477_s5 + $0x20] sm:$0xff]  ;;  %v1915_v48 = vld [vmem:[%s6477_s5 + $0xc8] sm:$0xff] }
 0x23f   :  { %v1698_v20 = vadd.f32 %v1697_v24, %v1663_v16  ;;  %2053 = vmatpush.msra.mxu3 %v1919_v17  ;;  %1961 = vmatpush.msrb.mxu1 %v5365_v39 }
 0x240   :  { %v1821_v37 = vrot.slane %v1820_v27, 2  ;;  %v1828_v62 = vrot.slane %v1827_v49, 2  ;;  %1975 = vmatpush.msrb.mxu2 %v1918_v38  ;;  %v1881_v55 = vsel %vm1794_vm9, %v1810_v22, %v1817_v29  ;;  %v1913_v29 = vld [vmem:[%s6477_s5 + $0xb8] sm:$0xff] }
 0x241   :  { %v1711_v14 = vmax.f32 %v1698_v20, 0.0  ;;  %v1665_v43 = vpop.f32.mrf.mxu3  ;;  %v5374_v20 = vld [vmem:[%s6477_s5 + $0x28] sm:$0xff]  ;;  %2054 = vmatpush.msra.mxu3 %v1918_v38 }
 0x242   :  { %v1822_v59 = vmax.f32 %v1820_v27, %v1821_v37  ;;  %v1666_v36 = vadd.f32 %v1665_v43, %v1631_v50  ;;  %v1829_v40 = vmax.f32 %v1827_v49, %v1828_v62  ;;  %v1567_v27 = vadd.f32 %v5279_v46, %v1532_v42  ;;  %v1917_v46 = vld [vmem:[%s6477_s5 + $0xd8] sm:$0xff]  ;;  %v1916_v62 = vld [vmem:[%s6477_s5 + $0xd0] sm:$0xff]  ;;  %1962 = vmatpush.msrb.mxu1 %v5374_v20 }
 0x243   :  { %v1832_v47 = vsel %vm1715_vm7, %v1711_v14, -inf  ;;  %v1839_v57 = vsel %vm1723_vm8, %v1711_v14, -inf  ;;  %1976 = vmatpush.msrb.mxu2 %v1917_v46  ;;  %2055 = vmatpush.msra.mxu3 %v1917_v46 }
 0x244   :  { %v1833_v60 = vrot.slane %v1832_v47, 4  ;;  %v1840_v52 = vrot.slane %v1839_v57, 4  ;;  %v1823_v5 = vrot.slane %v1822_v59, 1  ;;  %v1830_v9 = vrot.slane %v1829_v40, 1  ;;  %1963 = vmatpush.msrb.mxu1 %v5387_v1 }
 0x245   :  { %v1602_v33 = vadd.f32 %v1601_v25, %v1567_v27  ;;  %1977 = vmatpush.msrb.mxu2 %v1916_v62  ;;  %2056 = vmatpush.msra.mxu3 %v1916_v62  ;;  %v1912_v27 = vld [vmem:[%s6477_s5 + $0xb0] sm:$0xff]  ;;  %v1910_v62 = vld [vmem:[%s6477_s5 + $0xa0] sm:$0xff] }
 0x246   :  { %v1834_v0 = vmax.f32 %v1832_v47, %v1833_v60  ;;  %v1841_v41 = vmax.f32 %v1839_v57, %v1840_v52  ;;  %v1700_v44 = vpop.f32.mrf.mxu0  ;;  %v1824_v32 = vmax.f32 %v1822_v59, %v1823_v5  ;;  %v1831_v34 = vmax.f32 %v1829_v40, %v1830_v9  ;;  %v1636_v59 = vpop.f32.mrf.mxu2 }
 0x247   :  { %v1701_v11 = vadd.f32 %v1700_v44, %v1666_v36  ;;  %v5397_v36 = vld [vmem:[%s6477_s5 + $0x18] sm:$0xff]  ;;  %1978 = vmatpush.msrb.mxu2 %v1915_v48  ;;  %2057 = vmatpush.msra.mxu3 %v1915_v48  ;;  %v1908_v48 = vld [vmem:[%s6477_s5 + $0x90] sm:$0xff] }
 0x248   :  { %v1835_v13 = vrot.slane %v1834_v0, 2  ;;  %v1842_v58 = vrot.slane %v1841_v41, 2  ;;  %v1882_v47 = vsel %vm294_vm3, %v1881_v55, %v1824_v32  ;;  %1964 = vmatpush.msrb.mxu1 %v5397_v36  ;;  %v1911_v55 = vld [vmem:[%s6477_s5 + $0xa8] sm:$0xff] }
 0x249   :  { %v1712_v35 = vmax.f32 %v1701_v11, 0.0  ;;  %v1668_v15 = vpop.f32.mrf.mxu3 }
 0x24a   :  { %v1836_v31 = vmax.f32 %v1834_v0, %v1835_v13  ;;  %v1843_v16 = vmax.f32 %v1841_v41, %v1842_v58  ;;  %v1669_v37 = vadd.f32 %v1668_v15, %v1634_v28  ;;  %v1637_v0 = vadd.f32 %v1636_v59, %v1602_v33  ;;  %v1914_v15 = vld [vmem:[%s6477_s5 + $0xc0] sm:$0xff]  ;;  %1965 = vmatpush.msrb.mxu1 %v5407_v10 }
 0x24b   :  { %v1846_v45 = vsel %vm1715_vm7, %v1712_v35, -inf  ;;  %v1853_v18 = vsel %vm1723_vm8, %v1712_v35, -inf  ;;  %v1883_v41 = vsel %vm258_vm1, %v1882_v47, %v1831_v34  ;;  %v5416_v35 = vld [vmem:[%s6477_s5 + $0x8] sm:$0xff]  ;;  %1979 = vmatpush.msrb.mxu2 %v1914_v15  ;;  %2058 = vmatpush.msra.mxu3 %v1914_v15  ;;  %v5472_v33 = vld [vmem:[%s6477_s5 + $0x120] sm:$0xff] }
 0x24c   :  { %v1837_v49 = vrot.slane %v1836_v31, 1  ;;  %v1847_v24 = vrot.slane %v1846_v45, 4  ;;  %v1854_v61 = vrot.slane %v1853_v18, 4  ;;  %v1844_v60 = vrot.slane %v1843_v16, 1  ;;  %1966 = vmatpush.msrb.mxu1 %v5416_v35 }
 0x24d   :  { %1980 = vmatpush.msrb.mxu2 %v1913_v29  ;;  %2059 = vmatpush.msra.mxu3 %v1913_v29 }
 0x24e   :  { %v1848_v14 = vmax.f32 %v1846_v45, %v1847_v24  ;;  %v1855_v43 = vmax.f32 %v1853_v18, %v1854_v61  ;;  %v1703_v50 = vpop.f32.mrf.mxu0  ;;  %v1838_v57 = vmax.f32 %v1836_v31, %v1837_v49  ;;  %v1845_v5 = vmax.f32 %v1843_v16, %v1844_v60  ;;  %v5428_v18 = vld [vmem:[%s6477_s5] sm:$0xff]  ;;  %v5438_v61 = vld [vmem:[%s6477_s5 + $0x138] sm:$0xff] }
 0x24f   :  { %v1704_v52 = vadd.f32 %v1703_v50, %v1669_v37  ;;  %1967 = vmatpush.msrb.mxu1 %v5428_v18  ;;  %1981 = vmatpush.msrb.mxu2 %v1912_v27 }
 0x250   :  { %v1849_v54 = vrot.slane %v1848_v14, 2  ;;  %v1856_v12 = vrot.slane %v1855_v43, 2  ;;  %v1884_v11 = vsel %vm237_vm5, %v1883_v41, %v1838_v57  ;;  %2060 = vmatpush.msra.mxu3 %v1912_v27  ;;  %v5462_v57 = vld [vmem:[%s6477_s5 + $0x128] sm:$0xff]  ;;  %v5482_v41 = vld [vmem:[%s6477_s5 + $0x118] sm:$0xff] }
 0x251   :  { %v1713_v40 = vmax.f32 %v1704_v52, 0.0  ;;  %v1671_v3 = vpop.f32.mrf.mxu3  ;;  %v1885_v49 = vsel %vm202_vm2, %v1884_v11, %v1845_v5  ;;  %2000 = vmatpush.msra.mxu1 %v5438_v61  ;;  %1982 = vmatpush.msrb.mxu2 %v1911_v55  ;;  %v1909_v52 = vld [vmem:[%s6477_s5 + $0x98] sm:$0xff] }
 0x252   :  { %v1850_v44 = vmax.f32 %v1848_v14, %v1849_v54  ;;  %v1857_v6 = vmax.f32 %v1855_v43, %v1856_v12  ;;  %v1672_v22 = vadd.f32 %v1671_v3, %v1637_v0  ;;  %v5451_v43 = vld [vmem:[%s6477_s5 + $0x130] sm:$0xff]  ;;  %2061 = vmatpush.msra.mxu3 %v1911_v55  ;;  %v2093_v55 = vld [vmem:[%s6479_s7 + $0x8] sm:$0xff] }
 0x253   :  { %v1860_v26 = vsel %vm1715_vm7, %v1713_v40, -inf  ;;  %v1867_v13 = vsel %vm1723_vm8, %v1713_v40, -inf  ;;  %2001 = vmatpush.msra.mxu1 %v5451_v43  ;;  %1983 = vmatpush.msrb.mxu2 %v1910_v62  ;;  %v5489_v3 = vld [vmem:[%s6477_s5 + $0x110] sm:$0xff] }
 0x254   :  { %v1851_v58 = vrot.slane %v1850_v44, 1  ;;  %v1858_v17 = vrot.slane %v1857_v6, 1  ;;  %v1861_v42 = vrot.slane %v1860_v26, 4  ;;  %v1868_v28 = vrot.slane %v1867_v13, 4  ;;  %2062 = vmatpush.msra.mxu3 %v1910_v62  ;;  %v2247_v62 = vld [vmem:[%s6481_s9 + $0x78] sm:$0xff] }
 0x255   :  { %2002 = vmatpush.msra.mxu1 %v5462_v57  ;;  %1984 = vmatpush.msrb.mxu2 %v1909_v52 }
 0x256   :  { %v1852_v9 = vmax.f32 %v1850_v44, %v1851_v58  ;;  %v1859_v31 = vmax.f32 %v1857_v6, %v1858_v17  ;;  %v1862_v32 = vmax.f32 %v1860_v26, %v1861_v42  ;;  %v1869_v16 = vmax.f32 %v1867_v13, %v1868_v28  ;;  %v1706_v45 = vpop.f32.mrf.mxu0  ;;  %2063 = vmatpush.msra.mxu3 %v1909_v52  ;;  %v1907_v58 = vld [vmem:[%s6477_s5 + $0x88] sm:$0xff]  ;;  %v1906_v28 = vld [vmem:[%s6477_s5 + $0x80] sm:$0xff]  ;;  %v2119_v52 = vld [vmem:[%s6479_s7 + $0xd8] sm:$0xff] }
 0x257   :  { %v1707_v24 = vadd.f32 %v1706_v45, %v1672_v22  ;;  %v2125_v6 = vrot.slane %v5254_v56, 3  ;;  %2003 = vmatpush.msra.mxu1 %v5472_v33  ;;  %1985 = vmatpush.msrb.mxu2 %v1908_v48  ;;  %v5500_v17 = vld [vmem:[%s6477_s5 + $0x108] sm:$0xff]  ;;  %v5511_v22 = vld [vmem:[%s6477_s5 + $0x100] sm:$0xff]  ;;  %s3251_s5 = smov [#allocation4]  }
 0x258   :  { %v1886_v38 = vsel %vm181_vm6, %v1885_v49, %v1852_v9  ;;  %v1863_v37 = vrot.slane %v1862_v32, 2  ;;  %v1870_v46 = vrot.slane %v1869_v16, 2  ;;  %2064 = vmatpush.msra.mxu3 %v1908_v48  ;;  %v2242_v48 = vld [vmem:[%s6481_s9 + $0x50] sm:$0xff]  ;;  %s3010_s2 = sshll.u32 %s3251_s5, 4  ;;  %s3011_s2 = int_to_ptr.vmem [resolvable:$true] %s3010_s2 }
 0x259   :  { %v5445_v34 = vsel %vm146_vm0, %v1886_v38, %v1859_v31  ;;  %v1714_v14 = vmax.f32 %v1707_v24, 0.0  ;;  %2004 = vmatpush.msra.mxu1 %v5482_v41  ;;  %1986 = vmatpush.msrb.mxu2 %v1907_v58 }
 0x25a   :  { %v2014_v50 = vrot.slane %v5445_v34, 2  ;;  %v1864_v25 = vmax.f32 %v1862_v32, %v1863_v37  ;;  %v1871_v59 = vmax.f32 %v1869_v16, %v1870_v46  ;;  %v2018_v12 = vrot.slane %v5445_v34, 4  ;;  %2065 = vmatpush.msra.mxu3 %v1907_v58  ;;  %v2099_v37 = vld [vmem:[%s6479_s7 + $0x38] sm:$0xff]  ;;  %v2094_v46 = vld [vmem:[%s6479_s7 + $0x10] sm:$0xff] }
 0x25b   :  { %v1874_v47 = vsel %vm1715_vm7, %v1714_v14, -inf  ;;  %2005 = vmatpush.msra.mxu1 %v5489_v3  ;;  %1987 = vmatpush.msrb.mxu2 %v1906_v28  ;;  %v2021_v31 = vrot.slane %v5445_v34, 6  ;;  %v2180_v16 = vrot.slane %v5445_v34, 3  ;;  %v2092_v14 = vld [vmem:[%s6479_s7] sm:$0xff] }
 0x25c   :  { %v1875_v60 = vrot.slane %v1874_v47, 4  ;;  %2015 = vrot.lane.b32.xlu2 %v2014_v50, %s3246_s29  ;;  %v1865_v40 = vrot.slane %v1864_v25, 1  ;;  %v1872_v0 = vrot.slane %v1871_v59, 1  ;;  %v3161_v11 = vpack.i.bf16 %v2018_v12, %v2125_v6  ;;  %2066 = vmatpush.msra.mxu3 %v1906_v28  ;;  %v2122_v50 = vld [vmem:[%s6479_s7 + $0xf0] sm:$0xff]  ;;  %v2115_v6 = vld [vmem:[%s6479_s7 + $0xb8] sm:$0xff] }
 0x25d   :  { %2006 = vmatpush.msra.mxu1 %v5500_v17  ;;  %2031 = vmatpush.msra.mxu2 %v5292_v7  ;;  %v2130_v7 = vrot.slane %v5260_v8, 1  ;;  %v2111_v28 = vld [vmem:[%s6479_s7 + $0x98] sm:$0xff] }
 0x25e   :  { %v1876_v54 = vmax.f32 %v1874_v47, %v1875_v60  ;;  %v1866_v26 = vmax.f32 %v1864_v25, %v1865_v40  ;;  %v1873_v13 = vmax.f32 %v1871_v59, %v1872_v0  ;;  %v2121_v25 = vld [vmem:[%s6479_s7 + $0xe8] sm:$0xff]  ;;  %v2246_v59 = vld [vmem:[%s6481_s9 + $0x70] sm:$0xff]  ;;  %v2244_v60 = vld [vmem:[%s6481_s9 + $0x60] sm:$0xff] }
 0x25f   :  { %2007 = vmatpush.msra.mxu1 %v5511_v22  ;;  %2032 = vmatpush.msra.mxu2 %v5300_v2  ;;  %v1936_v2 = vrot.slane %v5254_v56, 4  ;;  %v2245_v47 = vld [vmem:[%s6481_s9 + $0x68] sm:$0xff] }
 0x260   :  { %v1877_v44 = vrot.slane %v1876_v54, 2  ;;  %v1888_v29 = vsel %vm1794_vm9, %v1866_v26, %v1873_v13  ;;  %v2117_v40 = vld [vmem:[%s6479_s7 + $0xc8] sm:$0xff] }
 0x261   :  { %2033 = vmatpush.msra.mxu2 %v5306_v51  ;;  %v2107_v51 = vld [vmem:[%s6479_s7 + $0x78] sm:$0xff]  ;;  %v2241_v0 = vld [vmem:[%s6481_s9 + $0x48] sm:$0xff] }
 0x262   :  { %v1878_v5 = vmax.f32 %v1876_v54, %v1877_v44  ;;  %2139 = vmatpush.msra.mxu0 %v2107_v51  ;;  %v2118_v54 = vld [vmem:[%s6479_s7 + $0xd0] sm:$0xff]  ;;  %v2240_v44 = vld [vmem:[%s6481_s9 + $0x40] sm:$0xff]  ;;  %v2113_v26 = vld [vmem:[%s6479_s7 + $0xa8] sm:$0xff] }
 0x263   :  { %2034 = vmatpush.msra.mxu2 %v5314_v23  ;;  %v2106_v23 = vld [vmem:[%s6479_s7 + $0x70] sm:$0xff]  ;;  %v2237_v13 = vld [vmem:[%s6481_s9 + $0x28] sm:$0xff] }
 0x264   :  { %v1879_v42 = vrot.slane %v1878_v5, 1  ;;  %3162 = vrot.lane.b32.xlu2 %v3161_v11, %s3246_s29  ;;  %2140 = vmatpush.msra.mxu0 %v2106_v23  ;;  %v2238_v11 = vld [vmem:[%s6481_s9 + $0x30] sm:$0xff] }
 0x265   :  { %2035 = vmatpush.msra.mxu2 %v5321_v4  ;;  %v2105_v4 = vld [vmem:[%s6479_s7 + $0x68] sm:$0xff] }
 0x266   :  { %v1880_v15 = vmax.f32 %v1878_v5, %v1879_v42  ;;  %2141 = vmatpush.msra.mxu0 %v2105_v4  ;;  %v2114_v5 = vld [vmem:[%s6479_s7 + $0xb0] sm:$0xff] }
 0x267   :  { %2036 = vmatpush.msra.mxu2 %v5330_v30  ;;  %v2104_v30 = vld [vmem:[%s6479_s7 + $0x60] sm:$0xff] }
 0x268   :  { %v5515_v9 = vsel %vm294_vm3, %v1888_v29, %v1880_v15  ;;  %2142 = vmatpush.msra.mxu0 %v2104_v30  ;;  %v2110_v15 = vld [vmem:[%s6479_s7 + $0x90] sm:$0xff] }
 0x269   :  { %v2022_v32 = vrot.slane %v5515_v9, 6  ;;  %v2185_v45 = vrot.slane %v5515_v9, 1  ;;  %2037 = vmatpush.msra.mxu2 %v5336_v63  ;;  %v2103_v63 = vld [vmem:[%s6479_s7 + $0x58] sm:$0xff] }
 0x26a   :  { %2143 = vmatpush.msra.mxu0 %v2103_v63 }
 0x26b   :  { %v2023_v27 = vsel %vm294_vm3, %v2021_v31, %v2022_v32  ;;  %v3156_v49 = vpack.i.bf16 %v2185_v45, %v2180_v16  ;;  %2038 = vmatpush.msra.mxu2 %v5341_v53  ;;  %v2102_v53 = vld [vmem:[%s6479_s7 + $0x50] sm:$0xff]  ;;  %v2108_v16 = vld [vmem:[%s6479_s7 + $0x80] sm:$0xff] }
 0x26c   :  { %2024 = vrot.lane.b32.xlu0 %v2023_v27, %s3246_s29  ;;  %2144 = vmatpush.msra.mxu0 %v2102_v53  ;;  %v2236_v45 = vld [vmem:[%s6481_s9 + $0x20] sm:$0xff] }
 0x26d   :  { %3157 = vrot.lane.b32.xlu1 %v3156_v49, %s3246_s29  ;;  %2039 = vmatpush.msra.mxu2 %v5355_v19  ;;  %v2101_v19 = vld [vmem:[%s6479_s7 + $0x48] sm:$0xff]  ;;  %v2255_v49 = vld [vmem:[%s6481_s9 + $0xb8] sm:$0xff] }
 0x26e   :  { %2145 = vmatpush.msra.mxu0 %v2101_v19 }
 0x26f   :  { %2040 = vmatpush.msra.mxu2 %v5365_v39 }
 0x271   :  { %2041 = vmatpush.msra.mxu2 %v5374_v20  ;;  %v2100_v20 = vld [vmem:[%s6479_s7 + $0x40] sm:$0xff] }
 0x272   :  { %2146 = vmatpush.msra.mxu0 %v2100_v20 }
 0x273   :  { %2042 = vmatpush.msra.mxu2 %v5387_v1 }
 0x274   :  { %2131 = vrot.lane.b32.xlu0 %v2130_v7, %s3246_s29  ;;  %2147 = vmatpush.msra.mxu0 %v2099_v37  ;;  %v2235_v7 = vld [vmem:[%s6481_s9 + $0x18] sm:$0xff] }
 0x275   :  { %2257 = vrot.lane.b32.xlu1 %v1936_v2, %s3246_s29  ;;  %2043 = vmatpush.msra.mxu2 %v5397_v36 }
 0x277   :  { %2044 = vmatpush.msra.mxu2 %v5407_v10  ;;  %v2098_v10 = vld [vmem:[%s6479_s7 + $0x30] sm:$0xff] }
 0x278   :  { %2148 = vmatpush.msra.mxu0 %v2098_v10 }
 0x279   :  { %2045 = vmatpush.msra.mxu2 %v5416_v35  ;;  %v2097_v35 = vld [vmem:[%s6479_s7 + $0x28] sm:$0xff] }
 0x27a   :  { %2149 = vmatpush.msra.mxu0 %v2097_v35 }
 0x27b   :  { %2046 = vmatpush.msra.mxu2 %v5428_v18  ;;  %v2096_v18 = vld [vmem:[%s6479_s7 + $0x20] sm:$0xff] }
 0x27c   :  { %2150 = vmatpush.msra.mxu0 %v2096_v18 }
 0x282   :  { %v3153_v39 = vpop.permute.xlu1 %3152 }
 0x283   :  { %v3155_v1 = vunpack.i.h.bf16 %v3153_v39  ;;  %v3154_v24 = vunpack.i.l.bf16 %v3153_v39  ;;  %v2249_v39 = vld [vmem:[%s6481_s9 + $0x88] sm:$0xff] }
 0x285   :  { %v1945_v36 = vsel %vm310_vm4, %v5254_v56, %v3155_v1  ;;  %v1946_v38 = vsel %vm310_vm4, %v1936_v2, %v3154_v24  ;;  %v2254_v2 = vld [vmem:[%s6481_s9 + $0xb0] sm:$0xff] }
 0x286   :  { %1968 = vmatmul.f32.vlgmr.msrb.gmra.mxu1 %v1945_v36  ;;  %1988 = vmatmul.f32.vlgmr.msrb.gmra.mxu2 %v1946_v38 }
 0x287   :  { %2079 = vmatpush.msrb.mxu1 %v5438_v61  ;;  %2191 = vmatpush.msrb.mxu2 %v2107_v51  ;;  %v2095_v61 = vld [vmem:[%s6479_s7 + $0x18] sm:$0xff]  ;;  %v2234_v51 = vld [vmem:[%s6481_s9 + $0x10] sm:$0xff] }
 0x288   :  { %2151 = vmatpush.msra.mxu0 %v2095_v61 }
 0x289   :  { %2080 = vmatpush.msrb.mxu1 %v5451_v43  ;;  %2192 = vmatpush.msrb.mxu2 %v2106_v23  ;;  %v2123_v43 = vld [vmem:[%s6479_s7 + $0xf8] sm:$0xff]  ;;  %v2253_v23 = vld [vmem:[%s6481_s9 + $0xa8] sm:$0xff] }
 0x28a   :  { %2152 = vmatpush.msra.mxu0 %v2094_v46  ;;  %2211 = vmatpush.msrb.mxu3 %v2123_v43 }
 0x28b   :  { %2081 = vmatpush.msrb.mxu1 %v5462_v57  ;;  %2193 = vmatpush.msrb.mxu2 %v2105_v4  ;;  %v2120_v57 = vld [vmem:[%s6479_s7 + $0xe0] sm:$0xff]  ;;  %v2233_v4 = vld [vmem:[%s6481_s9 + $0x8] sm:$0xff] }
 0x28c   :  { %2153 = vmatpush.msra.mxu0 %v2093_v55  ;;  %2212 = vmatpush.msrb.mxu3 %v2122_v50 }
 0x28d   :  { %2082 = vmatpush.msrb.mxu1 %v5472_v33  ;;  %2194 = vmatpush.msrb.mxu2 %v2104_v30  ;;  %v2243_v33 = vld [vmem:[%s6481_s9 + $0x58] sm:$0xff]  ;;  %v2252_v30 = vld [vmem:[%s6481_s9 + $0xa0] sm:$0xff] }
 0x28e   :  { %3040 = vmatmul.msk.f32.vlgmr.msra.gmra.mxu1 %vm310_vm4, %v5260_v8  ;;  %2154 = vmatpush.msra.mxu0 %v2092_v14 }
 0x28f   :  { %2083 = vmatpush.msrb.mxu1 %v5482_v41  ;;  %2195 = vmatpush.msrb.mxu2 %v2103_v63  ;;  %v2116_v41 = vld [vmem:[%s6479_s7 + $0xc0] sm:$0xff] }
 0x290   :  { %2264 = vmatpush.msrb.mxu0 %v2247_v62  ;;  %2213 = vmatpush.msrb.mxu3 %v2121_v25  ;;  %v2232_v63 = vld [vmem:[%s6481_s9] sm:$0xff] }
 0x291   :  { %2084 = vmatpush.msrb.mxu1 %v5489_v3  ;;  %2196 = vmatpush.msrb.mxu2 %v2102_v53  ;;  %v2239_v3 = vld [vmem:[%s6481_s9 + $0x38] sm:$0xff] }
 0x292   :  { %2265 = vmatpush.msrb.mxu0 %v2246_v59  ;;  %2214 = vmatpush.msrb.mxu3 %v2120_v57  ;;  %v2251_v53 = vld [vmem:[%s6481_s9 + $0x98] sm:$0xff] }
 0x293   :  { %2085 = vmatpush.msrb.mxu1 %v5500_v17  ;;  %2197 = vmatpush.msrb.mxu2 %v2101_v19  ;;  %v2112_v17 = vld [vmem:[%s6479_s7 + $0xa0] sm:$0xff]  ;;  %v2250_v19 = vld [vmem:[%s6481_s9 + $0x90] sm:$0xff] }
 0x294   :  { %2266 = vmatpush.msrb.mxu0 %v2245_v47  ;;  %2215 = vmatpush.msrb.mxu3 %v2119_v52 }
 0x295   :  { %2086 = vmatpush.msrb.mxu1 %v5511_v22  ;;  %2198 = vmatpush.msrb.mxu2 %v2100_v20  ;;  %v2109_v22 = vld [vmem:[%s6479_s7 + $0x88] sm:$0xff]  ;;  %v2248_v20 = vld [vmem:[%s6481_s9 + $0x80] sm:$0xff] }
 0x296   :  { %3041 = vmatmul.msk.f32.vlgmr.msrb.gmra.mxu1 %vm310_vm4, %v5515_v9  ;;  %2267 = vmatpush.msrb.mxu0 %v2244_v60 }
 0x297   :  { %2199 = vmatpush.msrb.mxu2 %v2099_v37  ;;  %2159 = vmatpush.msra.mxu1 %v2123_v43 }
 0x298   :  { %2268 = vmatpush.msrb.mxu0 %v2243_v33  ;;  %2216 = vmatpush.msrb.mxu3 %v2118_v54 }
 0x299   :  { %2200 = vmatpush.msrb.mxu2 %v2098_v10  ;;  %2160 = vmatpush.msra.mxu1 %v2122_v50 }
 0x29a   :  { %2269 = vmatpush.msrb.mxu0 %v2242_v48  ;;  %2217 = vmatpush.msrb.mxu3 %v2117_v40 }
 0x29b   :  { %2201 = vmatpush.msrb.mxu2 %v2097_v35  ;;  %2161 = vmatpush.msra.mxu1 %v2121_v25  ;;  %v3183_v25 = vld [vmem:[%s6478_s6] ss:$0 sm:$0xff] }
 0x29c   :  { %2270 = vmatpush.msrb.mxu0 %v2241_v0  ;;  %2218 = vmatpush.msrb.mxu3 %v2116_v41 }
 0x29d   :  { %2202 = vmatpush.msrb.mxu2 %v2096_v18  ;;  %2162 = vmatpush.msra.mxu1 %v2120_v57 }
 0x29e   :  { %2271 = vmatpush.msrb.mxu0 %v2240_v44  ;;  %2219 = vmatpush.msrb.mxu3 %v2115_v6 }
 0x29f   :  { %2203 = vmatpush.msrb.mxu2 %v2095_v61  ;;  %2163 = vmatpush.msra.mxu1 %v2119_v52  ;;  %v3185_v52 = vld [vmem:[%s6482_s10] ss:$0 sm:$0xff] }
 0x2a0   :  { %2272 = vmatpush.msrb.mxu0 %v2239_v3  ;;  %2220 = vmatpush.msrb.mxu3 %v2114_v5 }
 0x2a1   :  { %2204 = vmatpush.msrb.mxu2 %v2094_v46  ;;  %2164 = vmatpush.msra.mxu1 %v2118_v54 }
 0x2a2   :  { %2273 = vmatpush.msrb.mxu0 %v2238_v11  ;;  %2221 = vmatpush.msrb.mxu3 %v2113_v26 }
 0x2a3   :  { %2205 = vmatpush.msrb.mxu2 %v2093_v55  ;;  %2165 = vmatpush.msra.mxu1 %v2117_v40 }
 0x2a4   :  { %2274 = vmatpush.msrb.mxu0 %v2237_v13  ;;  %2222 = vmatpush.msrb.mxu3 %v2112_v17 }
 0x2a5   :  { %2206 = vmatpush.msrb.mxu2 %v2092_v14  ;;  %2166 = vmatpush.msra.mxu1 %v2116_v41 }
 0x2a6   :  { %2223 = vmatpush.msrb.mxu3 %v2111_v28  ;;  %2275 = vmatpush.msrb.mxu0 %v2236_v45 }
 0x2a7   :  { %2167 = vmatpush.msra.mxu1 %v2115_v6 }
 0x2a8   :  { %2224 = vmatpush.msrb.mxu3 %v2110_v15  ;;  %2276 = vmatpush.msrb.mxu0 %v2235_v7 }
 0x2a9   :  { %2168 = vmatpush.msra.mxu1 %v2114_v5 }
 0x2aa   :  { %2225 = vmatpush.msrb.mxu3 %v2109_v22  ;;  %2277 = vmatpush.msrb.mxu0 %v2234_v51 }
 0x2ab   :  { %2169 = vmatpush.msra.mxu1 %v2113_v26 }
 0x2ac   :  { %2226 = vmatpush.msrb.mxu3 %v2108_v16  ;;  %2278 = vmatpush.msrb.mxu0 %v2233_v4 }
 0x2ad   :  { %2170 = vmatpush.msra.mxu1 %v2112_v17 }
 0x2ae   :  { %2279 = vmatpush.msrb.mxu0 %v2232_v63 }
 0x2af   :  { %2171 = vmatpush.msra.mxu1 %v2111_v28 }
 0x2b1   :  { %2172 = vmatpush.msra.mxu1 %v2110_v15 }
 0x2b3   :  { %2173 = vmatpush.msra.mxu1 %v2109_v22 }
 0x2b5   :  { %2174 = vmatpush.msra.mxu1 %v2108_v16 }
 0x2b6   :  { %v2016_v58 = vpop.permute.xlu2 %2015 }
 0x2b7   :  { %v2027_v42 = vsel %vm310_vm4, %v5445_v34, %v2016_v58  ;;  %2292 = vmatpush.msrb.mxu1 %v2255_v49 }
 0x2b8   :  { %2047 = vmatmul.f32.vlgmr.msra.gmra.mxu2 %v2027_v42 }
 0x2b9   :  { %2309 = vmatpush.msra.mxu2 %v2247_v62  ;;  %2293 = vmatpush.msrb.mxu1 %v2254_v2  ;;  %v3184_v62 = vld [vmem:[%s6480_s8] ss:$0 sm:$0xff] }
 0x2bb   :  { %2310 = vmatpush.msra.mxu2 %v2246_v59  ;;  %2294 = vmatpush.msrb.mxu1 %v2253_v23 }
 0x2bd   :  { %2311 = vmatpush.msra.mxu2 %v2245_v47  ;;  %2295 = vmatpush.msrb.mxu1 %v2252_v30 }
 0x2be   :  { %v5690_v29 = vpop.permute.xlu2 %3162 }
 0x2bf   :  { %v3164_v32 = vunpack.i.l.bf16 %v5690_v29  ;;  %2312 = vmatpush.msra.mxu2 %v2244_v60  ;;  %2296 = vmatpush.msrb.mxu1 %v2251_v53  ;;  %v3165_v35 = vunpack.i.h.bf16 %v5690_v29 }
 0x2c1   :  { %v2134_v27 = vsel %vm310_vm4, %v5254_v56, %v3164_v32  ;;  %2313 = vmatpush.msra.mxu2 %v2243_v33  ;;  %2297 = vmatpush.msrb.mxu1 %v2250_v19  ;;  %v2308_v14 = vsel %vm310_vm4, %v5445_v34, %v3165_v35 }
 0x2c2   :  { %2155 = vmatmul.f32.vlgmr.msra.gmra.mxu0 %v2134_v27 }
 0x2c3   :  { %2314 = vmatpush.msra.mxu2 %v2242_v48  ;;  %2298 = vmatpush.msrb.mxu1 %v2249_v39 }
 0x2c5   :  { %2315 = vmatpush.msra.mxu2 %v2241_v0  ;;  %2299 = vmatpush.msrb.mxu1 %v2248_v20 }
 0x2c7   :  { %2316 = vmatpush.msra.mxu2 %v2240_v44  ;;  %v3247_v44 = vmov 8.0  }
 0x2c8   :  { %3188 = vrcp.f32 %v3247_v44 }
 0x2c9   :  { %2317 = vmatpush.msra.mxu2 %v2239_v3 }
 0x2cb   :  { %2318 = vmatpush.msra.mxu2 %v2238_v11 }
 0x2cd   :  { %2319 = vmatpush.msra.mxu2 %v2237_v13 }
 0x2ce   :  { %v3189_v22 = vpop.eup %3188 }
 0x2cf   :  { %2320 = vmatpush.msra.mxu2 %v2236_v45  ;;  %vm2386_vm11 = vweird.f32 %v3189_v22 }
 0x2d1   :  { %2321 = vmatpush.msra.mxu2 %v2235_v7 }
 0x2d3   :  { %2322 = vmatpush.msra.mxu2 %v2234_v51 }
 0x2d5   :  { %2323 = vmatpush.msra.mxu2 %v2233_v4 }
 0x2d7   :  { %2324 = vmatpush.msra.mxu2 %v2232_v63 }
 0x2de   :  { %v2025_v1 = vpop.permute.xlu0 %2024 }
 0x2df   :  { %v2028_v24 = vsel %vm310_vm4, %v2018_v12, %v2025_v1  ;;  %v3158_v36 = vpop.permute.xlu1 %3157 }
 0x2e0   :  { %v3159_v38 = vunpack.i.l.bf16 %v3158_v36  ;;  %2067 = vmatmul.f32.vlgmr.msra.gmra.mxu3 %v2028_v24  ;;  %v3160_v10 = vunpack.i.h.bf16 %v3158_v36 }
 0x2e1   :  { %2337 = vmatpush.msra.mxu3 %v2255_v49 }
 0x2e2   :  { %v2189_v37 = vsel %vm310_vm4, %v5445_v34, %v3159_v38  ;;  %v2190_v46 = vsel %vm310_vm4, %v2021_v31, %v3160_v10 }
 0x2e3   :  { %2207 = vmatmul.f32.vlgmr.msrb.gmra.mxu2 %v2189_v37  ;;  %2338 = vmatpush.msra.mxu3 %v2254_v2 }
 0x2e5   :  { %2339 = vmatpush.msra.mxu3 %v2253_v23  ;;  %v2382_v23 = vmul.f32 8.0, %v3189_v22 }
 0x2e6   :  { %v2132_v18 = vpop.permute.xlu0 %2131 }
 0x2e7   :  { %v2135_v61 = vsel %vm310_vm4, %v1939_v21, %v2132_v18  ;;  %2340 = vmatpush.msra.mxu3 %v2252_v30  ;;  %v2258_v12 = vpop.permute.xlu1 %2257 }
 0x2e8   :  { %v2260_v55 = vsel %vm310_vm4, %v5254_v56, %v2258_v12  ;;  %2175 = vmatmul.f32.vlgmr.msra.gmra.mxu1 %v2135_v61  ;;  %2227 = vmatmul.f32.vlgmr.msrb.gmra.mxu3 %v2190_v46 }
 0x2e9   :  { %2280 = vmatmul.f32.vlgmr.msrb.gmra.mxu0 %v2260_v55  ;;  %2341 = vmatpush.msra.mxu3 %v2251_v53 }
 0x2eb   :  { %2325 = vmatmul.f32.vlgmr.msra.gmra.mxu2 %v2308_v14  ;;  %2342 = vmatpush.msra.mxu3 %v2250_v19 }
 0x2ed   :  { %2343 = vmatpush.msra.mxu3 %v2249_v39 }
 0x2ef   :  { %2344 = vmatpush.msra.mxu3 %v2248_v20  ;;  %v2383_v20 = vsub.f32 1.0, %v2382_v23  ;;  %v2557_v23 = vld [vmem:[%s6485_s13 + $0x1c0] sm:$0xff] }
 0x2f0   :  { %3042 = vmatmul.msk.f32.vlgmr.msrb.gmra.mxu1 %vm310_vm4, %v5260_v8  ;;  %3043 = vmatmul.msk.f32.vlgmr.msra.gmra.mxu3 %vm310_vm4, %v5515_v9 }
 0x2f1   :  { %v2384_v10 = vmul.f32 %v3189_v22, %v2383_v20  ;;  %v2617_v20 = vld [vmem:[%s6485_s13 + $0x3a0] sm:$0xff] }
 0x2f3   :  { %v2385_v12 = vadd.f32 %v3189_v22, %v2384_v10  ;;  %v2613_v10 = vld [vmem:[%s6485_s13 + $0x380] sm:$0xff] }
 0x303   :  { %v1969_v21 = vpop.f32.mrf.mxu1 }
 0x304   :  { %v1970_v60 = vadd.f32 %v3183_v25, %v1969_v21  ;;  %v2387_v21 = vsel %vm2386_vm11, %v3189_v22, %v2385_v12  ;;  %v2614_v12 = vld [vmem:[%s6485_s13 + $0x388] sm:$0xff] }
 0x309   :  { %v1989_v56 = vpop.f32.mrf.mxu2 }
 0x30a   :  { %v1990_v33 = vadd.f32 %v1989_v56, %v1970_v60 }
 0x30b   :  { %v2009_v31 = vpop.f32.mrf.mxu1 }
 0x30c   :  { %v2010_v6 = vadd.f32 %v2009_v31, %v1990_v33  ;;  %v2390_v31 = vld [vmem:[%s6483_s11] sm:$0x3] }
 0x30e   :  { %v2012_v28 = vmax.f32 %v2010_v6, 0.0 }
 0x313   :  { %v2088_v43 = vpop.f32.mrf.mxu1 }
 0x33b   :  { %v2048_v50 = vpop.f32.mrf.mxu2 }
 0x33c   :  { %v2049_v3 = vadd.f32 %v3183_v25, %v2048_v50 }
 0x33f   :  { %v2156_v34 = vpop.f32.mrf.mxu0 }
 0x340   :  { %v2157_v47 = vadd.f32 %v3184_v62, %v2156_v34  ;;  %v2392_v34 = vperm.slane %v2390_v31, 0 }
 0x363   :  { %v2068_v59 = vpop.f32.mrf.mxu3 }
 0x364   :  { %v2069_v13 = vadd.f32 %v2068_v59, %v2049_v3 }
 0x365   :  { %v2176_v8 = vpop.f32.mrf.mxu1 }
 0x366   :  { %v2208_v57 = vpop.f32.mrf.mxu2  ;;  %v2177_v9 = vadd.f32 %v2176_v8, %v2157_v47  ;;  %v2281_v54 = vpop.f32.mrf.mxu0  ;;  %v2089_v16 = vadd.f32 %v2088_v43, %v2069_v13 }
 0x367   :  { %v2209_v40 = vadd.f32 %v3184_v62, %v2208_v57  ;;  %v2282_v41 = vadd.f32 %v3185_v52, %v2281_v54  ;;  %v2406_v62 = vperm.slane %v2390_v31, 1  ;;  %v2546_v31 = vld [vmem:[%s6485_s13 + $0x168] sm:$0xff] }
 0x368   :  { %v2179_v48 = vmax.f32 %v2177_v9, 0.0  ;;  %v2091_v63 = vmax.f32 %v2089_v16, 0.0 }
 0x36a   :  { %v2352_v58 = vrot.slane %v2179_v48, 5  ;;  %v2391_v48 = vld [vmem:[%s6484_s12] sm:$0x3] }
 0x36b   :  { %v2228_v0 = vpop.f32.mrf.mxu3 }
 0x36c   :  { %v2229_v5 = vadd.f32 %v2228_v0, %v2209_v40  ;;  %v2362_v45 = vsel %vm258_vm1, %v2012_v28, %v2352_v58  ;;  %v2420_v40 = vperm.slane %v2391_v48, 1  ;;  %v2418_v0 = vperm.slane %v2391_v48, 0 }
 0x36d   :  { %v2301_v11 = vpop.f32.mrf.mxu1 }
 0x36e   :  { %v2302_v26 = vadd.f32 %v2301_v11, %v2282_v41  ;;  %v2326_v17 = vpop.f32.mrf.mxu2  ;;  %v2231_v15 = vmax.f32 %v2229_v5, 0.0 }
 0x36f   :  { %v2327_v32 = vadd.f32 %v3185_v52, %v2326_v17 }
 0x370   :  { %v2304_v42 = vmax.f32 %v2302_v26, 0.0  ;;  %v2353_v2 = vrot.slane %v2231_v15, 5 }
 0x372   :  { %v2358_v29 = vrot.slane %v2304_v42, 3  ;;  %v2363_v39 = vsel %vm258_vm1, %v2091_v63, %v2353_v2  ;;  %v2558_v63 = vld [vmem:[%s6485_s13 + $0x1c8] sm:$0xff] }
 0x373   :  { %v2346_v27 = vpop.f32.mrf.mxu3 }
 0x374   :  { %v5768_v49 = vsel %vm202_vm2, %v2362_v45, %v2358_v29  ;;  %v2347_v7 = vadd.f32 %v2346_v27, %v2327_v32  ;;  %v2561_v45 = vld [vmem:[%s6485_s13 + $0x1e0] sm:$0xff]  ;;  %v2526_v32 = vld [vmem:[%s6485_s13 + $0xc8] sm:$0xff] }
 0x375   :  { %v2367_v51 = vsel %vm2366_vm10, %v5768_v49, 0.0  ;;  %v2625_v27 = vld [vmem:[%s6485_s13 + $0x3e0] sm:$0xff]  ;;  %2639 = vmatpush.msra.mxu0 %v2561_v45 }
 0x376   :  { %v2368_v4 = vrot.slane %v2367_v51, 4  ;;  %v2349_v30 = vmax.f32 %v2347_v7, 0.0  ;;  %v2562_v7 = vld [vmem:[%s6485_s13 + $0x1e8] sm:$0xff]  ;;  %2659 = vmatpush.msra.mxu1 %v2625_v27 }
 0x377   :  { %2679 = vmatpush.msrb.mxu3 %v2562_v7  ;;  %2640 = vmatpush.msra.mxu0 %v2557_v23  ;;  %v2521_v7 = vld [vmem:[%s6485_s13 + $0xa0] sm:$0xff]  ;;  %v2586_v23 = vld [vmem:[%s6485_s13 + $0x2a8] sm:$0xff] }
 0x378   :  { %v2369_v53 = vadd.f32 %v2368_v4, %v2367_v51  ;;  %v2359_v19 = vrot.slane %v2349_v30, 3  ;;  %v2626_v51 = vld [vmem:[%s6485_s13 + $0x3e8] sm:$0xff]  ;;  %v2621_v4 = vld [vmem:[%s6485_s13 + $0x3c0] sm:$0xff] }
 0x379   :  { %2699 = vmatpush.msrb.mxu2 %v2626_v51  ;;  %2660 = vmatpush.msra.mxu1 %v2621_v4  ;;  %v2522_v51 = vld [vmem:[%s6485_s13 + $0xa8] sm:$0xff]  ;;  %v2517_v4 = vld [vmem:[%s6485_s13 + $0x80] sm:$0xff] }
 0x37a   :  { %v2370_v1 = vrot.slane %v2369_v53, 2  ;;  %v5774_v24 = vsel %vm202_vm2, %v2363_v39, %v2359_v19  ;;  %v2553_v19 = vld [vmem:[%s6485_s13 + $0x1a0] sm:$0xff]  ;;  %2680 = vmatpush.msrb.mxu3 %v2558_v63  ;;  %vm2496_vm2 = vcmask 785408  }
 0x37b   :  { %v2374_v36 = vsel %vm2366_vm10, %v5774_v24, 0.0  ;;  %2641 = vmatpush.msra.mxu0 %v2553_v19  ;;  %2661 = vmatpush.msra.mxu1 %v2617_v20  ;;  %v2581_v63 = vld [vmem:[%s6485_s13 + $0x280] sm:$0xff]  ;;  %v2582_v20 = vld [vmem:[%s6485_s13 + $0x288] sm:$0xff] }
 0x37c   :  { %v2371_v38 = vadd.f32 %v2370_v1, %v2369_v53  ;;  %v2375_v37 = vrot.slane %v2374_v36, 4  ;;  %v2622_v53 = vld [vmem:[%s6485_s13 + $0x3c8] sm:$0xff] }
 0x37d   :  { %v2554_v1 = vld [vmem:[%s6485_s13 + $0x1a8] sm:$0xff]  ;;  %2700 = vmatpush.msrb.mxu2 %v2622_v53  ;;  %2662 = vmatpush.msra.mxu1 %v2613_v10 }
 0x37e   :  { %v2376_v35 = vadd.f32 %v2375_v37, %v2374_v36  ;;  %v2372_v61 = vrot.slane %v2371_v38, 1  ;;  %v2618_v36 = vld [vmem:[%s6485_s13 + $0x3a8] sm:$0xff]  ;;  %v2549_v37 = vld [vmem:[%s6485_s13 + $0x180] sm:$0xff]  ;;  %2681 = vmatpush.msrb.mxu3 %v2554_v1 }
 0x37f   :  { %2701 = vmatpush.msrb.mxu2 %v2618_v36  ;;  %2642 = vmatpush.msra.mxu0 %v2549_v37  ;;  %v2518_v53 = vld [vmem:[%s6485_s13 + $0x88] sm:$0xff]  ;;  %v2513_v1 = vld [vmem:[%s6485_s13 + $0x60] sm:$0xff] }
 0x380   :  { %v2377_v18 = vrot.slane %v2376_v35, 2  ;;  %v2373_v14 = vadd.f32 %v2372_v61, %v2371_v38  ;;  %v2550_v61 = vld [vmem:[%s6485_s13 + $0x188] sm:$0xff]  ;;  %v2577_v36 = vld [vmem:[%s6485_s13 + $0x260] sm:$0xff] }
 0x381   :  { %2682 = vmatpush.msrb.mxu3 %v2550_v61  ;;  %2702 = vmatpush.msrb.mxu2 %v2614_v12  ;;  %v2573_v61 = vld [vmem:[%s6485_s13 + $0x240] sm:$0xff]  ;;  %v2510_v12 = vld [vmem:[%s6485_s13 + $0x48] sm:$0xff] }
 0x382   :  { %v2378_v46 = vadd.f32 %v2377_v18, %v2376_v35  ;;  %v2388_v43 = vmul.f32 %v2387_v21, %v2373_v14 }
 0x383   :  { %2683 = vmatpush.msrb.mxu3 %v2546_v31  ;;  %v2569_v31 = vld [vmem:[%s6485_s13 + $0x220] sm:$0xff] }
 0x384   :  { %v2379_v55 = vrot.slane %v2378_v46, 1  ;;  %v2407_v47 = vmul.f32 %v2406_v62, %v2388_v43  ;;  %v2393_v57 = vmul.f32 %v2392_v34, %v2388_v43  ;;  %v2541_v43 = vld [vmem:[%s6485_s13 + $0x140] sm:$0xff] }
 0x386   :  { %v2380_v56 = vadd.f32 %v2379_v55, %v2378_v46  ;;  %v2545_v46 = vld [vmem:[%s6485_s13 + $0x160] sm:$0xff] }
 0x387   :  { %v2609_v55 = vld [vmem:[%s6485_s13 + $0x360] sm:$0xff]  ;;  %2643 = vmatpush.msra.mxu0 %v2545_v46 }
 0x388   :  { %v2389_v50 = vmul.f32 %v2387_v21, %v2380_v56  ;;  %v2610_v56 = vld [vmem:[%s6485_s13 + $0x368] sm:$0xff]  ;;  %2663 = vmatpush.msra.mxu1 %v2609_v55 }
 0x389   :  { %2703 = vmatpush.msrb.mxu2 %v2610_v56  ;;  %2644 = vmatpush.msra.mxu0 %v2541_v43  ;;  %v2506_v56 = vld [vmem:[%s6485_s13 + $0x28] sm:$0xff] }
 0x38a   :  { %v2408_v25 = vmul.f32 %v2406_v62, %v2389_v50  ;;  %v2394_v59 = vmul.f32 %v2392_v34, %v2389_v50  ;;  %v2542_v34 = vld [vmem:[%s6485_s13 + $0x148] sm:$0xff] }
 0x38b   :  { %2684 = vmatpush.msrb.mxu3 %v2542_v34  ;;  %v2570_v43 = vld [vmem:[%s6485_s13 + $0x228] sm:$0xff] }
 0x38c   :  { %v2411_v8 = vrot.slane %v2408_v25, 7  ;;  %v2397_v60 = vrot.slane %v2394_v59, 7  ;;  %v2606_v25 = vld [vmem:[%s6485_s13 + $0x348] sm:$0xff]  ;;  %v2537_v59 = vld [vmem:[%s6485_s13 + $0x120] sm:$0xff] }
 0x38d   :  { %2704 = vmatpush.msrb.mxu2 %v2606_v25  ;;  %2645 = vmatpush.msra.mxu0 %v2537_v59  ;;  %v2502_v34 = vld [vmem:[%s6485_s13 + $0x8] sm:$0xff]  ;;  %v2563_v59 = vld [vmem:[%s6485_s13 + $0x1f0] sm:$0xff] }
 0x38e   :  { %v2412_v9 = vsel %vm2398_vm12, %v2411_v8, %v2407_v47  ;;  %v2399_v52 = vsel %vm2398_vm12, %v2397_v60, %v2393_v57  ;;  %v2538_v57 = vld [vmem:[%s6485_s13 + $0x128] sm:$0xff] }
 0x38f   :  { %v2414_v33 = vsel %vm2401_vm13, %v2412_v9, 0.0  ;;  %v2402_v54 = vsel %vm2401_vm13, %v2399_v52, 0.0  ;;  %v2602_v60 = vld [vmem:[%s6485_s13 + $0x328] sm:$0xff]  ;;  %v2533_v9 = vld [vmem:[%s6485_s13 + $0x100] sm:$0xff]  ;;  %2685 = vmatpush.msrb.mxu3 %v2538_v57  ;;  %v2559_v57 = vld [vmem:[%s6485_s13 + $0x1d0] sm:$0xff] }
 0x390   :  { %2415 = vadd.xlane.f32.xlu0 %v2414_v33  ;;  %2403 = vadd.xlane.f32.xlu2 %v2402_v54  ;;  %v2597_v54 = vld [vmem:[%s6485_s13 + $0x300] sm:$0xff]  ;;  %v2566_v25 = vld [vmem:[%s6485_s13 + $0x208] sm:$0xff] }
 0x391   :  { %2705 = vmatpush.msrb.mxu2 %v2602_v60  ;;  %2646 = vmatpush.msra.mxu0 %v2533_v9  ;;  %v2623_v60 = vld [vmem:[%s6485_s13 + $0x3d0] sm:$0xff]  ;;  %v2560_v9 = vld [vmem:[%s6485_s13 + $0x1d8] sm:$0xff] }
 0x403   :  { %v2416_v41 = vpop.xlane.xlu0 %2415  ;;  %v2404_v44 = vpop.xlane.xlu2 %2403 }
 0x404   :  { %v2417_v6 = vmax.f32 %v2416_v41, 0.0  ;;  %v2405_v3 = vmax.f32 %v2404_v44, 0.0  ;;  %v2534_v41 = vld [vmem:[%s6485_s13 + $0x108] sm:$0xff] }
 0x405   :  { %v2598_v44 = vld [vmem:[%s6485_s13 + $0x308] sm:$0xff]  ;;  %2686 = vmatpush.msrb.mxu3 %v2534_v41  ;;  %v2615_v41 = vld [vmem:[%s6485_s13 + $0x390] sm:$0xff] }
 0x406   :  { %v2421_v5 = vmul.f32 %v2420_v40, %v2417_v6  ;;  %v2419_v11 = vmul.f32 %v2418_v0, %v2405_v3  ;;  %2706 = vmatpush.msrb.mxu2 %v2598_v44  ;;  %v2552_v44 = vld [vmem:[%s6485_s13 + $0x198] sm:$0xff] }
 0x408   :  { %v2422_v26 = vadd.f32 %v2421_v5, %v2419_v11  ;;  %v2529_v5 = vld [vmem:[%s6485_s13 + $0xe0] sm:$0xff] }
 0x409   :  { %v2593_v11 = vld [vmem:[%s6485_s13 + $0x2e0] sm:$0xff]  ;;  %2647 = vmatpush.msra.mxu0 %v2529_v5  ;;  %v2611_v5 = vld [vmem:[%s6485_s13 + $0x370] sm:$0xff] }
 0x40a   :  { %v3044_v13 = vmul.f32 -1.442695, %v2422_v26 }
 0x40c   :  { %3190 = vpow2.f32 %v3044_v13 }
 0x412   :  { %v3191_v58 = vpop.eup %3190 }
 0x413   :  { %v2426_v17 = vadd.f32 1.0, %v3191_v58  ;;  %v2530_v58 = vld [vmem:[%s6485_s13 + $0xe8] sm:$0xff] }
 0x414   :  { %2687 = vmatpush.msrb.mxu3 %v2530_v58  ;;  %v2543_v58 = vld [vmem:[%s6485_s13 + $0x150] sm:$0xff] }
 0x415   :  { %3192 = vrcp.f32 %v2426_v17  ;;  %vm2432_vm15 = vweird.f32 %v2426_v17  ;;  %v2438_v22 = vand.u32 2147483648, %v2426_v17  ;;  %v2436_v16 = vand.u32 2147483647, %v2426_v17 }
 0x416   :  { %2688 = vmatpush.msrb.mxu3 %v2526_v32  ;;  %v2540_v32 = vld [vmem:[%s6485_s13 + $0x138] sm:$0xff] }
 0x417   :  { %v2439_v30 = vor.u32 1.1754944e-38, %v2438_v22  ;;  %vm2437_vm1 = vcmp.eq.f32.partialorder %v2436_v16, 8.507059e+37  ;;  %v2589_v22 = vld [vmem:[%s6485_s13 + $0x2c0] sm:$0xff]  ;;  %v2590_v16 = vld [vmem:[%s6485_s13 + $0x2c8] sm:$0xff] }
 0x418   :  { %2689 = vmatpush.msrb.mxu3 %v2522_v51  ;;  %v2531_v51 = vld [vmem:[%s6485_s13 + $0xf0] sm:$0xff] }
 0x41a   :  { %2690 = vmatpush.msrb.mxu3 %v2518_v53  ;;  %v2591_v53 = vld [vmem:[%s6485_s13 + $0x2d0] sm:$0xff] }
 0x41b   :  { %v3193_v42 = vpop.eup %3192 }
 0x41c   :  { %v2428_v28 = vmul.f32 %v3193_v42, %v2426_v17  ;;  %vm2433_vm14 = vweird.f32 %v3193_v42  ;;  %v2594_v17 = vld [vmem:[%s6485_s13 + $0x2e8] sm:$0xff] }
 0x41d   :  { %vm5786_vm0 = vmor %vm2432_vm15, %vm2433_vm14  ;;  %2707 = vmatpush.msrb.mxu2 %v2594_v17  ;;  %v2607_v17 = vld [vmem:[%s6485_s13 + $0x350] sm:$0xff] }
 0x41e   :  { %v2429_v15 = vsub.f32 1.0, %v2428_v28 }
 0x41f   :  { %2708 = vmatpush.msrb.mxu2 %v2590_v16  ;;  %v2604_v16 = vld [vmem:[%s6485_s13 + $0x338] sm:$0xff] }
 0x420   :  { %v2430_v29 = vmul.f32 %v3193_v42, %v2429_v15  ;;  %v2525_v15 = vld [vmem:[%s6485_s13 + $0xc0] sm:$0xff] }
 0x421   :  { %2648 = vmatpush.msra.mxu0 %v2525_v15  ;;  %2709 = vmatpush.msrb.mxu2 %v2586_v23  ;;  %v2539_v15 = vld [vmem:[%s6485_s13 + $0x130] sm:$0xff] }
 0x422   :  { %v2431_v2 = vadd.f32 %v3193_v42, %v2430_v29  ;;  %v2595_v23 = vld [vmem:[%s6485_s13 + $0x2f0] sm:$0xff] }
 0x423   :  { %2649 = vmatpush.msra.mxu0 %v2521_v7  ;;  %2710 = vmatpush.msrb.mxu2 %v2582_v20  ;;  %v2536_v7 = vld [vmem:[%s6485_s13 + $0x118] sm:$0xff]  ;;  %v2523_v20 = vld [vmem:[%s6485_s13 + $0xb0] sm:$0xff] }
 0x424   :  { %v2435_v39 = vsel %vm5786_vm0, %v3193_v42, %v2431_v2  ;;  %v2585_v2 = vld [vmem:[%s6485_s13 + $0x2a0] sm:$0xff] }
 0x425   :  { %v2440_v38 = vsel %vm2437_vm1, %v2439_v30, %v2435_v39  ;;  %2650 = vmatpush.msra.mxu0 %v2517_v4  ;;  %v2532_v4 = vld [vmem:[%s6485_s13 + $0xf8] sm:$0xff] }
 0x426   :  { %v2443_v35 = vrot.slane %v2440_v38, 1  ;;  %v2444_v18 = vperm.slane %v2440_v38, 0  ;;  %v2514_v38 = vld [vmem:[%s6485_s13 + $0x68] sm:$0xff] }
 0x427   :  { %2651 = vmatpush.msra.mxu0 %v2513_v1  ;;  %2691 = vmatpush.msrb.mxu3 %v2514_v38  ;;  %v2587_v1 = vld [vmem:[%s6485_s13 + $0x2b0] sm:$0xff]  ;;  %v2588_v38 = vld [vmem:[%s6485_s13 + $0x2b8] sm:$0xff] }
 0x428   :  { %v2445_v14 = vperm.slane %v2443_v35, 0  ;;  %v5847_v21 = vmul.f32 %v2444_v18, %v5768_v49  ;;  %v2605_v49 = vld [vmem:[%s6485_s13 + $0x340] sm:$0xff]  ;;  %v2578_v35 = vld [vmem:[%s6485_s13 + $0x268] sm:$0xff] }
 0x429   :  { %2664 = vmatpush.msra.mxu1 %v2605_v49  ;;  %v2509_v18 = vld [vmem:[%s6485_s13 + $0x40] sm:$0xff]  ;;  %2711 = vmatpush.msrb.mxu2 %v2578_v35  ;;  %v2520_v35 = vld [vmem:[%s6485_s13 + $0x98] sm:$0xff] }
 0x42a   :  { %v5862_v50 = vmul.f32 %v2445_v14, %v5774_v24  ;;  %v2455_v62 = vrot.slane %v5847_v21, 1  ;;  %v2601_v24 = vld [vmem:[%s6485_s13 + $0x320] sm:$0xff]  ;;  %v2476_v47 = vrot.slane %v5847_v21, 5  ;;  %v2472_v48 = vrot.slane %v5847_v21, 4  ;;  %v2574_v14 = vld [vmem:[%s6485_s13 + $0x248] sm:$0xff]  ;;  %2652 = vmatpush.msra.mxu0 %v2509_v18  ;;  %2692 = vmatpush.msrb.mxu3 %v2510_v12  ;;  %v2584_v18 = vld [vmem:[%s6485_s13 + $0x298] sm:$0xff] }
 0x42b   :  { %2665 = vmatpush.msra.mxu1 %v2601_v24  ;;  %v2460_v42 = vrot.slane %v5847_v21, 2  ;;  %v2482_v28 = vrot.slane %v5847_v21, 6  ;;  %v2466_v37 = vrot.slane %v5847_v21, 3  ;;  %v2488_v10 = vrot.slane %v5847_v21, 7  ;;  %2712 = vmatpush.msrb.mxu2 %v2574_v14  ;;  %v2627_v24 = vld [vmem:[%s6485_s13 + $0x3f0] sm:$0xff] }
 0x42c   :  { %v2477_v8 = vrot.slane %v5862_v50, 4  ;;  %v2456_v52 = vsel %vm2398_vm12, %v5862_v50, %v2455_v62  ;;  %v2473_v40 = vrot.slane %v5862_v50, 3  ;;  %v2461_v6 = vrot.slane %v5862_v50, 1  ;;  %v2565_v62 = vld [vmem:[%s6485_s13 + $0x200] sm:$0xff]  ;;  %2693 = vmatpush.msrb.mxu3 %v2506_v56  ;;  %v2579_v12 = vld [vmem:[%s6485_s13 + $0x270] sm:$0xff]  ;;  %v2576_v56 = vld [vmem:[%s6485_s13 + $0x258] sm:$0xff] }
 0x42d   :  { %v2483_v3 = vrot.slane %v5862_v50, 5  ;;  %v2452_v13 = vrot.slane %v5862_v50, 7  ;;  %2666 = vmatpush.msra.mxu1 %v2597_v54  ;;  %v2467_v19 = vrot.slane %v5862_v50, 2  ;;  %v2489_v39 = vrot.slane %v5862_v50, 6  ;;  %v2501_v50 = vld [vmem:[%s6485_s13] sm:$0xff]  ;;  %2713 = vmatpush.msrb.mxu2 %v2570_v43  ;;  %v2619_v54 = vld [vmem:[%s6485_s13 + $0x3b0] sm:$0xff] }
 0x42e   :  { %v2478_v33 = vsel %vm2398_vm12, %v2477_v8, %v2476_v47  ;;  %v5911_v26 = vsel %vm2398_vm12, %v2473_v40, %v2472_v48  ;;  %v2462_v45 = vsel %vm2398_vm12, %v2461_v6, %v2460_v42  ;;  %v2564_v47 = vld [vmem:[%s6485_s13 + $0x1f8] sm:$0xff]  ;;  %2694 = vmatpush.msrb.mxu3 %v2502_v34  ;;  %v2511_v14 = vld [vmem:[%s6485_s13 + $0x50] sm:$0xff] }
 0x42f   :  { %v3166_v0 = vpack.i.bf16 %v2478_v33, %v2456_v52  ;;  %v5930_v29 = vsel %vm2398_vm12, %v2452_v13, %v5847_v21  ;;  %2667 = vmatpush.msra.mxu1 %v2593_v11  ;;  %v2484_v27 = vsel %vm2398_vm12, %v2483_v3, %v2482_v28  ;;  %v2468_v46 = vsel %vm2398_vm12, %v2467_v19, %v2466_v37  ;;  %v2505_v21 = vld [vmem:[%s6485_s13 + $0x20] sm:$0xff]  ;;  %v2628_v8 = vld [vmem:[%s6485_s13 + $0x3f8] sm:$0xff]  ;;  %v2555_v33 = vld [vmem:[%s6485_s13 + $0x1b0] sm:$0xff] }
 0x430   :  { %v3171_v30 = vpack.i.bf16 %v2484_v27, %v2462_v45  ;;  %v2490_v55 = vsel %vm2398_vm12, %v2489_v39, %v2488_v10  ;;  %2653 = vmatpush.msra.mxu0 %v2505_v21  ;;  %2714 = vmatpush.msrb.mxu2 %v2566_v25  ;;  %v2624_v52 = vld [vmem:[%s6485_s13 + $0x3d8] sm:$0xff]  ;;  %v2547_v3 = vld [vmem:[%s6485_s13 + $0x170] sm:$0xff] }
 0x431   :  { %3167 = vrot.lane.b32.xlu1 %v3166_v0, %s3248_s3  ;;  %2668 = vmatpush.msra.mxu1 %v2589_v22  ;;  %v3176_v49 = vpack.i.bf16 %v2490_v55, %v2468_v46  ;;  %v2556_v48 = vld [vmem:[%s6485_s13 + $0x1b8] sm:$0xff]  ;;  %v2551_v0 = vld [vmem:[%s6485_s13 + $0x190] sm:$0xff] }
 0x432   :  { %2654 = vmatpush.msra.mxu0 %v2501_v50  ;;  %2759 = vmatpush.msra.mxu3 %v2564_v47  ;;  %v2620_v40 = vld [vmem:[%s6485_s13 + $0x3b8] sm:$0xff]  ;;  %v2603_v22 = vld [vmem:[%s6485_s13 + $0x330] sm:$0xff] }
 0x433   :  { %2669 = vmatpush.msra.mxu1 %v2585_v2  ;;  %2779 = vmatpush.msra.mxu2 %v2628_v8  ;;  %v2616_v6 = vld [vmem:[%s6485_s13 + $0x398] sm:$0xff]  ;;  %v2535_v45 = vld [vmem:[%s6485_s13 + $0x110] sm:$0xff] }
 0x434   :  { %2719 = vmatpush.msrb.mxu0 %v2563_v59  ;;  %2760 = vmatpush.msra.mxu3 %v2560_v9  ;;  %v2548_v11 = vld [vmem:[%s6485_s13 + $0x178] sm:$0xff]  ;;  %v2599_v27 = vld [vmem:[%s6485_s13 + $0x310] sm:$0xff] }
 0x435   :  { %2670 = vmatpush.msra.mxu1 %v2581_v63  ;;  %2780 = vmatpush.msra.mxu2 %v2624_v52  ;;  %v2612_v13 = vld [vmem:[%s6485_s13 + $0x378] sm:$0xff]  ;;  %v2527_v63 = vld [vmem:[%s6485_s13 + $0xd0] sm:$0xff] }
 0x436   :  { %2720 = vmatpush.msrb.mxu0 %v2559_v57  ;;  %2761 = vmatpush.msra.mxu3 %v2556_v48  ;;  %v2544_v42 = vld [vmem:[%s6485_s13 + $0x158] sm:$0xff]  ;;  %v2519_v37 = vld [vmem:[%s6485_s13 + $0x90] sm:$0xff] }
 0x437   :  { %2671 = vmatpush.msra.mxu1 %v2577_v36  ;;  %2781 = vmatpush.msra.mxu2 %v2620_v40  ;;  %v2608_v28 = vld [vmem:[%s6485_s13 + $0x358] sm:$0xff]  ;;  %v2583_v10 = vld [vmem:[%s6485_s13 + $0x290] sm:$0xff] }
 0x438   :  { %2721 = vmatpush.msrb.mxu0 %v2555_v33  ;;  %2762 = vmatpush.msra.mxu3 %v2552_v44  ;;  %v2600_v2 = vld [vmem:[%s6485_s13 + $0x318] sm:$0xff]  ;;  %v2575_v21 = vld [vmem:[%s6485_s13 + $0x250] sm:$0xff] }
 0x439   :  { %3172 = vrot.lane.b32.xlu1 %v3171_v30, %s3246_s29  ;;  %2672 = vmatpush.msra.mxu1 %v2573_v61  ;;  %v2596_v30 = vld [vmem:[%s6485_s13 + $0x2f8] sm:$0xff]  ;;  %v2515_v61 = vld [vmem:[%s6485_s13 + $0x70] sm:$0xff] }
 0x43a   :  { %2722 = vmatpush.msrb.mxu0 %v2551_v0  ;;  %2782 = vmatpush.msra.mxu2 %v2616_v6  ;;  %v2528_v19 = vld [vmem:[%s6485_s13 + $0xd8] sm:$0xff]  ;;  %v2507_v43 = vld [vmem:[%s6485_s13 + $0x30] sm:$0xff] }
 0x43b   :  { %2673 = vmatpush.msra.mxu1 %v2569_v31  ;;  %2763 = vmatpush.msra.mxu3 %v2548_v11  ;;  %v2592_v39 = vld [vmem:[%s6485_s13 + $0x2d8] sm:$0xff]  ;;  %v2503_v34 = vld [vmem:[%s6485_s13 + $0x10] sm:$0xff] }
 0x43c   :  { %2723 = vmatpush.msrb.mxu0 %v2547_v3  ;;  %2783 = vmatpush.msra.mxu2 %v2612_v13  ;;  %v2524_v36 = vld [vmem:[%s6485_s13 + $0xb8] sm:$0xff]  ;;  %v2567_v25 = vld [vmem:[%s6485_s13 + $0x210] sm:$0xff] }
 0x43d   :  { %2674 = vmatpush.msra.mxu1 %v2565_v62  ;;  %2764 = vmatpush.msra.mxu3 %v2544_v42  ;;  %v2516_v46 = vld [vmem:[%s6485_s13 + $0x78] sm:$0xff]  ;;  %v2817_v13 = vld [vmem:[%s6487_s15 + $0x70] sm:$0xff] }
 0x43e   :  { %2724 = vmatpush.msrb.mxu0 %v2543_v58  ;;  %2784 = vmatpush.msra.mxu2 %v2608_v28  ;;  %v2580_v55 = vld [vmem:[%s6485_s13 + $0x278] sm:$0xff]  ;;  %v2833_v58 = vld [vmem:[%s6487_s15 + $0xf0] sm:$0xff]  ;;  %v2816_v28 = vld [vmem:[%s6487_s15 + $0x68] sm:$0xff] }
 0x43f   :  { %2739 = vmatpush.msrb.mxu1 %v2627_v24  ;;  %2765 = vmatpush.msra.mxu3 %v2540_v32  ;;  %v2512_v31 = vld [vmem:[%s6485_s13 + $0x58] sm:$0xff]  ;;  %v2865_v42 = vld [vmem:[%s6487_s15 + $0x1f0] sm:$0xff]  ;;  %v2864_v32 = vld [vmem:[%s6487_s15 + $0x1e8] sm:$0xff] }
 0x440   :  { %2725 = vmatpush.msrb.mxu0 %v2539_v15  ;;  %2785 = vmatpush.msra.mxu2 %v2604_v16  ;;  %v2508_v50 = vld [vmem:[%s6485_s13 + $0x38] sm:$0xff]  ;;  %v2832_v15 = vld [vmem:[%s6487_s15 + $0xe8] sm:$0xff]  ;;  %v2815_v16 = vld [vmem:[%s6487_s15 + $0x60] sm:$0xff] }
 0x441   :  { %3177 = vrot.lane.b32.xlu1 %v3176_v49, %s3249_s24  ;;  %2740 = vmatpush.msrb.mxu1 %v2623_v60  ;;  %v2571_v49 = vld [vmem:[%s6485_s13 + $0x230] sm:$0xff]  ;;  %v2572_v62 = vld [vmem:[%s6485_s13 + $0x238] sm:$0xff] }
 0x442   :  { %2726 = vmatpush.msrb.mxu0 %v2535_v45  ;;  %2766 = vmatpush.msra.mxu3 %v2536_v7  ;;  %v2504_v59 = vld [vmem:[%s6485_s13 + $0x18] sm:$0xff]  ;;  %v2831_v45 = vld [vmem:[%s6487_s15 + $0xe0] sm:$0xff] }
 0x443   :  { %2741 = vmatpush.msrb.mxu1 %v2619_v54  ;;  %2786 = vmatpush.msra.mxu2 %v2600_v2  ;;  %v2568_v24 = vld [vmem:[%s6485_s13 + $0x218] sm:$0xff]  ;;  %v2863_v7 = vld [vmem:[%s6487_s15 + $0x1e0] sm:$0xff] }
 0x444   :  { %2727 = vmatpush.msrb.mxu0 %v2531_v51  ;;  %2767 = vmatpush.msra.mxu3 %v2532_v4  ;;  %v2834_v11 = vld [vmem:[%s6487_s15 + $0xf8] sm:$0xff] }
 0x445   :  { %2742 = vmatpush.msrb.mxu1 %v2615_v41  ;;  %2787 = vmatpush.msra.mxu2 %v2596_v30  ;;  %v2814_v2 = vld [vmem:[%s6487_s15 + $0x58] sm:$0xff]  ;;  %v2813_v30 = vld [vmem:[%s6487_s15 + $0x50] sm:$0xff] }
 0x446   :  { %2728 = vmatpush.msrb.mxu0 %v2527_v63  ;;  %2768 = vmatpush.msra.mxu3 %v2528_v19  ;;  %v2830_v51 = vld [vmem:[%s6487_s15 + $0xd8] sm:$0xff]  ;;  %v2829_v63 = vld [vmem:[%s6487_s15 + $0xd0] sm:$0xff]  ;;  %v2812_v19 = vld [vmem:[%s6487_s15 + $0x48] sm:$0xff] }
 0x447   :  { %2743 = vmatpush.msrb.mxu1 %v2611_v5  ;;  %2788 = vmatpush.msra.mxu2 %v2592_v39  ;;  %v2818_v5 = vld [vmem:[%s6487_s15 + $0x78] sm:$0xff]  ;;  %v2828_v39 = vld [vmem:[%s6487_s15 + $0xc8] sm:$0xff] }
 0x448   :  { %2729 = vmatpush.msrb.mxu0 %v2523_v20  ;;  %2769 = vmatpush.msra.mxu3 %v2524_v36  ;;  %v2862_v4 = vld [vmem:[%s6487_s15 + $0x1d8] sm:$0xff]  ;;  %v2844_v20 = vld [vmem:[%s6487_s15 + $0x148] sm:$0xff]  ;;  %v2827_v36 = vld [vmem:[%s6487_s15 + $0xc0] sm:$0xff] }
 0x449   :  { %2744 = vmatpush.msrb.mxu1 %v2607_v17  ;;  %2789 = vmatpush.msra.mxu2 %v2588_v38  ;;  %v2849_v17 = vld [vmem:[%s6487_s15 + $0x170] sm:$0xff]  ;;  %v2843_v38 = vld [vmem:[%s6487_s15 + $0x140] sm:$0xff] }
 0x44a   :  { %2730 = vmatpush.msrb.mxu0 %v2519_v37  ;;  %2770 = vmatpush.msra.mxu3 %v2520_v35  ;;  %v2810_v37 = vld [vmem:[%s6487_s15 + $0x38] sm:$0xff]  ;;  %v2809_v35 = vld [vmem:[%s6487_s15 + $0x30] sm:$0xff] }
 0x44b   :  { %2745 = vmatpush.msrb.mxu1 %v2603_v22  ;;  %2790 = vmatpush.msra.mxu2 %v2584_v18  ;;  %v2848_v22 = vld [vmem:[%s6487_s15 + $0x168] sm:$0xff] }
 0x44c   :  { %2731 = vmatpush.msrb.mxu0 %v2515_v61  ;;  %2771 = vmatpush.msra.mxu3 %v2516_v46  ;;  %v2808_v18 = vld [vmem:[%s6487_s15 + $0x28] sm:$0xff]  ;;  %v2807_v61 = vld [vmem:[%s6487_s15 + $0x20] sm:$0xff]  ;;  %v2825_v46 = vld [vmem:[%s6487_s15 + $0xb0] sm:$0xff] }
 0x44d   :  { %2746 = vmatpush.msrb.mxu1 %v2599_v27  ;;  %2791 = vmatpush.msra.mxu2 %v2580_v55  ;;  %v2847_v27 = vld [vmem:[%s6487_s15 + $0x160] sm:$0xff]  ;;  %v2842_v55 = vld [vmem:[%s6487_s15 + $0x138] sm:$0xff] }
 0x44e   :  { %2732 = vmatpush.msrb.mxu0 %v2511_v14  ;;  %2772 = vmatpush.msra.mxu3 %v2512_v31  ;;  %v2861_v14 = vld [vmem:[%s6487_s15 + $0x1d0] sm:$0xff]  ;;  %v2824_v31 = vld [vmem:[%s6487_s15 + $0xa8] sm:$0xff] }
 0x44f   :  { %2747 = vmatpush.msrb.mxu1 %v2595_v23  ;;  %2792 = vmatpush.msra.mxu2 %v2576_v56  ;;  %v2846_v23 = vld [vmem:[%s6487_s15 + $0x158] sm:$0xff]  ;;  %v2841_v56 = vld [vmem:[%s6487_s15 + $0x130] sm:$0xff] }
 0x450   :  { %2733 = vmatpush.msrb.mxu0 %v2507_v43  ;;  %2773 = vmatpush.msra.mxu3 %v2508_v50  ;;  %v2860_v43 = vld [vmem:[%s6487_s15 + $0x1c8] sm:$0xff]  ;;  %v2823_v50 = vld [vmem:[%s6487_s15 + $0xa0] sm:$0xff] }
 0x451   :  { %2748 = vmatpush.msrb.mxu1 %v2591_v53  ;;  %2793 = vmatpush.msra.mxu2 %v2572_v62  ;;  %v2845_v53 = vld [vmem:[%s6487_s15 + $0x150] sm:$0xff]  ;;  %v2840_v62 = vld [vmem:[%s6487_s15 + $0x128] sm:$0xff] }
 0x452   :  { %2734 = vmatpush.msrb.mxu0 %v2503_v34  ;;  %2774 = vmatpush.msra.mxu3 %v2504_v59  ;;  %v2859_v34 = vld [vmem:[%s6487_s15 + $0x1c0] sm:$0xff]  ;;  %v2822_v59 = vld [vmem:[%s6487_s15 + $0x98] sm:$0xff] }
 0x453   :  { %2749 = vmatpush.msrb.mxu1 %v2587_v1  ;;  %2794 = vmatpush.msra.mxu2 %v2568_v24  ;;  %v2811_v1 = vld [vmem:[%s6487_s15 + $0x40] sm:$0xff] }
 0x454   :  { %v2839_v24 = vld [vmem:[%s6487_s15 + $0x120] sm:$0xff] }
 0x455   :  { %2750 = vmatpush.msrb.mxu1 %v2583_v10  ;;  %v2826_v10 = vld [vmem:[%s6487_s15 + $0xb8] sm:$0xff] }
 0x457   :  { %2751 = vmatpush.msrb.mxu1 %v2579_v12  ;;  %v2806_v12 = vld [vmem:[%s6487_s15 + $0x18] sm:$0xff] }
 0x459   :  { %2752 = vmatpush.msrb.mxu1 %v2575_v21  ;;  %v2805_v21 = vld [vmem:[%s6487_s15 + $0x10] sm:$0xff] }
 0x45b   :  { %2753 = vmatpush.msrb.mxu1 %v2571_v49  ;;  %v2804_v49 = vld [vmem:[%s6487_s15 + $0x8] sm:$0xff] }
 0x45d   :  { %2754 = vmatpush.msrb.mxu1 %v2567_v25  ;;  %v2803_v25 = vld [vmem:[%s6487_s15] sm:$0xff] }
 0x4a3   :  { %v3168_v47 = vpop.permute.xlu1 %3167 }
 0x4a4   :  { %v3170_v57 = vunpack.i.h.bf16 %v3168_v47  ;;  %v3169_v60 = vunpack.i.l.bf16 %v3168_v47  ;;  %v2858_v47 = vld [vmem:[%s6487_s15 + $0x1b8] sm:$0xff] }
 0x4a6   :  { %v2498_v54 = vsel %vm2366_vm10, %v5911_v26, %v3170_v57  ;;  %v2494_v48 = vsel %vm2366_vm10, %v5930_v29, %v3169_v60  ;;  %v2850_v26 = vld [vmem:[%s6487_s15 + $0x178] sm:$0xff]  ;;  %v2857_v60 = vld [vmem:[%s6487_s15 + $0x1b0] sm:$0xff] }
 0x4a7   :  { %v2866_v29 = vld [vmem:[%s6487_s15 + $0x1f8] sm:$0xff] }
 0x4a8   :  { %v2838_v57 = vld [vmem:[%s6487_s15 + $0x118] sm:$0xff] }
 0x4ab   :  { %v3173_v8 = vpop.permute.xlu1 %3172 }
 0x4ac   :  { %v3175_v9 = vunpack.i.h.bf16 %v3173_v8  ;;  %v3174_v52 = vunpack.i.l.bf16 %v3173_v8  ;;  %v2821_v8 = vld [vmem:[%s6487_s15 + $0x90] sm:$0xff] }
 0x4ae   :  { %v2495_v41 = vsel %vm310_vm4, %v2494_v48, %v3174_v52  ;;  %v2499_v44 = vsel %vm310_vm4, %v2498_v54, %v3175_v9  ;;  %v2820_v9 = vld [vmem:[%s6487_s15 + $0x88] sm:$0xff]  ;;  %v2837_v52 = vld [vmem:[%s6487_s15 + $0x110] sm:$0xff]  ;;  %v2819_v54 = vld [vmem:[%s6487_s15 + $0x80] sm:$0xff] }
 0x4af   :  { %v2836_v48 = vld [vmem:[%s6487_s15 + $0x108] sm:$0xff] }
 0x4b3   :  { %v3178_v33 = vpop.permute.xlu1 %3177 }
 0x4b4   :  { %v3180_v40 = vunpack.i.h.bf16 %v3178_v33  ;;  %v3179_v0 = vunpack.i.l.bf16 %v3178_v33  ;;  %v2856_v33 = vld [vmem:[%s6487_s15 + $0x1a8] sm:$0xff] }
 0x4b6   :  { %v2497_v6 = vsel %vm2496_vm2, %v2495_v41, %v3179_v0  ;;  %v2500_v3 = vsel %vm2496_vm2, %v2499_v44, %v3180_v40  ;;  %v2855_v40 = vld [vmem:[%s6487_s15 + $0x1a0] sm:$0xff]  ;;  %v2854_v41 = vld [vmem:[%s6487_s15 + $0x198] sm:$0xff]  ;;  %v2853_v44 = vld [vmem:[%s6487_s15 + $0x190] sm:$0xff] }
 0x4b7   :  { %2655 = vmatmul.f32.vlgmr.msra.gmra.mxu0 %v2497_v6  ;;  %2675 = vmatmul.f32.vlgmr.msra.gmra.mxu1 %v2500_v3  ;;  %v2835_v0 = vld [vmem:[%s6487_s15 + $0x100] sm:$0xff] }
 0x4b8   :  { %2695 = vmatmul.f32.vlgmr.msrb.gmra.mxu3 %v2497_v6  ;;  %2715 = vmatmul.f32.vlgmr.msrb.gmra.mxu2 %v2500_v3 }
 0x4b9   :  { %2871 = vmatpush.msra.mxu0 %v2818_v5  ;;  %2891 = vmatpush.msra.mxu1 %v2834_v11  ;;  %v2968_v5 = vld [vmem:[%s6489_s17 + $0x78] sm:$0xff]  ;;  %v2967_v11 = vld [vmem:[%s6489_s17 + $0x70] sm:$0xff] }
 0x4ba   :  { %2911 = vmatpush.msrb.mxu3 %v2850_v26  ;;  %2931 = vmatpush.msrb.mxu2 %v2866_v29  ;;  %v2966_v26 = vld [vmem:[%s6489_s17 + $0x68] sm:$0xff]  ;;  %v2629_v29 = vld [vmem:[%s6486_s14] sm:$0xf] }
 0x4bb   :  { %2872 = vmatpush.msra.mxu0 %v2817_v13  ;;  %2892 = vmatpush.msra.mxu1 %v2833_v58  ;;  %v2631_v13 = vperm.slane %v2629_v29, 0 }
 0x4bc   :  { %2912 = vmatpush.msrb.mxu3 %v2849_v17  ;;  %2932 = vmatpush.msrb.mxu2 %v2865_v42 }
 0x4bd   :  { %2873 = vmatpush.msra.mxu0 %v2816_v28  ;;  %2893 = vmatpush.msra.mxu1 %v2832_v15  ;;  %v2632_v15 = vperm.slane %v2629_v29, 1 }
 0x4be   :  { %2913 = vmatpush.msrb.mxu3 %v2848_v22  ;;  %2933 = vmatpush.msrb.mxu2 %v2864_v32  ;;  %v2633_v32 = vperm.slane %v2629_v29, 2 }
 0x4bf   :  { %2735 = vmatmul.f32.vlgmr.msrb.gmra.mxu0 %v2497_v6  ;;  %2755 = vmatmul.f32.vlgmr.msrb.gmra.mxu1 %v2500_v3 }
 0x4c0   :  { %2775 = vmatmul.f32.vlgmr.msra.gmra.mxu3 %v2497_v6  ;;  %2795 = vmatmul.f32.vlgmr.msra.gmra.mxu2 %v2500_v3  ;;  %v2852_v6 = vld [vmem:[%s6487_s15 + $0x188] sm:$0xff]  ;;  %v2851_v3 = vld [vmem:[%s6487_s15 + $0x180] sm:$0xff] }
 0x4c1   :  { %2874 = vmatpush.msra.mxu0 %v2815_v16  ;;  %2894 = vmatpush.msra.mxu1 %v2831_v45 }
 0x4c2   :  { %2914 = vmatpush.msrb.mxu3 %v2847_v27  ;;  %2934 = vmatpush.msrb.mxu2 %v2863_v7 }
 0x4c3   :  { %2875 = vmatpush.msra.mxu0 %v2814_v2  ;;  %2895 = vmatpush.msra.mxu1 %v2830_v51 }
 0x4c4   :  { %2915 = vmatpush.msrb.mxu3 %v2846_v23  ;;  %2935 = vmatpush.msrb.mxu2 %v2862_v4 }
 0x4c5   :  { %2876 = vmatpush.msra.mxu0 %v2813_v30  ;;  %2896 = vmatpush.msra.mxu1 %v2829_v63  ;;  %v2634_v63 = vperm.slane %v2629_v29, 3 }
 0x4c6   :  { %2916 = vmatpush.msrb.mxu3 %v2845_v53  ;;  %2936 = vmatpush.msrb.mxu2 %v2861_v14  ;;  %v2956_v14 = vld [vmem:[%s6489_s17 + $0x18] sm:$0xff] }
 0x4c7   :  { %2877 = vmatpush.msra.mxu0 %v2812_v19  ;;  %2897 = vmatpush.msra.mxu1 %v2828_v39 }
 0x4c8   :  { %2917 = vmatpush.msrb.mxu3 %v2844_v20  ;;  %2937 = vmatpush.msrb.mxu2 %v2860_v43  ;;  %v3186_v43 = vld [vmem:[%s6488_s16] ss:$0 sm:$0xff] }
 0x4c9   :  { %2878 = vmatpush.msra.mxu0 %v2811_v1  ;;  %2898 = vmatpush.msra.mxu1 %v2827_v36 }
 0x4ca   :  { %2918 = vmatpush.msrb.mxu3 %v2843_v38  ;;  %2938 = vmatpush.msrb.mxu2 %v2859_v34  ;;  %v2965_v38 = vld [vmem:[%s6489_s17 + $0x60] sm:$0xff] }
 0x4cb   :  { %2879 = vmatpush.msra.mxu0 %v2810_v37  ;;  %2899 = vmatpush.msra.mxu1 %v2826_v10  ;;  %v2964_v37 = vld [vmem:[%s6489_s17 + $0x58] sm:$0xff]  ;;  %v2963_v10 = vld [vmem:[%s6489_s17 + $0x50] sm:$0xff] }
 0x4cc   :  { %2919 = vmatpush.msrb.mxu3 %v2842_v55  ;;  %2939 = vmatpush.msrb.mxu2 %v2858_v47  ;;  %v2957_v55 = vld [vmem:[%s6489_s17 + $0x20] sm:$0xff] }
 0x4cd   :  { %2880 = vmatpush.msra.mxu0 %v2809_v35  ;;  %2900 = vmatpush.msra.mxu1 %v2825_v46  ;;  %v2962_v35 = vld [vmem:[%s6489_s17 + $0x48] sm:$0xff] }
 0x4ce   :  { %2920 = vmatpush.msrb.mxu3 %v2841_v56  ;;  %2940 = vmatpush.msrb.mxu2 %v2857_v60  ;;  %v2958_v46 = vld [vmem:[%s6489_s17 + $0x28] sm:$0xff]  ;;  %v2953_v56 = vld [vmem:[%s6489_s17] sm:$0xff] }
 0x4cf   :  { %2881 = vmatpush.msra.mxu0 %v2808_v18  ;;  %2901 = vmatpush.msra.mxu1 %v2824_v31  ;;  %v2961_v18 = vld [vmem:[%s6489_s17 + $0x40] sm:$0xff]  ;;  %v2954_v31 = vld [vmem:[%s6489_s17 + $0x8] sm:$0xff] }
 0x4d0   :  { %2921 = vmatpush.msrb.mxu3 %v2840_v62  ;;  %2941 = vmatpush.msrb.mxu2 %v2856_v33 }
 0x4d1   :  { %2882 = vmatpush.msra.mxu0 %v2807_v61  ;;  %2902 = vmatpush.msra.mxu1 %v2823_v50  ;;  %v2960_v61 = vld [vmem:[%s6489_s17 + $0x38] sm:$0xff] }
 0x4d2   :  { %2922 = vmatpush.msrb.mxu3 %v2839_v24  ;;  %2942 = vmatpush.msrb.mxu2 %v2855_v40 }
 0x4d3   :  { %2883 = vmatpush.msra.mxu0 %v2806_v12  ;;  %2903 = vmatpush.msra.mxu1 %v2822_v59  ;;  %v2959_v12 = vld [vmem:[%s6489_s17 + $0x30] sm:$0xff] }
 0x4d4   :  { %2923 = vmatpush.msrb.mxu3 %v2838_v57  ;;  %2943 = vmatpush.msrb.mxu2 %v2854_v41  ;;  %v3187_v57 = vld [vmem:[%s6490_s18] ss:$0 sm:$0xff] }
 0x4d5   :  { %2884 = vmatpush.msra.mxu0 %v2805_v21  ;;  %2904 = vmatpush.msra.mxu1 %v2821_v8  ;;  %v2955_v21 = vld [vmem:[%s6489_s17 + $0x10] sm:$0xff]  ;;  %s3001_s17 = sshll.u32 %s6491_s19, 4  ;;  %s3002_s17 = int_to_ptr.hbm [resolvable:$true] %s3001_s17 }
 0x4d6   :  { %2924 = vmatpush.msrb.mxu3 %v2837_v52  ;;  %2944 = vmatpush.msrb.mxu2 %v2853_v44 }
 0x4d7   :  { %2885 = vmatpush.msra.mxu0 %v2804_v49  ;;  %2905 = vmatpush.msra.mxu1 %v2820_v9 }
 0x4d8   :  { %2925 = vmatpush.msrb.mxu3 %v2836_v48  ;;  %2945 = vmatpush.msrb.mxu2 %v2852_v6 }
 0x4d9   :  { %2886 = vmatpush.msra.mxu0 %v2803_v25  ;;  %2906 = vmatpush.msra.mxu1 %v2819_v54 }
 0x4da   :  { %2926 = vmatpush.msrb.mxu3 %v2835_v0  ;;  %2946 = vmatpush.msrb.mxu2 %v2851_v3 }
 0x4db   :  { %2973 = vmatpush.msrb.mxu0 %v2968_v5 }
 0x4dd   :  { %2974 = vmatpush.msrb.mxu0 %v2967_v11 }
 0x4df   :  { %2975 = vmatpush.msrb.mxu0 %v2966_v26 }
 0x4e1   :  { %2976 = vmatpush.msrb.mxu0 %v2965_v38 }
 0x4e3   :  { %2977 = vmatpush.msrb.mxu0 %v2964_v37 }
 0x4e5   :  { %2978 = vmatpush.msrb.mxu0 %v2963_v10 }
 0x4e7   :  { %2979 = vmatpush.msrb.mxu0 %v2962_v35 }
 0x4e9   :  { %2980 = vmatpush.msrb.mxu0 %v2961_v18 }
 0x4eb   :  { %2981 = vmatpush.msrb.mxu0 %v2960_v61 }
 0x4ed   :  { %2982 = vmatpush.msrb.mxu0 %v2959_v12 }
 0x4ef   :  { %2983 = vmatpush.msrb.mxu0 %v2958_v46 }
 0x4f1   :  { %2984 = vmatpush.msrb.mxu0 %v2957_v55 }
 0x4f3   :  { %2985 = vmatpush.msrb.mxu0 %v2956_v14 }
 0x4f5   :  { %2986 = vmatpush.msrb.mxu0 %v2955_v21 }
 0x4f7   :  { %2987 = vmatpush.msrb.mxu0 %v2954_v31 }
 0x4f9   :  { %2988 = vmatpush.msrb.mxu0 %v2953_v56 }
 0x534   :  { %v2656_v58 = vpop.f32.mrf.mxu0  ;;  %v2676_v17 = vpop.f32.mrf.mxu1 }
 0x535   :  { %v2657_v42 = vadd.f32 %v2656_v58, %v2631_v13 }
 0x537   :  { %v2677_v28 = vadd.f32 %v2676_v17, %v2657_v42 }
 0x539   :  { %v2799_v22 = vmax.f32 %v2677_v28, 0.0 }
 0x53b   :  { %v2696_v16 = vpop.f32.mrf.mxu3  ;;  %v2716_v45 = vpop.f32.mrf.mxu2  ;;  %2887 = vmatmul.f32.vlgmr.msra.gmra.mxu0 %v2799_v22 }
 0x53c   :  { %v2697_v27 = vadd.f32 %v2696_v16, %v2632_v15  ;;  %v2736_v7 = vpop.f32.mrf.mxu0  ;;  %v2756_v23 = vpop.f32.mrf.mxu1 }
 0x53d   :  { %v2737_v2 = vadd.f32 %v2736_v7, %v2633_v32 }
 0x53e   :  { %v2717_v51 = vadd.f32 %v2716_v45, %v2697_v27 }
 0x53f   :  { %v2757_v4 = vadd.f32 %v2756_v23, %v2737_v2 }
 0x540   :  { %v2800_v30 = vmax.f32 %v2717_v51, 0.0 }
 0x541   :  { %v2801_v53 = vmax.f32 %v2757_v4, 0.0 }
 0x542   :  { %2907 = vmatmul.f32.vlgmr.msra.gmra.mxu1 %v2800_v30 }
 0x543   :  { %v2776_v19 = vpop.f32.mrf.mxu3  ;;  %2927 = vmatmul.f32.vlgmr.msrb.gmra.mxu3 %v2801_v53  ;;  %v2796_v20 = vpop.f32.mrf.mxu2 }
 0x544   :  { %v2777_v39 = vadd.f32 %v2776_v19, %v2634_v63 }
 0x546   :  { %v2797_v1 = vadd.f32 %v2796_v20, %v2777_v39 }
 0x548   :  { %v2802_v36 = vmax.f32 %v2797_v1, 0.0 }
 0x54a   :  { %2947 = vmatmul.f32.vlgmr.msrb.gmra.mxu2 %v2802_v36 }
 0x5b8   :  { %v2888_v49 = vpop.f32.mrf.mxu0 }
 0x5b9   :  { %v2889_v62 = vadd.f32 %v3186_v43, %v2888_v49 }
 0x5bf   :  { %v2908_v50 = vpop.f32.mrf.mxu1 }
 0x5c0   :  { %v2909_v25 = vadd.f32 %v2908_v50, %v2889_v62 }
 0x5c6   :  { %v2928_v34 = vpop.f32.mrf.mxu3 }
 0x5c7   :  { %v2929_v59 = vadd.f32 %v2928_v34, %v2909_v25 }
 0x5cd   :  { %v2948_v24 = vpop.f32.mrf.mxu2 }
 0x5ce   :  { %v2949_v47 = vadd.f32 %v2948_v24, %v2929_v59 }
 0x5d0   :  { %v2951_v8 = vmax.f32 %v2949_v47, 0.0 }
 0x5d2   :  { %2952 = vst [vmem:[#allocation2] sm:$0x3] %v2951_v8  ;;  %2989 = vmatmul.f32.vlgmr.msrb.gmra.mxu0 %v2951_v8 }
 0x5d3   :  { %3004 = dma.vmem_to_hbm [thread:$0]  %s3000_s23, 32, %s3002_s17, [#allocation3]  }
 0x64f   :  { %v2990_v60 = vpop.f32.mrf.mxu0 }
 0x650   :  { %v2991_v9 = vadd.f32 %v3187_v57, %v2990_v60 }
 0x652   :  { %2993 = vst [vmem:[#allocation4] sm:$0x3] %v2991_v9 }
 0x653   :  { %3015 = dma.vmem_to_hbm [thread:$0]  %s3011_s2, 32, %s3013_s0, [#allocation5]  }
 0x654   :  { %3242 = dma.done.wait [#allocation3], 32  }
 0x655   :  { %3243 = vsyncadd [#allocation3], 4294967264 }
 0x656   :  { %3244 = dma.done.wait [#allocation5], 32  }
 0x657   :  { %3245 = vsyncadd [#allocation5], 4294967264 }
 0x658   :  { %3024 = vsyncpa [#allocation3], 1 }
 0x659   :  { %3025 = vsyncpa [#allocation5], 1 }

</bundles_post_ra>
